<compile_context>
chip_gen: v7x
topology: tpu7x:2x2x1
jax: 0.10.0
libtpu: 0.0.40
codegen_flags: <defaults>
</compile_context>

<pallas_src>
import math

import jax
import jax.numpy as jnp
from jax.experimental import pallas as pl
from jax.experimental.pallas import tpu as pltpu

EPS = 1e-6  # config.rmsnorm_eps
F32 = jnp.float32
BF16 = jnp.bfloat16


# ----------------------------- math helpers (in-kernel) ----------------------------

def _rmsnorm(x, w):
    # Reference RMSNorm: norm = ||x||_2 (keepdim); rms = sqrt(mean(norm^2 over the
    # size-1 axis) + eps) == sqrt(sum(x^2) + eps).  out = weight * x / rms
    return w * x / jnp.sqrt(jnp.sum(x * x, axis=-1, keepdims=True) + EPS)


def _gelu(x):  # exact (erf) GELU, like torch.nn.GELU()
    return 0.5 * x * (1.0 + jax.lax.erf(x * (1.0 / math.sqrt(2.0))))


def _silu(x):
    return x * jax.nn.sigmoid(x)


# ----------------------------- fused forward ----------------------------------------

def gamba_forward(params, input_ids, attention_mask, *, num_labels):
    # TODO(synk): pretrained mamba-370m LM stub -> deterministic embedding lookup (XLA).
    emb = jnp.take(params["embed_table"], input_ids, axis=0)       # (B, S, MH) f32
    mask = attention_mask.astype(F32)                              # (B, S)

    B = input_ids.shape[0]
    H = params["lstm2_wih"].shape[1]                               # lstm hidden
    d_model = params["m_inpw"].shape[2]
    d_inner = params["m_Wd"].shape[-1]
    num_cycles = params["m_inpw"].shape[0]
    out_w = params["fc_w"].shape[-1]                               # 128-lane padded

    def kernel(emb_ref, mask_ref,
               l1w, l1b, l2wih, l2whh, l2b,
               m_inpw, m_Wd, m_WB, m_WC, m_outw, m_w1, m_w2, m_v256, m_v128, m_b1,
               a_Wvo, a_w1, a_w2, a_v128, a_b1,
               fc_w, fc_b,
               o_ref, x_ref):
        c = pl.program_id(0)

        # ---------------- stage 0 (runs once): masked mean pooling + Bi-LSTM --------
        @pl.when(c == 0)
        def _init():
            e = emb_ref[...]                                       # (B, S, MH)
            mk = mask_ref[...]                                     # (B, S)
            pooled = (jnp.sum(mk[:, :, None] * e, axis=1)
                      / jnp.sum(mk, axis=1, keepdims=True))        # (B, MH); no clamp

            # rnn1 (seq_len == 1, zero state): fwd|bwd fused into one matmul,
            # sigmoid/tanh evaluated once on the full (B, 8H) gate vector.
            g1 = (jnp.dot(pooled.astype(BF16), l1w[...],
                          preferred_element_type=F32) + l1b[...])  # (B, 8H)
            s1 = jax.nn.sigmoid(g1)
            t1 = jnp.tanh(g1)

            def zero_state_h(s, t, off):                           # f*c0 == 0 dropped
                i = s[:, off:off + H]
                g = t[:, off + 2 * H:off + 3 * H]
                o = s[:, off + 3 * H:off + 4 * H]
                return o * jnp.tanh(i * g)

            h1f = zero_state_h(s1, t1, 0)
            h1b = zero_state_h(s1, t1, 4 * H)

            # rnn2 over the 2-step sequence [h1f, h1b] (fwd) / reversed order (bwd).
            def step0(xin, d):                                     # zero initial state
                g = (jnp.dot(xin.astype(BF16), l2wih[d],
                             preferred_element_type=F32) + l2b[d])
                s = jax.nn.sigmoid(g)
                t = jnp.tanh(g)
                c_new = s[:, 0:H] * t[:, 2 * H:3 * H]
                return s[:, 3 * H:4 * H] * jnp.tanh(c_new), c_new

            def step1(xin, h, c_prev, d):                          # full LSTM cell
                g = (jnp.dot(xin.astype(BF16), l2wih[d], preferred_element_type=F32)
                     + jnp.dot(h.astype(BF16), l2whh[d], preferred_element_type=F32)
                     + l2b[d])
                s = jax.nn.sigmoid(g)
                t = jnp.tanh(g)
                c_new = s[:, H:2 * H] * c_prev + s[:, 0:H] * t[:, 2 * H:3 * H]
                return s[:, 3 * H:4 * H] * jnp.tanh(c_new)

            hf, cf = step0(h1f, 0)
            h2f = step1(h1b, hf, cf, 0)
            hb, cb = step0(h1b, 1)
            h2b = step1(h1f, hb, cb, 1)

            # torch: cat([h1,h2],2).permute(1,0,2).view(B,-1) == [h1f | h2f | h1b | h2b]
            x_ref[...] = jnp.concatenate([h1f, h2f, h1b, h2b], axis=1)   # (B, d_model)

        # ---------------- one cycle: 6 MambaBlocks + 1 AttentionBlock ---------------
        x = x_ref[...]

        def mamba_block(x, j):
            v128 = m_v128[j]                       # (3, d_model): norm1, norm2, mlp_b2
            v256 = m_v256[j]                       # (3, d_inner): conv_b, dt_b, D
            xn = _rmsnorm(x, v128[0:1])
            xz = jnp.dot(xn.astype(BF16), m_inpw[j],
                         preferred_element_type=F32)               # (B, 2*d_inner)
            # seq_len == 1: the causal depthwise conv reduces to its last tap, and that
            # per-channel scale is pre-folded into the in_proj columns on the host.
            xm = _silu(xz[:, :d_inner] + v256[0:1])
            z = xz[:, d_inner:]
            xm_b = xm.astype(BF16)
            # dt_proj folded into x_proj on the host -> one (d_inner,d_inner) matmul
            delta = jax.nn.softplus(
                jnp.dot(xm_b, m_Wd[j], preferred_element_type=F32) + v256[1:2])
            Bs = jnp.dot(xm_b, m_WB[j], preferred_element_type=F32)   # (B, d_state)
            Cs = jnp.dot(xm_b, m_WC[j], preferred_element_type=F32)
            bc = jnp.sum(Bs * Cs, axis=-1, keepdims=True)              # (B, 1)
            # seq_len == 1, h0 == 0: y = delta*x*<B,C> + D*x  (A_log is dead)
            y = (delta * bc + v256[2:3]) * xm
            y = y * _silu(z)
            x = x + jnp.dot(y.astype(BF16), m_outw[j], preferred_element_type=F32)
            xn2 = _rmsnorm(x, v128[1:2])
            hmid = _gelu(jnp.dot(xn2.astype(BF16), m_w1[j],
                                 preferred_element_type=F32) + m_b1[j])
            return x + (jnp.dot(hmid.astype(BF16), m_w2[j],
                                preferred_element_type=F32) + v128[2:3])

        def attn_block(x):
            v = a_v128[...]                        # (4, d_model): norm1, bvo, norm2, b2
            xn = _rmsnorm(x, v[0:1])
            # seq_len == 1 -> softmax over the single key is 1 for every head, so MHA
            # collapses to the host-folded linear map Wvo = v_wT @ out_wT (+ bvo).
            x = x + jnp.dot(xn.astype(BF16), a_Wvo[...],
                            preferred_element_type=F32) + v[1:2]
            xn2 = _rmsnorm(x, v[2:3])
            hmid = _gelu(jnp.dot(xn2.astype(BF16), a_w1[...],
                                 preferred_element_type=F32) + a_b1[...])
            return x + (jnp.dot(hmid.astype(BF16), a_w2[...],
                                preferred_element_type=F32) + v[3:4])

        for j in range(6):                         # statically unrolled within a cycle
            x = mamba_block(x, j)
        x = attn_block(x)
        x_ref[...] = x

        # ---------------- final classifier (lane-padded, unmasked store) ------------
        @pl.when(c == num_cycles - 1)
        def _final():
            o_ref[...] = (jnp.dot(x.astype(BF16), fc_w[...],
                                  preferred_element_type=F32) + fc_b[...])

    # ---- specs ----------------------------------------------------------------------
    def const_spec(a):          # DMA'd once (constant block index), stays resident
        nd = a.ndim
        return pl.BlockSpec(a.shape, lambda c, _n=nd: (0,) * _n)

    def stream_spec(a):         # one cycle's weight slice per grid step
        nd = a.ndim
        return pl.BlockSpec((None,) + a.shape[1:],
                            lambda c, _n=nd: (c,) + (0,) * (_n - 1))

    mm_names = ["m_inpw", "m_Wd", "m_WB", "m_WC", "m_outw", "m_w1", "m_w2",
                "m_v256", "m_v128", "m_b1"]
    at_names = ["a_Wvo", "a_w1", "a_w2", "a_v128", "a_b1"]

    const_inputs = [emb, mask,
                    params["lstm1_w"], params["lstm1_b"],
                    params["lstm2_wih"], params["lstm2_whh"], params["lstm2_b"]]
    stream_inputs = [params[n] for n in mm_names + at_names]
    tail_inputs = [params["fc_w"], params["fc_b"]]

    in_specs = ([const_spec(a) for a in const_inputs]
                + [stream_spec(a) for a in stream_inputs]
                + [const_spec(a) for a in tail_inputs])

    grid_spec = pltpu.PrefetchScalarGridSpec(
        num_scalar_prefetch=0,
        grid=(num_cycles,),
        in_specs=in_specs,
        out_specs=pl.BlockSpec((B, out_w), lambda c: (0, 0)),
        scratch_shapes=[pltpu.VMEM((B, d_model), F32)],   # x carried across cycles
    )

    out = pl.pallas_call(
        kernel,
        out_shape=jax.ShapeDtypeStruct((B, out_w), F32),
        grid_spec=grid_spec,
        compiler_params=pltpu.CompilerParams(
            dimension_semantics=("arbitrary",),            # x is carried -> sequential
            vmem_limit_bytes=32 * 1024 * 1024,             # v7x-safe (64 MiB physical)
        ),
    )(*const_inputs, *stream_inputs, *tail_inputs)

    return out[:, :num_labels]


# ----------------------------- deterministic init (host-side folds) -----------------

def nrm(key, shape, scale=0.02):
    return scale * jax.random.normal(key, shape, dtype=F32)


def init_lstm_params(k1, k2, mamba_hidden, hidden):
    # rnn1: bidirectional, seq_len == 1 -> W_hh is dead (h0 == 0), fwd|bwd W_ih fused.
    ks = jax.random.split(k1, 8)
    w_ih_f = nrm(ks[0], (4 * hidden, mamba_hidden), 0.1)
    b_f = nrm(ks[2], (4 * hidden,), 0.1) + nrm(ks[3], (4 * hidden,), 0.1)
    w_ih_b = nrm(ks[4], (4 * hidden, mamba_hidden), 0.1)
    b_b = nrm(ks[6], (4 * hidden,), 0.1) + nrm(ks[7], (4 * hidden,), 0.1)
    lstm1_w = jnp.concatenate([w_ih_f.T, w_ih_b.T], axis=1).astype(BF16)  # (MH, 8H)
    lstm1_b = jnp.concatenate([b_f, b_b])[None, :]                        # (1, 8H)

    # rnn2: bidirectional over the 2-step sequence h1.
    ks2 = jax.random.split(k2, 8)

    def direction(kk):
        w_ih = nrm(kk[0], (4 * hidden, hidden), 0.1)
        w_hh = nrm(kk[1], (4 * hidden, hidden), 0.1)
        b = nrm(kk[2], (4 * hidden,), 0.1) + nrm(kk[3], (4 * hidden,), 0.1)
        return w_ih.T, w_hh.T, b

    wi_f, wh_f, b2_f = direction(ks2[:4])
    wi_b, wh_b, b2_b = direction(ks2[4:])
    lstm2_wih = jnp.stack([wi_f, wi_b]).astype(BF16)      # (2, H, 4H)
    lstm2_whh = jnp.stack([wh_f, wh_b]).astype(BF16)      # (2, H, 4H)
    lstm2_b = jnp.stack([b2_f, b2_b])                     # (2, 4H) f32
    return lstm1_w, lstm1_b, lstm2_wih, lstm2_whh, lstm2_b


def init_mamba_stack(key, num_cycles, d_model, d_state, d_conv, expand):
    d_inner = expand * d_model
    dt_rank = math.ceil(d_model / 16)
    blocks = []
    for k in jax.random.split(key, 6 * num_cycles):
        ks = jax.random.split(k, 9)
        in_proj_wT = nrm(ks[0], (2 * d_inner, d_model)).T             # (d, 2*di)
        conv_w = nrm(ks[1], (d_inner, d_conv))
        conv_last = conv_w[:, -1]                                     # last tap only
        conv_b = nrm(ks[2], (d_inner,))
        x_proj_wT = nrm(ks[3], (dt_rank + 2 * d_state, d_inner)).T    # (di, dtr+2ds)
        dt_proj_wT = nrm(ks[4], (d_inner, dt_rank)).T                 # (dtr, di)
        dt_b = nrm(ks[5], (d_inner,))
        out_proj_wT = nrm(ks[6], (d_model, d_inner)).T                # (di, d)
        w1T = nrm(ks[7], (4 * d_model, d_model)).T
        w2T = nrm(ks[8], (d_model, 4 * d_model)).T

        # Host-side folds (seq_len == 1 specialization; A_log is dead and not created):
        in_proj_fold = in_proj_wT.at[:, :d_inner].multiply(conv_last[None, :])
        W_delta = x_proj_wT[:, :dt_rank] @ dt_proj_wT                 # (di, di)
        WB = x_proj_wT[:, dt_rank:dt_rank + d_state]                  # (di, ds)
        WC = x_proj_wT[:, dt_rank + d_state:]                         # (di, ds)

        blocks.append(dict(
            inpw=in_proj_fold.astype(BF16),
            Wd=W_delta.astype(BF16),
            WB=WB.astype(BF16),
            WC=WC.astype(BF16),
            outw=out_proj_wT.astype(BF16),
            w1=w1T.astype(BF16),
            w2=w2T.astype(BF16),
            v256=jnp.stack([conv_b, dt_b, jnp.ones((d_inner,), F32)]),       # (3, di)
            v128=jnp.stack([jnp.ones((d_model,), F32), jnp.ones((d_model,), F32),
                            jnp.zeros((d_model,), F32)]),                     # (3, d)
            b1=jnp.zeros((4 * d_model,), F32),
        ))

    def stack(name):
        a = jnp.stack([b[name] for b in blocks])
        return a.reshape((num_cycles, 6) + a.shape[1:])

    return {name: stack(name) for name in blocks[0]}


def init_attn_stack(key, num_cycles, d_model, expand):
    blocks = []
    for k in jax.random.split(key, num_cycles):
        ks = jax.random.split(k, 4)
        in_proj_w = nrm(ks[0], (3 * d_model, d_model))
        in_proj_b = jnp.zeros((3 * d_model,), F32)              # PyTorch MHA default
        v_wT = in_proj_w[2 * d_model:, :].T                     # V-only slice (d, d)
        v_b = in_proj_b[2 * d_model:]
        out_wT = nrm(ks[1], (d_model, d_model)).T
        out_b = jnp.zeros((d_model,), F32)
        # seq_len == 1 -> MHA is linear: fold V and out projections.
        Wvo = (v_wT @ out_wT).astype(BF16)
        bvo = v_b @ out_wT + out_b
        w1T = nrm(ks[2], (expand * d_model, d_model)).T
        w2T = nrm(ks[3], (d_model, expand * d_model)).T
        blocks.append(dict(
            Wvo=Wvo,
            w1=w1T.astype(BF16),
            w2=w2T.astype(BF16),
            v128=jnp.stack([jnp.ones((d_model,), F32), bvo,
                            jnp.ones((d_model,), F32),
                            jnp.zeros((d_model,), F32)]),        # (4, d)
            b1=jnp.zeros((1, expand * d_model), F32),
        ))
    return {name: jnp.stack([b[name] for b in blocks]) for name in blocks[0]}


# ----------------------------- main --------------------------------------------------

if __name__ == "__main__":
    # small, lane-dense, forward-consistent config
    B, SEQ, VOCAB = 8, 8, 64
    MAMBA_HIDDEN = 128          # stand-in for mamba-370m hidden_size
    LSTM_HIDDEN = 32
    D_MODEL = 4 * LSTM_HIDDEN   # lstm_output_dim = 128
    NUM_CYCLES = 1
    D_STATE, D_CONV, EXPAND = 16, 4, 2
    ATTN_EXPAND = 4
    NUM_LABELS = 3

    key = jax.random.PRNGKey(0)
    k_emb, k_r1, k_r2, k_m, k_a, k_fc, k_ids = jax.random.split(key, 7)

    lstm1_w, lstm1_b, lstm2_wih, lstm2_whh, lstm2_b = init_lstm_params(
        k_r1, k_r2, MAMBA_HIDDEN, LSTM_HIDDEN)
    mamba = init_mamba_stack(k_m, NUM_CYCLES, D_MODEL, D_STATE, D_CONV, EXPAND)
    attn = init_attn_stack(k_a, NUM_CYCLES, D_MODEL, ATTN_EXPAND)

    fc_wT = nrm(k_fc, (NUM_LABELS, D_MODEL)).T                               # (D, L)
    fc_w = jnp.zeros((D_MODEL, 128), F32).at[:, :NUM_LABELS].set(fc_wT).astype(BF16)
    fc_b = jnp.zeros((1, 128), F32)

    params = dict(
        embed_table=nrm(k_emb, (VOCAB, MAMBA_HIDDEN), 0.5),
        lstm1_w=lstm1_w, lstm1_b=lstm1_b,
        lstm2_wih=lstm2_wih, lstm2_whh=lstm2_whh, lstm2_b=lstm2_b,
        fc_w=fc_w, fc_b=fc_b,
    )
    params.update({"m_" + k: v for k, v in mamba.items()})
    params.update({"a_" + k: v for k, v in attn.items()})

    input_ids = jax.random.randint(k_ids, (B, SEQ), 0, VOCAB)
    lengths = 1 + (jnp.arange(B) * 3) % SEQ                        # >= 1 per row
    attention_mask = (jnp.arange(SEQ)[None, :] < lengths[:, None]).astype(jnp.int32)

    fwd = jax.jit(gamba_forward, static_argnames=("num_labels",))
    logits = fwd(params, input_ids, attention_mask, num_labels=NUM_LABELS)
    logits = jax.block_until_ready(logits)

    assert logits.shape == (B, NUM_LABELS), logits.shape
    assert bool(jnp.all(jnp.isfinite(logits)))
    print("KERNEL_OK")
</pallas_src>

<mosaic_0001>
module attributes {stable_mosaic.version = 11 : i64} {
  func.func @kernel(%arg0: i32, %arg1: memref<8x8x128xf32, #tpu.memory_space<vmem>>, %arg2: memref<8x8xf32, #tpu.memory_space<vmem>>, %arg3: memref<128x256xbf16, #tpu.memory_space<vmem>>, %arg4: memref<1x256xf32, #tpu.memory_space<vmem>>, %arg5: memref<2x32x128xbf16, #tpu.memory_space<vmem>>, %arg6: memref<2x32x128xbf16, #tpu.memory_space<vmem>>, %arg7: memref<2x128xf32, #tpu.memory_space<vmem>>, %arg8: memref<1x6x128x512xbf16, #tpu.memory_space<vmem>>, %arg9: memref<1x6x256x256xbf16, #tpu.memory_space<vmem>>, %arg10: memref<1x6x256x16xbf16, #tpu.memory_space<vmem>>, %arg11: memref<1x6x256x16xbf16, #tpu.memory_space<vmem>>, %arg12: memref<1x6x256x128xbf16, #tpu.memory_space<vmem>>, %arg13: memref<1x6x128x512xbf16, #tpu.memory_space<vmem>>, %arg14: memref<1x6x512x128xbf16, #tpu.memory_space<vmem>>, %arg15: memref<1x6x3x256xf32, #tpu.memory_space<vmem>>, %arg16: memref<1x6x3x128xf32, #tpu.memory_space<vmem>>, %arg17: memref<1x6x512xf32, #tpu.memory_space<vmem>>, %arg18: memref<1x128x128xbf16, #tpu.memory_space<vmem>>, %arg19: memref<1x128x512xbf16, #tpu.memory_space<vmem>>, %arg20: memref<1x512x128xbf16, #tpu.memory_space<vmem>>, %arg21: memref<1x4x128xf32, #tpu.memory_space<vmem>>, %arg22: memref<1x1x512xf32, #tpu.memory_space<vmem>>, %arg23: memref<128x128xbf16, #tpu.memory_space<vmem>>, %arg24: memref<1x128xf32, #tpu.memory_space<vmem>>, %arg25: memref<8x128xf32, #tpu.memory_space<vmem>>, %arg26: memref<8x128xf32, #tpu.memory_space<vmem>>) attributes {dimension_semantics = [#tpu.dimension_semantics<arbitrary>], iteration_bounds = array<i64: 1>, scalar_prefetch = 0 : i64, scratch_operands = 1 : i64, tpu.core_type = #tpu.core_type<tc>, window_params = [{pipeline_mode = #tpu.pipeline_mode<synchronous>, transform_indices = @transform_0, window_bounds = array<i64: 8, 8, 128>}, {pipeline_mode = #tpu.pipeline_mode<synchronous>, transform_indices = @transform_1, window_bounds = array<i64: 8, 8>}, {pipeline_mode = #tpu.pipeline_mode<synchronous>, transform_indices = @transform_2, window_bounds = array<i64: 128, 256>}, {pipeline_mode = #tpu.pipeline_mode<synchronous>, transform_indices = @transform_3, window_bounds = array<i64: 1, 256>}, {pipeline_mode = #tpu.pipeline_mode<synchronous>, transform_indices = @transform_4, window_bounds = array<i64: 2, 32, 128>}, {pipeline_mode = #tpu.pipeline_mode<synchronous>, transform_indices = @transform_5, window_bounds = array<i64: 2, 32, 128>}, {pipeline_mode = #tpu.pipeline_mode<synchronous>, transform_indices = @transform_6, window_bounds = array<i64: 2, 128>}, {transform_indices = @transform_7, window_bounds = array<i64: 1, 6, 128, 512>}, {transform_indices = @transform_8, window_bounds = array<i64: 1, 6, 256, 256>}, {transform_indices = @transform_9, window_bounds = array<i64: 1, 6, 256, 16>}, {transform_indices = @transform_10, window_bounds = array<i64: 1, 6, 256, 16>}, {transform_indices = @transform_11, window_bounds = array<i64: 1, 6, 256, 128>}, {transform_indices = @transform_12, window_bounds = array<i64: 1, 6, 128, 512>}, {transform_indices = @transform_13, window_bounds = array<i64: 1, 6, 512, 128>}, {transform_indices = @transform_14, window_bounds = array<i64: 1, 6, 3, 256>}, {transform_indices = @transform_15, window_bounds = array<i64: 1, 6, 3, 128>}, {transform_indices = @transform_16, window_bounds = array<i64: 1, 6, 512>}, {transform_indices = @transform_17, window_bounds = array<i64: 1, 128, 128>}, {transform_indices = @transform_18, window_bounds = array<i64: 1, 128, 512>}, {transform_indices = @transform_19, window_bounds = array<i64: 1, 512, 128>}, {transform_indices = @transform_20, window_bounds = array<i64: 1, 4, 128>}, {transform_indices = @transform_21, window_bounds = array<i64: 1, 1, 512>}, {pipeline_mode = #tpu.pipeline_mode<synchronous>, transform_indices = @transform_22, window_bounds = array<i64: 128, 128>}, {pipeline_mode = #tpu.pipeline_mode<synchronous>, transform_indices = @transform_23, window_bounds = array<i64: 1, 128>}, {pipeline_mode = #tpu.pipeline_mode<synchronous>, transform_indices = @transform_24, window_bounds = array<i64: 8, 128>}]} {
    %c0_i32 = arith.constant 0 : i32
    %0 = arith.cmpi eq, %arg0, %c0_i32 : i32
    %1 = arith.extui %0 : i1 to i32
    %c0_i32_0 = arith.constant 0 : i32
    %2 = arith.cmpi ne, %1, %c0_i32_0 : i32
    scf.if %2 {
      %c0_373 = arith.constant 0 : index
      %c0_374 = arith.constant 0 : index
      %c0_375 = arith.constant 0 : index
      %748 = vector.load %arg1[%c0_373, %c0_374, %c0_375] : memref<8x8x128xf32, #tpu.memory_space<vmem>>, vector<8x8x128xf32>
      %c0_376 = arith.constant 0 : index
      %c0_377 = arith.constant 0 : index
      %749 = vector.load %arg2[%c0_376, %c0_377] : memref<8x8xf32, #tpu.memory_space<vmem>>, vector<8x8xf32>
      %750 = vector.shape_cast %749 : vector<8x8xf32> to vector<8x8x1xf32>
      %751 = vector.broadcast %750 : vector<8x8x1xf32> to vector<8x8x128xf32>
      %752 = arith.mulf %751, %748 : vector<8x8x128xf32>
      %cst_378 = arith.constant dense<0.000000e+00> : vector<8x128xf32>
      %753 = vector.multi_reduction <add>, %752, %cst_378 [1] : vector<8x8x128xf32> to vector<8x128xf32>
      %cst_379 = arith.constant dense<0.000000e+00> : vector<8xf32>
      %754 = vector.multi_reduction <add>, %749, %cst_379 [1] : vector<8x8xf32> to vector<8xf32>
      %755 = vector.shape_cast %754 : vector<8xf32> to vector<8x1xf32>
      %756 = vector.broadcast %755 : vector<8x1xf32> to vector<8x128xf32>
      %757 = arith.divf %753, %756 : vector<8x128xf32>
      %758 = arith.truncf %757 : vector<8x128xf32> to vector<8x128xbf16>
      %c0_380 = arith.constant 0 : index
      %c0_381 = arith.constant 0 : index
      %759 = vector.load %arg3[%c0_380, %c0_381] : memref<128x256xbf16, #tpu.memory_space<vmem>>, vector<128x256xbf16>
      %cst_382 = arith.constant dense<0.000000e+00> : vector<8x256xf32>
      %760 = tpu.matmul %758, %759, %cst_382 {dimension_numbers = #tpu.dot_dimension_numbers<[1], [0], [0], [1], [0, 0, 1, 1], [], []>} : vector<8x128xbf16>, vector<128x256xbf16>, vector<8x256xf32> -> vector<8x256xf32>
      %c0_383 = arith.constant 0 : index
      %c0_384 = arith.constant 0 : index
      %761 = vector.load %arg4[%c0_383, %c0_384] : memref<1x256xf32, #tpu.memory_space<vmem>>, vector<1x256xf32>
      %762 = vector.broadcast %761 : vector<1x256xf32> to vector<8x256xf32>
      %763 = arith.addf %760, %762 : vector<8x256xf32>
      %764 = arith.negf %763 : vector<8x256xf32>
      %765 = math.exp %764 : vector<8x256xf32>
      %cst_385 = arith.constant 1.000000e+00 : f32
      %766 = vector.broadcast %cst_385 : f32 to vector<8x256xf32>
      %767 = arith.addf %766, %765 : vector<8x256xf32>
      %768 = arith.divf %766, %767 : vector<8x256xf32>
      %769 = math.tanh %763 : vector<8x256xf32>
      %770 = vector.extract_strided_slice %768 {offsets = [0, 0], sizes = [8, 32], strides = [1, 1]} : vector<8x256xf32> to vector<8x32xf32>
      %771 = vector.extract_strided_slice %769 {offsets = [0, 64], sizes = [8, 32], strides = [1, 1]} : vector<8x256xf32> to vector<8x32xf32>
      %772 = vector.extract_strided_slice %768 {offsets = [0, 96], sizes = [8, 32], strides = [1, 1]} : vector<8x256xf32> to vector<8x32xf32>
      %773 = arith.mulf %770, %771 : vector<8x32xf32>
      %774 = math.tanh %773 : vector<8x32xf32>
      %775 = arith.mulf %772, %774 : vector<8x32xf32>
      %776 = vector.extract_strided_slice %768 {offsets = [0, 128], sizes = [8, 32], strides = [1, 1]} : vector<8x256xf32> to vector<8x32xf32>
      %777 = vector.extract_strided_slice %769 {offsets = [0, 192], sizes = [8, 32], strides = [1, 1]} : vector<8x256xf32> to vector<8x32xf32>
      %778 = vector.extract_strided_slice %768 {offsets = [0, 224], sizes = [8, 32], strides = [1, 1]} : vector<8x256xf32> to vector<8x32xf32>
      %779 = arith.mulf %776, %777 : vector<8x32xf32>
      %780 = math.tanh %779 : vector<8x32xf32>
      %781 = arith.mulf %778, %780 : vector<8x32xf32>
      %782 = arith.truncf %775 : vector<8x32xf32> to vector<8x32xbf16>
      %c0_386 = arith.constant 0 : index
      %c0_387 = arith.constant 0 : index
      %c0_388 = arith.constant 0 : index
      %783 = vector.load %arg5[%c0_386, %c0_387, %c0_388] : memref<2x32x128xbf16, #tpu.memory_space<vmem>>, vector<1x32x128xbf16>
      %784 = vector.shape_cast %783 : vector<1x32x128xbf16> to vector<32x128xbf16>
      %cst_389 = arith.constant dense<0.000000e+00> : vector<8x128xf32>
      %785 = tpu.matmul %782, %784, %cst_389 {dimension_numbers = #tpu.dot_dimension_numbers<[1], [0], [0], [1], [0, 0, 1, 1], [], []>} : vector<8x32xbf16>, vector<32x128xbf16>, vector<8x128xf32> -> vector<8x128xf32>
      %c0_390 = arith.constant 0 : index
      %c0_391 = arith.constant 0 : index
      %786 = vector.load %arg7[%c0_390, %c0_391] : memref<2x128xf32, #tpu.memory_space<vmem>>, vector<1x128xf32>
      %787 = vector.shape_cast %786 : vector<1x128xf32> to vector<128xf32>
      %788 = vector.shape_cast %787 : vector<128xf32> to vector<1x128xf32>
      %789 = vector.broadcast %788 : vector<1x128xf32> to vector<8x128xf32>
      %790 = arith.addf %785, %789 : vector<8x128xf32>
      %791 = arith.negf %790 : vector<8x128xf32>
      %792 = math.exp %791 : vector<8x128xf32>
      %cst_392 = arith.constant 1.000000e+00 : f32
      %793 = vector.broadcast %cst_392 : f32 to vector<8x128xf32>
      %794 = arith.addf %793, %792 : vector<8x128xf32>
      %795 = arith.divf %793, %794 : vector<8x128xf32>
      %796 = math.tanh %790 : vector<8x128xf32>
      %797 = vector.extract_strided_slice %795 {offsets = [0, 0], sizes = [8, 32], strides = [1, 1]} : vector<8x128xf32> to vector<8x32xf32>
      %798 = vector.extract_strided_slice %796 {offsets = [0, 64], sizes = [8, 32], strides = [1, 1]} : vector<8x128xf32> to vector<8x32xf32>
      %799 = arith.mulf %797, %798 : vector<8x32xf32>
      %800 = vector.extract_strided_slice %795 {offsets = [0, 96], sizes = [8, 32], strides = [1, 1]} : vector<8x128xf32> to vector<8x32xf32>
      %801 = math.tanh %799 : vector<8x32xf32>
      %802 = arith.mulf %800, %801 : vector<8x32xf32>
      %803 = arith.truncf %781 : vector<8x32xf32> to vector<8x32xbf16>
      %c0_393 = arith.constant 0 : index
      %c0_394 = arith.constant 0 : index
      %c0_395 = arith.constant 0 : index
      %804 = vector.load %arg5[%c0_393, %c0_394, %c0_395] : memref<2x32x128xbf16, #tpu.memory_space<vmem>>, vector<1x32x128xbf16>
      %805 = vector.shape_cast %804 : vector<1x32x128xbf16> to vector<32x128xbf16>
      %cst_396 = arith.constant dense<0.000000e+00> : vector<8x128xf32>
      %806 = tpu.matmul %803, %805, %cst_396 {dimension_numbers = #tpu.dot_dimension_numbers<[1], [0], [0], [1], [0, 0, 1, 1], [], []>} : vector<8x32xbf16>, vector<32x128xbf16>, vector<8x128xf32> -> vector<8x128xf32>
      %807 = arith.truncf %802 : vector<8x32xf32> to vector<8x32xbf16>
      %c0_397 = arith.constant 0 : index
      %c0_398 = arith.constant 0 : index
      %c0_399 = arith.constant 0 : index
      %808 = vector.load %arg6[%c0_397, %c0_398, %c0_399] : memref<2x32x128xbf16, #tpu.memory_space<vmem>>, vector<1x32x128xbf16>
      %809 = vector.shape_cast %808 : vector<1x32x128xbf16> to vector<32x128xbf16>
      %cst_400 = arith.constant dense<0.000000e+00> : vector<8x128xf32>
      %810 = tpu.matmul %807, %809, %cst_400 {dimension_numbers = #tpu.dot_dimension_numbers<[1], [0], [0], [1], [0, 0, 1, 1], [], []>} : vector<8x32xbf16>, vector<32x128xbf16>, vector<8x128xf32> -> vector<8x128xf32>
      %811 = arith.addf %806, %810 : vector<8x128xf32>
      %c0_401 = arith.constant 0 : index
      %c0_402 = arith.constant 0 : index
      %812 = vector.load %arg7[%c0_401, %c0_402] : memref<2x128xf32, #tpu.memory_space<vmem>>, vector<1x128xf32>
      %813 = vector.shape_cast %812 : vector<1x128xf32> to vector<128xf32>
      %814 = vector.shape_cast %813 : vector<128xf32> to vector<1x128xf32>
      %815 = vector.broadcast %814 : vector<1x128xf32> to vector<8x128xf32>
      %816 = arith.addf %811, %815 : vector<8x128xf32>
      %817 = arith.negf %816 : vector<8x128xf32>
      %818 = math.exp %817 : vector<8x128xf32>
      %cst_403 = arith.constant 1.000000e+00 : f32
      %819 = vector.broadcast %cst_403 : f32 to vector<8x128xf32>
      %820 = arith.addf %819, %818 : vector<8x128xf32>
      %821 = arith.divf %819, %820 : vector<8x128xf32>
      %822 = math.tanh %816 : vector<8x128xf32>
      %823 = vector.extract_strided_slice %821 {offsets = [0, 32], sizes = [8, 32], strides = [1, 1]} : vector<8x128xf32> to vector<8x32xf32>
      %824 = arith.mulf %823, %799 : vector<8x32xf32>
      %825 = vector.extract_strided_slice %821 {offsets = [0, 0], sizes = [8, 32], strides = [1, 1]} : vector<8x128xf32> to vector<8x32xf32>
      %826 = vector.extract_strided_slice %822 {offsets = [0, 64], sizes = [8, 32], strides = [1, 1]} : vector<8x128xf32> to vector<8x32xf32>
      %827 = arith.mulf %825, %826 : vector<8x32xf32>
      %828 = arith.addf %824, %827 : vector<8x32xf32>
      %829 = vector.extract_strided_slice %821 {offsets = [0, 96], sizes = [8, 32], strides = [1, 1]} : vector<8x128xf32> to vector<8x32xf32>
      %830 = math.tanh %828 : vector<8x32xf32>
      %831 = arith.mulf %829, %830 : vector<8x32xf32>
      %832 = arith.truncf %781 : vector<8x32xf32> to vector<8x32xbf16>
      %c1_404 = arith.constant 1 : index
      %c0_405 = arith.constant 0 : index
      %c0_406 = arith.constant 0 : index
      %833 = vector.load %arg5[%c1_404, %c0_405, %c0_406] : memref<2x32x128xbf16, #tpu.memory_space<vmem>>, vector<1x32x128xbf16>
      %834 = vector.shape_cast %833 : vector<1x32x128xbf16> to vector<32x128xbf16>
      %cst_407 = arith.constant dense<0.000000e+00> : vector<8x128xf32>
      %835 = tpu.matmul %832, %834, %cst_407 {dimension_numbers = #tpu.dot_dimension_numbers<[1], [0], [0], [1], [0, 0, 1, 1], [], []>} : vector<8x32xbf16>, vector<32x128xbf16>, vector<8x128xf32> -> vector<8x128xf32>
      %c1_408 = arith.constant 1 : index
      %c0_409 = arith.constant 0 : index
      %836 = vector.load %arg7[%c1_408, %c0_409] : memref<2x128xf32, #tpu.memory_space<vmem>>, vector<1x128xf32>
      %837 = vector.shape_cast %836 : vector<1x128xf32> to vector<128xf32>
      %838 = vector.shape_cast %837 : vector<128xf32> to vector<1x128xf32>
      %839 = vector.broadcast %838 : vector<1x128xf32> to vector<8x128xf32>
      %840 = arith.addf %835, %839 : vector<8x128xf32>
      %841 = arith.negf %840 : vector<8x128xf32>
      %842 = math.exp %841 : vector<8x128xf32>
      %cst_410 = arith.constant 1.000000e+00 : f32
      %843 = vector.broadcast %cst_410 : f32 to vector<8x128xf32>
      %844 = arith.addf %843, %842 : vector<8x128xf32>
      %845 = arith.divf %843, %844 : vector<8x128xf32>
      %846 = math.tanh %840 : vector<8x128xf32>
      %847 = vector.extract_strided_slice %845 {offsets = [0, 0], sizes = [8, 32], strides = [1, 1]} : vector<8x128xf32> to vector<8x32xf32>
      %848 = vector.extract_strided_slice %846 {offsets = [0, 64], sizes = [8, 32], strides = [1, 1]} : vector<8x128xf32> to vector<8x32xf32>
      %849 = arith.mulf %847, %848 : vector<8x32xf32>
      %850 = vector.extract_strided_slice %845 {offsets = [0, 96], sizes = [8, 32], strides = [1, 1]} : vector<8x128xf32> to vector<8x32xf32>
      %851 = math.tanh %849 : vector<8x32xf32>
      %852 = arith.mulf %850, %851 : vector<8x32xf32>
      %853 = arith.truncf %775 : vector<8x32xf32> to vector<8x32xbf16>
      %c1_411 = arith.constant 1 : index
      %c0_412 = arith.constant 0 : index
      %c0_413 = arith.constant 0 : index
      %854 = vector.load %arg5[%c1_411, %c0_412, %c0_413] : memref<2x32x128xbf16, #tpu.memory_space<vmem>>, vector<1x32x128xbf16>
      %855 = vector.shape_cast %854 : vector<1x32x128xbf16> to vector<32x128xbf16>
      %cst_414 = arith.constant dense<0.000000e+00> : vector<8x128xf32>
      %856 = tpu.matmul %853, %855, %cst_414 {dimension_numbers = #tpu.dot_dimension_numbers<[1], [0], [0], [1], [0, 0, 1, 1], [], []>} : vector<8x32xbf16>, vector<32x128xbf16>, vector<8x128xf32> -> vector<8x128xf32>
      %857 = arith.truncf %852 : vector<8x32xf32> to vector<8x32xbf16>
      %c1_415 = arith.constant 1 : index
      %c0_416 = arith.constant 0 : index
      %c0_417 = arith.constant 0 : index
      %858 = vector.load %arg6[%c1_415, %c0_416, %c0_417] : memref<2x32x128xbf16, #tpu.memory_space<vmem>>, vector<1x32x128xbf16>
      %859 = vector.shape_cast %858 : vector<1x32x128xbf16> to vector<32x128xbf16>
      %cst_418 = arith.constant dense<0.000000e+00> : vector<8x128xf32>
      %860 = tpu.matmul %857, %859, %cst_418 {dimension_numbers = #tpu.dot_dimension_numbers<[1], [0], [0], [1], [0, 0, 1, 1], [], []>} : vector<8x32xbf16>, vector<32x128xbf16>, vector<8x128xf32> -> vector<8x128xf32>
      %861 = arith.addf %856, %860 : vector<8x128xf32>
      %c1_419 = arith.constant 1 : index
      %c0_420 = arith.constant 0 : index
      %862 = vector.load %arg7[%c1_419, %c0_420] : memref<2x128xf32, #tpu.memory_space<vmem>>, vector<1x128xf32>
      %863 = vector.shape_cast %862 : vector<1x128xf32> to vector<128xf32>
      %864 = vector.shape_cast %863 : vector<128xf32> to vector<1x128xf32>
      %865 = vector.broadcast %864 : vector<1x128xf32> to vector<8x128xf32>
      %866 = arith.addf %861, %865 : vector<8x128xf32>
      %867 = arith.negf %866 : vector<8x128xf32>
      %868 = math.exp %867 : vector<8x128xf32>
      %cst_421 = arith.constant 1.000000e+00 : f32
      %869 = vector.broadcast %cst_421 : f32 to vector<8x128xf32>
      %870 = arith.addf %869, %868 : vector<8x128xf32>
      %871 = arith.divf %869, %870 : vector<8x128xf32>
      %872 = math.tanh %866 : vector<8x128xf32>
      %873 = vector.extract_strided_slice %871 {offsets = [0, 32], sizes = [8, 32], strides = [1, 1]} : vector<8x128xf32> to vector<8x32xf32>
      %874 = arith.mulf %873, %849 : vector<8x32xf32>
      %875 = vector.extract_strided_slice %871 {offsets = [0, 0], sizes = [8, 32], strides = [1, 1]} : vector<8x128xf32> to vector<8x32xf32>
      %876 = vector.extract_strided_slice %872 {offsets = [0, 64], sizes = [8, 32], strides = [1, 1]} : vector<8x128xf32> to vector<8x32xf32>
      %877 = arith.mulf %875, %876 : vector<8x32xf32>
      %878 = arith.addf %874, %877 : vector<8x32xf32>
      %879 = vector.extract_strided_slice %871 {offsets = [0, 96], sizes = [8, 32], strides = [1, 1]} : vector<8x128xf32> to vector<8x32xf32>
      %880 = math.tanh %878 : vector<8x32xf32>
      %881 = arith.mulf %879, %880 : vector<8x32xf32>
      %882 = tpu.concatenate %775, %831, %781, %881 in 1 : vector<8x32xf32>, vector<8x32xf32>, vector<8x32xf32>, vector<8x32xf32> -> vector<8x128xf32>
      %c0_422 = arith.constant 0 : index
      %c0_423 = arith.constant 0 : index
      %883 = vector.load %arg26[%c0_422, %c0_423] : memref<8x128xf32, #tpu.memory_space<vmem>>, vector<8x128xf32>
      tpu.vector_store %arg26[%c0_422, %c0_423], %882 {strides = array<i32>} : memref<8x128xf32, #tpu.memory_space<vmem>>, vector<8x128xf32>,
    } else {
    }
    %c0 = arith.constant 0 : index
    %c0_1 = arith.constant 0 : index
    %3 = vector.load %arg26[%c0, %c0_1] : memref<8x128xf32, #tpu.memory_space<vmem>>, vector<8x128xf32>
    %c0_2 = arith.constant 0 : index
    %c0_3 = arith.constant 0 : index
    %c0_4 = arith.constant 0 : index
    %c0_5 = arith.constant 0 : index
    %4 = vector.load %arg16[%c0_2, %c0_3, %c0_4, %c0_5] : memref<1x6x3x128xf32, #tpu.memory_space<vmem>>, vector<1x1x3x128xf32>
    %5 = vector.shape_cast %4 : vector<1x1x3x128xf32> to vector<3x128xf32>
    %c0_6 = arith.constant 0 : index
    %c0_7 = arith.constant 0 : index
    %c0_8 = arith.constant 0 : index
    %c0_9 = arith.constant 0 : index
    %6 = vector.load %arg15[%c0_6, %c0_7, %c0_8, %c0_9] : memref<1x6x3x256xf32, #tpu.memory_space<vmem>>, vector<1x1x3x256xf32>
    %7 = vector.shape_cast %6 : vector<1x1x3x256xf32> to vector<3x256xf32>
    %8 = vector.extract_strided_slice %5 {offsets = [0, 0], sizes = [1, 128], strides = [1, 1]} : vector<3x128xf32> to vector<1x128xf32>
    %9 = vector.broadcast %8 : vector<1x128xf32> to vector<8x128xf32>
    %10 = arith.mulf %9, %3 : vector<8x128xf32>
    %11 = arith.mulf %3, %3 : vector<8x128xf32>
    %cst = arith.constant dense<0.000000e+00> : vector<8xf32>
    %12 = vector.multi_reduction <add>, %11, %cst [1] : vector<8x128xf32> to vector<8xf32>
    %13 = vector.shape_cast %12 : vector<8xf32> to vector<8x1xf32>
    %cst_10 = arith.constant 9.99999997E-7 : f32
    %14 = vector.broadcast %cst_10 : f32 to vector<8x1xf32>
    %15 = arith.addf %13, %14 : vector<8x1xf32>
    %16 = math.sqrt %15 : vector<8x1xf32>
    %17 = vector.broadcast %16 : vector<8x1xf32> to vector<8x128xf32>
    %18 = arith.divf %10, %17 : vector<8x128xf32>
    %19 = arith.truncf %18 : vector<8x128xf32> to vector<8x128xbf16>
    %c0_11 = arith.constant 0 : index
    %c0_12 = arith.constant 0 : index
    %c0_13 = arith.constant 0 : index
    %c0_14 = arith.constant 0 : index
    %20 = vector.load %arg8[%c0_11, %c0_12, %c0_13, %c0_14] : memref<1x6x128x512xbf16, #tpu.memory_space<vmem>>, vector<1x1x128x512xbf16>
    %21 = vector.shape_cast %20 : vector<1x1x128x512xbf16> to vector<128x512xbf16>
    %cst_15 = arith.constant dense<0.000000e+00> : vector<8x512xf32>
    %22 = tpu.matmul %19, %21, %cst_15 {dimension_numbers = #tpu.dot_dimension_numbers<[1], [0], [0], [1], [0, 0, 1, 1], [], []>} : vector<8x128xbf16>, vector<128x512xbf16>, vector<8x512xf32> -> vector<8x512xf32>
    %23 = vector.extract_strided_slice %22 {offsets = [0, 0], sizes = [8, 256], strides = [1, 1]} : vector<8x512xf32> to vector<8x256xf32>
    %24 = vector.extract_strided_slice %7 {offsets = [0, 0], sizes = [1, 256], strides = [1, 1]} : vector<3x256xf32> to vector<1x256xf32>
    %25 = vector.broadcast %24 : vector<1x256xf32> to vector<8x256xf32>
    %26 = arith.addf %23, %25 : vector<8x256xf32>
    %27 = arith.negf %26 : vector<8x256xf32>
    %28 = math.exp %27 : vector<8x256xf32>
    %cst_16 = arith.constant 1.000000e+00 : f32
    %29 = vector.broadcast %cst_16 : f32 to vector<8x256xf32>
    %30 = arith.addf %29, %28 : vector<8x256xf32>
    %31 = arith.divf %29, %30 : vector<8x256xf32>
    %32 = arith.mulf %26, %31 : vector<8x256xf32>
    %33 = vector.extract_strided_slice %22 {offsets = [0, 256], sizes = [8, 256], strides = [1, 1]} : vector<8x512xf32> to vector<8x256xf32>
    %34 = arith.truncf %32 : vector<8x256xf32> to vector<8x256xbf16>
    %c0_17 = arith.constant 0 : index
    %c0_18 = arith.constant 0 : index
    %c0_19 = arith.constant 0 : index
    %c0_20 = arith.constant 0 : index
    %35 = vector.load %arg9[%c0_17, %c0_18, %c0_19, %c0_20] : memref<1x6x256x256xbf16, #tpu.memory_space<vmem>>, vector<1x1x256x256xbf16>
    %36 = vector.shape_cast %35 : vector<1x1x256x256xbf16> to vector<256x256xbf16>
    %cst_21 = arith.constant dense<0.000000e+00> : vector<8x256xf32>
    %37 = tpu.matmul %34, %36, %cst_21 {dimension_numbers = #tpu.dot_dimension_numbers<[1], [0], [0], [1], [0, 0, 1, 1], [], []>} : vector<8x256xbf16>, vector<256x256xbf16>, vector<8x256xf32> -> vector<8x256xf32>
    %38 = vector.extract_strided_slice %7 {offsets = [1, 0], sizes = [1, 256], strides = [1, 1]} : vector<3x256xf32> to vector<1x256xf32>
    %39 = vector.broadcast %38 : vector<1x256xf32> to vector<8x256xf32>
    %40 = arith.addf %37, %39 : vector<8x256xf32>
    %cst_22 = arith.constant 0.000000e+00 : f32
    %41 = vector.broadcast %cst_22 : f32 to vector<8x256xf32>
    %42 = arith.maximumf %40, %41 : vector<8x256xf32>
    %43 = vector.broadcast %cst_22 : f32 to vector<8x256xf32>
    %44 = arith.subf %40, %43 : vector<8x256xf32>
    %45 = arith.cmpf one, %44, %44 : vector<8x256xf32>
    %46 = vector.broadcast %cst_22 : f32 to vector<8x256xf32>
    %47 = arith.addf %40, %46 : vector<8x256xf32>
    %48 = math.absf %44 : vector<8x256xf32>
    %cst_23 = arith.constant 0.000000e+00 : f32
    %49 = vector.broadcast %cst_23 : f32 to vector<8x256xf32>
    %50 = arith.subf %49, %48 : vector<8x256xf32>
    %51 = math.exp %50 : vector<8x256xf32>
    %52 = math.log1p %51 : vector<8x256xf32>
    %53 = arith.addf %42, %52 : vector<8x256xf32>
    %54 = arith.select %45, %47, %53 : vector<8x256xi1>, vector<8x256xf32>
    %c0_24 = arith.constant 0 : index
    %c0_25 = arith.constant 0 : index
    %c0_26 = arith.constant 0 : index
    %c0_27 = arith.constant 0 : index
    %55 = vector.load %arg10[%c0_24, %c0_25, %c0_26, %c0_27] : memref<1x6x256x16xbf16, #tpu.memory_space<vmem>>, vector<1x1x256x16xbf16>
    %56 = vector.shape_cast %55 : vector<1x1x256x16xbf16> to vector<256x16xbf16>
    %cst_28 = arith.constant dense<0.000000e+00> : vector<8x16xf32>
    %57 = tpu.matmul %34, %56, %cst_28 {dimension_numbers = #tpu.dot_dimension_numbers<[1], [0], [0], [1], [0, 0, 1, 1], [], []>} : vector<8x256xbf16>, vector<256x16xbf16>, vector<8x16xf32> -> vector<8x16xf32>
    %c0_29 = arith.constant 0 : index
    %c0_30 = arith.constant 0 : index
    %c0_31 = arith.constant 0 : index
    %c0_32 = arith.constant 0 : index
    %58 = vector.load %arg11[%c0_29, %c0_30, %c0_31, %c0_32] : memref<1x6x256x16xbf16, #tpu.memory_space<vmem>>, vector<1x1x256x16xbf16>
    %59 = vector.shape_cast %58 : vector<1x1x256x16xbf16> to vector<256x16xbf16>
    %cst_33 = arith.constant dense<0.000000e+00> : vector<8x16xf32>
    %60 = tpu.matmul %34, %59, %cst_33 {dimension_numbers = #tpu.dot_dimension_numbers<[1], [0], [0], [1], [0, 0, 1, 1], [], []>} : vector<8x256xbf16>, vector<256x16xbf16>, vector<8x16xf32> -> vector<8x16xf32>
    %61 = arith.mulf %57, %60 : vector<8x16xf32>
    %cst_34 = arith.constant dense<0.000000e+00> : vector<8xf32>
    %62 = vector.multi_reduction <add>, %61, %cst_34 [1] : vector<8x16xf32> to vector<8xf32>
    %63 = vector.shape_cast %62 : vector<8xf32> to vector<8x1xf32>
    %64 = vector.broadcast %63 : vector<8x1xf32> to vector<8x256xf32>
    %65 = arith.mulf %54, %64 : vector<8x256xf32>
    %66 = vector.extract_strided_slice %7 {offsets = [2, 0], sizes = [1, 256], strides = [1, 1]} : vector<3x256xf32> to vector<1x256xf32>
    %67 = vector.broadcast %66 : vector<1x256xf32> to vector<8x256xf32>
    %68 = arith.addf %65, %67 : vector<8x256xf32>
    %69 = arith.mulf %68, %32 : vector<8x256xf32>
    %70 = arith.negf %33 : vector<8x256xf32>
    %71 = math.exp %70 : vector<8x256xf32>
    %cst_35 = arith.constant 1.000000e+00 : f32
    %72 = vector.broadcast %cst_35 : f32 to vector<8x256xf32>
    %73 = arith.addf %72, %71 : vector<8x256xf32>
    %74 = arith.divf %72, %73 : vector<8x256xf32>
    %75 = arith.mulf %33, %74 : vector<8x256xf32>
    %76 = arith.mulf %69, %75 : vector<8x256xf32>
    %77 = arith.truncf %76 : vector<8x256xf32> to vector<8x256xbf16>
    %c0_36 = arith.constant 0 : index
    %c0_37 = arith.constant 0 : index
    %c0_38 = arith.constant 0 : index
    %c0_39 = arith.constant 0 : index
    %78 = vector.load %arg12[%c0_36, %c0_37, %c0_38, %c0_39] : memref<1x6x256x128xbf16, #tpu.memory_space<vmem>>, vector<1x1x256x128xbf16>
    %79 = vector.shape_cast %78 : vector<1x1x256x128xbf16> to vector<256x128xbf16>
    %cst_40 = arith.constant dense<0.000000e+00> : vector<8x128xf32>
    %80 = tpu.matmul %77, %79, %cst_40 {dimension_numbers = #tpu.dot_dimension_numbers<[1], [0], [0], [1], [0, 0, 1, 1], [], []>} : vector<8x256xbf16>, vector<256x128xbf16>, vector<8x128xf32> -> vector<8x128xf32>
    %81 = arith.addf %3, %80 : vector<8x128xf32>
    %82 = vector.extract_strided_slice %5 {offsets = [1, 0], sizes = [1, 128], strides = [1, 1]} : vector<3x128xf32> to vector<1x128xf32>
    %83 = vector.broadcast %82 : vector<1x128xf32> to vector<8x128xf32>
    %84 = arith.mulf %83, %81 : vector<8x128xf32>
    %85 = arith.mulf %81, %81 : vector<8x128xf32>
    %cst_41 = arith.constant dense<0.000000e+00> : vector<8xf32>
    %86 = vector.multi_reduction <add>, %85, %cst_41 [1] : vector<8x128xf32> to vector<8xf32>
    %87 = vector.shape_cast %86 : vector<8xf32> to vector<8x1xf32>
    %cst_42 = arith.constant 9.99999997E-7 : f32
    %88 = vector.broadcast %cst_42 : f32 to vector<8x1xf32>
    %89 = arith.addf %87, %88 : vector<8x1xf32>
    %90 = math.sqrt %89 : vector<8x1xf32>
    %91 = vector.broadcast %90 : vector<8x1xf32> to vector<8x128xf32>
    %92 = arith.divf %84, %91 : vector<8x128xf32>
    %93 = arith.truncf %92 : vector<8x128xf32> to vector<8x128xbf16>
    %c0_43 = arith.constant 0 : index
    %c0_44 = arith.constant 0 : index
    %c0_45 = arith.constant 0 : index
    %c0_46 = arith.constant 0 : index
    %94 = vector.load %arg13[%c0_43, %c0_44, %c0_45, %c0_46] : memref<1x6x128x512xbf16, #tpu.memory_space<vmem>>, vector<1x1x128x512xbf16>
    %95 = vector.shape_cast %94 : vector<1x1x128x512xbf16> to vector<128x512xbf16>
    %cst_47 = arith.constant dense<0.000000e+00> : vector<8x512xf32>
    %96 = tpu.matmul %93, %95, %cst_47 {dimension_numbers = #tpu.dot_dimension_numbers<[1], [0], [0], [1], [0, 0, 1, 1], [], []>} : vector<8x128xbf16>, vector<128x512xbf16>, vector<8x512xf32> -> vector<8x512xf32>
    %c0_48 = arith.constant 0 : index
    %c0_49 = arith.constant 0 : index
    %c0_50 = arith.constant 0 : index
    %97 = vector.load %arg17[%c0_48, %c0_49, %c0_50] : memref<1x6x512xf32, #tpu.memory_space<vmem>>, vector<1x1x512xf32>
    %98 = vector.shape_cast %97 : vector<1x1x512xf32> to vector<512xf32>
    %99 = vector.shape_cast %98 : vector<512xf32> to vector<1x512xf32>
    %100 = vector.broadcast %99 : vector<1x512xf32> to vector<8x512xf32>
    %101 = arith.addf %96, %100 : vector<8x512xf32>
    %cst_51 = arith.constant 5.000000e-01 : f32
    %102 = vector.broadcast %cst_51 : f32 to vector<8x512xf32>
    %103 = arith.mulf %102, %101 : vector<8x512xf32>
    %cst_52 = arith.constant 0.707106769 : f32
    %104 = vector.broadcast %cst_52 : f32 to vector<8x512xf32>
    %105 = arith.mulf %101, %104 : vector<8x512xf32>
    %106 = math.erf %105 : vector<8x512xf32>
    %cst_53 = arith.constant 1.000000e+00 : f32
    %107 = vector.broadcast %cst_53 : f32 to vector<8x512xf32>
    %108 = arith.addf %107, %106 : vector<8x512xf32>
    %109 = arith.mulf %103, %108 : vector<8x512xf32>
    %110 = arith.truncf %109 : vector<8x512xf32> to vector<8x512xbf16>
    %c0_54 = arith.constant 0 : index
    %c0_55 = arith.constant 0 : index
    %c0_56 = arith.constant 0 : index
    %c0_57 = arith.constant 0 : index
    %111 = vector.load %arg14[%c0_54, %c0_55, %c0_56, %c0_57] : memref<1x6x512x128xbf16, #tpu.memory_space<vmem>>, vector<1x1x512x128xbf16>
    %112 = vector.shape_cast %111 : vector<1x1x512x128xbf16> to vector<512x128xbf16>
    %cst_58 = arith.constant dense<0.000000e+00> : vector<8x128xf32>
    %113 = tpu.matmul %110, %112, %cst_58 {dimension_numbers = #tpu.dot_dimension_numbers<[1], [0], [0], [1], [0, 0, 1, 1], [], []>} : vector<8x512xbf16>, vector<512x128xbf16>, vector<8x128xf32> -> vector<8x128xf32>
    %114 = vector.extract_strided_slice %5 {offsets = [2, 0], sizes = [1, 128], strides = [1, 1]} : vector<3x128xf32> to vector<1x128xf32>
    %115 = vector.broadcast %114 : vector<1x128xf32> to vector<8x128xf32>
    %116 = arith.addf %113, %115 : vector<8x128xf32>
    %117 = arith.addf %81, %116 : vector<8x128xf32>
    %c0_59 = arith.constant 0 : index
    %c1 = arith.constant 1 : index
    %c0_60 = arith.constant 0 : index
    %c0_61 = arith.constant 0 : index
    %118 = vector.load %arg16[%c0_59, %c1, %c0_60, %c0_61] : memref<1x6x3x128xf32, #tpu.memory_space<vmem>>, vector<1x1x3x128xf32>
    %119 = vector.shape_cast %118 : vector<1x1x3x128xf32> to vector<3x128xf32>
    %c0_62 = arith.constant 0 : index
    %c1_63 = arith.constant 1 : index
    %c0_64 = arith.constant 0 : index
    %c0_65 = arith.constant 0 : index
    %120 = vector.load %arg15[%c0_62, %c1_63, %c0_64, %c0_65] : memref<1x6x3x256xf32, #tpu.memory_space<vmem>>, vector<1x1x3x256xf32>
    %121 = vector.shape_cast %120 : vector<1x1x3x256xf32> to vector<3x256xf32>
    %122 = vector.extract_strided_slice %119 {offsets = [0, 0], sizes = [1, 128], strides = [1, 1]} : vector<3x128xf32> to vector<1x128xf32>
    %123 = vector.broadcast %122 : vector<1x128xf32> to vector<8x128xf32>
    %124 = arith.mulf %123, %117 : vector<8x128xf32>
    %125 = arith.mulf %117, %117 : vector<8x128xf32>
    %cst_66 = arith.constant dense<0.000000e+00> : vector<8xf32>
    %126 = vector.multi_reduction <add>, %125, %cst_66 [1] : vector<8x128xf32> to vector<8xf32>
    %127 = vector.shape_cast %126 : vector<8xf32> to vector<8x1xf32>
    %cst_67 = arith.constant 9.99999997E-7 : f32
    %128 = vector.broadcast %cst_67 : f32 to vector<8x1xf32>
    %129 = arith.addf %127, %128 : vector<8x1xf32>
    %130 = math.sqrt %129 : vector<8x1xf32>
    %131 = vector.broadcast %130 : vector<8x1xf32> to vector<8x128xf32>
    %132 = arith.divf %124, %131 : vector<8x128xf32>
    %133 = arith.truncf %132 : vector<8x128xf32> to vector<8x128xbf16>
    %c0_68 = arith.constant 0 : index
    %c1_69 = arith.constant 1 : index
    %c0_70 = arith.constant 0 : index
    %c0_71 = arith.constant 0 : index
    %134 = vector.load %arg8[%c0_68, %c1_69, %c0_70, %c0_71] : memref<1x6x128x512xbf16, #tpu.memory_space<vmem>>, vector<1x1x128x512xbf16>
    %135 = vector.shape_cast %134 : vector<1x1x128x512xbf16> to vector<128x512xbf16>
    %cst_72 = arith.constant dense<0.000000e+00> : vector<8x512xf32>
    %136 = tpu.matmul %133, %135, %cst_72 {dimension_numbers = #tpu.dot_dimension_numbers<[1], [0], [0], [1], [0, 0, 1, 1], [], []>} : vector<8x128xbf16>, vector<128x512xbf16>, vector<8x512xf32> -> vector<8x512xf32>
    %137 = vector.extract_strided_slice %136 {offsets = [0, 0], sizes = [8, 256], strides = [1, 1]} : vector<8x512xf32> to vector<8x256xf32>
    %138 = vector.extract_strided_slice %121 {offsets = [0, 0], sizes = [1, 256], strides = [1, 1]} : vector<3x256xf32> to vector<1x256xf32>
    %139 = vector.broadcast %138 : vector<1x256xf32> to vector<8x256xf32>
    %140 = arith.addf %137, %139 : vector<8x256xf32>
    %141 = arith.negf %140 : vector<8x256xf32>
    %142 = math.exp %141 : vector<8x256xf32>
    %cst_73 = arith.constant 1.000000e+00 : f32
    %143 = vector.broadcast %cst_73 : f32 to vector<8x256xf32>
    %144 = arith.addf %143, %142 : vector<8x256xf32>
    %145 = arith.divf %143, %144 : vector<8x256xf32>
    %146 = arith.mulf %140, %145 : vector<8x256xf32>
    %147 = vector.extract_strided_slice %136 {offsets = [0, 256], sizes = [8, 256], strides = [1, 1]} : vector<8x512xf32> to vector<8x256xf32>
    %148 = arith.truncf %146 : vector<8x256xf32> to vector<8x256xbf16>
    %c0_74 = arith.constant 0 : index
    %c1_75 = arith.constant 1 : index
    %c0_76 = arith.constant 0 : index
    %c0_77 = arith.constant 0 : index
    %149 = vector.load %arg9[%c0_74, %c1_75, %c0_76, %c0_77] : memref<1x6x256x256xbf16, #tpu.memory_space<vmem>>, vector<1x1x256x256xbf16>
    %150 = vector.shape_cast %149 : vector<1x1x256x256xbf16> to vector<256x256xbf16>
    %cst_78 = arith.constant dense<0.000000e+00> : vector<8x256xf32>
    %151 = tpu.matmul %148, %150, %cst_78 {dimension_numbers = #tpu.dot_dimension_numbers<[1], [0], [0], [1], [0, 0, 1, 1], [], []>} : vector<8x256xbf16>, vector<256x256xbf16>, vector<8x256xf32> -> vector<8x256xf32>
    %152 = vector.extract_strided_slice %121 {offsets = [1, 0], sizes = [1, 256], strides = [1, 1]} : vector<3x256xf32> to vector<1x256xf32>
    %153 = vector.broadcast %152 : vector<1x256xf32> to vector<8x256xf32>
    %154 = arith.addf %151, %153 : vector<8x256xf32>
    %cst_79 = arith.constant 0.000000e+00 : f32
    %155 = vector.broadcast %cst_79 : f32 to vector<8x256xf32>
    %156 = arith.maximumf %154, %155 : vector<8x256xf32>
    %157 = vector.broadcast %cst_79 : f32 to vector<8x256xf32>
    %158 = arith.subf %154, %157 : vector<8x256xf32>
    %159 = arith.cmpf one, %158, %158 : vector<8x256xf32>
    %160 = vector.broadcast %cst_79 : f32 to vector<8x256xf32>
    %161 = arith.addf %154, %160 : vector<8x256xf32>
    %162 = math.absf %158 : vector<8x256xf32>
    %cst_80 = arith.constant 0.000000e+00 : f32
    %163 = vector.broadcast %cst_80 : f32 to vector<8x256xf32>
    %164 = arith.subf %163, %162 : vector<8x256xf32>
    %165 = math.exp %164 : vector<8x256xf32>
    %166 = math.log1p %165 : vector<8x256xf32>
    %167 = arith.addf %156, %166 : vector<8x256xf32>
    %168 = arith.select %159, %161, %167 : vector<8x256xi1>, vector<8x256xf32>
    %c0_81 = arith.constant 0 : index
    %c1_82 = arith.constant 1 : index
    %c0_83 = arith.constant 0 : index
    %c0_84 = arith.constant 0 : index
    %169 = vector.load %arg10[%c0_81, %c1_82, %c0_83, %c0_84] : memref<1x6x256x16xbf16, #tpu.memory_space<vmem>>, vector<1x1x256x16xbf16>
    %170 = vector.shape_cast %169 : vector<1x1x256x16xbf16> to vector<256x16xbf16>
    %cst_85 = arith.constant dense<0.000000e+00> : vector<8x16xf32>
    %171 = tpu.matmul %148, %170, %cst_85 {dimension_numbers = #tpu.dot_dimension_numbers<[1], [0], [0], [1], [0, 0, 1, 1], [], []>} : vector<8x256xbf16>, vector<256x16xbf16>, vector<8x16xf32> -> vector<8x16xf32>
    %c0_86 = arith.constant 0 : index
    %c1_87 = arith.constant 1 : index
    %c0_88 = arith.constant 0 : index
    %c0_89 = arith.constant 0 : index
    %172 = vector.load %arg11[%c0_86, %c1_87, %c0_88, %c0_89] : memref<1x6x256x16xbf16, #tpu.memory_space<vmem>>, vector<1x1x256x16xbf16>
    %173 = vector.shape_cast %172 : vector<1x1x256x16xbf16> to vector<256x16xbf16>
    %cst_90 = arith.constant dense<0.000000e+00> : vector<8x16xf32>
    %174 = tpu.matmul %148, %173, %cst_90 {dimension_numbers = #tpu.dot_dimension_numbers<[1], [0], [0], [1], [0, 0, 1, 1], [], []>} : vector<8x256xbf16>, vector<256x16xbf16>, vector<8x16xf32> -> vector<8x16xf32>
    %175 = arith.mulf %171, %174 : vector<8x16xf32>
    %cst_91 = arith.constant dense<0.000000e+00> : vector<8xf32>
    %176 = vector.multi_reduction <add>, %175, %cst_91 [1] : vector<8x16xf32> to vector<8xf32>
    %177 = vector.shape_cast %176 : vector<8xf32> to vector<8x1xf32>
    %178 = vector.broadcast %177 : vector<8x1xf32> to vector<8x256xf32>
    %179 = arith.mulf %168, %178 : vector<8x256xf32>
    %180 = vector.extract_strided_slice %121 {offsets = [2, 0], sizes = [1, 256], strides = [1, 1]} : vector<3x256xf32> to vector<1x256xf32>
    %181 = vector.broadcast %180 : vector<1x256xf32> to vector<8x256xf32>
    %182 = arith.addf %179, %181 : vector<8x256xf32>
    %183 = arith.mulf %182, %146 : vector<8x256xf32>
    %184 = arith.negf %147 : vector<8x256xf32>
    %185 = math.exp %184 : vector<8x256xf32>
    %cst_92 = arith.constant 1.000000e+00 : f32
    %186 = vector.broadcast %cst_92 : f32 to vector<8x256xf32>
    %187 = arith.addf %186, %185 : vector<8x256xf32>
    %188 = arith.divf %186, %187 : vector<8x256xf32>
    %189 = arith.mulf %147, %188 : vector<8x256xf32>
    %190 = arith.mulf %183, %189 : vector<8x256xf32>
    %191 = arith.truncf %190 : vector<8x256xf32> to vector<8x256xbf16>
    %c0_93 = arith.constant 0 : index
    %c1_94 = arith.constant 1 : index
    %c0_95 = arith.constant 0 : index
    %c0_96 = arith.constant 0 : index
    %192 = vector.load %arg12[%c0_93, %c1_94, %c0_95, %c0_96] : memref<1x6x256x128xbf16, #tpu.memory_space<vmem>>, vector<1x1x256x128xbf16>
    %193 = vector.shape_cast %192 : vector<1x1x256x128xbf16> to vector<256x128xbf16>
    %cst_97 = arith.constant dense<0.000000e+00> : vector<8x128xf32>
    %194 = tpu.matmul %191, %193, %cst_97 {dimension_numbers = #tpu.dot_dimension_numbers<[1], [0], [0], [1], [0, 0, 1, 1], [], []>} : vector<8x256xbf16>, vector<256x128xbf16>, vector<8x128xf32> -> vector<8x128xf32>
    %195 = arith.addf %117, %194 : vector<8x128xf32>
    %196 = vector.extract_strided_slice %119 {offsets = [1, 0], sizes = [1, 128], strides = [1, 1]} : vector<3x128xf32> to vector<1x128xf32>
    %197 = vector.broadcast %196 : vector<1x128xf32> to vector<8x128xf32>
    %198 = arith.mulf %197, %195 : vector<8x128xf32>
    %199 = arith.mulf %195, %195 : vector<8x128xf32>
    %cst_98 = arith.constant dense<0.000000e+00> : vector<8xf32>
    %200 = vector.multi_reduction <add>, %199, %cst_98 [1] : vector<8x128xf32> to vector<8xf32>
    %201 = vector.shape_cast %200 : vector<8xf32> to vector<8x1xf32>
    %cst_99 = arith.constant 9.99999997E-7 : f32
    %202 = vector.broadcast %cst_99 : f32 to vector<8x1xf32>
    %203 = arith.addf %201, %202 : vector<8x1xf32>
    %204 = math.sqrt %203 : vector<8x1xf32>
    %205 = vector.broadcast %204 : vector<8x1xf32> to vector<8x128xf32>
    %206 = arith.divf %198, %205 : vector<8x128xf32>
    %207 = arith.truncf %206 : vector<8x128xf32> to vector<8x128xbf16>
    %c0_100 = arith.constant 0 : index
    %c1_101 = arith.constant 1 : index
    %c0_102 = arith.constant 0 : index
    %c0_103 = arith.constant 0 : index
    %208 = vector.load %arg13[%c0_100, %c1_101, %c0_102, %c0_103] : memref<1x6x128x512xbf16, #tpu.memory_space<vmem>>, vector<1x1x128x512xbf16>
    %209 = vector.shape_cast %208 : vector<1x1x128x512xbf16> to vector<128x512xbf16>
    %cst_104 = arith.constant dense<0.000000e+00> : vector<8x512xf32>
    %210 = tpu.matmul %207, %209, %cst_104 {dimension_numbers = #tpu.dot_dimension_numbers<[1], [0], [0], [1], [0, 0, 1, 1], [], []>} : vector<8x128xbf16>, vector<128x512xbf16>, vector<8x512xf32> -> vector<8x512xf32>
    %c0_105 = arith.constant 0 : index
    %c1_106 = arith.constant 1 : index
    %c0_107 = arith.constant 0 : index
    %211 = vector.load %arg17[%c0_105, %c1_106, %c0_107] : memref<1x6x512xf32, #tpu.memory_space<vmem>>, vector<1x1x512xf32>
    %212 = vector.shape_cast %211 : vector<1x1x512xf32> to vector<512xf32>
    %213 = vector.shape_cast %212 : vector<512xf32> to vector<1x512xf32>
    %214 = vector.broadcast %213 : vector<1x512xf32> to vector<8x512xf32>
    %215 = arith.addf %210, %214 : vector<8x512xf32>
    %cst_108 = arith.constant 5.000000e-01 : f32
    %216 = vector.broadcast %cst_108 : f32 to vector<8x512xf32>
    %217 = arith.mulf %216, %215 : vector<8x512xf32>
    %cst_109 = arith.constant 0.707106769 : f32
    %218 = vector.broadcast %cst_109 : f32 to vector<8x512xf32>
    %219 = arith.mulf %215, %218 : vector<8x512xf32>
    %220 = math.erf %219 : vector<8x512xf32>
    %cst_110 = arith.constant 1.000000e+00 : f32
    %221 = vector.broadcast %cst_110 : f32 to vector<8x512xf32>
    %222 = arith.addf %221, %220 : vector<8x512xf32>
    %223 = arith.mulf %217, %222 : vector<8x512xf32>
    %224 = arith.truncf %223 : vector<8x512xf32> to vector<8x512xbf16>
    %c0_111 = arith.constant 0 : index
    %c1_112 = arith.constant 1 : index
    %c0_113 = arith.constant 0 : index
    %c0_114 = arith.constant 0 : index
    %225 = vector.load %arg14[%c0_111, %c1_112, %c0_113, %c0_114] : memref<1x6x512x128xbf16, #tpu.memory_space<vmem>>, vector<1x1x512x128xbf16>
    %226 = vector.shape_cast %225 : vector<1x1x512x128xbf16> to vector<512x128xbf16>
    %cst_115 = arith.constant dense<0.000000e+00> : vector<8x128xf32>
    %227 = tpu.matmul %224, %226, %cst_115 {dimension_numbers = #tpu.dot_dimension_numbers<[1], [0], [0], [1], [0, 0, 1, 1], [], []>} : vector<8x512xbf16>, vector<512x128xbf16>, vector<8x128xf32> -> vector<8x128xf32>
    %228 = vector.extract_strided_slice %119 {offsets = [2, 0], sizes = [1, 128], strides = [1, 1]} : vector<3x128xf32> to vector<1x128xf32>
    %229 = vector.broadcast %228 : vector<1x128xf32> to vector<8x128xf32>
    %230 = arith.addf %227, %229 : vector<8x128xf32>
    %231 = arith.addf %195, %230 : vector<8x128xf32>
    %c0_116 = arith.constant 0 : index
    %c2 = arith.constant 2 : index
    %c0_117 = arith.constant 0 : index
    %c0_118 = arith.constant 0 : index
    %232 = vector.load %arg16[%c0_116, %c2, %c0_117, %c0_118] : memref<1x6x3x128xf32, #tpu.memory_space<vmem>>, vector<1x1x3x128xf32>
    %233 = vector.shape_cast %232 : vector<1x1x3x128xf32> to vector<3x128xf32>
    %c0_119 = arith.constant 0 : index
    %c2_120 = arith.constant 2 : index
    %c0_121 = arith.constant 0 : index
    %c0_122 = arith.constant 0 : index
    %234 = vector.load %arg15[%c0_119, %c2_120, %c0_121, %c0_122] : memref<1x6x3x256xf32, #tpu.memory_space<vmem>>, vector<1x1x3x256xf32>
    %235 = vector.shape_cast %234 : vector<1x1x3x256xf32> to vector<3x256xf32>
    %236 = vector.extract_strided_slice %233 {offsets = [0, 0], sizes = [1, 128], strides = [1, 1]} : vector<3x128xf32> to vector<1x128xf32>
    %237 = vector.broadcast %236 : vector<1x128xf32> to vector<8x128xf32>
    %238 = arith.mulf %237, %231 : vector<8x128xf32>
    %239 = arith.mulf %231, %231 : vector<8x128xf32>
    %cst_123 = arith.constant dense<0.000000e+00> : vector<8xf32>
    %240 = vector.multi_reduction <add>, %239, %cst_123 [1] : vector<8x128xf32> to vector<8xf32>
    %241 = vector.shape_cast %240 : vector<8xf32> to vector<8x1xf32>
    %cst_124 = arith.constant 9.99999997E-7 : f32
    %242 = vector.broadcast %cst_124 : f32 to vector<8x1xf32>
    %243 = arith.addf %241, %242 : vector<8x1xf32>
    %244 = math.sqrt %243 : vector<8x1xf32>
    %245 = vector.broadcast %244 : vector<8x1xf32> to vector<8x128xf32>
    %246 = arith.divf %238, %245 : vector<8x128xf32>
    %247 = arith.truncf %246 : vector<8x128xf32> to vector<8x128xbf16>
    %c0_125 = arith.constant 0 : index
    %c2_126 = arith.constant 2 : index
    %c0_127 = arith.constant 0 : index
    %c0_128 = arith.constant 0 : index
    %248 = vector.load %arg8[%c0_125, %c2_126, %c0_127, %c0_128] : memref<1x6x128x512xbf16, #tpu.memory_space<vmem>>, vector<1x1x128x512xbf16>
    %249 = vector.shape_cast %248 : vector<1x1x128x512xbf16> to vector<128x512xbf16>
    %cst_129 = arith.constant dense<0.000000e+00> : vector<8x512xf32>
    %250 = tpu.matmul %247, %249, %cst_129 {dimension_numbers = #tpu.dot_dimension_numbers<[1], [0], [0], [1], [0, 0, 1, 1], [], []>} : vector<8x128xbf16>, vector<128x512xbf16>, vector<8x512xf32> -> vector<8x512xf32>
    %251 = vector.extract_strided_slice %250 {offsets = [0, 0], sizes = [8, 256], strides = [1, 1]} : vector<8x512xf32> to vector<8x256xf32>
    %252 = vector.extract_strided_slice %235 {offsets = [0, 0], sizes = [1, 256], strides = [1, 1]} : vector<3x256xf32> to vector<1x256xf32>
    %253 = vector.broadcast %252 : vector<1x256xf32> to vector<8x256xf32>
    %254 = arith.addf %251, %253 : vector<8x256xf32>
    %255 = arith.negf %254 : vector<8x256xf32>
    %256 = math.exp %255 : vector<8x256xf32>
    %cst_130 = arith.constant 1.000000e+00 : f32
    %257 = vector.broadcast %cst_130 : f32 to vector<8x256xf32>
    %258 = arith.addf %257, %256 : vector<8x256xf32>
    %259 = arith.divf %257, %258 : vector<8x256xf32>
    %260 = arith.mulf %254, %259 : vector<8x256xf32>
    %261 = vector.extract_strided_slice %250 {offsets = [0, 256], sizes = [8, 256], strides = [1, 1]} : vector<8x512xf32> to vector<8x256xf32>
    %262 = arith.truncf %260 : vector<8x256xf32> to vector<8x256xbf16>
    %c0_131 = arith.constant 0 : index
    %c2_132 = arith.constant 2 : index
    %c0_133 = arith.constant 0 : index
    %c0_134 = arith.constant 0 : index
    %263 = vector.load %arg9[%c0_131, %c2_132, %c0_133, %c0_134] : memref<1x6x256x256xbf16, #tpu.memory_space<vmem>>, vector<1x1x256x256xbf16>
    %264 = vector.shape_cast %263 : vector<1x1x256x256xbf16> to vector<256x256xbf16>
    %cst_135 = arith.constant dense<0.000000e+00> : vector<8x256xf32>
    %265 = tpu.matmul %262, %264, %cst_135 {dimension_numbers = #tpu.dot_dimension_numbers<[1], [0], [0], [1], [0, 0, 1, 1], [], []>} : vector<8x256xbf16>, vector<256x256xbf16>, vector<8x256xf32> -> vector<8x256xf32>
    %266 = vector.extract_strided_slice %235 {offsets = [1, 0], sizes = [1, 256], strides = [1, 1]} : vector<3x256xf32> to vector<1x256xf32>
    %267 = vector.broadcast %266 : vector<1x256xf32> to vector<8x256xf32>
    %268 = arith.addf %265, %267 : vector<8x256xf32>
    %cst_136 = arith.constant 0.000000e+00 : f32
    %269 = vector.broadcast %cst_136 : f32 to vector<8x256xf32>
    %270 = arith.maximumf %268, %269 : vector<8x256xf32>
    %271 = vector.broadcast %cst_136 : f32 to vector<8x256xf32>
    %272 = arith.subf %268, %271 : vector<8x256xf32>
    %273 = arith.cmpf one, %272, %272 : vector<8x256xf32>
    %274 = vector.broadcast %cst_136 : f32 to vector<8x256xf32>
    %275 = arith.addf %268, %274 : vector<8x256xf32>
    %276 = math.absf %272 : vector<8x256xf32>
    %cst_137 = arith.constant 0.000000e+00 : f32
    %277 = vector.broadcast %cst_137 : f32 to vector<8x256xf32>
    %278 = arith.subf %277, %276 : vector<8x256xf32>
    %279 = math.exp %278 : vector<8x256xf32>
    %280 = math.log1p %279 : vector<8x256xf32>
    %281 = arith.addf %270, %280 : vector<8x256xf32>
    %282 = arith.select %273, %275, %281 : vector<8x256xi1>, vector<8x256xf32>
    %c0_138 = arith.constant 0 : index
    %c2_139 = arith.constant 2 : index
    %c0_140 = arith.constant 0 : index
    %c0_141 = arith.constant 0 : index
    %283 = vector.load %arg10[%c0_138, %c2_139, %c0_140, %c0_141] : memref<1x6x256x16xbf16, #tpu.memory_space<vmem>>, vector<1x1x256x16xbf16>
    %284 = vector.shape_cast %283 : vector<1x1x256x16xbf16> to vector<256x16xbf16>
    %cst_142 = arith.constant dense<0.000000e+00> : vector<8x16xf32>
    %285 = tpu.matmul %262, %284, %cst_142 {dimension_numbers = #tpu.dot_dimension_numbers<[1], [0], [0], [1], [0, 0, 1, 1], [], []>} : vector<8x256xbf16>, vector<256x16xbf16>, vector<8x16xf32> -> vector<8x16xf32>
    %c0_143 = arith.constant 0 : index
    %c2_144 = arith.constant 2 : index
    %c0_145 = arith.constant 0 : index
    %c0_146 = arith.constant 0 : index
    %286 = vector.load %arg11[%c0_143, %c2_144, %c0_145, %c0_146] : memref<1x6x256x16xbf16, #tpu.memory_space<vmem>>, vector<1x1x256x16xbf16>
    %287 = vector.shape_cast %286 : vector<1x1x256x16xbf16> to vector<256x16xbf16>
    %cst_147 = arith.constant dense<0.000000e+00> : vector<8x16xf32>
    %288 = tpu.matmul %262, %287, %cst_147 {dimension_numbers = #tpu.dot_dimension_numbers<[1], [0], [0], [1], [0, 0, 1, 1], [], []>} : vector<8x256xbf16>, vector<256x16xbf16>, vector<8x16xf32> -> vector<8x16xf32>
    %289 = arith.mulf %285, %288 : vector<8x16xf32>
    %cst_148 = arith.constant dense<0.000000e+00> : vector<8xf32>
    %290 = vector.multi_reduction <add>, %289, %cst_148 [1] : vector<8x16xf32> to vector<8xf32>
    %291 = vector.shape_cast %290 : vector<8xf32> to vector<8x1xf32>
    %292 = vector.broadcast %291 : vector<8x1xf32> to vector<8x256xf32>
    %293 = arith.mulf %282, %292 : vector<8x256xf32>
    %294 = vector.extract_strided_slice %235 {offsets = [2, 0], sizes = [1, 256], strides = [1, 1]} : vector<3x256xf32> to vector<1x256xf32>
    %295 = vector.broadcast %294 : vector<1x256xf32> to vector<8x256xf32>
    %296 = arith.addf %293, %295 : vector<8x256xf32>
    %297 = arith.mulf %296, %260 : vector<8x256xf32>
    %298 = arith.negf %261 : vector<8x256xf32>
    %299 = math.exp %298 : vector<8x256xf32>
    %cst_149 = arith.constant 1.000000e+00 : f32
    %300 = vector.broadcast %cst_149 : f32 to vector<8x256xf32>
    %301 = arith.addf %300, %299 : vector<8x256xf32>
    %302 = arith.divf %300, %301 : vector<8x256xf32>
    %303 = arith.mulf %261, %302 : vector<8x256xf32>
    %304 = arith.mulf %297, %303 : vector<8x256xf32>
    %305 = arith.truncf %304 : vector<8x256xf32> to vector<8x256xbf16>
    %c0_150 = arith.constant 0 : index
    %c2_151 = arith.constant 2 : index
    %c0_152 = arith.constant 0 : index
    %c0_153 = arith.constant 0 : index
    %306 = vector.load %arg12[%c0_150, %c2_151, %c0_152, %c0_153] : memref<1x6x256x128xbf16, #tpu.memory_space<vmem>>, vector<1x1x256x128xbf16>
    %307 = vector.shape_cast %306 : vector<1x1x256x128xbf16> to vector<256x128xbf16>
    %cst_154 = arith.constant dense<0.000000e+00> : vector<8x128xf32>
    %308 = tpu.matmul %305, %307, %cst_154 {dimension_numbers = #tpu.dot_dimension_numbers<[1], [0], [0], [1], [0, 0, 1, 1], [], []>} : vector<8x256xbf16>, vector<256x128xbf16>, vector<8x128xf32> -> vector<8x128xf32>
    %309 = arith.addf %231, %308 : vector<8x128xf32>
    %310 = vector.extract_strided_slice %233 {offsets = [1, 0], sizes = [1, 128], strides = [1, 1]} : vector<3x128xf32> to vector<1x128xf32>
    %311 = vector.broadcast %310 : vector<1x128xf32> to vector<8x128xf32>
    %312 = arith.mulf %311, %309 : vector<8x128xf32>
    %313 = arith.mulf %309, %309 : vector<8x128xf32>
    %cst_155 = arith.constant dense<0.000000e+00> : vector<8xf32>
    %314 = vector.multi_reduction <add>, %313, %cst_155 [1] : vector<8x128xf32> to vector<8xf32>
    %315 = vector.shape_cast %314 : vector<8xf32> to vector<8x1xf32>
    %cst_156 = arith.constant 9.99999997E-7 : f32
    %316 = vector.broadcast %cst_156 : f32 to vector<8x1xf32>
    %317 = arith.addf %315, %316 : vector<8x1xf32>
    %318 = math.sqrt %317 : vector<8x1xf32>
    %319 = vector.broadcast %318 : vector<8x1xf32> to vector<8x128xf32>
    %320 = arith.divf %312, %319 : vector<8x128xf32>
    %321 = arith.truncf %320 : vector<8x128xf32> to vector<8x128xbf16>
    %c0_157 = arith.constant 0 : index
    %c2_158 = arith.constant 2 : index
    %c0_159 = arith.constant 0 : index
    %c0_160 = arith.constant 0 : index
    %322 = vector.load %arg13[%c0_157, %c2_158, %c0_159, %c0_160] : memref<1x6x128x512xbf16, #tpu.memory_space<vmem>>, vector<1x1x128x512xbf16>
    %323 = vector.shape_cast %322 : vector<1x1x128x512xbf16> to vector<128x512xbf16>
    %cst_161 = arith.constant dense<0.000000e+00> : vector<8x512xf32>
    %324 = tpu.matmul %321, %323, %cst_161 {dimension_numbers = #tpu.dot_dimension_numbers<[1], [0], [0], [1], [0, 0, 1, 1], [], []>} : vector<8x128xbf16>, vector<128x512xbf16>, vector<8x512xf32> -> vector<8x512xf32>
    %c0_162 = arith.constant 0 : index
    %c2_163 = arith.constant 2 : index
    %c0_164 = arith.constant 0 : index
    %325 = vector.load %arg17[%c0_162, %c2_163, %c0_164] : memref<1x6x512xf32, #tpu.memory_space<vmem>>, vector<1x1x512xf32>
    %326 = vector.shape_cast %325 : vector<1x1x512xf32> to vector<512xf32>
    %327 = vector.shape_cast %326 : vector<512xf32> to vector<1x512xf32>
    %328 = vector.broadcast %327 : vector<1x512xf32> to vector<8x512xf32>
    %329 = arith.addf %324, %328 : vector<8x512xf32>
    %cst_165 = arith.constant 5.000000e-01 : f32
    %330 = vector.broadcast %cst_165 : f32 to vector<8x512xf32>
    %331 = arith.mulf %330, %329 : vector<8x512xf32>
    %cst_166 = arith.constant 0.707106769 : f32
    %332 = vector.broadcast %cst_166 : f32 to vector<8x512xf32>
    %333 = arith.mulf %329, %332 : vector<8x512xf32>
    %334 = math.erf %333 : vector<8x512xf32>
    %cst_167 = arith.constant 1.000000e+00 : f32
    %335 = vector.broadcast %cst_167 : f32 to vector<8x512xf32>
    %336 = arith.addf %335, %334 : vector<8x512xf32>
    %337 = arith.mulf %331, %336 : vector<8x512xf32>
    %338 = arith.truncf %337 : vector<8x512xf32> to vector<8x512xbf16>
    %c0_168 = arith.constant 0 : index
    %c2_169 = arith.constant 2 : index
    %c0_170 = arith.constant 0 : index
    %c0_171 = arith.constant 0 : index
    %339 = vector.load %arg14[%c0_168, %c2_169, %c0_170, %c0_171] : memref<1x6x512x128xbf16, #tpu.memory_space<vmem>>, vector<1x1x512x128xbf16>
    %340 = vector.shape_cast %339 : vector<1x1x512x128xbf16> to vector<512x128xbf16>
    %cst_172 = arith.constant dense<0.000000e+00> : vector<8x128xf32>
    %341 = tpu.matmul %338, %340, %cst_172 {dimension_numbers = #tpu.dot_dimension_numbers<[1], [0], [0], [1], [0, 0, 1, 1], [], []>} : vector<8x512xbf16>, vector<512x128xbf16>, vector<8x128xf32> -> vector<8x128xf32>
    %342 = vector.extract_strided_slice %233 {offsets = [2, 0], sizes = [1, 128], strides = [1, 1]} : vector<3x128xf32> to vector<1x128xf32>
    %343 = vector.broadcast %342 : vector<1x128xf32> to vector<8x128xf32>
    %344 = arith.addf %341, %343 : vector<8x128xf32>
    %345 = arith.addf %309, %344 : vector<8x128xf32>
    %c0_173 = arith.constant 0 : index
    %c3 = arith.constant 3 : index
    %c0_174 = arith.constant 0 : index
    %c0_175 = arith.constant 0 : index
    %346 = vector.load %arg16[%c0_173, %c3, %c0_174, %c0_175] : memref<1x6x3x128xf32, #tpu.memory_space<vmem>>, vector<1x1x3x128xf32>
    %347 = vector.shape_cast %346 : vector<1x1x3x128xf32> to vector<3x128xf32>
    %c0_176 = arith.constant 0 : index
    %c3_177 = arith.constant 3 : index
    %c0_178 = arith.constant 0 : index
    %c0_179 = arith.constant 0 : index
    %348 = vector.load %arg15[%c0_176, %c3_177, %c0_178, %c0_179] : memref<1x6x3x256xf32, #tpu.memory_space<vmem>>, vector<1x1x3x256xf32>
    %349 = vector.shape_cast %348 : vector<1x1x3x256xf32> to vector<3x256xf32>
    %350 = vector.extract_strided_slice %347 {offsets = [0, 0], sizes = [1, 128], strides = [1, 1]} : vector<3x128xf32> to vector<1x128xf32>
    %351 = vector.broadcast %350 : vector<1x128xf32> to vector<8x128xf32>
    %352 = arith.mulf %351, %345 : vector<8x128xf32>
    %353 = arith.mulf %345, %345 : vector<8x128xf32>
    %cst_180 = arith.constant dense<0.000000e+00> : vector<8xf32>
    %354 = vector.multi_reduction <add>, %353, %cst_180 [1] : vector<8x128xf32> to vector<8xf32>
    %355 = vector.shape_cast %354 : vector<8xf32> to vector<8x1xf32>
    %cst_181 = arith.constant 9.99999997E-7 : f32
    %356 = vector.broadcast %cst_181 : f32 to vector<8x1xf32>
    %357 = arith.addf %355, %356 : vector<8x1xf32>
    %358 = math.sqrt %357 : vector<8x1xf32>
    %359 = vector.broadcast %358 : vector<8x1xf32> to vector<8x128xf32>
    %360 = arith.divf %352, %359 : vector<8x128xf32>
    %361 = arith.truncf %360 : vector<8x128xf32> to vector<8x128xbf16>
    %c0_182 = arith.constant 0 : index
    %c3_183 = arith.constant 3 : index
    %c0_184 = arith.constant 0 : index
    %c0_185 = arith.constant 0 : index
    %362 = vector.load %arg8[%c0_182, %c3_183, %c0_184, %c0_185] : memref<1x6x128x512xbf16, #tpu.memory_space<vmem>>, vector<1x1x128x512xbf16>
    %363 = vector.shape_cast %362 : vector<1x1x128x512xbf16> to vector<128x512xbf16>
    %cst_186 = arith.constant dense<0.000000e+00> : vector<8x512xf32>
    %364 = tpu.matmul %361, %363, %cst_186 {dimension_numbers = #tpu.dot_dimension_numbers<[1], [0], [0], [1], [0, 0, 1, 1], [], []>} : vector<8x128xbf16>, vector<128x512xbf16>, vector<8x512xf32> -> vector<8x512xf32>
    %365 = vector.extract_strided_slice %364 {offsets = [0, 0], sizes = [8, 256], strides = [1, 1]} : vector<8x512xf32> to vector<8x256xf32>
    %366 = vector.extract_strided_slice %349 {offsets = [0, 0], sizes = [1, 256], strides = [1, 1]} : vector<3x256xf32> to vector<1x256xf32>
    %367 = vector.broadcast %366 : vector<1x256xf32> to vector<8x256xf32>
    %368 = arith.addf %365, %367 : vector<8x256xf32>
    %369 = arith.negf %368 : vector<8x256xf32>
    %370 = math.exp %369 : vector<8x256xf32>
    %cst_187 = arith.constant 1.000000e+00 : f32
    %371 = vector.broadcast %cst_187 : f32 to vector<8x256xf32>
    %372 = arith.addf %371, %370 : vector<8x256xf32>
    %373 = arith.divf %371, %372 : vector<8x256xf32>
    %374 = arith.mulf %368, %373 : vector<8x256xf32>
    %375 = vector.extract_strided_slice %364 {offsets = [0, 256], sizes = [8, 256], strides = [1, 1]} : vector<8x512xf32> to vector<8x256xf32>
    %376 = arith.truncf %374 : vector<8x256xf32> to vector<8x256xbf16>
    %c0_188 = arith.constant 0 : index
    %c3_189 = arith.constant 3 : index
    %c0_190 = arith.constant 0 : index
    %c0_191 = arith.constant 0 : index
    %377 = vector.load %arg9[%c0_188, %c3_189, %c0_190, %c0_191] : memref<1x6x256x256xbf16, #tpu.memory_space<vmem>>, vector<1x1x256x256xbf16>
    %378 = vector.shape_cast %377 : vector<1x1x256x256xbf16> to vector<256x256xbf16>
    %cst_192 = arith.constant dense<0.000000e+00> : vector<8x256xf32>
    %379 = tpu.matmul %376, %378, %cst_192 {dimension_numbers = #tpu.dot_dimension_numbers<[1], [0], [0], [1], [0, 0, 1, 1], [], []>} : vector<8x256xbf16>, vector<256x256xbf16>, vector<8x256xf32> -> vector<8x256xf32>
    %380 = vector.extract_strided_slice %349 {offsets = [1, 0], sizes = [1, 256], strides = [1, 1]} : vector<3x256xf32> to vector<1x256xf32>
    %381 = vector.broadcast %380 : vector<1x256xf32> to vector<8x256xf32>
    %382 = arith.addf %379, %381 : vector<8x256xf32>
    %cst_193 = arith.constant 0.000000e+00 : f32
    %383 = vector.broadcast %cst_193 : f32 to vector<8x256xf32>
    %384 = arith.maximumf %382, %383 : vector<8x256xf32>
    %385 = vector.broadcast %cst_193 : f32 to vector<8x256xf32>
    %386 = arith.subf %382, %385 : vector<8x256xf32>
    %387 = arith.cmpf one, %386, %386 : vector<8x256xf32>
    %388 = vector.broadcast %cst_193 : f32 to vector<8x256xf32>
    %389 = arith.addf %382, %388 : vector<8x256xf32>
    %390 = math.absf %386 : vector<8x256xf32>
    %cst_194 = arith.constant 0.000000e+00 : f32
    %391 = vector.broadcast %cst_194 : f32 to vector<8x256xf32>
    %392 = arith.subf %391, %390 : vector<8x256xf32>
    %393 = math.exp %392 : vector<8x256xf32>
    %394 = math.log1p %393 : vector<8x256xf32>
    %395 = arith.addf %384, %394 : vector<8x256xf32>
    %396 = arith.select %387, %389, %395 : vector<8x256xi1>, vector<8x256xf32>
    %c0_195 = arith.constant 0 : index
    %c3_196 = arith.constant 3 : index
    %c0_197 = arith.constant 0 : index
    %c0_198 = arith.constant 0 : index
    %397 = vector.load %arg10[%c0_195, %c3_196, %c0_197, %c0_198] : memref<1x6x256x16xbf16, #tpu.memory_space<vmem>>, vector<1x1x256x16xbf16>
    %398 = vector.shape_cast %397 : vector<1x1x256x16xbf16> to vector<256x16xbf16>
    %cst_199 = arith.constant dense<0.000000e+00> : vector<8x16xf32>
    %399 = tpu.matmul %376, %398, %cst_199 {dimension_numbers = #tpu.dot_dimension_numbers<[1], [0], [0], [1], [0, 0, 1, 1], [], []>} : vector<8x256xbf16>, vector<256x16xbf16>, vector<8x16xf32> -> vector<8x16xf32>
    %c0_200 = arith.constant 0 : index
    %c3_201 = arith.constant 3 : index
    %c0_202 = arith.constant 0 : index
    %c0_203 = arith.constant 0 : index
    %400 = vector.load %arg11[%c0_200, %c3_201, %c0_202, %c0_203] : memref<1x6x256x16xbf16, #tpu.memory_space<vmem>>, vector<1x1x256x16xbf16>
    %401 = vector.shape_cast %400 : vector<1x1x256x16xbf16> to vector<256x16xbf16>
    %cst_204 = arith.constant dense<0.000000e+00> : vector<8x16xf32>
    %402 = tpu.matmul %376, %401, %cst_204 {dimension_numbers = #tpu.dot_dimension_numbers<[1], [0], [0], [1], [0, 0, 1, 1], [], []>} : vector<8x256xbf16>, vector<256x16xbf16>, vector<8x16xf32> -> vector<8x16xf32>
    %403 = arith.mulf %399, %402 : vector<8x16xf32>
    %cst_205 = arith.constant dense<0.000000e+00> : vector<8xf32>
    %404 = vector.multi_reduction <add>, %403, %cst_205 [1] : vector<8x16xf32> to vector<8xf32>
    %405 = vector.shape_cast %404 : vector<8xf32> to vector<8x1xf32>
    %406 = vector.broadcast %405 : vector<8x1xf32> to vector<8x256xf32>
    %407 = arith.mulf %396, %406 : vector<8x256xf32>
    %408 = vector.extract_strided_slice %349 {offsets = [2, 0], sizes = [1, 256], strides = [1, 1]} : vector<3x256xf32> to vector<1x256xf32>
    %409 = vector.broadcast %408 : vector<1x256xf32> to vector<8x256xf32>
    %410 = arith.addf %407, %409 : vector<8x256xf32>
    %411 = arith.mulf %410, %374 : vector<8x256xf32>
    %412 = arith.negf %375 : vector<8x256xf32>
    %413 = math.exp %412 : vector<8x256xf32>
    %cst_206 = arith.constant 1.000000e+00 : f32
    %414 = vector.broadcast %cst_206 : f32 to vector<8x256xf32>
    %415 = arith.addf %414, %413 : vector<8x256xf32>
    %416 = arith.divf %414, %415 : vector<8x256xf32>
    %417 = arith.mulf %375, %416 : vector<8x256xf32>
    %418 = arith.mulf %411, %417 : vector<8x256xf32>
    %419 = arith.truncf %418 : vector<8x256xf32> to vector<8x256xbf16>
    %c0_207 = arith.constant 0 : index
    %c3_208 = arith.constant 3 : index
    %c0_209 = arith.constant 0 : index
    %c0_210 = arith.constant 0 : index
    %420 = vector.load %arg12[%c0_207, %c3_208, %c0_209, %c0_210] : memref<1x6x256x128xbf16, #tpu.memory_space<vmem>>, vector<1x1x256x128xbf16>
    %421 = vector.shape_cast %420 : vector<1x1x256x128xbf16> to vector<256x128xbf16>
    %cst_211 = arith.constant dense<0.000000e+00> : vector<8x128xf32>
    %422 = tpu.matmul %419, %421, %cst_211 {dimension_numbers = #tpu.dot_dimension_numbers<[1], [0], [0], [1], [0, 0, 1, 1], [], []>} : vector<8x256xbf16>, vector<256x128xbf16>, vector<8x128xf32> -> vector<8x128xf32>
    %423 = arith.addf %345, %422 : vector<8x128xf32>
    %424 = vector.extract_strided_slice %347 {offsets = [1, 0], sizes = [1, 128], strides = [1, 1]} : vector<3x128xf32> to vector<1x128xf32>
    %425 = vector.broadcast %424 : vector<1x128xf32> to vector<8x128xf32>
    %426 = arith.mulf %425, %423 : vector<8x128xf32>
    %427 = arith.mulf %423, %423 : vector<8x128xf32>
    %cst_212 = arith.constant dense<0.000000e+00> : vector<8xf32>
    %428 = vector.multi_reduction <add>, %427, %cst_212 [1] : vector<8x128xf32> to vector<8xf32>
    %429 = vector.shape_cast %428 : vector<8xf32> to vector<8x1xf32>
    %cst_213 = arith.constant 9.99999997E-7 : f32
    %430 = vector.broadcast %cst_213 : f32 to vector<8x1xf32>
    %431 = arith.addf %429, %430 : vector<8x1xf32>
    %432 = math.sqrt %431 : vector<8x1xf32>
    %433 = vector.broadcast %432 : vector<8x1xf32> to vector<8x128xf32>
    %434 = arith.divf %426, %433 : vector<8x128xf32>
    %435 = arith.truncf %434 : vector<8x128xf32> to vector<8x128xbf16>
    %c0_214 = arith.constant 0 : index
    %c3_215 = arith.constant 3 : index
    %c0_216 = arith.constant 0 : index
    %c0_217 = arith.constant 0 : index
    %436 = vector.load %arg13[%c0_214, %c3_215, %c0_216, %c0_217] : memref<1x6x128x512xbf16, #tpu.memory_space<vmem>>, vector<1x1x128x512xbf16>
    %437 = vector.shape_cast %436 : vector<1x1x128x512xbf16> to vector<128x512xbf16>
    %cst_218 = arith.constant dense<0.000000e+00> : vector<8x512xf32>
    %438 = tpu.matmul %435, %437, %cst_218 {dimension_numbers = #tpu.dot_dimension_numbers<[1], [0], [0], [1], [0, 0, 1, 1], [], []>} : vector<8x128xbf16>, vector<128x512xbf16>, vector<8x512xf32> -> vector<8x512xf32>
    %c0_219 = arith.constant 0 : index
    %c3_220 = arith.constant 3 : index
    %c0_221 = arith.constant 0 : index
    %439 = vector.load %arg17[%c0_219, %c3_220, %c0_221] : memref<1x6x512xf32, #tpu.memory_space<vmem>>, vector<1x1x512xf32>
    %440 = vector.shape_cast %439 : vector<1x1x512xf32> to vector<512xf32>
    %441 = vector.shape_cast %440 : vector<512xf32> to vector<1x512xf32>
    %442 = vector.broadcast %441 : vector<1x512xf32> to vector<8x512xf32>
    %443 = arith.addf %438, %442 : vector<8x512xf32>
    %cst_222 = arith.constant 5.000000e-01 : f32
    %444 = vector.broadcast %cst_222 : f32 to vector<8x512xf32>
    %445 = arith.mulf %444, %443 : vector<8x512xf32>
    %cst_223 = arith.constant 0.707106769 : f32
    %446 = vector.broadcast %cst_223 : f32 to vector<8x512xf32>
    %447 = arith.mulf %443, %446 : vector<8x512xf32>
    %448 = math.erf %447 : vector<8x512xf32>
    %cst_224 = arith.constant 1.000000e+00 : f32
    %449 = vector.broadcast %cst_224 : f32 to vector<8x512xf32>
    %450 = arith.addf %449, %448 : vector<8x512xf32>
    %451 = arith.mulf %445, %450 : vector<8x512xf32>
    %452 = arith.truncf %451 : vector<8x512xf32> to vector<8x512xbf16>
    %c0_225 = arith.constant 0 : index
    %c3_226 = arith.constant 3 : index
    %c0_227 = arith.constant 0 : index
    %c0_228 = arith.constant 0 : index
    %453 = vector.load %arg14[%c0_225, %c3_226, %c0_227, %c0_228] : memref<1x6x512x128xbf16, #tpu.memory_space<vmem>>, vector<1x1x512x128xbf16>
    %454 = vector.shape_cast %453 : vector<1x1x512x128xbf16> to vector<512x128xbf16>
    %cst_229 = arith.constant dense<0.000000e+00> : vector<8x128xf32>
    %455 = tpu.matmul %452, %454, %cst_229 {dimension_numbers = #tpu.dot_dimension_numbers<[1], [0], [0], [1], [0, 0, 1, 1], [], []>} : vector<8x512xbf16>, vector<512x128xbf16>, vector<8x128xf32> -> vector<8x128xf32>
    %456 = vector.extract_strided_slice %347 {offsets = [2, 0], sizes = [1, 128], strides = [1, 1]} : vector<3x128xf32> to vector<1x128xf32>
    %457 = vector.broadcast %456 : vector<1x128xf32> to vector<8x128xf32>
    %458 = arith.addf %455, %457 : vector<8x128xf32>
    %459 = arith.addf %423, %458 : vector<8x128xf32>
    %c0_230 = arith.constant 0 : index
    %c4 = arith.constant 4 : index
    %c0_231 = arith.constant 0 : index
    %c0_232 = arith.constant 0 : index
    %460 = vector.load %arg16[%c0_230, %c4, %c0_231, %c0_232] : memref<1x6x3x128xf32, #tpu.memory_space<vmem>>, vector<1x1x3x128xf32>
    %461 = vector.shape_cast %460 : vector<1x1x3x128xf32> to vector<3x128xf32>
    %c0_233 = arith.constant 0 : index
    %c4_234 = arith.constant 4 : index
    %c0_235 = arith.constant 0 : index
    %c0_236 = arith.constant 0 : index
    %462 = vector.load %arg15[%c0_233, %c4_234, %c0_235, %c0_236] : memref<1x6x3x256xf32, #tpu.memory_space<vmem>>, vector<1x1x3x256xf32>
    %463 = vector.shape_cast %462 : vector<1x1x3x256xf32> to vector<3x256xf32>
    %464 = vector.extract_strided_slice %461 {offsets = [0, 0], sizes = [1, 128], strides = [1, 1]} : vector<3x128xf32> to vector<1x128xf32>
    %465 = vector.broadcast %464 : vector<1x128xf32> to vector<8x128xf32>
    %466 = arith.mulf %465, %459 : vector<8x128xf32>
    %467 = arith.mulf %459, %459 : vector<8x128xf32>
    %cst_237 = arith.constant dense<0.000000e+00> : vector<8xf32>
    %468 = vector.multi_reduction <add>, %467, %cst_237 [1] : vector<8x128xf32> to vector<8xf32>
    %469 = vector.shape_cast %468 : vector<8xf32> to vector<8x1xf32>
    %cst_238 = arith.constant 9.99999997E-7 : f32
    %470 = vector.broadcast %cst_238 : f32 to vector<8x1xf32>
    %471 = arith.addf %469, %470 : vector<8x1xf32>
    %472 = math.sqrt %471 : vector<8x1xf32>
    %473 = vector.broadcast %472 : vector<8x1xf32> to vector<8x128xf32>
    %474 = arith.divf %466, %473 : vector<8x128xf32>
    %475 = arith.truncf %474 : vector<8x128xf32> to vector<8x128xbf16>
    %c0_239 = arith.constant 0 : index
    %c4_240 = arith.constant 4 : index
    %c0_241 = arith.constant 0 : index
    %c0_242 = arith.constant 0 : index
    %476 = vector.load %arg8[%c0_239, %c4_240, %c0_241, %c0_242] : memref<1x6x128x512xbf16, #tpu.memory_space<vmem>>, vector<1x1x128x512xbf16>
    %477 = vector.shape_cast %476 : vector<1x1x128x512xbf16> to vector<128x512xbf16>
    %cst_243 = arith.constant dense<0.000000e+00> : vector<8x512xf32>
    %478 = tpu.matmul %475, %477, %cst_243 {dimension_numbers = #tpu.dot_dimension_numbers<[1], [0], [0], [1], [0, 0, 1, 1], [], []>} : vector<8x128xbf16>, vector<128x512xbf16>, vector<8x512xf32> -> vector<8x512xf32>
    %479 = vector.extract_strided_slice %478 {offsets = [0, 0], sizes = [8, 256], strides = [1, 1]} : vector<8x512xf32> to vector<8x256xf32>
    %480 = vector.extract_strided_slice %463 {offsets = [0, 0], sizes = [1, 256], strides = [1, 1]} : vector<3x256xf32> to vector<1x256xf32>
    %481 = vector.broadcast %480 : vector<1x256xf32> to vector<8x256xf32>
    %482 = arith.addf %479, %481 : vector<8x256xf32>
    %483 = arith.negf %482 : vector<8x256xf32>
    %484 = math.exp %483 : vector<8x256xf32>
    %cst_244 = arith.constant 1.000000e+00 : f32
    %485 = vector.broadcast %cst_244 : f32 to vector<8x256xf32>
    %486 = arith.addf %485, %484 : vector<8x256xf32>
    %487 = arith.divf %485, %486 : vector<8x256xf32>
    %488 = arith.mulf %482, %487 : vector<8x256xf32>
    %489 = vector.extract_strided_slice %478 {offsets = [0, 256], sizes = [8, 256], strides = [1, 1]} : vector<8x512xf32> to vector<8x256xf32>
    %490 = arith.truncf %488 : vector<8x256xf32> to vector<8x256xbf16>
    %c0_245 = arith.constant 0 : index
    %c4_246 = arith.constant 4 : index
    %c0_247 = arith.constant 0 : index
    %c0_248 = arith.constant 0 : index
    %491 = vector.load %arg9[%c0_245, %c4_246, %c0_247, %c0_248] : memref<1x6x256x256xbf16, #tpu.memory_space<vmem>>, vector<1x1x256x256xbf16>
    %492 = vector.shape_cast %491 : vector<1x1x256x256xbf16> to vector<256x256xbf16>
    %cst_249 = arith.constant dense<0.000000e+00> : vector<8x256xf32>
    %493 = tpu.matmul %490, %492, %cst_249 {dimension_numbers = #tpu.dot_dimension_numbers<[1], [0], [0], [1], [0, 0, 1, 1], [], []>} : vector<8x256xbf16>, vector<256x256xbf16>, vector<8x256xf32> -> vector<8x256xf32>
    %494 = vector.extract_strided_slice %463 {offsets = [1, 0], sizes = [1, 256], strides = [1, 1]} : vector<3x256xf32> to vector<1x256xf32>
    %495 = vector.broadcast %494 : vector<1x256xf32> to vector<8x256xf32>
    %496 = arith.addf %493, %495 : vector<8x256xf32>
    %cst_250 = arith.constant 0.000000e+00 : f32
    %497 = vector.broadcast %cst_250 : f32 to vector<8x256xf32>
    %498 = arith.maximumf %496, %497 : vector<8x256xf32>
    %499 = vector.broadcast %cst_250 : f32 to vector<8x256xf32>
    %500 = arith.subf %496, %499 : vector<8x256xf32>
    %501 = arith.cmpf one, %500, %500 : vector<8x256xf32>
    %502 = vector.broadcast %cst_250 : f32 to vector<8x256xf32>
    %503 = arith.addf %496, %502 : vector<8x256xf32>
    %504 = math.absf %500 : vector<8x256xf32>
    %cst_251 = arith.constant 0.000000e+00 : f32
    %505 = vector.broadcast %cst_251 : f32 to vector<8x256xf32>
    %506 = arith.subf %505, %504 : vector<8x256xf32>
    %507 = math.exp %506 : vector<8x256xf32>
    %508 = math.log1p %507 : vector<8x256xf32>
    %509 = arith.addf %498, %508 : vector<8x256xf32>
    %510 = arith.select %501, %503, %509 : vector<8x256xi1>, vector<8x256xf32>
    %c0_252 = arith.constant 0 : index
    %c4_253 = arith.constant 4 : index
    %c0_254 = arith.constant 0 : index
    %c0_255 = arith.constant 0 : index
    %511 = vector.load %arg10[%c0_252, %c4_253, %c0_254, %c0_255] : memref<1x6x256x16xbf16, #tpu.memory_space<vmem>>, vector<1x1x256x16xbf16>
    %512 = vector.shape_cast %511 : vector<1x1x256x16xbf16> to vector<256x16xbf16>
    %cst_256 = arith.constant dense<0.000000e+00> : vector<8x16xf32>
    %513 = tpu.matmul %490, %512, %cst_256 {dimension_numbers = #tpu.dot_dimension_numbers<[1], [0], [0], [1], [0, 0, 1, 1], [], []>} : vector<8x256xbf16>, vector<256x16xbf16>, vector<8x16xf32> -> vector<8x16xf32>
    %c0_257 = arith.constant 0 : index
    %c4_258 = arith.constant 4 : index
    %c0_259 = arith.constant 0 : index
    %c0_260 = arith.constant 0 : index
    %514 = vector.load %arg11[%c0_257, %c4_258, %c0_259, %c0_260] : memref<1x6x256x16xbf16, #tpu.memory_space<vmem>>, vector<1x1x256x16xbf16>
    %515 = vector.shape_cast %514 : vector<1x1x256x16xbf16> to vector<256x16xbf16>
    %cst_261 = arith.constant dense<0.000000e+00> : vector<8x16xf32>
    %516 = tpu.matmul %490, %515, %cst_261 {dimension_numbers = #tpu.dot_dimension_numbers<[1], [0], [0], [1], [0, 0, 1, 1], [], []>} : vector<8x256xbf16>, vector<256x16xbf16>, vector<8x16xf32> -> vector<8x16xf32>
    %517 = arith.mulf %513, %516 : vector<8x16xf32>
    %cst_262 = arith.constant dense<0.000000e+00> : vector<8xf32>
    %518 = vector.multi_reduction <add>, %517, %cst_262 [1] : vector<8x16xf32> to vector<8xf32>
    %519 = vector.shape_cast %518 : vector<8xf32> to vector<8x1xf32>
    %520 = vector.broadcast %519 : vector<8x1xf32> to vector<8x256xf32>
    %521 = arith.mulf %510, %520 : vector<8x256xf32>
    %522 = vector.extract_strided_slice %463 {offsets = [2, 0], sizes = [1, 256], strides = [1, 1]} : vector<3x256xf32> to vector<1x256xf32>
    %523 = vector.broadcast %522 : vector<1x256xf32> to vector<8x256xf32>
    %524 = arith.addf %521, %523 : vector<8x256xf32>
    %525 = arith.mulf %524, %488 : vector<8x256xf32>
    %526 = arith.negf %489 : vector<8x256xf32>
    %527 = math.exp %526 : vector<8x256xf32>
    %cst_263 = arith.constant 1.000000e+00 : f32
    %528 = vector.broadcast %cst_263 : f32 to vector<8x256xf32>
    %529 = arith.addf %528, %527 : vector<8x256xf32>
    %530 = arith.divf %528, %529 : vector<8x256xf32>
    %531 = arith.mulf %489, %530 : vector<8x256xf32>
    %532 = arith.mulf %525, %531 : vector<8x256xf32>
    %533 = arith.truncf %532 : vector<8x256xf32> to vector<8x256xbf16>
    %c0_264 = arith.constant 0 : index
    %c4_265 = arith.constant 4 : index
    %c0_266 = arith.constant 0 : index
    %c0_267 = arith.constant 0 : index
    %534 = vector.load %arg12[%c0_264, %c4_265, %c0_266, %c0_267] : memref<1x6x256x128xbf16, #tpu.memory_space<vmem>>, vector<1x1x256x128xbf16>
    %535 = vector.shape_cast %534 : vector<1x1x256x128xbf16> to vector<256x128xbf16>
    %cst_268 = arith.constant dense<0.000000e+00> : vector<8x128xf32>
    %536 = tpu.matmul %533, %535, %cst_268 {dimension_numbers = #tpu.dot_dimension_numbers<[1], [0], [0], [1], [0, 0, 1, 1], [], []>} : vector<8x256xbf16>, vector<256x128xbf16>, vector<8x128xf32> -> vector<8x128xf32>
    %537 = arith.addf %459, %536 : vector<8x128xf32>
    %538 = vector.extract_strided_slice %461 {offsets = [1, 0], sizes = [1, 128], strides = [1, 1]} : vector<3x128xf32> to vector<1x128xf32>
    %539 = vector.broadcast %538 : vector<1x128xf32> to vector<8x128xf32>
    %540 = arith.mulf %539, %537 : vector<8x128xf32>
    %541 = arith.mulf %537, %537 : vector<8x128xf32>
    %cst_269 = arith.constant dense<0.000000e+00> : vector<8xf32>
    %542 = vector.multi_reduction <add>, %541, %cst_269 [1] : vector<8x128xf32> to vector<8xf32>
    %543 = vector.shape_cast %542 : vector<8xf32> to vector<8x1xf32>
    %cst_270 = arith.constant 9.99999997E-7 : f32
    %544 = vector.broadcast %cst_270 : f32 to vector<8x1xf32>
    %545 = arith.addf %543, %544 : vector<8x1xf32>
    %546 = math.sqrt %545 : vector<8x1xf32>
    %547 = vector.broadcast %546 : vector<8x1xf32> to vector<8x128xf32>
    %548 = arith.divf %540, %547 : vector<8x128xf32>
    %549 = arith.truncf %548 : vector<8x128xf32> to vector<8x128xbf16>
    %c0_271 = arith.constant 0 : index
    %c4_272 = arith.constant 4 : index
    %c0_273 = arith.constant 0 : index
    %c0_274 = arith.constant 0 : index
    %550 = vector.load %arg13[%c0_271, %c4_272, %c0_273, %c0_274] : memref<1x6x128x512xbf16, #tpu.memory_space<vmem>>, vector<1x1x128x512xbf16>
    %551 = vector.shape_cast %550 : vector<1x1x128x512xbf16> to vector<128x512xbf16>
    %cst_275 = arith.constant dense<0.000000e+00> : vector<8x512xf32>
    %552 = tpu.matmul %549, %551, %cst_275 {dimension_numbers = #tpu.dot_dimension_numbers<[1], [0], [0], [1], [0, 0, 1, 1], [], []>} : vector<8x128xbf16>, vector<128x512xbf16>, vector<8x512xf32> -> vector<8x512xf32>
    %c0_276 = arith.constant 0 : index
    %c4_277 = arith.constant 4 : index
    %c0_278 = arith.constant 0 : index
    %553 = vector.load %arg17[%c0_276, %c4_277, %c0_278] : memref<1x6x512xf32, #tpu.memory_space<vmem>>, vector<1x1x512xf32>
    %554 = vector.shape_cast %553 : vector<1x1x512xf32> to vector<512xf32>
    %555 = vector.shape_cast %554 : vector<512xf32> to vector<1x512xf32>
    %556 = vector.broadcast %555 : vector<1x512xf32> to vector<8x512xf32>
    %557 = arith.addf %552, %556 : vector<8x512xf32>
    %cst_279 = arith.constant 5.000000e-01 : f32
    %558 = vector.broadcast %cst_279 : f32 to vector<8x512xf32>
    %559 = arith.mulf %558, %557 : vector<8x512xf32>
    %cst_280 = arith.constant 0.707106769 : f32
    %560 = vector.broadcast %cst_280 : f32 to vector<8x512xf32>
    %561 = arith.mulf %557, %560 : vector<8x512xf32>
    %562 = math.erf %561 : vector<8x512xf32>
    %cst_281 = arith.constant 1.000000e+00 : f32
    %563 = vector.broadcast %cst_281 : f32 to vector<8x512xf32>
    %564 = arith.addf %563, %562 : vector<8x512xf32>
    %565 = arith.mulf %559, %564 : vector<8x512xf32>
    %566 = arith.truncf %565 : vector<8x512xf32> to vector<8x512xbf16>
    %c0_282 = arith.constant 0 : index
    %c4_283 = arith.constant 4 : index
    %c0_284 = arith.constant 0 : index
    %c0_285 = arith.constant 0 : index
    %567 = vector.load %arg14[%c0_282, %c4_283, %c0_284, %c0_285] : memref<1x6x512x128xbf16, #tpu.memory_space<vmem>>, vector<1x1x512x128xbf16>
    %568 = vector.shape_cast %567 : vector<1x1x512x128xbf16> to vector<512x128xbf16>
    %cst_286 = arith.constant dense<0.000000e+00> : vector<8x128xf32>
    %569 = tpu.matmul %566, %568, %cst_286 {dimension_numbers = #tpu.dot_dimension_numbers<[1], [0], [0], [1], [0, 0, 1, 1], [], []>} : vector<8x512xbf16>, vector<512x128xbf16>, vector<8x128xf32> -> vector<8x128xf32>
    %570 = vector.extract_strided_slice %461 {offsets = [2, 0], sizes = [1, 128], strides = [1, 1]} : vector<3x128xf32> to vector<1x128xf32>
    %571 = vector.broadcast %570 : vector<1x128xf32> to vector<8x128xf32>
    %572 = arith.addf %569, %571 : vector<8x128xf32>
    %573 = arith.addf %537, %572 : vector<8x128xf32>
    %c0_287 = arith.constant 0 : index
    %c5 = arith.constant 5 : index
    %c0_288 = arith.constant 0 : index
    %c0_289 = arith.constant 0 : index
    %574 = vector.load %arg16[%c0_287, %c5, %c0_288, %c0_289] : memref<1x6x3x128xf32, #tpu.memory_space<vmem>>, vector<1x1x3x128xf32>
    %575 = vector.shape_cast %574 : vector<1x1x3x128xf32> to vector<3x128xf32>
    %c0_290 = arith.constant 0 : index
    %c5_291 = arith.constant 5 : index
    %c0_292 = arith.constant 0 : index
    %c0_293 = arith.constant 0 : index
    %576 = vector.load %arg15[%c0_290, %c5_291, %c0_292, %c0_293] : memref<1x6x3x256xf32, #tpu.memory_space<vmem>>, vector<1x1x3x256xf32>
    %577 = vector.shape_cast %576 : vector<1x1x3x256xf32> to vector<3x256xf32>
    %578 = vector.extract_strided_slice %575 {offsets = [0, 0], sizes = [1, 128], strides = [1, 1]} : vector<3x128xf32> to vector<1x128xf32>
    %579 = vector.broadcast %578 : vector<1x128xf32> to vector<8x128xf32>
    %580 = arith.mulf %579, %573 : vector<8x128xf32>
    %581 = arith.mulf %573, %573 : vector<8x128xf32>
    %cst_294 = arith.constant dense<0.000000e+00> : vector<8xf32>
    %582 = vector.multi_reduction <add>, %581, %cst_294 [1] : vector<8x128xf32> to vector<8xf32>
    %583 = vector.shape_cast %582 : vector<8xf32> to vector<8x1xf32>
    %cst_295 = arith.constant 9.99999997E-7 : f32
    %584 = vector.broadcast %cst_295 : f32 to vector<8x1xf32>
    %585 = arith.addf %583, %584 : vector<8x1xf32>
    %586 = math.sqrt %585 : vector<8x1xf32>
    %587 = vector.broadcast %586 : vector<8x1xf32> to vector<8x128xf32>
    %588 = arith.divf %580, %587 : vector<8x128xf32>
    %589 = arith.truncf %588 : vector<8x128xf32> to vector<8x128xbf16>
    %c0_296 = arith.constant 0 : index
    %c5_297 = arith.constant 5 : index
    %c0_298 = arith.constant 0 : index
    %c0_299 = arith.constant 0 : index
    %590 = vector.load %arg8[%c0_296, %c5_297, %c0_298, %c0_299] : memref<1x6x128x512xbf16, #tpu.memory_space<vmem>>, vector<1x1x128x512xbf16>
    %591 = vector.shape_cast %590 : vector<1x1x128x512xbf16> to vector<128x512xbf16>
    %cst_300 = arith.constant dense<0.000000e+00> : vector<8x512xf32>
    %592 = tpu.matmul %589, %591, %cst_300 {dimension_numbers = #tpu.dot_dimension_numbers<[1], [0], [0], [1], [0, 0, 1, 1], [], []>} : vector<8x128xbf16>, vector<128x512xbf16>, vector<8x512xf32> -> vector<8x512xf32>
    %593 = vector.extract_strided_slice %592 {offsets = [0, 0], sizes = [8, 256], strides = [1, 1]} : vector<8x512xf32> to vector<8x256xf32>
    %594 = vector.extract_strided_slice %577 {offsets = [0, 0], sizes = [1, 256], strides = [1, 1]} : vector<3x256xf32> to vector<1x256xf32>
    %595 = vector.broadcast %594 : vector<1x256xf32> to vector<8x256xf32>
    %596 = arith.addf %593, %595 : vector<8x256xf32>
    %597 = arith.negf %596 : vector<8x256xf32>
    %598 = math.exp %597 : vector<8x256xf32>
    %cst_301 = arith.constant 1.000000e+00 : f32
    %599 = vector.broadcast %cst_301 : f32 to vector<8x256xf32>
    %600 = arith.addf %599, %598 : vector<8x256xf32>
    %601 = arith.divf %599, %600 : vector<8x256xf32>
    %602 = arith.mulf %596, %601 : vector<8x256xf32>
    %603 = vector.extract_strided_slice %592 {offsets = [0, 256], sizes = [8, 256], strides = [1, 1]} : vector<8x512xf32> to vector<8x256xf32>
    %604 = arith.truncf %602 : vector<8x256xf32> to vector<8x256xbf16>
    %c0_302 = arith.constant 0 : index
    %c5_303 = arith.constant 5 : index
    %c0_304 = arith.constant 0 : index
    %c0_305 = arith.constant 0 : index
    %605 = vector.load %arg9[%c0_302, %c5_303, %c0_304, %c0_305] : memref<1x6x256x256xbf16, #tpu.memory_space<vmem>>, vector<1x1x256x256xbf16>
    %606 = vector.shape_cast %605 : vector<1x1x256x256xbf16> to vector<256x256xbf16>
    %cst_306 = arith.constant dense<0.000000e+00> : vector<8x256xf32>
    %607 = tpu.matmul %604, %606, %cst_306 {dimension_numbers = #tpu.dot_dimension_numbers<[1], [0], [0], [1], [0, 0, 1, 1], [], []>} : vector<8x256xbf16>, vector<256x256xbf16>, vector<8x256xf32> -> vector<8x256xf32>
    %608 = vector.extract_strided_slice %577 {offsets = [1, 0], sizes = [1, 256], strides = [1, 1]} : vector<3x256xf32> to vector<1x256xf32>
    %609 = vector.broadcast %608 : vector<1x256xf32> to vector<8x256xf32>
    %610 = arith.addf %607, %609 : vector<8x256xf32>
    %cst_307 = arith.constant 0.000000e+00 : f32
    %611 = vector.broadcast %cst_307 : f32 to vector<8x256xf32>
    %612 = arith.maximumf %610, %611 : vector<8x256xf32>
    %613 = vector.broadcast %cst_307 : f32 to vector<8x256xf32>
    %614 = arith.subf %610, %613 : vector<8x256xf32>
    %615 = arith.cmpf one, %614, %614 : vector<8x256xf32>
    %616 = vector.broadcast %cst_307 : f32 to vector<8x256xf32>
    %617 = arith.addf %610, %616 : vector<8x256xf32>
    %618 = math.absf %614 : vector<8x256xf32>
    %cst_308 = arith.constant 0.000000e+00 : f32
    %619 = vector.broadcast %cst_308 : f32 to vector<8x256xf32>
    %620 = arith.subf %619, %618 : vector<8x256xf32>
    %621 = math.exp %620 : vector<8x256xf32>
    %622 = math.log1p %621 : vector<8x256xf32>
    %623 = arith.addf %612, %622 : vector<8x256xf32>
    %624 = arith.select %615, %617, %623 : vector<8x256xi1>, vector<8x256xf32>
    %c0_309 = arith.constant 0 : index
    %c5_310 = arith.constant 5 : index
    %c0_311 = arith.constant 0 : index
    %c0_312 = arith.constant 0 : index
    %625 = vector.load %arg10[%c0_309, %c5_310, %c0_311, %c0_312] : memref<1x6x256x16xbf16, #tpu.memory_space<vmem>>, vector<1x1x256x16xbf16>
    %626 = vector.shape_cast %625 : vector<1x1x256x16xbf16> to vector<256x16xbf16>
    %cst_313 = arith.constant dense<0.000000e+00> : vector<8x16xf32>
    %627 = tpu.matmul %604, %626, %cst_313 {dimension_numbers = #tpu.dot_dimension_numbers<[1], [0], [0], [1], [0, 0, 1, 1], [], []>} : vector<8x256xbf16>, vector<256x16xbf16>, vector<8x16xf32> -> vector<8x16xf32>
    %c0_314 = arith.constant 0 : index
    %c5_315 = arith.constant 5 : index
    %c0_316 = arith.constant 0 : index
    %c0_317 = arith.constant 0 : index
    %628 = vector.load %arg11[%c0_314, %c5_315, %c0_316, %c0_317] : memref<1x6x256x16xbf16, #tpu.memory_space<vmem>>, vector<1x1x256x16xbf16>
    %629 = vector.shape_cast %628 : vector<1x1x256x16xbf16> to vector<256x16xbf16>
    %cst_318 = arith.constant dense<0.000000e+00> : vector<8x16xf32>
    %630 = tpu.matmul %604, %629, %cst_318 {dimension_numbers = #tpu.dot_dimension_numbers<[1], [0], [0], [1], [0, 0, 1, 1], [], []>} : vector<8x256xbf16>, vector<256x16xbf16>, vector<8x16xf32> -> vector<8x16xf32>
    %631 = arith.mulf %627, %630 : vector<8x16xf32>
    %cst_319 = arith.constant dense<0.000000e+00> : vector<8xf32>
    %632 = vector.multi_reduction <add>, %631, %cst_319 [1] : vector<8x16xf32> to vector<8xf32>
    %633 = vector.shape_cast %632 : vector<8xf32> to vector<8x1xf32>
    %634 = vector.broadcast %633 : vector<8x1xf32> to vector<8x256xf32>
    %635 = arith.mulf %624, %634 : vector<8x256xf32>
    %636 = vector.extract_strided_slice %577 {offsets = [2, 0], sizes = [1, 256], strides = [1, 1]} : vector<3x256xf32> to vector<1x256xf32>
    %637 = vector.broadcast %636 : vector<1x256xf32> to vector<8x256xf32>
    %638 = arith.addf %635, %637 : vector<8x256xf32>
    %639 = arith.mulf %638, %602 : vector<8x256xf32>
    %640 = arith.negf %603 : vector<8x256xf32>
    %641 = math.exp %640 : vector<8x256xf32>
    %cst_320 = arith.constant 1.000000e+00 : f32
    %642 = vector.broadcast %cst_320 : f32 to vector<8x256xf32>
    %643 = arith.addf %642, %641 : vector<8x256xf32>
    %644 = arith.divf %642, %643 : vector<8x256xf32>
    %645 = arith.mulf %603, %644 : vector<8x256xf32>
    %646 = arith.mulf %639, %645 : vector<8x256xf32>
    %647 = arith.truncf %646 : vector<8x256xf32> to vector<8x256xbf16>
    %c0_321 = arith.constant 0 : index
    %c5_322 = arith.constant 5 : index
    %c0_323 = arith.constant 0 : index
    %c0_324 = arith.constant 0 : index
    %648 = vector.load %arg12[%c0_321, %c5_322, %c0_323, %c0_324] : memref<1x6x256x128xbf16, #tpu.memory_space<vmem>>, vector<1x1x256x128xbf16>
    %649 = vector.shape_cast %648 : vector<1x1x256x128xbf16> to vector<256x128xbf16>
    %cst_325 = arith.constant dense<0.000000e+00> : vector<8x128xf32>
    %650 = tpu.matmul %647, %649, %cst_325 {dimension_numbers = #tpu.dot_dimension_numbers<[1], [0], [0], [1], [0, 0, 1, 1], [], []>} : vector<8x256xbf16>, vector<256x128xbf16>, vector<8x128xf32> -> vector<8x128xf32>
    %651 = arith.addf %573, %650 : vector<8x128xf32>
    %652 = vector.extract_strided_slice %575 {offsets = [1, 0], sizes = [1, 128], strides = [1, 1]} : vector<3x128xf32> to vector<1x128xf32>
    %653 = vector.broadcast %652 : vector<1x128xf32> to vector<8x128xf32>
    %654 = arith.mulf %653, %651 : vector<8x128xf32>
    %655 = arith.mulf %651, %651 : vector<8x128xf32>
    %cst_326 = arith.constant dense<0.000000e+00> : vector<8xf32>
    %656 = vector.multi_reduction <add>, %655, %cst_326 [1] : vector<8x128xf32> to vector<8xf32>
    %657 = vector.shape_cast %656 : vector<8xf32> to vector<8x1xf32>
    %cst_327 = arith.constant 9.99999997E-7 : f32
    %658 = vector.broadcast %cst_327 : f32 to vector<8x1xf32>
    %659 = arith.addf %657, %658 : vector<8x1xf32>
    %660 = math.sqrt %659 : vector<8x1xf32>
    %661 = vector.broadcast %660 : vector<8x1xf32> to vector<8x128xf32>
    %662 = arith.divf %654, %661 : vector<8x128xf32>
    %663 = arith.truncf %662 : vector<8x128xf32> to vector<8x128xbf16>
    %c0_328 = arith.constant 0 : index
    %c5_329 = arith.constant 5 : index
    %c0_330 = arith.constant 0 : index
    %c0_331 = arith.constant 0 : index
    %664 = vector.load %arg13[%c0_328, %c5_329, %c0_330, %c0_331] : memref<1x6x128x512xbf16, #tpu.memory_space<vmem>>, vector<1x1x128x512xbf16>
    %665 = vector.shape_cast %664 : vector<1x1x128x512xbf16> to vector<128x512xbf16>
    %cst_332 = arith.constant dense<0.000000e+00> : vector<8x512xf32>
    %666 = tpu.matmul %663, %665, %cst_332 {dimension_numbers = #tpu.dot_dimension_numbers<[1], [0], [0], [1], [0, 0, 1, 1], [], []>} : vector<8x128xbf16>, vector<128x512xbf16>, vector<8x512xf32> -> vector<8x512xf32>
    %c0_333 = arith.constant 0 : index
    %c5_334 = arith.constant 5 : index
    %c0_335 = arith.constant 0 : index
    %667 = vector.load %arg17[%c0_333, %c5_334, %c0_335] : memref<1x6x512xf32, #tpu.memory_space<vmem>>, vector<1x1x512xf32>
    %668 = vector.shape_cast %667 : vector<1x1x512xf32> to vector<512xf32>
    %669 = vector.shape_cast %668 : vector<512xf32> to vector<1x512xf32>
    %670 = vector.broadcast %669 : vector<1x512xf32> to vector<8x512xf32>
    %671 = arith.addf %666, %670 : vector<8x512xf32>
    %cst_336 = arith.constant 5.000000e-01 : f32
    %672 = vector.broadcast %cst_336 : f32 to vector<8x512xf32>
    %673 = arith.mulf %672, %671 : vector<8x512xf32>
    %cst_337 = arith.constant 0.707106769 : f32
    %674 = vector.broadcast %cst_337 : f32 to vector<8x512xf32>
    %675 = arith.mulf %671, %674 : vector<8x512xf32>
    %676 = math.erf %675 : vector<8x512xf32>
    %cst_338 = arith.constant 1.000000e+00 : f32
    %677 = vector.broadcast %cst_338 : f32 to vector<8x512xf32>
    %678 = arith.addf %677, %676 : vector<8x512xf32>
    %679 = arith.mulf %673, %678 : vector<8x512xf32>
    %680 = arith.truncf %679 : vector<8x512xf32> to vector<8x512xbf16>
    %c0_339 = arith.constant 0 : index
    %c5_340 = arith.constant 5 : index
    %c0_341 = arith.constant 0 : index
    %c0_342 = arith.constant 0 : index
    %681 = vector.load %arg14[%c0_339, %c5_340, %c0_341, %c0_342] : memref<1x6x512x128xbf16, #tpu.memory_space<vmem>>, vector<1x1x512x128xbf16>
    %682 = vector.shape_cast %681 : vector<1x1x512x128xbf16> to vector<512x128xbf16>
    %cst_343 = arith.constant dense<0.000000e+00> : vector<8x128xf32>
    %683 = tpu.matmul %680, %682, %cst_343 {dimension_numbers = #tpu.dot_dimension_numbers<[1], [0], [0], [1], [0, 0, 1, 1], [], []>} : vector<8x512xbf16>, vector<512x128xbf16>, vector<8x128xf32> -> vector<8x128xf32>
    %684 = vector.extract_strided_slice %575 {offsets = [2, 0], sizes = [1, 128], strides = [1, 1]} : vector<3x128xf32> to vector<1x128xf32>
    %685 = vector.broadcast %684 : vector<1x128xf32> to vector<8x128xf32>
    %686 = arith.addf %683, %685 : vector<8x128xf32>
    %687 = arith.addf %651, %686 : vector<8x128xf32>
    %c0_344 = arith.constant 0 : index
    %c0_345 = arith.constant 0 : index
    %c0_346 = arith.constant 0 : index
    %688 = vector.load %arg21[%c0_344, %c0_345, %c0_346] : memref<1x4x128xf32, #tpu.memory_space<vmem>>, vector<1x4x128xf32>
    %689 = vector.shape_cast %688 : vector<1x4x128xf32> to vector<4x128xf32>
    %690 = vector.extract_strided_slice %689 {offsets = [0, 0], sizes = [1, 128], strides = [1, 1]} : vector<4x128xf32> to vector<1x128xf32>
    %691 = vector.broadcast %690 : vector<1x128xf32> to vector<8x128xf32>
    %692 = arith.mulf %691, %687 : vector<8x128xf32>
    %693 = arith.mulf %687, %687 : vector<8x128xf32>
    %cst_347 = arith.constant dense<0.000000e+00> : vector<8xf32>
    %694 = vector.multi_reduction <add>, %693, %cst_347 [1] : vector<8x128xf32> to vector<8xf32>
    %695 = vector.shape_cast %694 : vector<8xf32> to vector<8x1xf32>
    %cst_348 = arith.constant 9.99999997E-7 : f32
    %696 = vector.broadcast %cst_348 : f32 to vector<8x1xf32>
    %697 = arith.addf %695, %696 : vector<8x1xf32>
    %698 = math.sqrt %697 : vector<8x1xf32>
    %699 = vector.broadcast %698 : vector<8x1xf32> to vector<8x128xf32>
    %700 = arith.divf %692, %699 : vector<8x128xf32>
    %701 = arith.truncf %700 : vector<8x128xf32> to vector<8x128xbf16>
    %c0_349 = arith.constant 0 : index
    %c0_350 = arith.constant 0 : index
    %c0_351 = arith.constant 0 : index
    %702 = vector.load %arg18[%c0_349, %c0_350, %c0_351] : memref<1x128x128xbf16, #tpu.memory_space<vmem>>, vector<1x128x128xbf16>
    %703 = vector.shape_cast %702 : vector<1x128x128xbf16> to vector<128x128xbf16>
    %cst_352 = arith.constant dense<0.000000e+00> : vector<8x128xf32>
    %704 = tpu.matmul %701, %703, %cst_352 {dimension_numbers = #tpu.dot_dimension_numbers<[1], [0], [0], [1], [0, 0, 1, 1], [], []>} : vector<8x128xbf16>, vector<128x128xbf16>, vector<8x128xf32> -> vector<8x128xf32>
    %705 = arith.addf %687, %704 : vector<8x128xf32>
    %706 = vector.extract_strided_slice %689 {offsets = [1, 0], sizes = [1, 128], strides = [1, 1]} : vector<4x128xf32> to vector<1x128xf32>
    %707 = vector.broadcast %706 : vector<1x128xf32> to vector<8x128xf32>
    %708 = arith.addf %705, %707 : vector<8x128xf32>
    %709 = vector.extract_strided_slice %689 {offsets = [2, 0], sizes = [1, 128], strides = [1, 1]} : vector<4x128xf32> to vector<1x128xf32>
    %710 = vector.broadcast %709 : vector<1x128xf32> to vector<8x128xf32>
    %711 = arith.mulf %710, %708 : vector<8x128xf32>
    %712 = arith.mulf %708, %708 : vector<8x128xf32>
    %cst_353 = arith.constant dense<0.000000e+00> : vector<8xf32>
    %713 = vector.multi_reduction <add>, %712, %cst_353 [1] : vector<8x128xf32> to vector<8xf32>
    %714 = vector.shape_cast %713 : vector<8xf32> to vector<8x1xf32>
    %cst_354 = arith.constant 9.99999997E-7 : f32
    %715 = vector.broadcast %cst_354 : f32 to vector<8x1xf32>
    %716 = arith.addf %714, %715 : vector<8x1xf32>
    %717 = math.sqrt %716 : vector<8x1xf32>
    %718 = vector.broadcast %717 : vector<8x1xf32> to vector<8x128xf32>
    %719 = arith.divf %711, %718 : vector<8x128xf32>
    %720 = arith.truncf %719 : vector<8x128xf32> to vector<8x128xbf16>
    %c0_355 = arith.constant 0 : index
    %c0_356 = arith.constant 0 : index
    %c0_357 = arith.constant 0 : index
    %721 = vector.load %arg19[%c0_355, %c0_356, %c0_357] : memref<1x128x512xbf16, #tpu.memory_space<vmem>>, vector<1x128x512xbf16>
    %722 = vector.shape_cast %721 : vector<1x128x512xbf16> to vector<128x512xbf16>
    %cst_358 = arith.constant dense<0.000000e+00> : vector<8x512xf32>
    %723 = tpu.matmul %720, %722, %cst_358 {dimension_numbers = #tpu.dot_dimension_numbers<[1], [0], [0], [1], [0, 0, 1, 1], [], []>} : vector<8x128xbf16>, vector<128x512xbf16>, vector<8x512xf32> -> vector<8x512xf32>
    %c0_359 = arith.constant 0 : index
    %c0_360 = arith.constant 0 : index
    %c0_361 = arith.constant 0 : index
    %724 = vector.load %arg22[%c0_359, %c0_360, %c0_361] : memref<1x1x512xf32, #tpu.memory_space<vmem>>, vector<1x1x512xf32>
    %725 = vector.shape_cast %724 : vector<1x1x512xf32> to vector<1x512xf32>
    %726 = vector.broadcast %725 : vector<1x512xf32> to vector<8x512xf32>
    %727 = arith.addf %723, %726 : vector<8x512xf32>
    %cst_362 = arith.constant 5.000000e-01 : f32
    %728 = vector.broadcast %cst_362 : f32 to vector<8x512xf32>
    %729 = arith.mulf %728, %727 : vector<8x512xf32>
    %cst_363 = arith.constant 0.707106769 : f32
    %730 = vector.broadcast %cst_363 : f32 to vector<8x512xf32>
    %731 = arith.mulf %727, %730 : vector<8x512xf32>
    %732 = math.erf %731 : vector<8x512xf32>
    %cst_364 = arith.constant 1.000000e+00 : f32
    %733 = vector.broadcast %cst_364 : f32 to vector<8x512xf32>
    %734 = arith.addf %733, %732 : vector<8x512xf32>
    %735 = arith.mulf %729, %734 : vector<8x512xf32>
    %736 = arith.truncf %735 : vector<8x512xf32> to vector<8x512xbf16>
    %c0_365 = arith.constant 0 : index
    %c0_366 = arith.constant 0 : index
    %c0_367 = arith.constant 0 : index
    %737 = vector.load %arg20[%c0_365, %c0_366, %c0_367] : memref<1x512x128xbf16, #tpu.memory_space<vmem>>, vector<1x512x128xbf16>
    %738 = vector.shape_cast %737 : vector<1x512x128xbf16> to vector<512x128xbf16>
    %cst_368 = arith.constant dense<0.000000e+00> : vector<8x128xf32>
    %739 = tpu.matmul %736, %738, %cst_368 {dimension_numbers = #tpu.dot_dimension_numbers<[1], [0], [0], [1], [0, 0, 1, 1], [], []>} : vector<8x512xbf16>, vector<512x128xbf16>, vector<8x128xf32> -> vector<8x128xf32>
    %740 = vector.extract_strided_slice %689 {offsets = [3, 0], sizes = [1, 128], strides = [1, 1]} : vector<4x128xf32> to vector<1x128xf32>
    %741 = vector.broadcast %740 : vector<1x128xf32> to vector<8x128xf32>
    %742 = arith.addf %739, %741 : vector<8x128xf32>
    %743 = arith.addf %708, %742 : vector<8x128xf32>
    %c0_369 = arith.constant 0 : index
    %c0_370 = arith.constant 0 : index
    %744 = vector.load %arg26[%c0_369, %c0_370] : memref<8x128xf32, #tpu.memory_space<vmem>>, vector<8x128xf32>
    tpu.vector_store %arg26[%c0_369, %c0_370], %743 {strides = array<i32>} : memref<8x128xf32, #tpu.memory_space<vmem>>, vector<8x128xf32>,
    %c0_i32_371 = arith.constant 0 : i32
    %745 = arith.cmpi eq, %arg0, %c0_i32_371 : i32
    %746 = arith.extui %745 : i1 to i32
    %c0_i32_372 = arith.constant 0 : i32
    %747 = arith.cmpi ne, %746, %c0_i32_372 : i32
    scf.if %747 {
      %748 = arith.truncf %743 : vector<8x128xf32> to vector<8x128xbf16>
      %c0_373 = arith.constant 0 : index
      %c0_374 = arith.constant 0 : index
      %749 = vector.load %arg23[%c0_373, %c0_374] : memref<128x128xbf16, #tpu.memory_space<vmem>>, vector<128x128xbf16>
      %cst_375 = arith.constant dense<0.000000e+00> : vector<8x128xf32>
      %750 = tpu.matmul %748, %749, %cst_375 {dimension_numbers = #tpu.dot_dimension_numbers<[1], [0], [0], [1], [0, 0, 1, 1], [], []>} : vector<8x128xbf16>, vector<128x128xbf16>, vector<8x128xf32> -> vector<8x128xf32>
      %c0_376 = arith.constant 0 : index
      %c0_377 = arith.constant 0 : index
      %751 = vector.load %arg24[%c0_376, %c0_377] : memref<1x128xf32, #tpu.memory_space<vmem>>, vector<1x128xf32>
      %752 = vector.broadcast %751 : vector<1x128xf32> to vector<8x128xf32>
      %753 = arith.addf %750, %752 : vector<8x128xf32>
      %c0_378 = arith.constant 0 : index
      %c0_379 = arith.constant 0 : index
      %754 = vector.load %arg25[%c0_378, %c0_379] : memref<8x128xf32, #tpu.memory_space<vmem>>, vector<8x128xf32>
      tpu.vector_store %arg25[%c0_378, %c0_379], %753 {strides = array<i32>} : memref<8x128xf32, #tpu.memory_space<vmem>>, vector<8x128xf32>,
    } else {
    }
    return
  }
  func.func @transform_0(%arg0: i32) -> (i32, i32, i32) {
    %c0_i32 = arith.constant 0 : i32
    %c0_i32_0 = arith.constant 0 : i32
    %c0_i32_1 = arith.constant 0 : i32
    %c0_i32_2 = arith.constant 0 : i32
    return %c0_i32, %c0_i32_0, %c0_i32_1 : i32, i32, i32
  }
  func.func @transform_1(%arg0: i32) -> (i32, i32) {
    %c0_i32 = arith.constant 0 : i32
    %c0_i32_0 = arith.constant 0 : i32
    %c0_i32_1 = arith.constant 0 : i32
    return %c0_i32, %c0_i32_0 : i32, i32
  }
  func.func @transform_2(%arg0: i32) -> (i32, i32) {
    %c0_i32 = arith.constant 0 : i32
    %c0_i32_0 = arith.constant 0 : i32
    %c0_i32_1 = arith.constant 0 : i32
    return %c0_i32, %c0_i32_0 : i32, i32
  }
  func.func @transform_3(%arg0: i32) -> (i32, i32) {
    %c0_i32 = arith.constant 0 : i32
    %c0_i32_0 = arith.constant 0 : i32
    %c0_i32_1 = arith.constant 0 : i32
    return %c0_i32, %c0_i32_0 : i32, i32
  }
  func.func @transform_4(%arg0: i32) -> (i32, i32, i32) {
    %c0_i32 = arith.constant 0 : i32
    %c0_i32_0 = arith.constant 0 : i32
    %c0_i32_1 = arith.constant 0 : i32
    %c0_i32_2 = arith.constant 0 : i32
    return %c0_i32, %c0_i32_0, %c0_i32_1 : i32, i32, i32
  }
  func.func @transform_5(%arg0: i32) -> (i32, i32, i32) {
    %c0_i32 = arith.constant 0 : i32
    %c0_i32_0 = arith.constant 0 : i32
    %c0_i32_1 = arith.constant 0 : i32
    %c0_i32_2 = arith.constant 0 : i32
    return %c0_i32, %c0_i32_0, %c0_i32_1 : i32, i32, i32
  }
  func.func @transform_6(%arg0: i32) -> (i32, i32) {
    %c0_i32 = arith.constant 0 : i32
    %c0_i32_0 = arith.constant 0 : i32
    %c0_i32_1 = arith.constant 0 : i32
    return %c0_i32, %c0_i32_0 : i32, i32
  }
  func.func @transform_7(%arg0: i32) -> (i32, i32, i32, i32) {
    %c0_i32 = arith.constant 0 : i32
    %c0_i32_0 = arith.constant 0 : i32
    %c0_i32_1 = arith.constant 0 : i32
    %c0_i32_2 = arith.constant 0 : i32
    return %arg0, %c0_i32, %c0_i32_0, %c0_i32_1 : i32, i32, i32, i32
  }
  func.func @transform_8(%arg0: i32) -> (i32, i32, i32, i32) {
    %c0_i32 = arith.constant 0 : i32
    %c0_i32_0 = arith.constant 0 : i32
    %c0_i32_1 = arith.constant 0 : i32
    %c0_i32_2 = arith.constant 0 : i32
    return %arg0, %c0_i32, %c0_i32_0, %c0_i32_1 : i32, i32, i32, i32
  }
  func.func @transform_9(%arg0: i32) -> (i32, i32, i32, i32) {
    %c0_i32 = arith.constant 0 : i32
    %c0_i32_0 = arith.constant 0 : i32
    %c0_i32_1 = arith.constant 0 : i32
    %c0_i32_2 = arith.constant 0 : i32
    return %arg0, %c0_i32, %c0_i32_0, %c0_i32_1 : i32, i32, i32, i32
  }
  func.func @transform_10(%arg0: i32) -> (i32, i32, i32, i32) {
    %c0_i32 = arith.constant 0 : i32
    %c0_i32_0 = arith.constant 0 : i32
    %c0_i32_1 = arith.constant 0 : i32
    %c0_i32_2 = arith.constant 0 : i32
    return %arg0, %c0_i32, %c0_i32_0, %c0_i32_1 : i32, i32, i32, i32
  }
  func.func @transform_11(%arg0: i32) -> (i32, i32, i32, i32) {
    %c0_i32 = arith.constant 0 : i32
    %c0_i32_0 = arith.constant 0 : i32
    %c0_i32_1 = arith.constant 0 : i32
    %c0_i32_2 = arith.constant 0 : i32
    return %arg0, %c0_i32, %c0_i32_0, %c0_i32_1 : i32, i32, i32, i32
  }
  func.func @transform_12(%arg0: i32) -> (i32, i32, i32, i32) {
    %c0_i32 = arith.constant 0 : i32
    %c0_i32_0 = arith.constant 0 : i32
    %c0_i32_1 = arith.constant 0 : i32
    %c0_i32_2 = arith.constant 0 : i32
    return %arg0, %c0_i32, %c0_i32_0, %c0_i32_1 : i32, i32, i32, i32
  }
  func.func @transform_13(%arg0: i32) -> (i32, i32, i32, i32) {
    %c0_i32 = arith.constant 0 : i32
    %c0_i32_0 = arith.constant 0 : i32
    %c0_i32_1 = arith.constant 0 : i32
    %c0_i32_2 = arith.constant 0 : i32
    return %arg0, %c0_i32, %c0_i32_0, %c0_i32_1 : i32, i32, i32, i32
  }
  func.func @transform_14(%arg0: i32) -> (i32, i32, i32, i32) {
    %c0_i32 = arith.constant 0 : i32
    %c0_i32_0 = arith.constant 0 : i32
    %c0_i32_1 = arith.constant 0 : i32
    %c0_i32_2 = arith.constant 0 : i32
    return %arg0, %c0_i32, %c0_i32_0, %c0_i32_1 : i32, i32, i32, i32
  }
  func.func @transform_15(%arg0: i32) -> (i32, i32, i32, i32) {
    %c0_i32 = arith.constant 0 : i32
    %c0_i32_0 = arith.constant 0 : i32
    %c0_i32_1 = arith.constant 0 : i32
    %c0_i32_2 = arith.constant 0 : i32
    return %arg0, %c0_i32, %c0_i32_0, %c0_i32_1 : i32, i32, i32, i32
  }
  func.func @transform_16(%arg0: i32) -> (i32, i32, i32) {
    %c0_i32 = arith.constant 0 : i32
    %c0_i32_0 = arith.constant 0 : i32
    %c0_i32_1 = arith.constant 0 : i32
    return %arg0, %c0_i32, %c0_i32_0 : i32, i32, i32
  }
  func.func @transform_17(%arg0: i32) -> (i32, i32, i32) {
    %c0_i32 = arith.constant 0 : i32
    %c0_i32_0 = arith.constant 0 : i32
    %c0_i32_1 = arith.constant 0 : i32
    return %arg0, %c0_i32, %c0_i32_0 : i32, i32, i32
  }
  func.func @transform_18(%arg0: i32) -> (i32, i32, i32) {
    %c0_i32 = arith.constant 0 : i32
    %c0_i32_0 = arith.constant 0 : i32
    %c0_i32_1 = arith.constant 0 : i32
    return %arg0, %c0_i32, %c0_i32_0 : i32, i32, i32
  }
  func.func @transform_19(%arg0: i32) -> (i32, i32, i32) {
    %c0_i32 = arith.constant 0 : i32
    %c0_i32_0 = arith.constant 0 : i32
    %c0_i32_1 = arith.constant 0 : i32
    return %arg0, %c0_i32, %c0_i32_0 : i32, i32, i32
  }
  func.func @transform_20(%arg0: i32) -> (i32, i32, i32) {
    %c0_i32 = arith.constant 0 : i32
    %c0_i32_0 = arith.constant 0 : i32
    %c0_i32_1 = arith.constant 0 : i32
    return %arg0, %c0_i32, %c0_i32_0 : i32, i32, i32
  }
  func.func @transform_21(%arg0: i32) -> (i32, i32, i32) {
    %c0_i32 = arith.constant 0 : i32
    %c0_i32_0 = arith.constant 0 : i32
    %c0_i32_1 = arith.constant 0 : i32
    return %arg0, %c0_i32, %c0_i32_0 : i32, i32, i32
  }
  func.func @transform_22(%arg0: i32) -> (i32, i32) {
    %c0_i32 = arith.constant 0 : i32
    %c0_i32_0 = arith.constant 0 : i32
    %c0_i32_1 = arith.constant 0 : i32
    return %c0_i32, %c0_i32_0 : i32, i32
  }
  func.func @transform_23(%arg0: i32) -> (i32, i32) {
    %c0_i32 = arith.constant 0 : i32
    %c0_i32_0 = arith.constant 0 : i32
    %c0_i32_1 = arith.constant 0 : i32
    return %c0_i32, %c0_i32_0 : i32, i32
  }
  func.func @transform_24(%arg0: i32) -> (i32, i32) {
    %c0_i32 = arith.constant 0 : i32
    %c0_i32_0 = arith.constant 0 : i32
    %c0_i32_1 = arith.constant 0 : i32
    return %c0_i32, %c0_i32_0 : i32, i32
  }
}

</mosaic_0001>

<bundles_post_ra>
// kernel: gamba_forward.1
= control target key start
LH: loop header
LB: loop body
LE: loop exit
PB: predicated region body
PF: predicated region fallthrough
CT: control target
= control target key end

     0   :  { %s20517_s0 = inlined_call_operand.vmem [shape: f32[8,8,128], index: 0, kind: input, shape index: {}]   ;;  %s20518_s1 = inlined_call_operand.vmem [shape: f32[8,8], index: 1, kind: input, shape index: {}]   ;;  %s20519_s2 = inlined_call_operand.vmem [shape: bf16[128,256], index: 2, kind: input, shape index: {}]   ;;  %s20520_s3 = inlined_call_operand.hbm [shape: f32[1,256], index: 3, kind: input, shape index: {}]   ;;  %s20521_s4 = inlined_call_operand.hbm [shape: bf16[2,32,128], index: 4, kind: input, shape index: {}]   ;;  %s20522_s5 = inlined_call_operand.hbm [shape: bf16[2,32,128], index: 5, kind: input, shape index: {}]   ;;  %s20523_s6 = inlined_call_operand.hbm [shape: f32[2,128], index: 6, kind: input, shape index: {}]   ;;  %s20524_s7 = inlined_call_operand.vmem [shape: bf16[1,6,128,512], index: 7, kind: input, shape index: {}]   ;;  %s20525_s8 = inlined_call_operand.hbm [shape: bf16[1,6,256,256], index: 8, kind: input, shape index: {}]   ;;  %s20526_s9 = inlined_call_operand.vmem [shape: bf16[1,6,256,16], index: 9, kind: input, shape index: {}]   ;;  %s20527_s10 = inlined_call_operand.vmem [shape: bf16[1,6,256,16], index: 10, kind: input, shape index: {}]   ;;  %s20528_s11 = inlined_call_operand.vmem [shape: bf16[1,6,256,128], index: 11, kind: input, shape index: {}]   ;;  %s20529_s12 = inlined_call_operand.hbm [shape: bf16[1,6,128,512], index: 12, kind: input, shape index: {}]   ;;  %s20530_s13 = inlined_call_operand.hbm [shape: bf16[1,6,512,128], index: 13, kind: input, shape index: {}]   ;;  %s20531_s14 = inlined_call_operand.vmem [shape: f32[1,6,3,256], index: 14, kind: input, shape index: {}]   ;;  %s20532_s15 = inlined_call_operand.vmem [shape: f32[1,6,3,128], index: 15, kind: input, shape index: {}]   ;;  %s20533_s16 = inlined_call_operand.vmem [shape: f32[1,6,512], index: 16, kind: input, shape index: {}]   ;;  %s20534_s17 = inlined_call_operand.hbm [shape: bf16[1,128,128], index: 17, kind: input, shape index: {}]   ;;  %s20535_s18 = inlined_call_operand.vmem [shape: bf16[1,128,512], index: 18, kind: input, shape index: {}]   ;;  %s20536_s19 = inlined_call_operand.hbm [shape: bf16[1,512,128], index: 19, kind: input, shape index: {}]   ;;  %s20537_s20 = inlined_call_operand.hbm [shape: f32[1,4,128], index: 20, kind: input, shape index: {}]   ;;  %s20538_s21 = inlined_call_operand.hbm [shape: f32[1,1,512], index: 21, kind: input, shape index: {}]   ;;  %s20539_s22 = inlined_call_operand.hbm [shape: bf16[128,128], index: 22, kind: input, shape index: {}]   ;;  %s20540_s23 = inlined_call_operand.vmem [shape: f32[1,128], index: 23, kind: input, shape index: {}]   ;;  %s20541_s24 = inlined_call_operand.vmem [shape: f32[8,128], index: 24, kind: output, shape index: {}]  }
   0x1   :  { %20551 = sst [smem:[#allocation29_spill]] %s20517_s0 }
   0x2   :  { %20552 = sst [smem:[#allocation30_spill]] %s20518_s1 }
   0x3   :  { %20553 = sst [smem:[#allocation31_spill]] %s20519_s2 }
   0x4   :  { %20554 = sst [smem:[#allocation32_spill]] %s20520_s3 }
   0x5   :  { %20555 = sst [smem:[#allocation33_spill]] %s20521_s4 }
   0x6   :  { %20556 = sst [smem:[#allocation34_spill]] %s20522_s5 }
   0x7   :  { %20557 = sst [smem:[#allocation35_spill]] %s20523_s6 }
   0x8   :  { %20558 = sst [smem:[#allocation36_spill]] %s20524_s7 }
   0x9   :  { %20559 = sst [smem:[#allocation37_spill]] %s20525_s8 }
   0xa   :  { %20560 = sst [smem:[#allocation38_spill]] %s20535_s18 }
   0xb   :  { %20561 = sst [smem:[#allocation39_spill]] %s20540_s23 }
   0xc   :  { %20562 = sst [smem:[#allocation40_spill]] %s20541_s24 }
   0xd   :  { %29 = vsyncpa [#allocation4], 0 }
   0xe   :  { %30 = vsyncpa [#allocation6], 0 }
   0xf   :  { %31 = vsyncpa [#allocation9], 0 }
  0x10   :  { %32 = vsyncpa [#allocation12], 0 }
  0x11   :  { %33 = vsyncpa [#allocation15], 0 }
  0x12   :  { %34 = vsyncpa [#allocation18], 0 }
  0x13   :  { %35 = vsyncpa [#allocation21], 0  ;;  %s17949_s5 = smov [#allocation5]   ;;  %s20563_s6 = sld [smem:[#allocation33_spill]] }
  0x14   :  { %s57_s26 = sshll.u32 %s17949_s5, 4  ;;  %s58_s26 = int_to_ptr.vmem [resolvable:$true] %s57_s26 }
  0x19   :  { %s17671_s2 = scalar_lea.hbm %s20563_s6, 512 }
  0x1a   :  { %p17672_p0 = scmp.ne.s32.totalorder %s20563_s6, %s17671_s2  ;;  %p17675_p1 = scmp.lt.u32.totalorder %s17671_s2, %s20563_s6 }
  0x1c   :  { %p17677_p2 = pnand %p17675_p1, %p17672_p0 }
  0x1e   :  { %17680 = shalt.err (!%p17677_p2)
}
  0x1f   :  { %s17681_s3 = scalar_lea.vmem %s58_s26, 512  ;;  %p17686_p4 = scmp.lt.s32.totalorder %s58_s26, %s58_s26 }
  0x20   :  { %p17682_p3 = scmp.ne.s32.totalorder %s58_s26, %s17681_s3  ;;  %p17687_p5 = scmp.lt.s32.totalorder %s17681_s3, %s17681_s3 }
  0x22   :  { %p17688_p6 = por %p17687_p5, %p17686_p4 }
  0x24   :  { %p17689_p7 = pnand %p17688_p6, %p17682_p3 }
  0x26   :  { %17692 = shalt.err (!%p17689_p7)
}
  0x27   :  { %s17950_s25 = smov 64   ;;  %s17951_s8 = smov 4  }
  0x28   :  { %63 = dma.hbm_to_vmem [thread:$0]  %s20563_s6, 512, %s58_s26, [#allocation6], %s17950_s25, %s17950_s25, %s17951_s8  }
  0x29   :  { %s17952_s5 = smov [#allocation8]   ;;  %s17953_s28 = smov [#allocation11]  }
  0x2a   :  { %s82_s27 = sshll.u32 %s17952_s5, 4  ;;  %s111_s2 = sshll.u32 %s17953_s28, 4  ;;  %s83_s27 = int_to_ptr.vmem [resolvable:$true] %s82_s27  ;;  %s112_s2 = int_to_ptr.vmem [resolvable:$true] %s111_s2 }
  0x2b   :  { %s20564_s7 = sld [smem:[#allocation35_spill]] }
  0x31   :  { %s17693_s30 = scalar_lea.hbm %s20564_s7, 32 }
  0x32   :  { %p17694_p8 = scmp.ne.s32.totalorder %s20564_s7, %s17693_s30  ;;  %p17697_p9 = scmp.lt.u32.totalorder %s17693_s30, %s20564_s7 }
  0x34   :  { %p17699_p10 = pnand %p17697_p9, %p17694_p8 }
  0x36   :  { %17702 = shalt.err (!%p17699_p10)
}
  0x37   :  { %s17703_s26 = scalar_lea.vmem %s83_s27, 32  ;;  %p17708_p12 = scmp.lt.s32.totalorder %s83_s27, %s83_s27 }
  0x38   :  { %p17704_p11 = scmp.ne.s32.totalorder %s83_s27, %s17703_s26  ;;  %p17709_p13 = scmp.lt.s32.totalorder %s17703_s26, %s17703_s26 }
  0x3a   :  { %p17710_p0 = por %p17709_p13, %p17708_p12 }
  0x3c   :  { %p17711_p1 = pnand %p17710_p0, %p17704_p11 }
  0x3e   :  { %17714 = shalt.err (!%p17711_p1)
}
  0x3f   :  { %85 = dma.hbm_to_vmem [thread:$0]  %s20564_s7, 32, %s83_s27, [#allocation9]  }
  0x40   :  { %s17715_s5 = scalar_lea.hbm %s20529_s12, 24576 }
  0x41   :  { %p17716_p2 = scmp.ne.s32.totalorder %s20529_s12, %s17715_s5  ;;  %p17719_p3 = scmp.lt.u32.totalorder %s17715_s5, %s20529_s12 }
  0x43   :  { %p17721_p4 = pnand %p17719_p3, %p17716_p2 }
  0x45   :  { %17724 = shalt.err (!%p17721_p4)
}
  0x46   :  { %s17725_s0 = scalar_lea.vmem %s112_s2, 24576  ;;  %p17730_p6 = scmp.lt.s32.totalorder %s112_s2, %s112_s2 }
  0x47   :  { %p17726_p5 = scmp.ne.s32.totalorder %s112_s2, %s17725_s0  ;;  %p17731_p7 = scmp.lt.s32.totalorder %s17725_s0, %s17725_s0 }
  0x49   :  { %p17732_p8 = por %p17731_p7, %p17730_p6 }
  0x4b   :  { %p17733_p9 = pnand %p17732_p8, %p17726_p5 }
  0x4d   :  { %17736 = shalt.err (!%p17733_p9)
}
  0x4e   :  { %s17954_s27 = smov 256   ;;  %s17955_s7 = smov 16  }
  0x4f   :  { %117 = dma.hbm_to_vmem [thread:$0]  %s20529_s12, 24576, %s112_s2, [#allocation12], %s17954_s27, %s17954_s27, %s17955_s7  }
  0x50   :  { %s17956_s26 = smov [#allocation14]   ;;  %s17957_s4 = smov [#allocation17]  }
  0x51   :  { %s141_s6 = sshll.u32 %s17956_s26, 4  ;;  %s168_s24 = sshll.u32 %s17957_s4, 4  ;;  %s142_s6 = int_to_ptr.vmem [resolvable:$true] %s141_s6  ;;  %s169_s24 = int_to_ptr.vmem [resolvable:$true] %s168_s24 }
  0x52   :  { %s17737_s18 = scalar_lea.hbm %s20534_s17, 1024 }
  0x53   :  { %p17738_p10 = scmp.ne.s32.totalorder %s20534_s17, %s17737_s18  ;;  %p17741_p11 = scmp.lt.u32.totalorder %s17737_s18, %s20534_s17 }
  0x55   :  { %p17743_p12 = pnand %p17741_p11, %p17738_p10 }
  0x57   :  { %17746 = shalt.err (!%p17743_p12)
}
  0x58   :  { %s17747_s12 = scalar_lea.vmem %s142_s6, 1024  ;;  %p17752_p0 = scmp.lt.s32.totalorder %s142_s6, %s142_s6 }
  0x59   :  { %p17748_p13 = scmp.ne.s32.totalorder %s142_s6, %s17747_s12  ;;  %p17753_p1 = scmp.lt.s32.totalorder %s17747_s12, %s17747_s12 }
  0x5b   :  { %p17754_p2 = por %p17753_p1, %p17752_p0 }
  0x5d   :  { %p17755_p3 = pnand %p17754_p2, %p17748_p13 }
  0x5f   :  { %17758 = shalt.err (!%p17755_p3)
}
  0x60   :  { %147 = dma.hbm_to_vmem [thread:$0]  %s20534_s17, 1024, %s142_s6, [#allocation15], %s17950_s25, %s17950_s25, %s17951_s8  }
  0x61   :  { %s17759_s3 = scalar_lea.hbm %s20537_s20, 64 }
  0x62   :  { %p17760_p4 = scmp.ne.s32.totalorder %s20537_s20, %s17759_s3  ;;  %p17763_p5 = scmp.lt.u32.totalorder %s17759_s3, %s20537_s20 }
  0x64   :  { %p17765_p6 = pnand %p17763_p5, %p17760_p4 }
  0x66   :  { %17768 = shalt.err (!%p17765_p6)
}
  0x67   :  { %s17769_s18 = scalar_lea.vmem %s169_s24, 64  ;;  %p17774_p8 = scmp.lt.s32.totalorder %s169_s24, %s169_s24 }
  0x68   :  { %p17770_p7 = scmp.ne.s32.totalorder %s169_s24, %s17769_s18  ;;  %p17775_p9 = scmp.lt.s32.totalorder %s17769_s18, %s17769_s18 }
  0x6a   :  { %p17776_p10 = por %p17775_p9, %p17774_p8 }
  0x6c   :  { %p17777_p11 = pnand %p17776_p10, %p17770_p7 }
  0x6e   :  { %17780 = shalt.err (!%p17777_p11)
}
  0x6f   :  { %171 = dma.hbm_to_vmem [thread:$0]  %s20537_s20, 64, %s169_s24, [#allocation18]  }
  0x70   :  { %s17958_s23 = smov [#allocation3]   ;;  %s17959_s29 = smov [#allocation7]  }
  0x71   :  { %s48_s28 = sshll.u32 %s17958_s23, 4  ;;  %s69_s0 = sshll.u32 %s17959_s29, 4  ;;  %s49_s28 = int_to_ptr.vmem [resolvable:$true] %s48_s28  ;;  %s70_s0 = int_to_ptr.vmem [resolvable:$true] %s69_s0 }
  0x72   :  { %s20565_s27 = sld [smem:[#allocation32_spill]] }
  0x78   :  { %s17781_s7 = scalar_lea.hbm %s20565_s27, 32 }
  0x79   :  { %p17782_p12 = scmp.ne.s32.totalorder %s20565_s27, %s17781_s7  ;;  %p17785_p13 = scmp.lt.u32.totalorder %s17781_s7, %s20565_s27 }
  0x7b   :  { %p17787_p0 = pnand %p17785_p13, %p17782_p12 }
  0x7d   :  { %17790 = shalt.err (!%p17787_p0)
}
  0x7e   :  { %s17791_s20 = scalar_lea.vmem %s49_s28, 32  ;;  %p17796_p2 = scmp.lt.s32.totalorder %s49_s28, %s49_s28 }
  0x7f   :  { %p17792_p1 = scmp.ne.s32.totalorder %s49_s28, %s17791_s20  ;;  %p17797_p3 = scmp.lt.s32.totalorder %s17791_s20, %s17791_s20 }
  0x81   :  { %p17798_p4 = por %p17797_p3, %p17796_p2 }
  0x83   :  { %p17799_p5 = pnand %p17798_p4, %p17792_p1 }
  0x85   :  { %17802 = shalt.err (!%p17799_p5)
}
  0x86   :  { %51 = dma.hbm_to_vmem [thread:$0]  %s20565_s27, 32, %s49_s28, [#allocation4]  }
  0x87   :  { %s20566_s17 = sld [smem:[#allocation34_spill]] }
  0x8d   :  { %s17803_s6 = scalar_lea.hbm %s20566_s17, 512 }
  0x8e   :  { %p17804_p6 = scmp.ne.s32.totalorder %s20566_s17, %s17803_s6  ;;  %p17807_p7 = scmp.lt.u32.totalorder %s17803_s6, %s20566_s17 }
  0x90   :  { %p17809_p8 = pnand %p17807_p7, %p17804_p6 }
  0x92   :  { %17812 = shalt.err (!%p17809_p8)
}
  0x93   :  { %s17813_s7 = scalar_lea.vmem %s70_s0, 512  ;;  %p17818_p10 = scmp.lt.s32.totalorder %s70_s0, %s70_s0 }
  0x94   :  { %p17814_p9 = scmp.ne.s32.totalorder %s70_s0, %s17813_s7  ;;  %p17819_p11 = scmp.lt.s32.totalorder %s17813_s7, %s17813_s7 }
  0x96   :  { %p17820_p12 = por %p17819_p11, %p17818_p10 }
  0x98   :  { %p17821_p13 = pnand %p17820_p12, %p17814_p9 }
  0x9a   :  { %17824 = shalt.err (!%p17821_p13)
}
  0x9b   :  { %75 = dma.hbm_to_vmem [thread:$0]  %s20566_s17, 512, %s70_s0, [#allocation6], %s17950_s25, %s17950_s25, %s17951_s8  }
  0x9c   :  { %s17960_s30 = smov [#allocation10]   ;;  %s20567_s20 = sld [smem:[#allocation37_spill]] }
  0x9d   :  { %s93_s3 = sshll.u32 %s17960_s30, 4  ;;  %s94_s3 = int_to_ptr.vmem [resolvable:$true] %s93_s3 }
  0xa2   :  { %s17825_s24 = scalar_lea.hbm %s20567_s20, 24576 }
  0xa3   :  { %p17826_p0 = scmp.ne.s32.totalorder %s20567_s20, %s17825_s24  ;;  %p17829_p1 = scmp.lt.u32.totalorder %s17825_s24, %s20567_s20 }
  0xa5   :  { %p17831_p2 = pnand %p17829_p1, %p17826_p0 }
  0xa7   :  { %17834 = shalt.err (!%p17831_p2)
}
  0xa8   :  { %s17835_s23 = scalar_lea.vmem %s94_s3, 24576  ;;  %p17840_p4 = scmp.lt.s32.totalorder %s94_s3, %s94_s3 }
  0xa9   :  { %p17836_p3 = scmp.ne.s32.totalorder %s94_s3, %s17835_s23  ;;  %p17841_p5 = scmp.lt.s32.totalorder %s17835_s23, %s17835_s23 }
  0xab   :  { %p17842_p6 = por %p17841_p5, %p17840_p4 }
  0xad   :  { %p17843_p7 = pnand %p17842_p6, %p17836_p3 }
  0xaf   :  { %17846 = shalt.err (!%p17843_p7)
}
  0xb0   :  { %s17961_s0 = smov 128   ;;  %s17962_s17 = smov 8  }
  0xb1   :  { %99 = dma.hbm_to_vmem [thread:$0]  %s20567_s20, 24576, %s94_s3, [#allocation9], %s17961_s0, %s17961_s0, %s17962_s17  }
  0xb2   :  { %s17963_s2 = smov [#allocation13]   ;;  %s17964_s28 = smov [#allocation16]  }
  0xb3   :  { %s123_s7 = sshll.u32 %s17963_s2, 4  ;;  %s155_s27 = sshll.u32 %s17964_s28, 4  ;;  %s124_s7 = int_to_ptr.vmem [resolvable:$true] %s123_s7  ;;  %s18202_s27 = int_to_ptr.vmem [resolvable:$true] %s155_s27 }
  0xb4   :  { %s17847_s4 = scalar_lea.hbm %s20530_s13, 24576 }
  0xb5   :  { %p17848_p8 = scmp.ne.s32.totalorder %s20530_s13, %s17847_s4  ;;  %p17851_p9 = scmp.lt.u32.totalorder %s17847_s4, %s20530_s13 }
  0xb7   :  { %p17853_p10 = pnand %p17851_p9, %p17848_p8 }
  0xb9   :  { %17856 = shalt.err (!%p17853_p10)
}
  0xba   :  { %s17857_s3 = scalar_lea.vmem %s124_s7, 24576  ;;  %p17862_p12 = scmp.lt.s32.totalorder %s124_s7, %s124_s7 }
  0xbb   :  { %p17858_p11 = scmp.ne.s32.totalorder %s124_s7, %s17857_s3  ;;  %p17863_p13 = scmp.lt.s32.totalorder %s17857_s3, %s17857_s3 }
  0xbd   :  { %p17864_p0 = por %p17863_p13, %p17862_p12 }
  0xbf   :  { %p17865_p1 = pnand %p17864_p0, %p17858_p11 }
  0xc1   :  { %17868 = shalt.err (!%p17865_p1)
}
  0xc2   :  { %129 = dma.hbm_to_vmem [thread:$0]  %s20530_s13, 24576, %s124_s7, [#allocation12], %s17950_s25, %s17950_s25, %s17951_s8  }
  0xc3   :  { %s17869_s17 = scalar_lea.hbm %s20536_s19, 4096 }
  0xc4   :  { %p17870_p2 = scmp.ne.s32.totalorder %s20536_s19, %s17869_s17  ;;  %p17873_p3 = scmp.lt.u32.totalorder %s17869_s17, %s20536_s19 }
  0xc6   :  { %p17875_p4 = pnand %p17873_p3, %p17870_p2 }
  0xc8   :  { %17878 = shalt.err (!%p17875_p4)
}
  0xc9   :  { %s17879_s30 = scalar_lea.vmem %s18202_s27, 4096  ;;  %p17884_p6 = scmp.lt.s32.totalorder %s18202_s27, %s18202_s27 }
  0xca   :  { %p17880_p5 = scmp.ne.s32.totalorder %s18202_s27, %s17879_s30  ;;  %p17885_p7 = scmp.lt.s32.totalorder %s17879_s30, %s17879_s30 }
  0xcc   :  { %p17886_p8 = por %p17885_p7, %p17884_p6 }
  0xce   :  { %p17887_p9 = pnand %p17886_p8, %p17880_p5 }
  0xd0   :  { %17890 = shalt.err (!%p17887_p9)
}
  0xd1   :  { %161 = dma.hbm_to_vmem [thread:$0]  %s20536_s19, 4096, %s18202_s27, [#allocation15], %s17950_s25, %s17950_s25, %s17951_s8  }
  0xd2   :  { %s17965_s26 = smov [#allocation19]   ;;  %s17966_s24 = smov [#allocation20]  }
  0xd3   :  { %s178_s4 = sshll.u32 %s17965_s26, 4  ;;  %s187_s1 = sshll.u32 %s17966_s24, 4  ;;  %s179_s4 = int_to_ptr.vmem [resolvable:$true] %s178_s4  ;;  %s18239_s1 = int_to_ptr.vmem [resolvable:$true] %s187_s1 }
  0xd4   :  { %s17891_s3 = scalar_lea.hbm %s20538_s21, 64 }
  0xd5   :  { %p17892_p10 = scmp.ne.s32.totalorder %s20538_s21, %s17891_s3  ;;  %p17895_p11 = scmp.lt.u32.totalorder %s17891_s3, %s20538_s21 }
  0xd7   :  { %p17897_p12 = pnand %p17895_p11, %p17892_p10 }
  0xd9   :  { %17900 = shalt.err (!%p17897_p12)
}
  0xda   :  { %s17901_s19 = scalar_lea.vmem %s179_s4, 64  ;;  %p17906_p0 = scmp.lt.s32.totalorder %s179_s4, %s179_s4 }
  0xdb   :  { %p17902_p13 = scmp.ne.s32.totalorder %s179_s4, %s17901_s19  ;;  %p17907_p1 = scmp.lt.s32.totalorder %s17901_s19, %s17901_s19 }
  0xdd   :  { %p17908_p2 = por %p17907_p1, %p17906_p0 }
  0xdf   :  { %p17909_p3 = pnand %p17908_p2, %p17902_p13 }
  0xe1   :  { %17912 = shalt.err (!%p17909_p3)
}
  0xe2   :  { %181 = dma.hbm_to_vmem [thread:$0]  %s20538_s21, 64, %s179_s4, [#allocation18]  }
  0xe3   :  { %s17913_s2 = scalar_lea.hbm %s20539_s22, 1024 }
  0xe4   :  { %p17914_p4 = scmp.ne.s32.totalorder %s20539_s22, %s17913_s2  ;;  %p17917_p5 = scmp.lt.u32.totalorder %s17913_s2, %s20539_s22 }
  0xe6   :  { %p17919_p6 = pnand %p17917_p5, %p17914_p4 }
  0xe8   :  { %17922 = shalt.err (!%p17919_p6)
}
  0xe9   :  { %s17923_s26 = scalar_lea.vmem %s18239_s1, 1024  ;;  %p17928_p8 = scmp.lt.s32.totalorder %s18239_s1, %s18239_s1 }
  0xea   :  { %p17924_p7 = scmp.ne.s32.totalorder %s18239_s1, %s17923_s26  ;;  %p17929_p9 = scmp.lt.s32.totalorder %s17923_s26, %s17923_s26 }
  0xec   :  { %p17930_p10 = por %p17929_p9, %p17928_p8 }
  0xee   :  { %p17931_p11 = pnand %p17930_p10, %p17924_p7 }
  0xf0   :  { %17934 = shalt.err (!%p17931_p11)
}
  0xf1   :  { %193 = dma.hbm_to_vmem [thread:$0]  %s20539_s22, 1024, %s18239_s1, [#allocation21], %s17950_s25, %s17950_s25, %s17951_s8  }
  0xf2   :  { %17935 = dma.done.wait [#allocation4], 32  }
  0xf3   :  { %17936 = vsyncadd [#allocation4], 4294967264 }
  0xf4   :  { %17937 = dma.done.wait [#allocation6], 1024  }
  0xf5   :  { %17938 = vsyncadd [#allocation6], 4294966272 }
  0xf6   :  { %17939 = dma.done.wait [#allocation9], 24608  }
  0xf7   :  { %17940 = vsyncadd [#allocation9], 4294942688 }
  0xf8   :  { %17941 = dma.done.wait [#allocation12], 49152  }
  0xf9   :  { %17942 = vsyncadd [#allocation12], 4294918144 }
  0xfa   :  { %17943 = dma.done.wait [#allocation15], 5120  }
  0xfb   :  { %17944 = vsyncadd [#allocation15], 4294962176 }
  0xfc   :  { %17945 = dma.done.wait [#allocation18], 128  }
  0xfd   :  { %17946 = vsyncadd [#allocation18], 4294967168 }
  0xfe   :  { %17947 = dma.done.wait [#allocation21], 1024  }
  0xff   :  { %17948 = vsyncadd [#allocation21], 4294966272  ;;  %v246_v0 = vlaneseq  ;;  %vm358_vm0 = vcmask 64512   ;;  %s20568_s24 = sld [smem:[#allocation30_spill]]  ;;  %s20569_s18 = sld [smem:[#allocation31_spill]]  ;;  %v17967_v35 = vmov 0  }
 0x100   :  { %581 = vmatprep.mubr.bf16.mxu0 %v17967_v35  ;;  %s20570_s12 = sld [smem:[#allocation29_spill]]  ;;  %vm447_vm1 = vcmask 1041409   ;;  %vm450_vm2 = vcmask 1042434   ;;  %vm453_vm3 = vcmask 1043459   ;;  %vm456_vm4 = vcmask 1044484   ;;  %s17970_s3 = smov 96  }
 0x101   :  { %v247_v1 = vshrl.u32 %v246_v0, 7  ;;  %vm459_vm5 = vcmask 1045509   ;;  %vm462_vm6 = vcmask 1046534   ;;  %vm465_vm7 = vcmask 1047559   ;;  %s17971_s20 = smov 32   ;;  %s20571_s0 = sld [smem:[#allocation36_spill]] }
 0x102   :  { %vm17969_vm8 = vmmov 0   ;;  %vm651_vm9 = vcmask 261120   ;;  %vm1078_vm10 = vcmask 523264   ;;  %vm1080_vm11 = vcmask 785408   ;;  %s20572_s5 = sld [smem:[#allocation38_spill]]  ;;  %s20573_s6 = sld [smem:[#allocation39_spill]] }
 0x103   :  { %v18273_v2 = vsub.s32 2, %v247_v1  ;;  %v18275_v3 = vsub.s32 0, %v247_v1  ;;  %v18282_v8 = vsub.s32 3, %v247_v1  ;;  %v18285_v10 = vsub.s32 4, %v247_v1  ;;  %s20574_s19 = sld [smem:[#allocation40_spill]] }
 0x104   :  { %v18288_v12 = vsub.s32 5, %v247_v1  ;;  %v18291_v14 = vsub.s32 6, %v247_v1  ;;  %v18293_v15 = vsub.s32 1, %v247_v1  ;;  %v297_v17 = vsub.s32 7, %v247_v1 }
 0x105   :  { %v245_v4 = vld [vmem:[%s20568_s24] sm:$0xff]  ;;  %v15881_v22 = vld [vmem:[%s20569_s18 + $0x14] ss:$8 sps:$4 sm:$0xff]   ;;  %v15883_v23 = vld [vmem:[%s20569_s18 + $0x10] ss:$8 sps:$4 sm:$0xff]   ;;  %vm2040_vm14 = vcmask 130048  }
 0x106   :  { %v359_v5 = vsel %vm358_vm0, %v245_v4, 0.0  ;;  %v263_v6 = vrot.slane %v245_v4, %v18273_v2  ;;  %v249_v7 = vrot.slane %v245_v4, %v18275_v3  ;;  %v270_v9 = vrot.slane %v245_v4, %v18282_v8  ;;  %v15878_v20 = vld [vmem:[%s20569_s18 + $0x4] ss:$8 sps:$4 sm:$0xff]   ;;  %v15880_v21 = vld [vmem:[%s20569_s18] ss:$8 sps:$4 sm:$0xff]   ;;  %v239_v37 = vld [vmem:[%s20570_s12 + $0x10] sm:$0xff] }
 0x107   :  { %360 = vadd.xlane.f32.xlu0 %v359_v5  ;;  %v277_v11 = vrot.slane %v245_v4, %v18285_v10  ;;  %v284_v13 = vrot.slane %v245_v4, %v18288_v12  ;;  %v291_v16 = vrot.slane %v245_v4, %v18291_v14  ;;  %v256_v18 = vrot.slane %v245_v4, %v18293_v15  ;;  %v15884_v24 = vld [vmem:[%s20569_s18 + $0x24] ss:$8 sps:$4 sm:$0xff]   ;;  %v15886_v25 = vld [vmem:[%s20569_s18 + $0x20] ss:$8 sps:$4 sm:$0xff]   ;;  %v15887_v26 = vld [vmem:[%s20569_s18 + $0x34] ss:$8 sps:$4 sm:$0xff]  }
 0x108   :  { %265 = vbcast.lane.b32.xlu1 %v263_v6, 256  ;;  %v298_v19 = vrot.slane %v245_v4, %v297_v17  ;;  %549 = vmatprep.subr.bf16.mxu0 %v15878_v20  ;;  %v15889_v27 = vld [vmem:[%s20569_s18 + $0x30] ss:$8 sps:$4 sm:$0xff]   ;;  %v15890_v28 = vld [vmem:[%s20569_s18 + $0x44] ss:$8 sps:$4 sm:$0xff]  }
 0x109   :  { %550 = vmatpush1.bf16.msra.mxu0 %v15880_v21  ;;  %v15892_v29 = vld [vmem:[%s20569_s18 + $0x40] ss:$8 sps:$4 sm:$0xff]   ;;  %v15893_v30 = vld [vmem:[%s20569_s18 + $0x54] ss:$8 sps:$4 sm:$0xff]   ;;  %v15895_v31 = vld [vmem:[%s20569_s18 + $0x50] ss:$8 sps:$4 sm:$0xff]  }
 0x10a   :  { %551 = vmatprep.subr.bf16.mxu0 %v15881_v22  ;;  %v15896_v32 = vld [vmem:[%s20569_s18 + $0x64] ss:$8 sps:$4 sm:$0xff]   ;;  %v15898_v33 = vld [vmem:[%s20569_s18 + $0x60] ss:$8 sps:$4 sm:$0xff]   ;;  %v15899_v34 = vld [vmem:[%s20569_s18 + $0x74] ss:$8 sps:$4 sm:$0xff]  }
 0x10b   :  { %v15901_v36 = vld [vmem:[%s20569_s18 + $0x70] ss:$8 sps:$4 sm:$0xff]   ;;  %v237_v39 = vld [vmem:[%s20570_s12] sm:$0xff]  ;;  %v242_v56 = vld [vmem:[%s20570_s12 + $0x28] sm:$0xff] }
 0x10c   :  { %251 = vbcast.lane.b32.xlu1 %v249_v7, 256  ;;  %v240_v43 = vld [vmem:[%s20570_s12 + $0x18] sm:$0xff]  ;;  %v241_v49 = vld [vmem:[%s20570_s12 + $0x20] sm:$0xff]  ;;  %v243_v0 = vld [vmem:[%s20570_s12 + $0x30] sm:$0xff] }
 0x10d   :  { %552 = vmatpush1.bf16.msra.mxu0 %v15883_v23 }
 0x10e   :  { %553 = vmatprep.subr.bf16.mxu0 %v15884_v24 }
 0x110   :  { %272 = vbcast.lane.b32.xlu1 %v270_v9, 256 }
 0x111   :  { %554 = vmatpush1.bf16.msra.mxu0 %v15886_v25 }
 0x112   :  { %555 = vmatprep.subr.bf16.mxu0 %v15887_v26 }
 0x114   :  { %279 = vbcast.lane.b32.xlu1 %v277_v11, 256 }
 0x115   :  { %556 = vmatpush1.bf16.msra.mxu0 %v15889_v27 }
 0x116   :  { %557 = vmatprep.subr.bf16.mxu0 %v15890_v28  ;;  %v238_v28 = vld [vmem:[%s20570_s12 + $0x8] sm:$0xff] }
 0x118   :  { %286 = vbcast.lane.b32.xlu1 %v284_v13, 256 }
 0x119   :  { %558 = vmatpush1.bf16.msra.mxu0 %v15892_v29 }
 0x11a   :  { %559 = vmatprep.subr.bf16.mxu0 %v15893_v30 }
 0x11c   :  { %293 = vbcast.lane.b32.xlu1 %v291_v16, 256  ;;  %v244_v16 = vld [vmem:[%s20570_s12 + $0x38] sm:$0xff] }
 0x11d   :  { %258 = vbcast.lane.b32.xlu0 %v256_v18, 256  ;;  %560 = vmatpush1.bf16.msra.mxu0 %v15895_v31 }
 0x11e   :  { %561 = vmatprep.subr.bf16.mxu0 %v15896_v32 }
 0x120   :  { %300 = vbcast.lane.b32.xlu1 %v298_v19, 256 }
 0x121   :  { %562 = vmatpush1.bf16.msra.mxu0 %v15898_v33 }
 0x122   :  { %563 = vmatprep.subr.bf16.mxu0 %v15899_v34 }
 0x125   :  { %564 = vmatpush1.bf16.msra.mxu0 %v15901_v36 }
 0x17a   :  { %v266_v38 = vpop.permute.xlu1 %265 }
 0x17b   :  { %v304_v40 = vmul.f32 %v266_v38, %v239_v37 }
 0x17d   :  { %v322_v41 = vrot.slane %v304_v40, 4 }
 0x17e   :  { %v252_v42 = vpop.permute.xlu1 %251 }
 0x17f   :  { %v323_v44 = vadd.f32 %v322_v41, %v304_v40  ;;  %v302_v45 = vmul.f32 %v252_v42, %v237_v39 }
 0x181   :  { %v324_v46 = vrot.slane %v323_v44, 2  ;;  %v310_v47 = vrot.slane %v302_v45, 4 }
 0x182   :  { %v273_v48 = vpop.permute.xlu1 %272 }
 0x183   :  { %v311_v50 = vadd.f32 %v310_v47, %v302_v45  ;;  %v305_v51 = vmul.f32 %v273_v48, %v240_v43  ;;  %v18358_v52 = vadd.f32 %v324_v46, %v323_v44 }
 0x185   :  { %v312_v53 = vrot.slane %v311_v50, 2  ;;  %v328_v54 = vrot.slane %v305_v51, 4  ;;  %v326_v60 = vrot.slane %v18358_v52, 1 }
 0x186   :  { %v280_v55 = vpop.permute.xlu1 %279 }
 0x187   :  { %v18363_v57 = vadd.f32 %v312_v53, %v311_v50  ;;  %v329_v58 = vadd.f32 %v328_v54, %v305_v51  ;;  %v306_v59 = vmul.f32 %v280_v55, %v241_v49  ;;  %v327_v54 = vadd.f32 %v326_v60, %v18358_v52 }
 0x189   :  { %v330_v61 = vrot.slane %v329_v58, 2  ;;  %v334_v62 = vrot.slane %v306_v59, 4  ;;  %v314_v1 = vrot.slane %v18363_v57, 1 }
 0x18a   :  { %v287_v63 = vpop.permute.xlu1 %286 }
 0x18b   :  { %v331_v4 = vadd.f32 %v330_v61, %v329_v58  ;;  %v335_v5 = vadd.f32 %v334_v62, %v306_v59  ;;  %v307_v6 = vmul.f32 %v287_v63, %v242_v56 }
 0x18d   :  { %v332_v7 = vrot.slane %v331_v4, 1  ;;  %v336_v9 = vrot.slane %v335_v5, 2  ;;  %v340_v11 = vrot.slane %v307_v6, 4 }
 0x18e   :  { %v294_v13 = vpop.permute.xlu1 %293 }
 0x18f   :  { %v337_v17 = vadd.f32 %v336_v9, %v335_v5  ;;  %v341_v18 = vadd.f32 %v340_v11, %v307_v6  ;;  %v308_v19 = vmul.f32 %v294_v13, %v243_v0  ;;  %v333_v56 = vadd.f32 %v332_v7, %v331_v4 }
 0x190   :  { %v315_v13 = vadd.f32 %v314_v1, %v18363_v57 }
 0x191   :  { %v338_v20 = vrot.slane %v337_v17, 1  ;;  %v342_v21 = vrot.slane %v341_v18, 2  ;;  %v346_v22 = vrot.slane %v308_v19, 4 }
 0x192   :  { %v301_v23 = vpop.permute.xlu1 %300 }
 0x193   :  { %v343_v24 = vadd.f32 %v342_v21, %v341_v18  ;;  %v347_v25 = vadd.f32 %v346_v22, %v308_v19  ;;  %v309_v26 = vmul.f32 %v301_v23, %v244_v16  ;;  %v339_v61 = vadd.f32 %v338_v20, %v337_v17 }
 0x194   :  { %v361_v27 = vpop.xlane.xlu0 %360 }
 0x195   :  { %v344_v29 = vrot.slane %v343_v24, 1  ;;  %v348_v30 = vrot.slane %v347_v25, 2  ;;  %v352_v31 = vrot.slane %v309_v26, 4  ;;  %v363_v32 = vrot.slane %v361_v27, 1 }
 0x196   :  { %v364_v33 = vrot.slane %v361_v27, 2  ;;  %v365_v34 = vrot.slane %v361_v27, 3  ;;  %v366_v36 = vrot.slane %v361_v27, 4  ;;  %v367_v37 = vrot.slane %v361_v27, 5 }
 0x197   :  { %v349_v38 = vadd.f32 %v348_v30, %v347_v25  ;;  %v353_v39 = vadd.f32 %v352_v31, %v309_v26  ;;  %v368_v40 = vrot.slane %v361_v27, 6  ;;  %v369_v41 = vrot.slane %v361_v27, 7 }
 0x198   :  { %17350 = vrcp.f32 %v361_v27  ;;  %v259_v42 = vpop.permute.xlu0 %258  ;;  %v345_v5 = vadd.f32 %v344_v29, %v343_v24 }
 0x199   :  { %v350_v43 = vrot.slane %v349_v38, 1  ;;  %v354_v44 = vrot.slane %v353_v39, 2  ;;  %17352 = vrcp.f32 %v364_v33  ;;  %v303_v45 = vmul.f32 %v259_v42, %v238_v28 }
 0x19a   :  { %17354 = vrcp.f32 %v365_v34 }
 0x19b   :  { %v355_v46 = vadd.f32 %v354_v44, %v353_v39  ;;  %17356 = vrcp.f32 %v366_v36  ;;  %v316_v47 = vrot.slane %v303_v45, 4  ;;  %v351_v62 = vadd.f32 %v350_v43, %v349_v38 }
 0x19c   :  { %17358 = vrcp.f32 %v367_v37 }
 0x19d   :  { %v356_v48 = vrot.slane %v355_v46, 1  ;;  %17360 = vrcp.f32 %v368_v40  ;;  %v317_v49 = vadd.f32 %v316_v47, %v303_v45 }
 0x19e   :  { %17362 = vrcp.f32 %v369_v41 }
 0x19f   :  { %17364 = vrcp.f32 %v363_v32  ;;  %v318_v50 = vrot.slane %v317_v49, 2  ;;  %v357_v6 = vadd.f32 %v356_v48, %v355_v46 }
 0x1a1   :  { %v319_v51 = vadd.f32 %v318_v50, %v317_v49 }
 0x1a2   :  { %v17351_v53 = vpop.eup %17350 }
 0x1a3   :  { %v17353_v55 = vpop.eup %17352  ;;  %v320_v58 = vrot.slane %v319_v51, 1  ;;  %v379_v21 = vmul.f32 %v17351_v53, %v315_v13  ;;  %v418_v53 = vld [vmem:[#allocation3] sm:$0x3]  ;;  %v18389_v13 = vld [vmem:[#allocation5] sm:$0xff]  }
 0x1a4   :  { %v17355_v59 = vpop.eup %17354  ;;  %v383_v63 = vmul.f32 %v17353_v55, %v327_v54  ;;  %v423_v54 = vrot.slane %v418_v53, %v18275_v3  ;;  %v15906_v53 = vld [vmem:[#allocation5 + $0x10] sm:$0xff]  }
 0x1a5   :  { %v17357_v0 = vpop.eup %17356  ;;  %v385_v9 = vmul.f32 %v17355_v59, %v333_v56  ;;  %v321_v16 = vadd.f32 %v320_v58, %v319_v51  ;;  %v394_v30 = vpack.c.bf16 %v379_v21, %v379_v21 }
 0x1a6   :  { %v17359_v11 = vpop.eup %17358  ;;  %v387_v18 = vmul.f32 %v17357_v0, %v339_v61  ;;  %v396_v19 = vpack.c.bf16 %v383_v63, %v383_v63 }
 0x1a7   :  { %v17361_v52 = vpop.eup %17360  ;;  %v389_v60 = vmul.f32 %v17359_v11, %v345_v5  ;;  %v397_v4 = vpack.c.bf16 %v385_v9, %v385_v9  ;;  %v438_v42 = vunpack.c.l.b16 %v394_v30 }
 0x1a8   :  { %v17363_v7 = vpop.eup %17362  ;;  %v391_v17 = vmul.f32 %v17361_v52, %v351_v62  ;;  %v398_v20 = vpack.c.bf16 %v387_v18, %v387_v18  ;;  %v440_v25 = vunpack.c.l.b16 %v396_v19  ;;  %v17968_v18 = vmov 0.0   ;;  %v17670_v52 = vld [vmem:[#allocation3] sm:$0x3] }
 0x1a9   :  { %v17365_v22 = vpop.eup %17364  ;;  %v393_v23 = vmul.f32 %v17363_v7, %v357_v6  ;;  %v399_v24 = vpack.c.bf16 %v389_v60, %v389_v60  ;;  %v441_v28 = vunpack.c.l.b16 %v397_v4  ;;  %15767 = vmatprep.subr.bf16.mxu1 %v17968_v18  ;;  %15771 = vmatprep.mubr.msk.bf16.mxu1 %vm17969_vm8, %v17968_v18  ;;  %v427_v60 = vrot.slane %v17670_v52, %v18293_v15 }
 0x1aa   :  { %v381_v26 = vmul.f32 %v17365_v22, %v321_v16  ;;  %v400_v27 = vpack.c.bf16 %v391_v17, %v391_v17  ;;  %v442_v29 = vunpack.c.l.b16 %v398_v20  ;;  %v449_v36 = vrot.slane %v440_v25, 6  ;;  %v18391_v16 = vld [vmem:[#allocation5 + $0x8] sm:$0xff]   ;;  %15768 = vmatpush3.bf16.msra.mxu1 %v18389_v13  ;;  %15799 = vmatprep.subr.bf16.mxu0 %v17968_v18 }
 0x1ab   :  { %v401_v57 = vpack.c.bf16 %v393_v23, %v393_v23  ;;  %v443_v1 = vunpack.c.l.b16 %v399_v24  ;;  %v452_v37 = vrot.slane %v441_v28, 5  ;;  %15769 = vmatprep.subr.bf16.mxu1 %v17968_v18 }
 0x1ac   :  { %v395_v31 = vpack.c.bf16 %v381_v26, %v381_v26  ;;  %v444_v32 = vunpack.c.l.b16 %v400_v27  ;;  %v455_v38 = vrot.slane %v442_v29, 4 }
 0x1ad   :  { %v445_v33 = vunpack.c.l.b16 %v401_v57  ;;  %v458_v39 = vrot.slane %v443_v1, 3 }
 0x1ae   :  { %v439_v34 = vunpack.c.l.b16 %v395_v31  ;;  %v461_v40 = vrot.slane %v444_v32, 2  ;;  %15770 = vmatpush3.bf16.msra.mxu1 %v18391_v16  ;;  %v18423_v31 = vld [vmem:[#allocation8] ss:$0 sm:$0xff] }
 0x1af   :  { %v464_v41 = vrot.slane %v445_v33, 1  ;;  %15775 = vmatprep.subr.bf16.mxu1 %v17968_v18 }
 0x1b0   :  { %v446_v43 = vrot.slane %v439_v34, 7 }
 0x1b2   :  { %v448_v44 = vsel %vm447_vm1, %v446_v43, %v438_v42 }
 0x1b3   :  { %v451_v45 = vsel %vm450_vm2, %v449_v36, %v448_v44 }
 0x1b4   :  { %v454_v46 = vsel %vm453_vm3, %v452_v37, %v451_v45  ;;  %v15904_v45 = vld [vmem:[#allocation7] sm:$0xff]  }
 0x1b5   :  { %v457_v47 = vsel %vm456_vm4, %v455_v38, %v454_v46  ;;  %v15905_v46 = vld [vmem:[#allocation7 + $0x8] sm:$0xff]  }
 0x1b6   :  { %v460_v48 = vsel %vm459_vm5, %v458_v39, %v457_v47 }
 0x1b7   :  { %v463_v49 = vsel %vm462_vm6, %v461_v40, %v460_v48 }
 0x1b8   :  { %v466_v50 = vsel %vm465_vm7, %v464_v41, %v463_v49 }
 0x1b9   :  { %v467_v51 = vpack.c.b16 %v466_v50, %v466_v50 }
 0x1bb   :  { %582 = vmatmul.mubr.bf16.vlgmr.msra.gmra.mrb[0].mxu0 %v467_v51 }
 0x1bc   :  { %15803 = vmatprep.mubr.msk.bf16.mxu0 %vm17969_vm8, %v17968_v18 }
 0x28e   :  { %v583_v55 = vpop.f32.mrb[0].mxu0 }
 0x28f   :  { %v584_v56 = vadd.f32 %v583_v55, %v423_v54  ;;  %v585_v58 = vpop.f32.mrb[1].mxu0  ;;  %v15907_v55 = vld [vmem:[#allocation5 + $0x18] sm:$0xff]  }
 0x290   :  { %v587_v59 = vpop.f32.mrb[2].mxu0  ;;  %v586_v4 = vadd.f32 %v585_v58, %v427_v60 }
 0x291   :  { %17366 = vtanh.f32 %v584_v56  ;;  %v588_v61 = vpop.f32.mrb[3].mxu0  ;;  %v13189_v63 = vmul.f32 -1.442695, %v584_v56 }
 0x292   :  { %v13190_v22 = vmul.f32 -1.442695, %v586_v4 }
 0x293   :  { %17368 = vpow2.f32 %v13189_v63 }
 0x29b   :  { %v17367_v62 = vpop.eup %17366 }
 0x29c   :  { %605 = vrot.lane.b32.xlu0 %v17367_v62, %s17950_s25 }
 0x29d   :  { %v17369_v0 = vpop.eup %17368 }
 0x29e   :  { %v596_v5 = vadd.f32 1.0, %v17369_v0 }
 0x2a0   :  { %17370 = vrcp.f32 %v596_v5 }
 0x2aa   :  { %v17371_v6 = vpop.eup %17370 }
 0x30e   :  { %v606_v9 = vpop.permute.xlu0 %605 }
 0x30f   :  { %v608_v11 = vmul.f32 %v17371_v6, %v606_v9  ;;  %v18453_v9 = vld [vmem:[#allocation8 + $0x1] ss:$0 sm:$0xff] }
 0x311   :  { %17372 = vtanh.f32 %v608_v11 }
 0x312   :  { %17374 = vtanh.f32 %v586_v4 }
 0x313   :  { %17376 = vpow2.f32 %v13190_v22 }
 0x31b   :  { %v17373_v19 = vpop.eup %17372 }
 0x31c   :  { %611 = vrot.lane.b32.xlu1 %v17373_v19, %s17970_s3  ;;  %v17375_v20 = vpop.eup %17374 }
 0x31d   :  { %v17377_v23 = vpop.eup %17376 }
 0x31e   :  { %v597_v24 = vadd.f32 1.0, %v17377_v23 }
 0x320   :  { %17378 = vrcp.f32 %v597_v24 }
 0x32a   :  { %v17379_v26 = vpop.eup %17378 }
 0x38e   :  { %v612_v7 = vpop.permute.xlu1 %611 }
 0x38f   :  { %v18405_v21 = vmul.f32 %v17371_v6, %v612_v7 }
 0x391   :  { %v626_v17 = vpack.c.bf16 %v18405_v21, %v18405_v21 }
 0x393   :  { %637 = vrot.lane.b32.xlu0 %v626_v17, %s17971_s20 }
 0x397   :  { %616 = vrot.lane.b32.xlu0 %v17375_v20, %s17950_s25 }
 0x405   :  { %v18411_v25 = vpop.permute.xlu0 %637 }
 0x406   :  { %15772 = vmatmul.mubr.msk.bf16.vlgmr.msra.gmra.mrb[0].mxu1 %vm651_vm9, %v18411_v25 }
 0x407   :  { %15779 = vmatprep.mubr.msk.bf16.mxu1 %vm17969_vm8, %v17968_v18  ;;  %15776 = vmatpush3.bf16.msra.mxu1 %v15904_v45 }
 0x408   :  { %15777 = vmatprep.subr.bf16.mxu1 %v17968_v18 }
 0x409   :  { %v617_v27 = vpop.permute.xlu0 %616 }
 0x40a   :  { %v619_v28 = vmul.f32 %v17379_v26, %v617_v27 }
 0x40b   :  { %15778 = vmatpush3.bf16.msra.mxu1 %v15905_v46 }
 0x40c   :  { %17380 = vtanh.f32 %v619_v28  ;;  %15783 = vmatprep.subr.bf16.mxu1 %v17968_v18 }
 0x416   :  { %v17381_v29 = vpop.eup %17380 }
 0x417   :  { %622 = vrot.lane.b32.xlu0 %v17381_v29, %s17970_s3  ;;  %v15908_v29 = vld [vmem:[#allocation7 + $0x10] sm:$0xff]  }
 0x418   :  { %15800 = vmatpush3.bf16.msra.mxu0 %v15908_v29  ;;  %v15919_v29 = vld [vmem:[%s20571_s0 + $0x28] ss:$16 sps:$4 sm:$0xff]  }
 0x419   :  { %15801 = vmatprep.subr.bf16.mxu0 %v17968_v18 }
 0x489   :  { %v623_v57 = vpop.permute.xlu0 %622 }
 0x48a   :  { %v18418_v1 = vmul.f32 %v17379_v26, %v623_v57 }
 0x48c   :  { %v713_v30 = vpack.c.bf16 %v18418_v1, %v18418_v1 }
 0x48e   :  { %778 = vrot.lane.b32.xlu0 %v713_v30, %s17971_s20  ;;  %v15909_v30 = vld [vmem:[#allocation7 + $0x18] sm:$0xff]  }
 0x48f   :  { %15802 = vmatpush3.bf16.msra.mxu0 %v15909_v30  ;;  %v15927_v30 = vld [vmem:[%s20571_s0 + $0x4c] ss:$16 sps:$4 sm:$0xff]  }
 0x4d9   :  { %v689_v32 = vpop.f32.mrb[0].mxu1 }
 0x4da   :  { %v690_v33 = vadd.f32 %v18423_v31, %v689_v32  ;;  %v15773_v34 = vpop.f32.mrb[1].mxu1 }
 0x4db   :  { %v692_v36 = vpop.f32.mrb[2].mxu1 }
 0x4dc   :  { %17382 = vtanh.f32 %v690_v33  ;;  %v15774_v37 = vpop.f32.mrb[3].mxu1  ;;  %v13195_v39 = vmul.f32 -1.442695, %v690_v33 }
 0x4de   :  { %17384 = vpow2.f32 %v13195_v39 }
 0x4e6   :  { %v17383_v38 = vpop.eup %17382 }
 0x4e7   :  { %703 = vrot.lane.b32.xlu1 %v17383_v38, %s17950_s25 }
 0x4e8   :  { %v17385_v40 = vpop.eup %17384 }
 0x4e9   :  { %v698_v41 = vadd.f32 1.0, %v17385_v40 }
 0x4eb   :  { %17386 = vrcp.f32 %v698_v41 }
 0x4f5   :  { %v17387_v42 = vpop.eup %17386 }
 0x500   :  { %v779_v54 = vpop.permute.xlu0 %778 }
 0x559   :  { %v704_v43 = vpop.permute.xlu1 %703 }
 0x55a   :  { %v18427_v44 = vmul.f32 %v17387_v42, %v704_v43 }
 0x55c   :  { %17388 = vtanh.f32 %v18427_v44 }
 0x566   :  { %v17389_v47 = vpop.eup %17388 }
 0x567   :  { %709 = vrot.lane.b32.xlu1 %v17389_v47, %s17970_s3 }
 0x5d9   :  { %v710_v48 = vpop.permute.xlu1 %709 }
 0x5da   :  { %v712_v49 = vmul.f32 %v17387_v42, %v710_v48 }
 0x5dc   :  { %v714_v50 = vpack.c.bf16 %v712_v49, %v712_v49 }
 0x5de   :  { %720 = vrot.lane.b32.xlu1 %v714_v50, %s17971_s20 }
 0x650   :  { %v721_v51 = vpop.permute.xlu1 %720 }
 0x651   :  { %15780 = vmatmul.mubr.msk.bf16.vlgmr.msra.gmra.mrb[4].mxu1 %vm651_vm9, %v721_v51 }
 0x652   :  { %15784 = vmatpush3.bf16.msra.mxu1 %v18389_v13  ;;  %15787 = vmatprep.mubr.msk.bf16.mxu1 %vm17969_vm8, %v17968_v18 }
 0x653   :  { %15785 = vmatprep.subr.bf16.mxu1 %v17968_v18 }
 0x656   :  { %15786 = vmatpush3.bf16.msra.mxu1 %v18391_v16 }
 0x657   :  { %15791 = vmatprep.subr.bf16.mxu1 %v17968_v18 }
 0x659   :  { %15788 = vmatmul.mubr.msk.bf16.vlgmr.msra.gmra.mrb[8].mxu1 %vm651_vm9, %v779_v54 }
 0x65a   :  { %15792 = vmatpush3.bf16.msra.mxu1 %v15906_v53  ;;  %15795 = vmatprep.mubr.msk.bf16.mxu1 %vm17969_vm8, %v17968_v18 }
 0x65b   :  { %15793 = vmatprep.subr.bf16.mxu1 %v17968_v18 }
 0x65e   :  { %15794 = vmatpush3.bf16.msra.mxu1 %v15907_v55 }
 0x65f   :  { %15807 = vmatprep.subr.bf16.mxu1 %v17968_v18 }
 0x661   :  { %15796 = vmatmul.mubr.msk.bf16.vlgmr.msra.gmra.mrb[12].mxu1 %vm651_vm9, %v779_v54 }
 0x662   :  { %15808 = vmatpush3.bf16.msra.mxu1 %v15906_v53  ;;  %15811 = vmatprep.mubr.msk.bf16.mxu1 %vm17969_vm8, %v17968_v18 }
 0x663   :  { %15809 = vmatprep.subr.bf16.mxu1 %v17968_v18 }
 0x666   :  { %15810 = vmatpush3.bf16.msra.mxu1 %v15907_v55 }
 0x669   :  { %15812 = vmatmul.mubr.msk.bf16.vlgmr.msra.gmra.mrb[16].mxu1 %vm651_vm9, %v18411_v25 }
 0x66a   :  { %1370 = vmatprep.mubr.bf16.mxu1 %v17967_v35 }
 0x724   :  { %v771_v56 = vpop.f32.mrb[4].mxu1 }
 0x725   :  { %v15781_v58 = vpop.f32.mrb[5].mxu1 }
 0x726   :  { %v774_v59 = vpop.f32.mrb[6].mxu1 }
 0x727   :  { %v15782_v61 = vpop.f32.mrb[7].mxu1 }
 0x72c   :  { %v817_v62 = vpop.f32.mrb[8].mxu1 }
 0x72d   :  { %v818_v63 = vadd.f32 %v817_v62, %v771_v56  ;;  %v15789_v0 = vpop.f32.mrb[9].mxu1 }
 0x72e   :  { %v820_v5 = vpop.f32.mrb[10].mxu1 }
 0x72f   :  { %v15790_v6 = vpop.f32.mrb[11].mxu1  ;;  %v823_v28 = vadd.f32 %v18423_v31, %v818_v63 }
 0x731   :  { %v13200_v33 = vmul.f32 -1.442695, %v823_v28 }
 0x734   :  { %v908_v11 = vpop.f32.mrb[12].mxu1 }
 0x735   :  { %v909_v13 = vadd.f32 %v18453_v9, %v908_v11  ;;  %v15797_v16 = vpop.f32.mrb[13].mxu1 }
 0x736   :  { %v911_v19 = vpop.f32.mrb[14].mxu1 }
 0x737   :  { %17390 = vtanh.f32 %v909_v13  ;;  %v15798_v52 = vpop.f32.mrb[15].mxu1  ;;  %v13205_v22 = vmul.f32 -1.442695, %v909_v13 }
 0x739   :  { %17392 = vpow2.f32 %v13205_v22  ;;  %v15912_v22 = vld [vmem:[%s20571_s0 + $0x4] ss:$16 sps:$4 sm:$0xff]  }
 0x73a   :  { %1297 = vmatprep.subr.bf16.mxu0 %v15912_v22  ;;  %v15970_v22 = vld [vmem:[#allocation10 + $0x40] ss:$8 sps:$4 sm:$0xff]  }
 0x73c   :  { %v1030_v60 = vpop.f32.mrb[16].mxu1 }
 0x73d   :  { %v15813_v4 = vpop.f32.mrb[17].mxu1 }
 0x73e   :  { %v1033_v7 = vpop.f32.mrb[18].mxu1 }
 0x73f   :  { %v15814_v17 = vpop.f32.mrb[19].mxu1 }
 0x741   :  { %v17391_v20 = vpop.eup %17390 }
 0x742   :  { %922 = vrot.lane.b32.xlu1 %v17391_v20, %s17950_s25 }
 0x743   :  { %v17393_v23 = vpop.eup %17392 }
 0x744   :  { %v917_v24 = vadd.f32 1.0, %v17393_v23  ;;  %v15915_v23 = vld [vmem:[%s20571_s0 + $0xc] ss:$16 sps:$4 sm:$0xff]  }
 0x745   :  { %1338 = vmatprep.subr.bf16.mxu1 %v15915_v23  ;;  %v15975_v23 = vld [vmem:[#allocation10 + $0x54] ss:$8 sps:$4 sm:$0xff]  }
 0x746   :  { %17394 = vrcp.f32 %v917_v24  ;;  %v15910_v24 = vld [vmem:[%s20571_s0] ss:$16 sps:$4 sm:$0xff]  }
 0x750   :  { %v17395_v25 = vpop.eup %17394 }
 0x7b4   :  { %v923_v26 = vpop.permute.xlu1 %922 }
 0x7b5   :  { %v925_v27 = vmul.f32 %v17395_v25, %v923_v26  ;;  %v15918_v26 = vld [vmem:[%s20571_s0 + $0x24] ss:$16 sps:$4 sm:$0xff]  }
 0x7b7   :  { %17396 = vtanh.f32 %v925_v27 }
 0x7b8   :  { %17398 = vtanh.f32 %v823_v28  ;;  %v15916_v28 = vld [vmem:[%s20571_s0 + $0x20] ss:$16 sps:$4 sm:$0xff]  }
 0x7b9   :  { %17400 = vpow2.f32 %v13200_v33  ;;  %v15925_v33 = vld [vmem:[%s20571_s0 + $0x48] ss:$16 sps:$4 sm:$0xff]  }
 0x7c1   :  { %v17397_v57 = vpop.eup %17396 }
 0x7c2   :  { %928 = vrot.lane.b32.xlu0 %v17397_v57, %s17970_s3  ;;  %v17399_v32 = vpop.eup %17398  ;;  %v15924_v57 = vld [vmem:[%s20571_s0 + $0x44] ss:$16 sps:$4 sm:$0xff]  }
 0x7c3   :  { %v17401_v34 = vpop.eup %17400 }
 0x7c4   :  { %v827_v36 = vadd.f32 1.0, %v17401_v34  ;;  %v15928_v34 = vld [vmem:[%s20571_s0 + $0x60] ss:$16 sps:$4 sm:$0xff]  }
 0x7c6   :  { %837 = vrot.lane.b32.xlu0 %v17399_v32, %s17950_s25  ;;  %17402 = vrcp.f32 %v827_v36  ;;  %v15922_v32 = vld [vmem:[%s20571_s0 + $0x40] ss:$16 sps:$4 sm:$0xff]   ;;  %v15930_v36 = vld [vmem:[%s20571_s0 + $0x64] ss:$16 sps:$4 sm:$0xff]  }
 0x7d0   :  { %v17403_v39 = vpop.eup %17402 }
 0x834   :  { %v929_v31 = vpop.permute.xlu0 %928 }
 0x835   :  { %v931_v37 = vmul.f32 %v17395_v25, %v929_v31  ;;  %v15913_v25 = vld [vmem:[%s20571_s0 + $0x8] ss:$16 sps:$4 sm:$0xff]  }
 0x836   :  { %1339 = vmatpush1.bf16.msra.mxu1 %v15913_v25  ;;  %v15931_v31 = vld [vmem:[%s20571_s0 + $0x68] ss:$16 sps:$4 sm:$0xff]  }
 0x837   :  { %v932_v38 = vpack.c.bf16 %v931_v37, %v931_v37  ;;  %v15933_v37 = vld [vmem:[%s20571_s0 + $0x6c] ss:$16 sps:$4 sm:$0xff]   ;;  %v15978_v25 = vld [vmem:[#allocation10 + $0x64] ss:$8 sps:$4 sm:$0xff]  }
 0x838   :  { %v838_v40 = vpop.permute.xlu0 %837 }
 0x839   :  { %v840_v41 = vmul.f32 %v17403_v39, %v838_v40  ;;  %939 = vrot.lane.b32.xlu1 %v932_v38, %s17971_s20  ;;  %v15936_v38 = vld [vmem:[%s20571_s0 + $0x84] ss:$16 sps:$4 sm:$0xff]   ;;  %v15934_v40 = vld [vmem:[%s20571_s0 + $0x80] ss:$16 sps:$4 sm:$0xff]  }
 0x83b   :  { %842 = vrot.lane.b32.xlu0 %v840_v41, %s17971_s20  ;;  %v15937_v41 = vld [vmem:[%s20571_s0 + $0x88] ss:$16 sps:$4 sm:$0xff]  }
 0x83d   :  { %832 = vrot.lane.b32.xlu1 %v18427_v44, %s17971_s20 }
 0x83f   :  { %1045 = vrot.lane.b32.xlu0 %v925_v27, %s17971_s20  ;;  %v15921_v27 = vld [vmem:[%s20571_s0 + $0x2c] ss:$16 sps:$4 sm:$0xff]  }
 0x840   :  { %1340 = vmatprep.subr.bf16.mxu1 %v15921_v27  ;;  %v15981_v27 = vld [vmem:[#allocation10 + $0x74] ss:$8 sps:$4 sm:$0xff]  }
 0x841   :  { %1341 = vmatpush1.bf16.msra.mxu1 %v15919_v29  ;;  %v15982_v29 = vld [vmem:[%s20526_s9 + $0x40] sm:$0xff]  }
 0x842   :  { %1342 = vmatprep.subr.bf16.mxu1 %v15927_v30  ;;  %v15986_v30 = vld [vmem:[%s20526_s9] sm:$0xff]  }
 0x845   :  { %1343 = vmatpush1.bf16.msra.mxu1 %v15925_v33  ;;  %v15987_v33 = vld [vmem:[%s20526_s9 + $0x48] sm:$0xff]  }
 0x846   :  { %1344 = vmatprep.subr.bf16.mxu1 %v15933_v37  ;;  %v15992_v37 = vld [vmem:[%s20526_s9 + $0x50] sm:$0xff]  }
 0x849   :  { %1345 = vmatpush1.bf16.msra.mxu1 %v15931_v31  ;;  %v15988_v31 = vld [vmem:[#allocation10 + $0x90] ss:$8 sps:$4 sm:$0xff]  }
 0x8ab   :  { %v940_v42 = vpop.permute.xlu1 %939 }
 0x8ac   :  { %15804 = vmatmul.mubr.msk.bf16.vlgmr.msra.gmra.mrb[4].mxu0 %vm651_vm9, %v940_v42  ;;  %v15942_v42 = vld [vmem:[%s20571_s0 + $0xa4] ss:$16 sps:$4 sm:$0xff]  }
 0x8ad   :  { %1329 = vmatprep.mubr.bf16.mxu0 %v17967_v35  ;;  %v843_v46 = vpop.permute.xlu0 %842  ;;  %1298 = vmatpush1.bf16.msra.mxu0 %v15910_v24  ;;  %v15973_v24 = vld [vmem:[#allocation10 + $0x50] ss:$8 sps:$4 sm:$0xff]  }
 0x8ae   :  { %1299 = vmatprep.subr.bf16.mxu0 %v15918_v26  ;;  %v15976_v26 = vld [vmem:[#allocation10 + $0x60] ss:$8 sps:$4 sm:$0xff]  }
 0x8af   :  { %v833_v43 = vpop.permute.xlu1 %832 }
 0x8b0   :  { %v835_v45 = vmul.f32 %v17403_v39, %v833_v43  ;;  %v15945_v43 = vld [vmem:[%s20571_s0 + $0xac] ss:$16 sps:$4 sm:$0xff]  }
 0x8b1   :  { %1300 = vmatpush1.bf16.msra.mxu0 %v15916_v28  ;;  %v15979_v28 = vld [vmem:[#allocation10 + $0x70] ss:$8 sps:$4 sm:$0xff]  }
 0x8b2   :  { %v845_v47 = vadd.f32 %v843_v46, %v835_v45  ;;  %1301 = vmatprep.subr.bf16.mxu0 %v15924_v57  ;;  %v15940_v45 = vld [vmem:[%s20571_s0 + $0xa0] ss:$16 sps:$4 sm:$0xff]   ;;  %v15943_v46 = vld [vmem:[%s20571_s0 + $0xa8] ss:$16 sps:$4 sm:$0xff]  }
 0x8b3   :  { %v15985_v57 = vld [vmem:[#allocation10 + $0x84] ss:$8 sps:$4 sm:$0xff]  }
 0x8b4   :  { %17404 = vtanh.f32 %v845_v47  ;;  %v15948_v47 = vld [vmem:[%s20571_s0 + $0xc4] ss:$16 sps:$4 sm:$0xff]  }
 0x8b5   :  { %1302 = vmatpush1.bf16.msra.mxu0 %v15922_v32  ;;  %v15983_v32 = vld [vmem:[#allocation10 + $0x80] ss:$8 sps:$4 sm:$0xff]  }
 0x8b6   :  { %1303 = vmatprep.subr.bf16.mxu0 %v15930_v36  ;;  %v15991_v36 = vld [vmem:[%s20526_s9 + $0x8] sm:$0xff]  }
 0x8b9   :  { %1304 = vmatpush1.bf16.msra.mxu0 %v15928_v34  ;;  %v15990_v34 = vld [vmem:[#allocation10 + $0x94] ss:$8 sps:$4 sm:$0xff]  }
 0x8ba   :  { %1305 = vmatprep.subr.bf16.mxu0 %v15936_v38  ;;  %v15995_v38 = vld [vmem:[#allocation10 + $0xa4] ss:$8 sps:$4 sm:$0xff]  }
 0x8bd   :  { %1306 = vmatpush1.bf16.msra.mxu0 %v15934_v40  ;;  %v15993_v40 = vld [vmem:[#allocation10 + $0xa0] ss:$8 sps:$4 sm:$0xff]  }
 0x8be   :  { %v17405_v48 = vpop.eup %17404  ;;  %1307 = vmatprep.subr.bf16.mxu0 %v15942_v42  ;;  %v16000_v42 = vld [vmem:[#allocation10 + $0xb4] ss:$8 sps:$4 sm:$0xff]  }
 0x8bf   :  { %848 = vrot.lane.b32.xlu0 %v17405_v48, %s17950_s25  ;;  %v15951_v48 = vld [vmem:[%s20571_s0 + $0xcc] ss:$16 sps:$4 sm:$0xff]  }
 0x8c1   :  { %1308 = vmatpush1.bf16.msra.mxu0 %v15940_v45  ;;  %v15998_v45 = vld [vmem:[#allocation10 + $0xb0] ss:$8 sps:$4 sm:$0xff]  }
 0x8c2   :  { %1309 = vmatprep.subr.bf16.mxu0 %v15948_v47  ;;  %v16005_v47 = vld [vmem:[#allocation10 + $0xc4] ss:$8 sps:$4 sm:$0xff]  }
 0x8c3   :  { %1066 = vrot.lane.b32.xlu0 %v18405_v21, %s17971_s20 }
 0x8c7   :  { %1074 = vrot.lane.b32.xlu0 %v18418_v1, %s17970_s3  ;;  %v1046_v1 = vpop.permute.xlu0 %1045 }
 0x97f   :  { %v990_v44 = vpop.f32.mrb[4].mxu0 }
 0x980   :  { %v1031_v49 = vadd.f32 %v1030_v60, %v990_v44  ;;  %v15805_v50 = vpop.f32.mrb[5].mxu0  ;;  %v15946_v44 = vld [vmem:[%s20571_s0 + $0xc0] ss:$16 sps:$4 sm:$0xff]  }
 0x981   :  { %v993_v51 = vpop.f32.mrb[6].mxu0  ;;  %v15954_v50 = vld [vmem:[%s20571_s0 + $0xe4] ss:$16 sps:$4 sm:$0xff]   ;;  %1310 = vmatpush1.bf16.msra.mxu0 %v15946_v44 }
 0x982   :  { %v1036_v53 = vadd.f32 %v18453_v9, %v1031_v49  ;;  %v15806_v54 = vpop.f32.mrb[7].mxu0  ;;  %v849_v9 = vpop.permute.xlu0 %848  ;;  %v15949_v49 = vld [vmem:[%s20571_s0 + $0xc8] ss:$16 sps:$4 sm:$0xff]   ;;  %v15957_v51 = vld [vmem:[%s20571_s0 + $0xec] ss:$16 sps:$4 sm:$0xff]   ;;  %1311 = vmatprep.subr.bf16.mxu0 %v15954_v50 }
 0x983   :  { %v851_v11 = vmul.f32 %v17403_v39, %v849_v9  ;;  %v15939_v39 = vld [vmem:[%s20571_s0 + $0x8c] ss:$16 sps:$4 sm:$0xff]   ;;  %v15955_v54 = vld [vmem:[%s20571_s0 + $0xe8] ss:$16 sps:$4 sm:$0xff]  }
 0x984   :  { %17406 = vtanh.f32 %v1036_v53  ;;  %v13210_v56 = vmul.f32 -1.442695, %v1036_v53  ;;  %1346 = vmatprep.subr.bf16.mxu1 %v15939_v39  ;;  %v15952_v53 = vld [vmem:[%s20571_s0 + $0xe0] ss:$16 sps:$4 sm:$0xff]   ;;  %v16003_v44 = vld [vmem:[#allocation10 + $0xc0] ss:$8 sps:$4 sm:$0xff]  }
 0x985   :  { %1347 = vmatpush1.bf16.msra.mxu1 %v15937_v41  ;;  %1312 = vmatpush1.bf16.msra.mxu0 %v15952_v53  ;;  %v15996_v39 = vld [vmem:[%s20526_s9 + $0x10] sm:$0xff]   ;;  %v15997_v41 = vld [vmem:[%s20526_s9 + $0x58] sm:$0xff]  }
 0x986   :  { %17408 = vpow2.f32 %v13210_v56  ;;  %v1067_v13 = vpop.permute.xlu0 %1066  ;;  %1348 = vmatprep.subr.bf16.mxu1 %v15945_v43  ;;  %v16001_v43 = vld [vmem:[%s20526_s9 + $0x18] sm:$0xff]  }
 0x987   :  { %v16010_v50 = vld [vmem:[#allocation10 + $0xd4] ss:$8 sps:$4 sm:$0xff]   ;;  %v16008_v53 = vld [vmem:[#allocation10 + $0xd0] ss:$8 sps:$4 sm:$0xff]  }
 0x989   :  { %1349 = vmatpush1.bf16.msra.mxu1 %v15943_v46  ;;  %v16002_v46 = vld [vmem:[%s20526_s9 + $0x60] sm:$0xff]  }
 0x98a   :  { %v1075_v52 = vpop.permute.xlu0 %1074  ;;  %1350 = vmatprep.subr.bf16.mxu1 %v15951_v48  ;;  %v16006_v48 = vld [vmem:[%s20526_s9 + $0x20] sm:$0xff]  }
 0x98d   :  { %1351 = vmatpush1.bf16.msra.mxu1 %v15949_v49  ;;  %v16007_v49 = vld [vmem:[%s20526_s9 + $0x68] sm:$0xff]  }
 0x98e   :  { %v17407_v55 = vpop.eup %17406  ;;  %1352 = vmatprep.subr.bf16.mxu1 %v15957_v51  ;;  %v16011_v51 = vld [vmem:[%s20526_s9 + $0x28] sm:$0xff]  }
 0x98f   :  { %1050 = vrot.lane.b32.xlu1 %v17407_v55, %s17950_s25  ;;  %v15960_v55 = vld [vmem:[#allocation10 + $0x4] ss:$8 sps:$4 sm:$0xff]  }
 0x990   :  { %v17409_v58 = vpop.eup %17408  ;;  %1626 = vmatprep.subr.bf16.mxu0 %v15960_v55  ;;  %v16015_v55 = vld [vmem:[#allocation10 + $0xe4] ss:$8 sps:$4 sm:$0xff]  }
 0x991   :  { %v1040_v59 = vadd.f32 1.0, %v17409_v58  ;;  %1353 = vmatpush1.bf16.msra.mxu1 %v15955_v54  ;;  %v16012_v54 = vld [vmem:[%s20526_s9 + $0x70] sm:$0xff]  }
 0x992   :  { %15045 = vmatprep.subr.bf16.mxu1 %v15982_v29 }
 0x993   :  { %17410 = vrcp.f32 %v1040_v59 }
 0x99d   :  { %v17411_v21 = vpop.eup %17410 }
 0x99e   :  { %v1048_v63 = vmul.f32 %v17411_v21, %v1046_v1 }
 0xa01   :  { %v1051_v61 = vpop.permute.xlu1 %1050 }
 0xa02   :  { %v1053_v62 = vmul.f32 %v17411_v21, %v1051_v61 }
 0xa04   :  { %1055 = vrot.lane.b32.xlu1 %v1053_v62, %s17971_s20 }
 0xa76   :  { %v1056_v0 = vpop.permute.xlu1 %1055 }
 0xa77   :  { %v1058_v5 = vadd.f32 %v1056_v0, %v1048_v63  ;;  %v18582_v63 = vld [vmem:[%s20532_s15] sm:$0x7] }
 0xa78   :  { %v1089_v0 = vrot.slane %v18582_v63, %v18275_v3 }
 0xa79   :  { %17412 = vtanh.f32 %v1058_v5 }
 0xa83   :  { %v17413_v6 = vpop.eup %17412 }
 0xa84   :  { %1061 = vrot.lane.b32.xlu1 %v17413_v6, %s17950_s25 }
 0xa88   :  { %1070 = vrot.lane.b32.xlu1 %v851_v11, %s17950_s25  ;;  %v15958_v11 = vld [vmem:[#allocation10] ss:$8 sps:$4 sm:$0xff]  }
 0xaf6   :  { %v1062_v16 = vpop.permute.xlu1 %1061 }
 0xaf7   :  { %v1064_v60 = vmul.f32 %v17411_v21, %v1062_v16  ;;  %v15963_v16 = vld [vmem:[#allocation10 + $0x14] ss:$8 sps:$4 sm:$0xff]  }
 0xafa   :  { %v1071_v19 = vpop.permute.xlu1 %1070 }
 0xafb   :  { %v1077_v4 = vsel %vm651_vm9, %v1067_v13, %v1071_v19  ;;  %v15961_v19 = vld [vmem:[#allocation10 + $0x10] ss:$8 sps:$4 sm:$0xff]  }
 0xafc   :  { %v1079_v7 = vsel %vm1078_vm10, %v1077_v4, %v1075_v52  ;;  %v15966_v52 = vld [vmem:[#allocation10 + $0x24] ss:$8 sps:$4 sm:$0xff]   ;;  %v15969_v4 = vld [vmem:[#allocation10 + $0x34] ss:$8 sps:$4 sm:$0xff]  }
 0xafd   :  { %v18479_v17 = vsel %vm1080_vm11, %v1079_v7, %v1064_v60  ;;  %v15964_v60 = vld [vmem:[#allocation10 + $0x20] ss:$8 sps:$4 sm:$0xff]   ;;  %v15967_v7 = vld [vmem:[#allocation10 + $0x30] ss:$8 sps:$4 sm:$0xff]  }
 0xafe   :  { %v1091_v20 = vmul.f32 %v18479_v17, %v18479_v17  ;;  %v1090_v5 = vmul.f32 %v1089_v0, %v18479_v17  ;;  %v18641_v0 = vld [vmem:[%s20531_s14] sm:$0x77] }
 0xb00   :  { %1092 = vadd.xlane.f32.xlu1 %v1091_v20  ;;  %v15972_v20 = vld [vmem:[#allocation10 + $0x44] ss:$8 sps:$4 sm:$0xff]  }
 0xb8d   :  { %v1093_v56 = vpop.xlane.xlu1 %1092 }
 0xb8e   :  { %v1094_v58 = vadd.f32 1e-06, %v1093_v56  ;;  %v16016_v56 = vld [vmem:[%s20526_s9 + $0x30] sm:$0xff]  }
 0xb90   :  { %17414 = vrsqrt.f32 %v1094_v58  ;;  %vm1097_vm12 = vcmp.eq.f32.partialorder %v1094_v58, inf  ;;  %v1100_v61 = vand.u32 2147483648, %v1094_v58  ;;  %vm1099_vm13 = vcmp.eq.f32.partialorder %v1094_v58, 0.0 }
 0xb9a   :  { %v17415_v59 = vpop.eup %17414 }
 0xb9b   :  { %v1096_v21 = vmul.f32 %v17415_v59, %v1094_v58  ;;  %v16017_v59 = vld [vmem:[%s20526_s9 + $0x78] sm:$0xff]  }
 0xb9d   :  { %v1098_v62 = vsel %vm1097_vm12, %v1094_v58, %v1096_v21  ;;  %v16013_v58 = vld [vmem:[#allocation10 + $0xe0] ss:$8 sps:$4 sm:$0xff]   ;;  %v16020_v21 = vld [vmem:[#allocation10 + $0xf4] ss:$8 sps:$4 sm:$0xff]  }
 0xb9e   :  { %v1101_v1 = vsel %vm1099_vm13, %v1100_v61, %v1098_v62  ;;  %v16021_v61 = vld [vmem:[%s20526_s9 + $0x38] sm:$0xff]  }
 0xb9f   :  { %17416 = vrcp.f32 %v1101_v1  ;;  %v16018_v62 = vld [vmem:[#allocation10 + $0xf0] ss:$8 sps:$4 sm:$0xff]   ;;  %v16022_v1 = vld [vmem:[%s20527_s10 + $0x40] sm:$0xff]  }
 0xba9   :  { %v17417_v6 = vpop.eup %17416 }
 0xbaa   :  { %v1103_v9 = vmul.f32 %v17417_v6, %v1090_v5  ;;  %v1383_v5 = vrot.slane %v18641_v0, %v18275_v3  ;;  %v1387_v6 = vrot.slane %v18641_v0, %v18285_v10 }
 0xbac   :  { %v1104_v13 = vpack.c.bf16 %v1103_v9, %v1103_v9  ;;  %v1393_v9 = vrot.slane %v1383_v5, %v18275_v3 }
 0xbae   :  { %1330 = vmatmul.mubr.bf16.vlgmr.msra.gmra.mrb[8].mxu0 %v1104_v13  ;;  %1371 = vmatmul.mubr.bf16.vlgmr.msra.gmra.mrb[20].mxu1 %v1104_v13 }
 0xbaf   :  { %1627 = vmatpush1.bf16.msra.mxu0 %v15958_v11  ;;  %15046 = vmatpush3.bf16.msra.mxu1 %v15986_v30  ;;  %v1397_v11 = vrot.slane %v1387_v6, %v18275_v3 }
 0xbb0   :  { %1628 = vmatprep.subr.bf16.mxu0 %v15963_v16  ;;  %15047 = vmatprep.subr.bf16.mxu1 %v15987_v33 }
 0xbb3   :  { %1629 = vmatpush1.bf16.msra.mxu0 %v15961_v19  ;;  %15048 = vmatpush3.bf16.msra.mxu1 %v15991_v36  ;;  %v16023_v36 = vld [vmem:[%s20527_s10] sm:$0xff]  }
 0xbb4   :  { %1630 = vmatprep.subr.bf16.mxu0 %v15966_v52  ;;  %15049 = vmatprep.subr.bf16.mxu1 %v15992_v37  ;;  %v16024_v37 = vld [vmem:[%s20527_s10 + $0x48] sm:$0xff]  }
 0xbb7   :  { %1631 = vmatpush1.bf16.msra.mxu0 %v15964_v60  ;;  %15050 = vmatpush3.bf16.msra.mxu1 %v15996_v39  ;;  %v16026_v39 = vld [vmem:[%s20527_s10 + $0x50] sm:$0xff]  }
 0xbb8   :  { %1632 = vmatprep.subr.bf16.mxu0 %v15969_v4  ;;  %15051 = vmatprep.subr.bf16.mxu1 %v15997_v41  ;;  %v16028_v41 = vld [vmem:[%s20527_s10 + $0x58] sm:$0xff]  }
 0xbbb   :  { %1633 = vmatpush1.bf16.msra.mxu0 %v15967_v7  ;;  %15052 = vmatpush3.bf16.msra.mxu1 %v16001_v43  ;;  %v16030_v43 = vld [vmem:[%s20527_s10 + $0x60] sm:$0xff]  }
 0xbbc   :  { %1634 = vmatprep.subr.bf16.mxu0 %v15972_v20  ;;  %15053 = vmatprep.subr.bf16.mxu1 %v16002_v46  ;;  %v16032_v46 = vld [vmem:[%s20527_s10 + $0x68] sm:$0xff]  }
 0xbbf   :  { %1635 = vmatpush1.bf16.msra.mxu0 %v15970_v22  ;;  %15054 = vmatpush3.bf16.msra.mxu1 %v16006_v48  ;;  %v16034_v48 = vld [vmem:[%s20527_s10 + $0x70] sm:$0xff]  }
 0xbc0   :  { %1636 = vmatprep.subr.bf16.mxu0 %v15975_v23  ;;  %15055 = vmatprep.subr.bf16.mxu1 %v16007_v49  ;;  %v16036_v49 = vld [vmem:[%s20527_s10 + $0x78] sm:$0xff]  }
 0xbc3   :  { %1637 = vmatpush1.bf16.msra.mxu0 %v15973_v24  ;;  %15056 = vmatpush3.bf16.msra.mxu1 %v16011_v51  ;;  %v16038_v51 = vld [vmem:[%s20528_s11 + $0x40] sm:$0xff]  }
 0xbc4   :  { %1638 = vmatprep.subr.bf16.mxu0 %v15978_v25  ;;  %15057 = vmatprep.subr.bf16.mxu1 %v16012_v54  ;;  %v16040_v54 = vld [vmem:[%s20528_s11 + $0x48] sm:$0xff]  }
 0xbc7   :  { %1639 = vmatpush1.bf16.msra.mxu0 %v15976_v26  ;;  %15058 = vmatpush3.bf16.msra.mxu1 %v16016_v56  ;;  %v16042_v56 = vld [vmem:[%s20528_s11 + $0x50] sm:$0xff]  }
 0xbc8   :  { %1640 = vmatprep.subr.bf16.mxu0 %v15981_v27  ;;  %15059 = vmatprep.subr.bf16.mxu1 %v16017_v59  ;;  %v16044_v59 = vld [vmem:[%s20528_s11 + $0x58] sm:$0xff]  }
 0xbcb   :  { %1641 = vmatpush1.bf16.msra.mxu0 %v15979_v28  ;;  %15060 = vmatpush3.bf16.msra.mxu1 %v16021_v61  ;;  %v16046_v61 = vld [vmem:[%s20528_s11 + $0x60] sm:$0xff]  }
 0xbcc   :  { %1642 = vmatprep.subr.bf16.mxu0 %v15985_v57  ;;  %15067 = vmatprep.subr.bf16.mxu1 %v16022_v1  ;;  %v16048_v1 = vld [vmem:[%s20528_s11 + $0x68] sm:$0xff]  }
 0xbcf   :  { %1643 = vmatpush1.bf16.msra.mxu0 %v15983_v32 }
 0xbd0   :  { %1644 = vmatprep.subr.bf16.mxu0 %v15990_v34 }
 0xbd3   :  { %1645 = vmatpush1.bf16.msra.mxu0 %v15988_v31 }
 0xbd4   :  { %1646 = vmatprep.subr.bf16.mxu0 %v15995_v38  ;;  %v16025_v38 = vld [vmem:[%s20527_s10 + $0x8] sm:$0xff]  }
 0xbd7   :  { %1647 = vmatpush1.bf16.msra.mxu0 %v15993_v40  ;;  %v16027_v40 = vld [vmem:[%s20527_s10 + $0x10] sm:$0xff]  }
 0xbd8   :  { %1648 = vmatprep.subr.bf16.mxu0 %v16000_v42  ;;  %v16029_v42 = vld [vmem:[%s20527_s10 + $0x18] sm:$0xff]  }
 0xbdb   :  { %1649 = vmatpush1.bf16.msra.mxu0 %v15998_v45  ;;  %v16031_v45 = vld [vmem:[%s20527_s10 + $0x20] sm:$0xff]  }
 0xbdc   :  { %1650 = vmatprep.subr.bf16.mxu0 %v16005_v47  ;;  %v16033_v47 = vld [vmem:[%s20527_s10 + $0x28] sm:$0xff]  }
 0xbdf   :  { %1651 = vmatpush1.bf16.msra.mxu0 %v16003_v44  ;;  %v16035_v44 = vld [vmem:[%s20527_s10 + $0x30] sm:$0xff]  }
 0xbe0   :  { %1652 = vmatprep.subr.bf16.mxu0 %v16010_v50  ;;  %v16037_v50 = vld [vmem:[%s20527_s10 + $0x38] sm:$0xff]  }
 0xbe3   :  { %1653 = vmatpush1.bf16.msra.mxu0 %v16008_v53  ;;  %v16039_v53 = vld [vmem:[%s20528_s11] sm:$0xff]  }
 0xbe4   :  { %1654 = vmatprep.subr.bf16.mxu0 %v16015_v55  ;;  %v16041_v55 = vld [vmem:[%s20528_s11 + $0x8] sm:$0xff]  }
 0xbe7   :  { %1655 = vmatpush1.bf16.msra.mxu0 %v16013_v58  ;;  %v16043_v58 = vld [vmem:[%s20528_s11 + $0x10] sm:$0xff]  }
 0xbe8   :  { %1656 = vmatprep.subr.bf16.mxu0 %v16020_v21  ;;  %v16045_v21 = vld [vmem:[%s20528_s11 + $0x18] sm:$0xff]  }
 0xbeb   :  { %1657 = vmatpush1.bf16.msra.mxu0 %v16018_v62  ;;  %v16047_v62 = vld [vmem:[%s20528_s11 + $0x20] sm:$0xff]  }
 0xbec   :  { %15089 = vmatprep.subr.bf16.mxu0 %v16038_v51 }
 0xc81   :  { %v1331_v13 = vpop.f32.mrb[8].mxu0  ;;  %v18649_v16 = vpop.f32.mrb[20].mxu1 }
 0xc82   :  { %v1398_v19 = vadd.f32 %v1393_v9, %v1331_v13  ;;  %v1333_v52 = vpop.f32.mrb[9].mxu0  ;;  %v18651_v60 = vpop.f32.mrb[21].mxu1 }
 0xc83   :  { %v1399_v4 = vadd.f32 %v1397_v11, %v1333_v52  ;;  %v1335_v7 = vpop.f32.mrb[10].mxu0  ;;  %v1376_v20 = vpop.f32.mrb[22].mxu1 }
 0xc84   :  { %v13243_v22 = vmul.f32 -1.442695, %v1398_v19  ;;  %v1336_v23 = vpop.f32.mrb[11].mxu0  ;;  %v1377_v24 = vpop.f32.mrb[23].mxu1 }
 0xc85   :  { %v13244_v25 = vmul.f32 -1.442695, %v1399_v4 }
 0xc86   :  { %17418 = vpow2.f32 %v13243_v22 }
 0xc87   :  { %17420 = vpow2.f32 %v13244_v25 }
 0xc90   :  { %v17419_v26 = vpop.eup %17418 }
 0xc91   :  { %v17421_v27 = vpop.eup %17420  ;;  %v1406_v28 = vadd.f32 1.0, %v17419_v26 }
 0xc92   :  { %v1407_v29 = vadd.f32 1.0, %v17421_v27 }
 0xc93   :  { %17422 = vrcp.f32 %v1406_v28  ;;  %v16049_v28 = vld [vmem:[%s20528_s11 + $0x28] sm:$0xff]  }
 0xc94   :  { %17424 = vrcp.f32 %v1407_v29  ;;  %v16050_v29 = vld [vmem:[%s20528_s11 + $0x70] sm:$0xff]  }
 0xc9d   :  { %v17423_v57 = vpop.eup %17422 }
 0xc9e   :  { %v17425_v30 = vpop.eup %17424  ;;  %v18653_v32 = vmul.f32 %v17423_v57, %v1398_v19  ;;  %v16051_v57 = vld [vmem:[%s20528_s11 + $0x30] sm:$0xff]  }
 0xc9f   :  { %v18655_v33 = vmul.f32 %v17425_v30, %v1399_v4  ;;  %v16052_v30 = vld [vmem:[%s20528_s11 + $0x78] sm:$0xff]  }
 0xca0   :  { %v1414_v31 = vpack.c.bf16 %v18653_v32, %v18653_v32 }
 0xca1   :  { %v1415_v34 = vpack.c.bf16 %v18655_v33, %v18655_v33 }
 0xca3   :  { %1658 = vmatprep.mubr.bf16.mxu0 %v1415_v34  ;;  %1863 = vmatprep.mubr.bf16.mxu1 %v1415_v34 }
 0xca4   :  { %1659 = vmatmul.mubr.bf16.vlgmr.msra.gmra.mrb[12].mxu0 %v1414_v31  ;;  %1864 = vmatmul.mubr.bf16.vlgmr.msra.gmra.mrb[24].mxu1 %v1414_v31 }
 0xca5   :  { %15068 = vmatpush3.bf16.msra.mxu1 %v16023_v36  ;;  %2031 = vmatprep.mubr.bf16.mxu1 %v1415_v34  ;;  %v16053_v34 = vld [vmem:[%s20528_s11 + $0x38] sm:$0xff]   ;;  %v1451_v36 = vrot.slane %v18641_v0, %v18293_v15 }
 0xca6   :  { %15069 = vmatprep.subr.bf16.mxu1 %v16024_v37  ;;  %15090 = vmatpush3.bf16.msra.mxu0 %v16039_v53 }
 0xca7   :  { %15091 = vmatprep.subr.bf16.mxu0 %v16040_v54  ;;  %v1461_v37 = vrot.slane %v1451_v36, %v18293_v15 }
 0xca9   :  { %15070 = vmatpush3.bf16.msra.mxu1 %v16025_v38 }
 0xcaa   :  { %15071 = vmatprep.subr.bf16.mxu1 %v16026_v39  ;;  %15092 = vmatpush3.bf16.msra.mxu0 %v16041_v55 }
 0xcab   :  { %15093 = vmatprep.subr.bf16.mxu0 %v16042_v56 }
 0xcad   :  { %15072 = vmatpush3.bf16.msra.mxu1 %v16027_v40 }
 0xcae   :  { %15073 = vmatprep.subr.bf16.mxu1 %v16028_v41  ;;  %15094 = vmatpush3.bf16.msra.mxu0 %v16043_v58 }
 0xcaf   :  { %15095 = vmatprep.subr.bf16.mxu0 %v16044_v59 }
 0xcb1   :  { %15074 = vmatpush3.bf16.msra.mxu1 %v16029_v42 }
 0xcb2   :  { %15075 = vmatprep.subr.bf16.mxu1 %v16030_v43  ;;  %15096 = vmatpush3.bf16.msra.mxu0 %v16045_v21 }
 0xcb3   :  { %15097 = vmatprep.subr.bf16.mxu0 %v16046_v61 }
 0xcb5   :  { %15076 = vmatpush3.bf16.msra.mxu1 %v16031_v45 }
 0xcb6   :  { %15077 = vmatprep.subr.bf16.mxu1 %v16032_v46  ;;  %15098 = vmatpush3.bf16.msra.mxu0 %v16047_v62 }
 0xcb7   :  { %15099 = vmatprep.subr.bf16.mxu0 %v16048_v1 }
 0xcb9   :  { %15078 = vmatpush3.bf16.msra.mxu1 %v16033_v47 }
 0xcba   :  { %15079 = vmatprep.subr.bf16.mxu1 %v16034_v48  ;;  %15100 = vmatpush3.bf16.msra.mxu0 %v16049_v28 }
 0xcbb   :  { %15101 = vmatprep.subr.bf16.mxu0 %v16050_v29 }
 0xcbd   :  { %15080 = vmatpush3.bf16.msra.mxu1 %v16035_v44 }
 0xcbe   :  { %15081 = vmatprep.subr.bf16.mxu1 %v16036_v49  ;;  %15102 = vmatpush3.bf16.msra.mxu0 %v16051_v57  ;;  %v13309_v49 = vmul.f32 -1.442695, %v18649_v16 }
 0xcbf   :  { %15103 = vmatprep.subr.bf16.mxu0 %v16052_v30 }
 0xcc1   :  { %15082 = vmatpush3.bf16.msra.mxu1 %v16037_v50  ;;  %v13310_v50 = vmul.f32 -1.442695, %v18651_v60 }
 0xcc2   :  { %15104 = vmatpush3.bf16.msra.mxu0 %v16053_v34 }
 0xcc4   :  { %2032 = vmatmul.mubr.bf16.vlgmr.msra.gmra.mrb[28].mxu1 %v1414_v31  ;;  %v1455_v31 = vrot.slane %v18641_v0, %v18288_v12 }
 0xcc5   :  { %2520 = vmatprep.mubr.bf16.mxu1 %v17967_v35 }
 0xcc6   :  { %v1465_v38 = vrot.slane %v1455_v31, %v18293_v15 }
 0xd77   :  { %v1660_v5 = vpop.f32.mrb[12].mxu0  ;;  %v15061_v6 = vpop.f32.mrb[24].mxu1 }
 0xd78   :  { %v1662_v9 = vpop.f32.mrb[13].mxu0  ;;  %v15062_v11 = vpop.f32.mrb[25].mxu1  ;;  %v1661_v39 = vadd.f32 %v1660_v5, %v1461_v37 }
 0xd79   :  { %v15063_v13 = vadd.f32 %v15062_v11, %v15061_v6  ;;  %v1664_v19 = vpop.f32.mrb[14].mxu0  ;;  %v15064_v52 = vpop.f32.mrb[26].mxu1  ;;  %v1663_v40 = vadd.f32 %v1662_v9, %v1465_v38 }
 0xd7a   :  { %v1665_v4 = vpop.f32.mrb[15].mxu0  ;;  %v15065_v7 = vpop.f32.mrb[27].mxu1  ;;  %v1673_v41 = vand.u32 2147483647, %v1661_v39  ;;  %vm1669_vm1 = vcmp.ne.f32.partialorder %v1661_v39, %v1661_v39 }
 0xd7b   :  { %v1674_v42 = vand.u32 2147483647, %v1663_v40  ;;  %vm1670_vm2 = vcmp.ne.f32.partialorder %v1663_v40, %v1663_v40 }
 0xd7c   :  { %v1675_v43 = vsub.f32 0.0, %v1673_v41 }
 0xd7d   :  { %v1676_v45 = vsub.f32 0.0, %v1674_v42 }
 0xd7e   :  { %v1677_v46 = vmul.f32 1.442695, %v1675_v43 }
 0xd7f   :  { %v1679_v47 = vmul.f32 1.442695, %v1676_v45 }
 0xd80   :  { %17426 = vpow2.f32 %v1677_v46 }
 0xd81   :  { %17428 = vpow2.f32 %v1679_v47 }
 0xd82   :  { %17430 = vpow2.f32 %v13309_v49 }
 0xd83   :  { %17432 = vpow2.f32 %v13310_v50 }
 0xd8a   :  { %v17427_v48 = vpop.eup %17426 }
 0xd8b   :  { %v17429_v44 = vpop.eup %17428  ;;  %v1681_v51 = vadd.f32 1.0, %v17427_v48  ;;  %v1684_v55 = vmul.f32 -0.5, %v17427_v48  ;;  %v1687_v6 = vand.u32 2147483647, %v17427_v48 }
 0xd8c   :  { %v1690_v53 = vadd.f32 1.0, %v17429_v44  ;;  %v17431_v54 = vpop.eup %17430  ;;  %v1693_v56 = vmul.f32 -0.5, %v17429_v44  ;;  %v1696_v9 = vand.u32 2147483647, %v17429_v44 }
 0xd8d   :  { %17434 = vlog2.f32 %v1681_v51  ;;  %v17433_v58 = vpop.eup %17432  ;;  %v2074_v61 = vadd.f32 1.0, %v17431_v54  ;;  %v1685_v62 = vadd.f32 1.0, %v1684_v55  ;;  %vm1688_vm15 = vcmp.lt.f32.partialorder %v1687_v6, 0.0004427343  ;;  %v16057_v54 = vld [vmem:[#allocation11 + $0x8] ss:$16 sps:$4 sm:$0xff]  }
 0xd8e   :  { %17436 = vlog2.f32 %v1690_v53  ;;  %v1694_v1 = vadd.f32 1.0, %v1693_v56  ;;  %v2075_v5 = vadd.f32 1.0, %v17433_v58  ;;  %vm1697_vm0 = vcmp.lt.f32.partialorder %v1696_v9, 0.0004427343  ;;  %v16054_v53 = vld [vmem:[#allocation11] ss:$16 sps:$4 sm:$0xff]  }
 0xd8f   :  { %17438 = vrcp.f32 %v2074_v61  ;;  %v1686_v19 = vmul.f32 %v17427_v48, %v1685_v62  ;;  %v16062_v55 = vld [vmem:[#allocation11 + $0x24] ss:$16 sps:$4 sm:$0xff]   ;;  %v16065_v56 = vld [vmem:[#allocation11 + $0x2c] ss:$16 sps:$4 sm:$0xff]   ;;  %v16060_v58 = vld [vmem:[#allocation11 + $0x20] ss:$16 sps:$4 sm:$0xff]  }
 0xd90   :  { %v1695_v52 = vmul.f32 %v17429_v44, %v1694_v1  ;;  %17440 = vrcp.f32 %v2075_v5  ;;  %v16066_v61 = vld [vmem:[#allocation11 + $0x40] ss:$16 sps:$4 sm:$0xff]   ;;  %v16069_v62 = vld [vmem:[#allocation11 + $0x48] ss:$16 sps:$4 sm:$0xff]   ;;  %v16074_v1 = vld [vmem:[#allocation11 + $0x64] ss:$16 sps:$4 sm:$0xff]  }
 0xd91   :  { %v16077_v5 = vld [vmem:[#allocation11 + $0x6c] ss:$16 sps:$4 sm:$0xff]   ;;  %v16072_v6 = vld [vmem:[#allocation11 + $0x60] ss:$16 sps:$4 sm:$0xff]   ;;  %v16075_v9 = vld [vmem:[#allocation11 + $0x68] ss:$16 sps:$4 sm:$0xff]  }
 0xd97   :  { %v15083_v20 = vpop.f32.mrb[28].mxu1  ;;  %v17435_v59 = vpop.eup %17434 }
 0xd98   :  { %v15084_v22 = vpop.f32.mrb[29].mxu1  ;;  %v17437_v21 = vpop.eup %17436  ;;  %v1683_v11 = vmul.f32 0.6931472, %v17435_v59  ;;  %v16063_v59 = vld [vmem:[#allocation11 + $0x28] ss:$16 sps:$4 sm:$0xff]  }
 0xd99   :  { %v15085_v23 = vadd.f32 %v15084_v22, %v15083_v20  ;;  %v15086_v24 = vpop.f32.mrb[30].mxu1  ;;  %v1667_v20 = vmax.f32 %v1661_v39, 0.0  ;;  %v1668_v22 = vmax.f32 %v1663_v40, 0.0  ;;  %v17439_v34 = vpop.eup %17438 }
 0xd9a   :  { %v15087_v25 = vpop.f32.mrb[31].mxu1  ;;  %v1689_v4 = vsel %vm1688_vm15, %v1686_v19, %v1683_v11  ;;  %v2053_v24 = vrot.slane %v18641_v0, %v18291_v14  ;;  %v17441_v37 = vpop.eup %17440  ;;  %v2080_v42 = vmul.f32 %v17439_v34, %v18649_v16  ;;  %v16080_v11 = vld [vmem:[#allocation11 + $0x84] ss:$16 sps:$4 sm:$0xff]   ;;  %v16078_v19 = vld [vmem:[#allocation11 + $0x80] ss:$16 sps:$4 sm:$0xff]  }
 0xd9b   :  { %v2039_v26 = vmul.f32 %v15085_v23, %v15063_v13  ;;  %v1692_v13 = vmul.f32 0.6931472, %v17437_v21  ;;  %v2049_v23 = vrot.slane %v18641_v0, %v18273_v2  ;;  %v1699_v25 = vadd.f32 %v1689_v4, %v1667_v20  ;;  %v16071_v21 = vld [vmem:[#allocation11 + $0x4c] ss:$16 sps:$4 sm:$0xff]   ;;  %v16086_v4 = vld [vmem:[#allocation11 + $0xa4] ss:$16 sps:$4 sm:$0xff]  }
 0xd9c   :  { %v2063_v28 = vrot.slane %v2053_v24, %v18273_v2  ;;  %v2081_v0 = vmul.f32 %v17441_v37, %v18651_v60  ;;  %v16084_v20 = vld [vmem:[#allocation11 + $0xa0] ss:$16 sps:$4 sm:$0xff]   ;;  %v16095_v24 = vld [vmem:[#allocation11 + $0xcc] ss:$16 sps:$4 sm:$0xff]  }
 0xd9d   :  { %v2041_v27 = vsel %vm2040_vm14, %v2039_v26, 0.0  ;;  %v1698_v7 = vsel %vm1697_vm0, %v1695_v52, %v1692_v13  ;;  %v1701_v29 = vsel %vm1669_vm1, %v1661_v39, %v1699_v25  ;;  %v16083_v13 = vld [vmem:[#allocation11 + $0x8c] ss:$16 sps:$4 sm:$0xff]   ;;  %v16081_v52 = vld [vmem:[#allocation11 + $0x88] ss:$16 sps:$4 sm:$0xff]   ;;  %v16103_v34 = vld [vmem:[#allocation13 + $0xc0] sm:$0xff]  }
 0xd9e   :  { %2042 = vadd.xlane.f32.xlu0 %v2041_v27  ;;  %v1700_v26 = vadd.f32 %v1698_v7, %v1668_v22  ;;  %v2059_v27 = vrot.slane %v2049_v23, %v18273_v2  ;;  %v16089_v7 = vld [vmem:[#allocation11 + $0xac] ss:$16 sps:$4 sm:$0xff]   ;;  %v16087_v22 = vld [vmem:[#allocation11 + $0xa8] ss:$16 sps:$4 sm:$0xff]   ;;  %v16092_v23 = vld [vmem:[#allocation11 + $0xc4] ss:$16 sps:$4 sm:$0xff]  }
 0xd9f   :  { %v16090_v25 = vld [vmem:[#allocation11 + $0xc0] ss:$16 sps:$4 sm:$0xff]  }
 0xda0   :  { %v1702_v57 = vsel %vm1670_vm2, %v1663_v40, %v1700_v26  ;;  %v16093_v26 = vld [vmem:[#allocation11 + $0xc8] ss:$16 sps:$4 sm:$0xff]  }
 0xe2b   :  { %v2043_v30 = vpop.xlane.xlu0 %2042 }
 0xe2c   :  { %v2044_v36 = vmul.f32 %v2043_v30, %v1701_v29  ;;  %v2045_v31 = vmul.f32 %v2043_v30, %v1702_v57  ;;  %v16096_v29 = vld [vmem:[#allocation11 + $0xe0] ss:$16 sps:$4 sm:$0xff]   ;;  %v16099_v57 = vld [vmem:[#allocation11 + $0xe8] ss:$16 sps:$4 sm:$0xff]  }
 0xe2d   :  { %v16102_v30 = vld [vmem:[#allocation13 + $0x40] sm:$0xff]  }
 0xe2e   :  { %v2064_v38 = vadd.f32 %v2059_v27, %v2044_v36  ;;  %v2065_v41 = vadd.f32 %v2063_v28, %v2045_v31  ;;  %v16098_v27 = vld [vmem:[#allocation11 + $0xe4] ss:$16 sps:$4 sm:$0xff]   ;;  %v16101_v28 = vld [vmem:[#allocation11 + $0xec] ss:$16 sps:$4 sm:$0xff]  }
 0xe30   :  { %v2066_v43 = vmul.f32 %v2064_v38, %v18653_v32  ;;  %v2067_v45 = vmul.f32 %v2065_v41, %v18655_v33  ;;  %v16056_v32 = vld [vmem:[#allocation11 + $0x4] ss:$16 sps:$4 sm:$0xff]   ;;  %v16059_v33 = vld [vmem:[#allocation11 + $0xc] ss:$16 sps:$4 sm:$0xff]  }
 0xe31   :  { %2488 = vmatprep.subr.bf16.mxu1 %v16056_v32  ;;  %2529 = vmatprep.subr.bf16.mxu0 %v16059_v33  ;;  %v16111_v32 = vld [vmem:[#allocation13 + $0xd0] sm:$0xff]  }
 0xe32   :  { %v2082_v46 = vmul.f32 %v2080_v42, %v2066_v43  ;;  %v2083_v47 = vmul.f32 %v2081_v0, %v2067_v45  ;;  %2489 = vmatpush1.bf16.msra.mxu1 %v16054_v53  ;;  %v2258_v43 = vrot.slane %v18582_v63, %v18293_v15  ;;  %v16112_v33 = vld [vmem:[#allocation13 + $0x10] sm:$0xff]  }
 0xe33   :  { %2490 = vmatprep.subr.bf16.mxu1 %v16062_v55  ;;  %v16113_v53 = vld [vmem:[#allocation13 + $0x90] sm:$0xff]   ;;  %v16115_v55 = vld [vmem:[#allocation13 + $0xd8] sm:$0xff]  }
 0xe34   :  { %v2085_v48 = vpack.c.bf16 %v2083_v47, %v2083_v47  ;;  %v2084_v39 = vpack.c.bf16 %v2082_v46, %v2082_v46 }
 0xe36   :  { %2246 = vmatprep.mubr.bf16.mxu0 %v2085_v48  ;;  %2491 = vmatpush1.bf16.msra.mxu1 %v16060_v58  ;;  %v16104_v48 = vld [vmem:[#allocation13] sm:$0xff]   ;;  %v16117_v58 = vld [vmem:[#allocation13 + $0x98] sm:$0xff]  }
 0xe37   :  { %2247 = vmatmul.mubr.bf16.vlgmr.msra.gmra.mrb[16].mxu0 %v2084_v39  ;;  %v16105_v39 = vld [vmem:[#allocation13 + $0x80] sm:$0xff]  }
 0xe38   :  { %2561 = vmatprep.mubr.bf16.mxu0 %v17967_v35  ;;  %2530 = vmatpush1.bf16.msra.mxu0 %v16057_v54  ;;  %v16114_v54 = vld [vmem:[#allocation13 + $0x58] sm:$0xff]  }
 0xe39   :  { %2531 = vmatprep.subr.bf16.mxu0 %v16065_v56  ;;  %v16116_v56 = vld [vmem:[#allocation13 + $0x18] sm:$0xff]  }
 0xe3c   :  { %2532 = vmatpush1.bf16.msra.mxu0 %v16063_v59  ;;  %v16118_v59 = vld [vmem:[#allocation13 + $0x60] sm:$0xff]  }
 0xe3d   :  { %2533 = vmatprep.subr.bf16.mxu0 %v16071_v21  ;;  %v16120_v21 = vld [vmem:[#allocation13 + $0x20] sm:$0xff]  }
 0xe40   :  { %2534 = vmatpush1.bf16.msra.mxu0 %v16069_v62  ;;  %v16122_v62 = vld [vmem:[#allocation13 + $0x68] sm:$0xff]  }
 0xe41   :  { %2535 = vmatprep.subr.bf16.mxu0 %v16077_v5  ;;  %v16124_v5 = vld [vmem:[#allocation13 + $0x28] sm:$0xff]  }
 0xe44   :  { %2536 = vmatpush1.bf16.msra.mxu0 %v16075_v9  ;;  %v16126_v9 = vld [vmem:[#allocation13 + $0x70] sm:$0xff]  }
 0xe45   :  { %2537 = vmatprep.subr.bf16.mxu0 %v16083_v13  ;;  %v16128_v13 = vld [vmem:[#allocation13 + $0x30] sm:$0xff]  }
 0xe48   :  { %2538 = vmatpush1.bf16.msra.mxu0 %v16081_v52  ;;  %v16130_v52 = vld [vmem:[#allocation13 + $0x78] sm:$0xff]  }
 0xe49   :  { %2539 = vmatprep.subr.bf16.mxu0 %v16089_v7  ;;  %v16132_v7 = vld [vmem:[#allocation13 + $0x38] sm:$0xff]  }
 0xe4c   :  { %2540 = vmatpush1.bf16.msra.mxu0 %v16087_v22  ;;  %v2306_v22 = vld [vmem:[%s20533_s16] ss:$8 sm:$0xf] }
 0xe4d   :  { %2541 = vmatprep.subr.bf16.mxu0 %v16095_v24  ;;  %v2319_v24 = vrot.slane %v2306_v22, %v18273_v2 }
 0xe50   :  { %2542 = vmatpush1.bf16.msra.mxu0 %v16093_v26  ;;  %v2323_v26 = vrot.slane %v2306_v22, %v18282_v8 }
 0xe51   :  { %2543 = vmatprep.subr.bf16.mxu0 %v16101_v28 }
 0xe54   :  { %2544 = vmatpush1.bf16.msra.mxu0 %v16099_v57 }
 0xe55   :  { %15133 = vmatprep.subr.bf16.mxu0 %v16103_v34 }
 0xf0a   :  { %v15105_v40 = vpop.f32.mrb[16].mxu0 }
 0xf0b   :  { %v15106_v44 = vpop.f32.mrb[17].mxu0 }
 0xf0c   :  { %v15107_v49 = vadd.f32 %v15106_v44, %v15105_v40  ;;  %v15108_v50 = vpop.f32.mrb[18].mxu0  ;;  %v16106_v44 = vld [vmem:[#allocation13 + $0x48] sm:$0xff]  }
 0xf0d   :  { %v15109_v51 = vpop.f32.mrb[19].mxu0  ;;  %v16108_v50 = vld [vmem:[#allocation13 + $0x8] sm:$0xff]  }
 0xf0e   :  { %v18776_v16 = vadd.f32 %v15107_v49, %v18479_v17  ;;  %v16068_v17 = vld [vmem:[#allocation11 + $0x44] ss:$16 sps:$4 sm:$0xff]   ;;  %v16107_v49 = vld [vmem:[#allocation13 + $0xc8] sm:$0xff]  }
 0xf0f   :  { %2492 = vmatprep.subr.bf16.mxu1 %v16068_v17  ;;  %v16109_v51 = vld [vmem:[#allocation13 + $0x88] sm:$0xff]   ;;  %v16119_v17 = vld [vmem:[#allocation13 + $0xe0] sm:$0xff]  }
 0xf10   :  { %v2260_v60 = vmul.f32 %v18776_v16, %v18776_v16  ;;  %2493 = vmatpush1.bf16.msra.mxu1 %v16066_v61  ;;  %v2259_v45 = vmul.f32 %v2258_v43, %v18776_v16  ;;  %v16121_v61 = vld [vmem:[#allocation13 + $0xa0] sm:$0xff]  }
 0xf11   :  { %2494 = vmatprep.subr.bf16.mxu1 %v16074_v1  ;;  %v16123_v1 = vld [vmem:[#allocation13 + $0xe8] sm:$0xff]  }
 0xf12   :  { %2261 = vadd.xlane.f32.xlu0 %v2260_v60  ;;  %v16110_v60 = vld [vmem:[#allocation13 + $0x50] sm:$0xff]  }
 0xf14   :  { %2495 = vmatpush1.bf16.msra.mxu1 %v16072_v6  ;;  %v16125_v6 = vld [vmem:[#allocation13 + $0xa8] sm:$0xff]  }
 0xf15   :  { %2496 = vmatprep.subr.bf16.mxu1 %v16080_v11  ;;  %v16127_v11 = vld [vmem:[#allocation13 + $0xf0] sm:$0xff]  }
 0xf18   :  { %2497 = vmatpush1.bf16.msra.mxu1 %v16078_v19  ;;  %v16129_v19 = vld [vmem:[#allocation13 + $0xb0] sm:$0xff]  }
 0xf19   :  { %2498 = vmatprep.subr.bf16.mxu1 %v16086_v4  ;;  %v16131_v4 = vld [vmem:[#allocation13 + $0xf8] sm:$0xff]  }
 0xf1c   :  { %2499 = vmatpush1.bf16.msra.mxu1 %v16084_v20  ;;  %v16133_v20 = vld [vmem:[#allocation13 + $0xb8] sm:$0xff]  }
 0xf1d   :  { %2500 = vmatprep.subr.bf16.mxu1 %v16092_v23  ;;  %v2311_v23 = vrot.slane %v2306_v22, %v18275_v3 }
 0xf20   :  { %2501 = vmatpush1.bf16.msra.mxu1 %v16090_v25  ;;  %v2315_v25 = vrot.slane %v2306_v22, %v18293_v15 }
 0xf21   :  { %2502 = vmatprep.subr.bf16.mxu1 %v16098_v27 }
 0xf24   :  { %2503 = vmatpush1.bf16.msra.mxu1 %v16096_v29 }
 0xf25   :  { %15111 = vmatprep.subr.bf16.mxu1 %v16102_v30 }
 0xf9f   :  { %v2262_v36 = vpop.xlane.xlu0 %2261 }
 0xfa0   :  { %v2263_v31 = vadd.f32 1e-06, %v2262_v36 }
 0xfa2   :  { %17442 = vrsqrt.f32 %v2263_v31  ;;  %vm2266_vm3 = vcmp.eq.f32.partialorder %v2263_v31, inf  ;;  %v2269_v41 = vand.u32 2147483648, %v2263_v31  ;;  %vm2268_vm4 = vcmp.eq.f32.partialorder %v2263_v31, 0.0 }
 0xfac   :  { %v17443_v37 = vpop.eup %17442 }
 0xfad   :  { %v2265_v38 = vmul.f32 %v17443_v37, %v2263_v31 }
 0xfaf   :  { %v2267_v42 = vsel %vm2266_vm3, %v2263_v31, %v2265_v38 }
 0xfb0   :  { %v2270_v0 = vsel %vm2268_vm4, %v2269_v41, %v2267_v42 }
 0xfb1   :  { %17444 = vrcp.f32 %v2270_v0 }
 0xfbb   :  { %v17445_v46 = vpop.eup %17444 }
 0xfbc   :  { %v2272_v47 = vmul.f32 %v17445_v46, %v2259_v45 }
 0xfbe   :  { %v2273_v40 = vpack.c.bf16 %v2272_v47, %v2272_v47 }
 0xfc0   :  { %2521 = vmatmul.mubr.bf16.vlgmr.msra.gmra.mrb[32].mxu1 %v2273_v40  ;;  %2562 = vmatmul.mubr.bf16.vlgmr.msra.gmra.mrb[20].mxu0 %v2273_v40 }
 0xfc1   :  { %15112 = vmatpush3.bf16.msra.mxu1 %v16104_v48  ;;  %15134 = vmatpush3.bf16.msra.mxu0 %v16105_v39 }
 0xfc2   :  { %15113 = vmatprep.subr.bf16.mxu1 %v16106_v44  ;;  %15135 = vmatprep.subr.bf16.mxu0 %v16107_v49 }
 0xfc5   :  { %15114 = vmatpush3.bf16.msra.mxu1 %v16108_v50  ;;  %15136 = vmatpush3.bf16.msra.mxu0 %v16109_v51 }
 0xfc6   :  { %15115 = vmatprep.subr.bf16.mxu1 %v16110_v60  ;;  %15137 = vmatprep.subr.bf16.mxu0 %v16111_v32 }
 0xfc9   :  { %15116 = vmatpush3.bf16.msra.mxu1 %v16112_v33  ;;  %15138 = vmatpush3.bf16.msra.mxu0 %v16113_v53 }
 0xfca   :  { %15117 = vmatprep.subr.bf16.mxu1 %v16114_v54  ;;  %15139 = vmatprep.subr.bf16.mxu0 %v16115_v55 }
 0xfcd   :  { %15118 = vmatpush3.bf16.msra.mxu1 %v16116_v56  ;;  %15140 = vmatpush3.bf16.msra.mxu0 %v16117_v58 }
 0xfce   :  { %15119 = vmatprep.subr.bf16.mxu1 %v16118_v59  ;;  %15141 = vmatprep.subr.bf16.mxu0 %v16119_v17 }
 0xfd1   :  { %15120 = vmatpush3.bf16.msra.mxu1 %v16120_v21  ;;  %15142 = vmatpush3.bf16.msra.mxu0 %v16121_v61 }
 0xfd2   :  { %15121 = vmatprep.subr.bf16.mxu1 %v16122_v62  ;;  %15143 = vmatprep.subr.bf16.mxu0 %v16123_v1  ;;  %v2661_v1 = vrot.slane %v18582_v63, %v18273_v2  ;;  %v16136_v63 = vld [vmem:[%s20571_s0 + $0x104] ss:$16 sps:$4 sm:$0xff]  }
 0xfd5   :  { %15122 = vmatpush3.bf16.msra.mxu1 %v16124_v5  ;;  %15144 = vmatpush3.bf16.msra.mxu0 %v16125_v6 }
 0xfd6   :  { %15123 = vmatprep.subr.bf16.mxu1 %v16126_v9  ;;  %15145 = vmatprep.subr.bf16.mxu0 %v16127_v11 }
 0xfd9   :  { %15124 = vmatpush3.bf16.msra.mxu1 %v16128_v13  ;;  %15146 = vmatpush3.bf16.msra.mxu0 %v16129_v19 }
 0xfda   :  { %15125 = vmatprep.subr.bf16.mxu1 %v16130_v52  ;;  %15147 = vmatprep.subr.bf16.mxu0 %v16131_v4 }
 0xfdd   :  { %15126 = vmatpush3.bf16.msra.mxu1 %v16132_v7  ;;  %15148 = vmatpush3.bf16.msra.mxu0 %v16133_v20 }
 0xfde   :  { %3151 = vmatprep.subr.bf16.mxu1 %v16136_v63  ;;  %v16194_v63 = vld [vmem:[#allocation10 + $0x140] ss:$8 sps:$4 sm:$0xff]  }
0x1093   :  { %v2522_v27 = vpop.f32.mrb[32].mxu1  ;;  %v2563_v28 = vpop.f32.mrb[20].mxu0 }
0x1094   :  { %v2523_v29 = vadd.f32 %v2522_v27, %v2311_v23  ;;  %v2564_v57 = vadd.f32 %v2563_v28, %v2319_v24  ;;  %v2524_v30 = vpop.f32.mrb[33].mxu1  ;;  %v2565_v34 = vpop.f32.mrb[21].mxu0  ;;  %v16142_v27 = vld [vmem:[%s20571_s0 + $0x124] ss:$16 sps:$4 sm:$0xff]   ;;  %v16145_v28 = vld [vmem:[%s20571_s0 + $0x12c] ss:$16 sps:$4 sm:$0xff]  }
0x1095   :  { %v2525_v36 = vadd.f32 %v2524_v30, %v2315_v25  ;;  %v2566_v31 = vadd.f32 %v2565_v34, %v2323_v26  ;;  %v2526_v37 = vpop.f32.mrb[34].mxu1  ;;  %v2567_v38 = vpop.f32.mrb[22].mxu0  ;;  %v16139_v25 = vld [vmem:[%s20571_s0 + $0x10c] ss:$16 sps:$4 sm:$0xff]   ;;  %v16134_v26 = vld [vmem:[%s20571_s0 + $0x100] ss:$16 sps:$4 sm:$0xff]  }
0x1096   :  { %v2574_v41 = vmul.f32 0.70710677, %v2523_v29  ;;  %v2576_v42 = vmul.f32 0.70710677, %v2564_v57  ;;  %v2527_v45 = vpop.f32.mrb[35].mxu1  ;;  %v2568_v46 = vpop.f32.mrb[23].mxu0  ;;  %3192 = vmatprep.subr.bf16.mxu0 %v16139_v25 }
0x1097   :  { %v2575_v0 = vmul.f32 0.70710677, %v2525_v36  ;;  %v2577_v43 = vmul.f32 0.70710677, %v2566_v31  ;;  %v2570_v44 = vmul.f32 0.5, %v2523_v29  ;;  %v2572_v51 = vmul.f32 0.5, %v2564_v57 }
0x1098   :  { %17446 = verf.f32 %v2574_v41  ;;  %v2571_v60 = vmul.f32 0.5, %v2525_v36  ;;  %v2573_v53 = vmul.f32 0.5, %v2566_v31  ;;  %v16140_v29 = vld [vmem:[%s20571_s0 + $0x120] ss:$16 sps:$4 sm:$0xff]   ;;  %v16143_v57 = vld [vmem:[%s20571_s0 + $0x128] ss:$16 sps:$4 sm:$0xff]  }
0x1099   :  { %17448 = verf.f32 %v2576_v42  ;;  %v16148_v30 = vld [vmem:[%s20571_s0 + $0x144] ss:$16 sps:$4 sm:$0xff]   ;;  %v16151_v34 = vld [vmem:[%s20571_s0 + $0x14c] ss:$16 sps:$4 sm:$0xff]   ;;  %v16146_v36 = vld [vmem:[%s20571_s0 + $0x140] ss:$16 sps:$4 sm:$0xff]  }
0x109a   :  { %17450 = verf.f32 %v2575_v0  ;;  %v16149_v31 = vld [vmem:[%s20571_s0 + $0x148] ss:$16 sps:$4 sm:$0xff]   ;;  %v16154_v37 = vld [vmem:[%s20571_s0 + $0x164] ss:$16 sps:$4 sm:$0xff]   ;;  %v16157_v38 = vld [vmem:[%s20571_s0 + $0x16c] ss:$16 sps:$4 sm:$0xff]  }
0x109b   :  { %17452 = verf.f32 %v2577_v43  ;;  %v16152_v41 = vld [vmem:[%s20571_s0 + $0x160] ss:$16 sps:$4 sm:$0xff]   ;;  %v16155_v42 = vld [vmem:[%s20571_s0 + $0x168] ss:$16 sps:$4 sm:$0xff]   ;;  %v16160_v0 = vld [vmem:[%s20571_s0 + $0x184] ss:$16 sps:$4 sm:$0xff]  }
0x109c   :  { %v16158_v43 = vld [vmem:[%s20571_s0 + $0x180] ss:$16 sps:$4 sm:$0xff]   ;;  %v16161_v45 = vld [vmem:[%s20571_s0 + $0x188] ss:$16 sps:$4 sm:$0xff]   ;;  %v16163_v46 = vld [vmem:[%s20571_s0 + $0x18c] ss:$16 sps:$4 sm:$0xff]  }
0x109d   :  { %v16199_v25 = vld [vmem:[#allocation10 + $0x154] ss:$8 sps:$4 sm:$0xff]  }
0x10a2   :  { %v17447_v47 = vpop.eup %17446 }
0x10a3   :  { %v17449_v48 = vpop.eup %17448  ;;  %v2582_v39 = vadd.f32 1.0, %v17447_v47  ;;  %v16166_v47 = vld [vmem:[%s20571_s0 + $0x1a4] ss:$16 sps:$4 sm:$0xff]  }
0x10a4   :  { %v17451_v40 = vpop.eup %17450  ;;  %v2584_v49 = vadd.f32 1.0, %v17449_v48  ;;  %v16169_v48 = vld [vmem:[%s20571_s0 + $0x1ac] ss:$16 sps:$4 sm:$0xff]  }
0x10a5   :  { %v17453_v50 = vpop.eup %17452  ;;  %v2583_v32 = vadd.f32 1.0, %v17451_v40  ;;  %v2586_v33 = vmul.f32 %v2582_v39, %v2570_v44  ;;  %v16164_v39 = vld [vmem:[%s20571_s0 + $0x1a0] ss:$16 sps:$4 sm:$0xff]   ;;  %v16167_v40 = vld [vmem:[%s20571_s0 + $0x1a8] ss:$16 sps:$4 sm:$0xff]  }
0x10a6   :  { %v2585_v54 = vadd.f32 1.0, %v17453_v50  ;;  %v2588_v55 = vmul.f32 %v2584_v49, %v2572_v51  ;;  %v16172_v44 = vld [vmem:[%s20571_s0 + $0x1c4] ss:$16 sps:$4 sm:$0xff]   ;;  %v16175_v49 = vld [vmem:[%s20571_s0 + $0x1cc] ss:$16 sps:$4 sm:$0xff]  }
0x10a7   :  { %v2587_v56 = vmul.f32 %v2583_v32, %v2571_v60  ;;  %v2590_v17 = vpack.c.bf16 %v2586_v33, %v2586_v33  ;;  %v16170_v50 = vld [vmem:[%s20571_s0 + $0x1c0] ss:$16 sps:$4 sm:$0xff]   ;;  %v16173_v51 = vld [vmem:[%s20571_s0 + $0x1c8] ss:$16 sps:$4 sm:$0xff]   ;;  %v16178_v60 = vld [vmem:[%s20571_s0 + $0x1e4] ss:$16 sps:$4 sm:$0xff]  }
0x10a8   :  { %v2589_v58 = vmul.f32 %v2585_v54, %v2573_v53  ;;  %v2592_v61 = vpack.c.bf16 %v2588_v55, %v2588_v55  ;;  %v16181_v32 = vld [vmem:[%s20571_s0 + $0x1ec] ss:$16 sps:$4 sm:$0xff]   ;;  %v16176_v33 = vld [vmem:[%s20571_s0 + $0x1e0] ss:$16 sps:$4 sm:$0xff]   ;;  %v16179_v53 = vld [vmem:[%s20571_s0 + $0x1e8] ss:$16 sps:$4 sm:$0xff]  }
0x10a9   :  { %v2591_v59 = vpack.c.bf16 %v2587_v56, %v2587_v56  ;;  %v16184_v54 = vld [vmem:[#allocation10 + $0x104] ss:$8 sps:$4 sm:$0xff]  }
0x10aa   :  { %v2593_v21 = vpack.c.bf16 %v2589_v58, %v2589_v58 }
0x10ab   :  { %2886 = vmatprep.mubr.bf16.mxu1 %v2591_v59 }
0x10ac   :  { %2926 = vmatprep.mubr.bf16.mxu0 %v2593_v21  ;;  %2887 = vmatmul.mubr.bf16.vlgmr.msra.gmra.mrb[36].mxu1 %v2590_v17 }
0x10ad   :  { %2927 = vmatmul.mubr.bf16.vlgmr.msra.gmra.mrb[24].mxu0 %v2592_v61  ;;  %3183 = vmatprep.mubr.bf16.mxu1 %v17967_v35 }
0x10ae   :  { %3224 = vmatprep.mubr.bf16.mxu0 %v17967_v35  ;;  %3152 = vmatpush1.bf16.msra.mxu1 %v16134_v26  ;;  %v16197_v26 = vld [vmem:[#allocation10 + $0x150] ss:$8 sps:$4 sm:$0xff]  }
0x10af   :  { %3153 = vmatprep.subr.bf16.mxu1 %v16142_v27  ;;  %v16200_v27 = vld [vmem:[#allocation10 + $0x160] ss:$8 sps:$4 sm:$0xff]  }
0x10b2   :  { %3154 = vmatpush1.bf16.msra.mxu1 %v16140_v29  ;;  %v16203_v29 = vld [vmem:[#allocation10 + $0x170] ss:$8 sps:$4 sm:$0xff]  }
0x10b3   :  { %3155 = vmatprep.subr.bf16.mxu1 %v16148_v30  ;;  %v16209_v30 = vld [vmem:[#allocation10 + $0x184] ss:$8 sps:$4 sm:$0xff]  }
0x10b6   :  { %3156 = vmatpush1.bf16.msra.mxu1 %v16146_v36  ;;  %v16207_v36 = vld [vmem:[#allocation10 + $0x180] ss:$8 sps:$4 sm:$0xff]  }
0x10b7   :  { %3157 = vmatprep.subr.bf16.mxu1 %v16154_v37  ;;  %v16214_v37 = vld [vmem:[#allocation10 + $0x194] ss:$8 sps:$4 sm:$0xff]  }
0x10ba   :  { %3158 = vmatpush1.bf16.msra.mxu1 %v16152_v41  ;;  %v16212_v41 = vld [vmem:[#allocation10 + $0x190] ss:$8 sps:$4 sm:$0xff]  }
0x10bb   :  { %3159 = vmatprep.subr.bf16.mxu1 %v16160_v0  ;;  %v16219_v0 = vld [vmem:[#allocation10 + $0x1a4] ss:$8 sps:$4 sm:$0xff]  }
0x10be   :  { %3160 = vmatpush1.bf16.msra.mxu1 %v16158_v43  ;;  %v16220_v43 = vld [vmem:[%s20526_s9 + $0x90] sm:$0xff]  }
0x10bf   :  { %3161 = vmatprep.subr.bf16.mxu1 %v16166_v47  ;;  %v16224_v47 = vld [vmem:[#allocation10 + $0x1b4] ss:$8 sps:$4 sm:$0xff]  }
0x10c2   :  { %3162 = vmatpush1.bf16.msra.mxu1 %v16164_v39  ;;  %v16222_v39 = vld [vmem:[#allocation10 + $0x1b0] ss:$8 sps:$4 sm:$0xff]  }
0x10c3   :  { %3163 = vmatprep.subr.bf16.mxu1 %v16172_v44  ;;  %v16229_v44 = vld [vmem:[#allocation10 + $0x1c4] ss:$8 sps:$4 sm:$0xff]  }
0x10c6   :  { %3164 = vmatpush1.bf16.msra.mxu1 %v16170_v50  ;;  %v16227_v50 = vld [vmem:[#allocation10 + $0x1c0] ss:$8 sps:$4 sm:$0xff]  }
0x10c7   :  { %3165 = vmatprep.subr.bf16.mxu1 %v16178_v60  ;;  %v16234_v60 = vld [vmem:[#allocation10 + $0x1d4] ss:$8 sps:$4 sm:$0xff]  }
0x10ca   :  { %3166 = vmatpush1.bf16.msra.mxu1 %v16176_v33  ;;  %v16232_v33 = vld [vmem:[#allocation10 + $0x1d0] ss:$8 sps:$4 sm:$0xff]  }
0x10cb   :  { %3481 = vmatprep.subr.bf16.mxu1 %v16184_v54  ;;  %v16239_v54 = vld [vmem:[#allocation10 + $0x1e4] ss:$8 sps:$4 sm:$0xff]  }
0x117f   :  { %v15127_v62 = vpop.f32.mrb[36].mxu1 }
0x1180   :  { %v15149_v5 = vpop.f32.mrb[24].mxu0  ;;  %v15128_v6 = vpop.f32.mrb[37].mxu1 }
0x1181   :  { %v15129_v9 = vadd.f32 %v15128_v6, %v15127_v62  ;;  %v15150_v11 = vpop.f32.mrb[25].mxu0  ;;  %v15130_v13 = vpop.f32.mrb[38].mxu1  ;;  %v18898_v62 = vld [vmem:[%s20532_s15 + $0x4] sm:$0x7] }
0x1182   :  { %v15151_v19 = vadd.f32 %v15150_v11, %v15149_v5  ;;  %v15152_v52 = vpop.f32.mrb[26].mxu0  ;;  %v15131_v4 = vpop.f32.mrb[39].mxu1  ;;  %v16182_v11 = vld [vmem:[#allocation10 + $0x100] ss:$8 sps:$4 sm:$0xff]  }
0x1183   :  { %v2889_v7 = vadd.f32 %v15129_v9, %v2661_v1  ;;  %v15153_v20 = vpop.f32.mrb[27].mxu0  ;;  %v2942_v1 = vrot.slane %v18898_v62, %v18275_v3  ;;  %v16185_v52 = vld [vmem:[#allocation10 + $0x110] ss:$8 sps:$4 sm:$0xff]   ;;  %v16190_v4 = vld [vmem:[#allocation10 + $0x124] ss:$8 sps:$4 sm:$0xff]  }
0x1184   :  { %v16193_v20 = vld [vmem:[#allocation10 + $0x134] ss:$8 sps:$4 sm:$0xff]  }
0x1185   :  { %v2929_v22 = vadd.f32 %v15151_v19, %v2889_v7  ;;  %v16187_v19 = vld [vmem:[#allocation10 + $0x114] ss:$8 sps:$4 sm:$0xff]   ;;  %v16188_v7 = vld [vmem:[#allocation10 + $0x120] ss:$8 sps:$4 sm:$0xff]  }
0x1187   :  { %v18795_v23 = vadd.f32 %v2929_v22, %v18776_v16  ;;  %v16137_v16 = vld [vmem:[%s20571_s0 + $0x108] ss:$16 sps:$4 sm:$0xff]   ;;  %v16191_v22 = vld [vmem:[#allocation10 + $0x130] ss:$8 sps:$4 sm:$0xff]  }
0x1188   :  { %3193 = vmatpush1.bf16.msra.mxu0 %v16137_v16  ;;  %v16202_v16 = vld [vmem:[#allocation10 + $0x164] ss:$8 sps:$4 sm:$0xff]  }
0x1189   :  { %v2944_v24 = vmul.f32 %v18795_v23, %v18795_v23  ;;  %3194 = vmatprep.subr.bf16.mxu0 %v16145_v28  ;;  %v2943_v5 = vmul.f32 %v2942_v1, %v18795_v23  ;;  %v16205_v28 = vld [vmem:[#allocation10 + $0x174] ss:$8 sps:$4 sm:$0xff]   ;;  %v18957_v1 = vld [vmem:[%s20531_s14 + $0x8] sm:$0x77] }
0x118b   :  { %2945 = vadd.xlane.f32.xlu1 %v2944_v24  ;;  %v16196_v24 = vld [vmem:[#allocation10 + $0x144] ss:$8 sps:$4 sm:$0xff]  }
0x118c   :  { %3195 = vmatpush1.bf16.msra.mxu0 %v16143_v57  ;;  %v16206_v57 = vld [vmem:[%s20526_s9 + $0xc0] sm:$0xff]  }
0x118d   :  { %3196 = vmatprep.subr.bf16.mxu0 %v16151_v34  ;;  %v16210_v34 = vld [vmem:[%s20526_s9 + $0x80] sm:$0xff]  }
0x1190   :  { %3197 = vmatpush1.bf16.msra.mxu0 %v16149_v31  ;;  %v16211_v31 = vld [vmem:[%s20526_s9 + $0xc8] sm:$0xff]  }
0x1191   :  { %3198 = vmatprep.subr.bf16.mxu0 %v16157_v38  ;;  %v16215_v38 = vld [vmem:[%s20526_s9 + $0x88] sm:$0xff]  }
0x1194   :  { %3199 = vmatpush1.bf16.msra.mxu0 %v16155_v42  ;;  %v16216_v42 = vld [vmem:[%s20526_s9 + $0xd0] sm:$0xff]  }
0x1195   :  { %3200 = vmatprep.subr.bf16.mxu0 %v16163_v46  ;;  %v16221_v46 = vld [vmem:[%s20526_s9 + $0xd8] sm:$0xff]  }
0x1198   :  { %3201 = vmatpush1.bf16.msra.mxu0 %v16161_v45  ;;  %v16217_v45 = vld [vmem:[#allocation10 + $0x1a0] ss:$8 sps:$4 sm:$0xff]  }
0x1199   :  { %3202 = vmatprep.subr.bf16.mxu0 %v16169_v48  ;;  %v16225_v48 = vld [vmem:[%s20526_s9 + $0x98] sm:$0xff]  }
0x119c   :  { %3203 = vmatpush1.bf16.msra.mxu0 %v16167_v40  ;;  %v16226_v40 = vld [vmem:[%s20526_s9 + $0xe0] sm:$0xff]  }
0x119d   :  { %3204 = vmatprep.subr.bf16.mxu0 %v16175_v49  ;;  %v16230_v49 = vld [vmem:[%s20526_s9 + $0xa0] sm:$0xff]  }
0x11a0   :  { %3205 = vmatpush1.bf16.msra.mxu0 %v16173_v51  ;;  %v16231_v51 = vld [vmem:[%s20526_s9 + $0xe8] sm:$0xff]  }
0x11a1   :  { %3206 = vmatprep.subr.bf16.mxu0 %v16181_v32  ;;  %v16235_v32 = vld [vmem:[%s20526_s9 + $0xa8] sm:$0xff]  }
0x11a4   :  { %3207 = vmatpush1.bf16.msra.mxu0 %v16179_v53  ;;  %v16236_v53 = vld [vmem:[%s20526_s9 + $0xf0] sm:$0xff]  }
0x11a5   :  { %15155 = vmatprep.subr.bf16.mxu0 %v16206_v57 }
0x1218   :  { %v2946_v55 = vpop.xlane.xlu1 %2945 }
0x1219   :  { %v2947_v56 = vadd.f32 1e-06, %v2946_v55  ;;  %v16240_v55 = vld [vmem:[%s20526_s9 + $0xb0] sm:$0xff]  }
0x121b   :  { %17454 = vrsqrt.f32 %v2947_v56  ;;  %vm2950_vm5 = vcmp.eq.f32.partialorder %v2947_v56, inf  ;;  %v2953_v17 = vand.u32 2147483648, %v2947_v56  ;;  %vm2952_vm6 = vcmp.eq.f32.partialorder %v2947_v56, 0.0 }
0x1225   :  { %v17455_v58 = vpop.eup %17454 }
0x1226   :  { %v2949_v59 = vmul.f32 %v17455_v58, %v2947_v56  ;;  %v16241_v58 = vld [vmem:[%s20526_s9 + $0xf8] sm:$0xff]  }
0x1228   :  { %v2951_v21 = vsel %vm2950_vm5, %v2947_v56, %v2949_v59  ;;  %v16237_v56 = vld [vmem:[#allocation10 + $0x1e0] ss:$8 sps:$4 sm:$0xff]   ;;  %v16242_v59 = vld [vmem:[#allocation10 + $0x1f0] ss:$8 sps:$4 sm:$0xff]  }
0x1229   :  { %v2954_v61 = vsel %vm2952_vm6, %v2953_v17, %v2951_v21  ;;  %v16244_v17 = vld [vmem:[#allocation10 + $0x1f4] ss:$8 sps:$4 sm:$0xff]  }
0x122a   :  { %17456 = vrcp.f32 %v2954_v61  ;;  %v16245_v21 = vld [vmem:[%s20526_s9 + $0xb8] sm:$0xff]   ;;  %v16246_v61 = vld [vmem:[%s20527_s10 + $0xc0] sm:$0xff]  }
0x1234   :  { %v17457_v6 = vpop.eup %17456 }
0x1235   :  { %v2956_v9 = vmul.f32 %v17457_v6, %v2943_v5  ;;  %v3237_v5 = vrot.slane %v18957_v1, %v18275_v3  ;;  %v3241_v6 = vrot.slane %v18957_v1, %v18285_v10 }
0x1237   :  { %v2957_v13 = vpack.c.bf16 %v2956_v9, %v2956_v9  ;;  %v3247_v9 = vrot.slane %v3237_v5, %v18275_v3 }
0x1239   :  { %3184 = vmatmul.mubr.bf16.vlgmr.msra.gmra.mrb[40].mxu1 %v2957_v13  ;;  %3225 = vmatmul.mubr.bf16.vlgmr.msra.gmra.mrb[28].mxu0 %v2957_v13 }
0x123a   :  { %3482 = vmatpush1.bf16.msra.mxu1 %v16182_v11  ;;  %15156 = vmatpush3.bf16.msra.mxu0 %v16210_v34  ;;  %v3251_v11 = vrot.slane %v3241_v6, %v18275_v3 }
0x123b   :  { %3483 = vmatprep.subr.bf16.mxu1 %v16187_v19  ;;  %15157 = vmatprep.subr.bf16.mxu0 %v16211_v31 }
0x123e   :  { %3484 = vmatpush1.bf16.msra.mxu1 %v16185_v52  ;;  %15158 = vmatpush3.bf16.msra.mxu0 %v16215_v38  ;;  %v16247_v38 = vld [vmem:[%s20527_s10 + $0x80] sm:$0xff]  }
0x123f   :  { %3485 = vmatprep.subr.bf16.mxu1 %v16190_v4  ;;  %15159 = vmatprep.subr.bf16.mxu0 %v16216_v42  ;;  %v16248_v42 = vld [vmem:[%s20527_s10 + $0xc8] sm:$0xff]  }
0x1242   :  { %3486 = vmatpush1.bf16.msra.mxu1 %v16188_v7  ;;  %15160 = vmatpush3.bf16.msra.mxu0 %v16220_v43  ;;  %v16250_v43 = vld [vmem:[%s20527_s10 + $0xd0] sm:$0xff]  }
0x1243   :  { %3487 = vmatprep.subr.bf16.mxu1 %v16193_v20  ;;  %15161 = vmatprep.subr.bf16.mxu0 %v16221_v46  ;;  %v16252_v46 = vld [vmem:[%s20527_s10 + $0xd8] sm:$0xff]  }
0x1246   :  { %3488 = vmatpush1.bf16.msra.mxu1 %v16191_v22  ;;  %15162 = vmatpush3.bf16.msra.mxu0 %v16225_v48  ;;  %v16254_v48 = vld [vmem:[%s20527_s10 + $0xe0] sm:$0xff]  }
0x1247   :  { %3489 = vmatprep.subr.bf16.mxu1 %v16196_v24  ;;  %15163 = vmatprep.subr.bf16.mxu0 %v16226_v40  ;;  %v16256_v40 = vld [vmem:[%s20527_s10 + $0xe8] sm:$0xff]  }
0x124a   :  { %3490 = vmatpush1.bf16.msra.mxu1 %v16194_v63  ;;  %15164 = vmatpush3.bf16.msra.mxu0 %v16230_v49  ;;  %v16258_v49 = vld [vmem:[%s20527_s10 + $0xf0] sm:$0xff]  }
0x124b   :  { %3491 = vmatprep.subr.bf16.mxu1 %v16199_v25  ;;  %15165 = vmatprep.subr.bf16.mxu0 %v16231_v51  ;;  %v16260_v51 = vld [vmem:[%s20527_s10 + $0xf8] sm:$0xff]  }
0x124e   :  { %3492 = vmatpush1.bf16.msra.mxu1 %v16197_v26  ;;  %15166 = vmatpush3.bf16.msra.mxu0 %v16235_v32  ;;  %v16262_v32 = vld [vmem:[%s20528_s11 + $0xc0] sm:$0xff]  }
0x124f   :  { %3493 = vmatprep.subr.bf16.mxu1 %v16202_v16  ;;  %15167 = vmatprep.subr.bf16.mxu0 %v16236_v53  ;;  %v16264_v53 = vld [vmem:[%s20528_s11 + $0xc8] sm:$0xff]  }
0x1252   :  { %3494 = vmatpush1.bf16.msra.mxu1 %v16200_v27  ;;  %15168 = vmatpush3.bf16.msra.mxu0 %v16240_v55  ;;  %v16266_v55 = vld [vmem:[%s20528_s11 + $0xd0] sm:$0xff]  }
0x1253   :  { %3495 = vmatprep.subr.bf16.mxu1 %v16205_v28  ;;  %15169 = vmatprep.subr.bf16.mxu0 %v16241_v58  ;;  %v16268_v58 = vld [vmem:[%s20528_s11 + $0xd8] sm:$0xff]  }
0x1256   :  { %3496 = vmatpush1.bf16.msra.mxu1 %v16203_v29  ;;  %15170 = vmatpush3.bf16.msra.mxu0 %v16245_v21  ;;  %v16271_v21 = vld [vmem:[%s20528_s11 + $0xa0] sm:$0xff]  }
0x1257   :  { %3497 = vmatprep.subr.bf16.mxu1 %v16209_v30  ;;  %15177 = vmatprep.subr.bf16.mxu0 %v16246_v61 }
0x125a   :  { %3498 = vmatpush1.bf16.msra.mxu1 %v16207_v36 }
0x125b   :  { %3499 = vmatprep.subr.bf16.mxu1 %v16214_v37 }
0x125e   :  { %3500 = vmatpush1.bf16.msra.mxu1 %v16212_v41 }
0x125f   :  { %3501 = vmatprep.subr.bf16.mxu1 %v16219_v0  ;;  %v16249_v0 = vld [vmem:[%s20527_s10 + $0x88] sm:$0xff]  }
0x1262   :  { %3502 = vmatpush1.bf16.msra.mxu1 %v16217_v45  ;;  %v16251_v45 = vld [vmem:[%s20527_s10 + $0x90] sm:$0xff]  }
0x1263   :  { %3503 = vmatprep.subr.bf16.mxu1 %v16224_v47  ;;  %v16253_v47 = vld [vmem:[%s20527_s10 + $0x98] sm:$0xff]  }
0x1266   :  { %3504 = vmatpush1.bf16.msra.mxu1 %v16222_v39  ;;  %v16255_v39 = vld [vmem:[%s20527_s10 + $0xa0] sm:$0xff]  }
0x1267   :  { %3505 = vmatprep.subr.bf16.mxu1 %v16229_v44  ;;  %v16257_v44 = vld [vmem:[%s20527_s10 + $0xa8] sm:$0xff]  }
0x126a   :  { %3506 = vmatpush1.bf16.msra.mxu1 %v16227_v50  ;;  %v16259_v50 = vld [vmem:[%s20527_s10 + $0xb0] sm:$0xff]  }
0x126b   :  { %3507 = vmatprep.subr.bf16.mxu1 %v16234_v60  ;;  %v16261_v60 = vld [vmem:[%s20527_s10 + $0xb8] sm:$0xff]  }
0x126e   :  { %3508 = vmatpush1.bf16.msra.mxu1 %v16232_v33  ;;  %v16263_v33 = vld [vmem:[%s20528_s11 + $0x80] sm:$0xff]  }
0x126f   :  { %3509 = vmatprep.subr.bf16.mxu1 %v16239_v54  ;;  %v16265_v54 = vld [vmem:[%s20528_s11 + $0x88] sm:$0xff]  }
0x1272   :  { %3510 = vmatpush1.bf16.msra.mxu1 %v16237_v56  ;;  %v16267_v56 = vld [vmem:[%s20528_s11 + $0x90] sm:$0xff]  }
0x1273   :  { %3511 = vmatprep.subr.bf16.mxu1 %v16244_v17  ;;  %v16270_v17 = vld [vmem:[%s20528_s11 + $0xe0] sm:$0xff]  }
0x1276   :  { %3512 = vmatpush1.bf16.msra.mxu1 %v16242_v59  ;;  %v16269_v59 = vld [vmem:[%s20528_s11 + $0x98] sm:$0xff]  }
0x1277   :  { %15199 = vmatprep.subr.bf16.mxu1 %v16262_v32 }
0x130c   :  { %v3185_v13 = vpop.f32.mrb[40].mxu1  ;;  %v18965_v19 = vpop.f32.mrb[28].mxu0 }
0x130d   :  { %v3252_v52 = vadd.f32 %v3247_v9, %v3185_v13  ;;  %v3187_v4 = vpop.f32.mrb[41].mxu1  ;;  %v18967_v7 = vpop.f32.mrb[29].mxu0 }
0x130e   :  { %v3253_v20 = vadd.f32 %v3251_v11, %v3187_v4  ;;  %v3189_v22 = vpop.f32.mrb[42].mxu1  ;;  %v3230_v24 = vpop.f32.mrb[30].mxu0 }
0x130f   :  { %v13457_v63 = vmul.f32 -1.442695, %v3252_v52  ;;  %v3190_v25 = vpop.f32.mrb[43].mxu1  ;;  %v3231_v26 = vpop.f32.mrb[31].mxu0 }
0x1310   :  { %v13458_v16 = vmul.f32 -1.442695, %v3253_v20 }
0x1311   :  { %17458 = vpow2.f32 %v13457_v63 }
0x1312   :  { %17460 = vpow2.f32 %v13458_v16 }
0x131b   :  { %v17459_v27 = vpop.eup %17458 }
0x131c   :  { %v17461_v28 = vpop.eup %17460  ;;  %v3260_v29 = vadd.f32 1.0, %v17459_v27 }
0x131d   :  { %v3261_v57 = vadd.f32 1.0, %v17461_v28  ;;  %v16272_v28 = vld [vmem:[%s20528_s11 + $0xe8] sm:$0xff]  }
0x131e   :  { %17462 = vrcp.f32 %v3260_v29  ;;  %v16273_v29 = vld [vmem:[%s20528_s11 + $0xa8] sm:$0xff]  }
0x131f   :  { %17464 = vrcp.f32 %v3261_v57  ;;  %v16274_v57 = vld [vmem:[%s20528_s11 + $0xf0] sm:$0xff]  }
0x1328   :  { %v17463_v30 = vpop.eup %17462 }
0x1329   :  { %v17465_v34 = vpop.eup %17464  ;;  %v18969_v36 = vmul.f32 %v17463_v30, %v3252_v52  ;;  %v16275_v30 = vld [vmem:[%s20528_s11 + $0xb0] sm:$0xff]  }
0x132a   :  { %v18971_v31 = vmul.f32 %v17465_v34, %v3253_v20  ;;  %v16276_v34 = vld [vmem:[%s20528_s11 + $0xf8] sm:$0xff]  }
0x132b   :  { %v3268_v41 = vpack.c.bf16 %v18969_v36, %v18969_v36 }
0x132c   :  { %v3269_v37 = vpack.c.bf16 %v18971_v31, %v18971_v31 }
0x132e   :  { %3513 = vmatprep.mubr.bf16.mxu1 %v3269_v37  ;;  %3719 = vmatprep.mubr.bf16.mxu0 %v3269_v37 }
0x132f   :  { %3514 = vmatmul.mubr.bf16.vlgmr.msra.gmra.mrb[44].mxu1 %v3268_v41  ;;  %3720 = vmatmul.mubr.bf16.vlgmr.msra.gmra.mrb[32].mxu0 %v3268_v41 }
0x1330   :  { %15178 = vmatpush3.bf16.msra.mxu0 %v16247_v38  ;;  %3888 = vmatprep.mubr.bf16.mxu0 %v3269_v37  ;;  %v16277_v37 = vld [vmem:[%s20528_s11 + $0xb8] sm:$0xff]   ;;  %v3306_v38 = vrot.slane %v18957_v1, %v18293_v15 }
0x1331   :  { %15179 = vmatprep.subr.bf16.mxu0 %v16248_v42  ;;  %15200 = vmatpush3.bf16.msra.mxu1 %v16263_v33 }
0x1332   :  { %15201 = vmatprep.subr.bf16.mxu1 %v16264_v53  ;;  %v3316_v42 = vrot.slane %v3306_v38, %v18293_v15 }
0x1334   :  { %15180 = vmatpush3.bf16.msra.mxu0 %v16249_v0 }
0x1335   :  { %15181 = vmatprep.subr.bf16.mxu0 %v16250_v43  ;;  %15202 = vmatpush3.bf16.msra.mxu1 %v16265_v54 }
0x1336   :  { %15203 = vmatprep.subr.bf16.mxu1 %v16266_v55 }
0x1338   :  { %15182 = vmatpush3.bf16.msra.mxu0 %v16251_v45 }
0x1339   :  { %15183 = vmatprep.subr.bf16.mxu0 %v16252_v46  ;;  %15204 = vmatpush3.bf16.msra.mxu1 %v16267_v56 }
0x133a   :  { %15205 = vmatprep.subr.bf16.mxu1 %v16268_v58 }
0x133c   :  { %15184 = vmatpush3.bf16.msra.mxu0 %v16253_v47 }
0x133d   :  { %15185 = vmatprep.subr.bf16.mxu0 %v16254_v48  ;;  %15206 = vmatpush3.bf16.msra.mxu1 %v16269_v59 }
0x133e   :  { %15207 = vmatprep.subr.bf16.mxu1 %v16270_v17 }
0x1340   :  { %15186 = vmatpush3.bf16.msra.mxu0 %v16255_v39 }
0x1341   :  { %15187 = vmatprep.subr.bf16.mxu0 %v16256_v40  ;;  %15208 = vmatpush3.bf16.msra.mxu1 %v16271_v21 }
0x1342   :  { %15209 = vmatprep.subr.bf16.mxu1 %v16272_v28 }
0x1344   :  { %15188 = vmatpush3.bf16.msra.mxu0 %v16257_v44 }
0x1345   :  { %15189 = vmatprep.subr.bf16.mxu0 %v16258_v49  ;;  %15210 = vmatpush3.bf16.msra.mxu1 %v16273_v29 }
0x1346   :  { %15211 = vmatprep.subr.bf16.mxu1 %v16274_v57 }
0x1348   :  { %15190 = vmatpush3.bf16.msra.mxu0 %v16259_v50 }
0x1349   :  { %15191 = vmatprep.subr.bf16.mxu0 %v16260_v51  ;;  %15212 = vmatpush3.bf16.msra.mxu1 %v16275_v30  ;;  %v13587_v51 = vmul.f32 -1.442695, %v18965_v19 }
0x134a   :  { %15213 = vmatprep.subr.bf16.mxu1 %v16276_v34 }
0x134c   :  { %15192 = vmatpush3.bf16.msra.mxu0 %v16261_v60  ;;  %v13588_v60 = vmul.f32 -1.442695, %v18967_v7 }
0x134d   :  { %15214 = vmatpush3.bf16.msra.mxu1 %v16277_v37 }
0x134f   :  { %3889 = vmatmul.mubr.bf16.vlgmr.msra.gmra.mrb[36].mxu0 %v3268_v41  ;;  %v3310_v41 = vrot.slane %v18957_v1, %v18288_v12 }
0x1350   :  { %4379 = vmatprep.mubr.bf16.mxu0 %v17967_v35 }
0x1351   :  { %v3320_v0 = vrot.slane %v3310_v41, %v18293_v15 }
0x1402   :  { %v3515_v61 = vpop.f32.mrb[44].mxu1  ;;  %v15171_v5 = vpop.f32.mrb[32].mxu0 }
0x1403   :  { %v3517_v6 = vpop.f32.mrb[45].mxu1  ;;  %v15172_v9 = vpop.f32.mrb[33].mxu0  ;;  %v3516_v43 = vadd.f32 %v3515_v61, %v3316_v42 }
0x1404   :  { %v15173_v11 = vadd.f32 %v15172_v9, %v15171_v5  ;;  %v3519_v13 = vpop.f32.mrb[46].mxu1  ;;  %v15174_v52 = vpop.f32.mrb[34].mxu0  ;;  %v3518_v45 = vadd.f32 %v3517_v6, %v3320_v0 }
0x1405   :  { %v3520_v4 = vpop.f32.mrb[47].mxu1  ;;  %v15175_v20 = vpop.f32.mrb[35].mxu0  ;;  %v3528_v46 = vand.u32 2147483647, %v3516_v43  ;;  %vm3524_vm10 = vcmp.ne.f32.partialorder %v3516_v43, %v3516_v43 }
0x1406   :  { %v3529_v47 = vand.u32 2147483647, %v3518_v45  ;;  %vm3525_vm11 = vcmp.ne.f32.partialorder %v3518_v45, %v3518_v45 }
0x1407   :  { %v3530_v48 = vsub.f32 0.0, %v3528_v46 }
0x1408   :  { %v3531_v39 = vsub.f32 0.0, %v3529_v47 }
0x1409   :  { %v3532_v40 = vmul.f32 1.442695, %v3530_v48 }
0x140a   :  { %v3534_v44 = vmul.f32 1.442695, %v3531_v39 }
0x140b   :  { %17466 = vpow2.f32 %v3532_v40 }
0x140c   :  { %17468 = vpow2.f32 %v3534_v44 }
0x140d   :  { %17470 = vpow2.f32 %v13587_v51 }
0x140e   :  { %17472 = vpow2.f32 %v13588_v60 }
0x1415   :  { %v17467_v49 = vpop.eup %17466 }
0x1416   :  { %v17469_v50 = vpop.eup %17468  ;;  %v3536_v32 = vadd.f32 1.0, %v17467_v49  ;;  %v3539_v54 = vmul.f32 -0.5, %v17467_v49  ;;  %v3542_v6 = vand.u32 2147483647, %v17467_v49 }
0x1417   :  { %v3545_v33 = vadd.f32 1.0, %v17469_v50  ;;  %v17471_v53 = vpop.eup %17470  ;;  %v3548_v55 = vmul.f32 -0.5, %v17469_v50  ;;  %v3551_v9 = vand.u32 2147483647, %v17469_v50 }
0x1418   :  { %17474 = vlog2.f32 %v3536_v32  ;;  %v17473_v56 = vpop.eup %17472  ;;  %v3930_v17 = vadd.f32 1.0, %v17471_v53  ;;  %v3540_v21 = vadd.f32 1.0, %v3539_v54  ;;  %vm3543_vm7 = vcmp.lt.f32.partialorder %v3542_v6, 0.0004427343  ;;  %v16281_v53 = vld [vmem:[#allocation11 + $0x108] ss:$16 sps:$4 sm:$0xff]  }
0x1419   :  { %17476 = vlog2.f32 %v3545_v33  ;;  %v3549_v61 = vadd.f32 1.0, %v3548_v55  ;;  %v3931_v5 = vadd.f32 1.0, %v17473_v56  ;;  %vm3552_vm9 = vcmp.lt.f32.partialorder %v3551_v9, 0.0004427343  ;;  %v16278_v33 = vld [vmem:[#allocation11 + $0x100] ss:$16 sps:$4 sm:$0xff]  }
0x141a   :  { %17478 = vrcp.f32 %v3930_v17  ;;  %v3541_v52 = vmul.f32 %v17467_v49, %v3540_v21  ;;  %v16286_v54 = vld [vmem:[#allocation11 + $0x124] ss:$16 sps:$4 sm:$0xff]   ;;  %v16289_v55 = vld [vmem:[#allocation11 + $0x12c] ss:$16 sps:$4 sm:$0xff]   ;;  %v16284_v56 = vld [vmem:[#allocation11 + $0x120] ss:$16 sps:$4 sm:$0xff]  }
0x141b   :  { %v3550_v4 = vmul.f32 %v17469_v50, %v3549_v61  ;;  %17480 = vrcp.f32 %v3931_v5  ;;  %v16290_v17 = vld [vmem:[#allocation11 + $0x140] ss:$16 sps:$4 sm:$0xff]   ;;  %v16293_v21 = vld [vmem:[#allocation11 + $0x148] ss:$16 sps:$4 sm:$0xff]   ;;  %v16298_v61 = vld [vmem:[#allocation11 + $0x164] ss:$16 sps:$4 sm:$0xff]  }
0x141c   :  { %v16301_v5 = vld [vmem:[#allocation11 + $0x16c] ss:$16 sps:$4 sm:$0xff]   ;;  %v16296_v6 = vld [vmem:[#allocation11 + $0x160] ss:$16 sps:$4 sm:$0xff]   ;;  %v16299_v9 = vld [vmem:[#allocation11 + $0x168] ss:$16 sps:$4 sm:$0xff]  }
0x1422   :  { %v15193_v22 = vpop.f32.mrb[36].mxu0  ;;  %v17475_v58 = vpop.eup %17474 }
0x1423   :  { %v15194_v24 = vpop.f32.mrb[37].mxu0  ;;  %v17477_v59 = vpop.eup %17476 }
0x1424   :  { %v15195_v63 = vadd.f32 %v15194_v24, %v15193_v22  ;;  %v15196_v25 = vpop.f32.mrb[38].mxu0  ;;  %v3547_v13 = vmul.f32 0.6931472, %v17477_v59  ;;  %v3522_v24 = vmax.f32 %v3516_v43, 0.0  ;;  %v17479_v37 = vpop.eup %17478  ;;  %v16295_v59 = vld [vmem:[#allocation11 + $0x14c] ss:$16 sps:$4 sm:$0xff]  }
0x1425   :  { %v15197_v26 = vpop.f32.mrb[39].mxu0  ;;  %v3905_v25 = vrot.slane %v18957_v1, %v18273_v2  ;;  %v17481_v42 = vpop.eup %17480  ;;  %v3936_v47 = vmul.f32 %v17479_v37, %v18965_v19  ;;  %v16327_v37 = vld [vmem:[#allocation13 + $0x1c0] sm:$0xff]  }
0x1426   :  { %v3896_v16 = vmul.f32 %v15195_v63, %v15173_v11  ;;  %v3538_v11 = vmul.f32 0.6931472, %v17475_v58  ;;  %v3553_v22 = vsel %vm3552_vm9, %v3550_v4, %v3547_v13  ;;  %v3523_v63 = vmax.f32 %v3518_v45, 0.0  ;;  %v16287_v58 = vld [vmem:[#allocation11 + $0x128] ss:$16 sps:$4 sm:$0xff]  }
0x1427   :  { %v3909_v26 = vrot.slane %v18957_v1, %v18291_v14  ;;  %v3915_v28 = vrot.slane %v3905_v25, %v18273_v2  ;;  %v3937_v1 = vmul.f32 %v17481_v42, %v18967_v7  ;;  %v16304_v13 = vld [vmem:[#allocation11 + $0x184] ss:$16 sps:$4 sm:$0xff]   ;;  %v16307_v4 = vld [vmem:[#allocation11 + $0x18c] ss:$16 sps:$4 sm:$0xff]  }
0x1428   :  { %v3897_v27 = vsel %vm2040_vm14, %v3896_v16, 0.0  ;;  %v3544_v20 = vsel %vm3543_vm7, %v3541_v52, %v3538_v11  ;;  %v16302_v11 = vld [vmem:[#allocation11 + $0x180] ss:$16 sps:$4 sm:$0xff]   ;;  %v16305_v52 = vld [vmem:[#allocation11 + $0x188] ss:$16 sps:$4 sm:$0xff]  }
0x1429   :  { %3898 = vadd.xlane.f32.xlu0 %v3897_v27  ;;  %v3554_v16 = vadd.f32 %v3544_v20, %v3522_v24  ;;  %v3555_v27 = vadd.f32 %v3553_v22, %v3523_v63  ;;  %v3919_v29 = vrot.slane %v3909_v26, %v18273_v2  ;;  %v16310_v20 = vld [vmem:[#allocation11 + $0x1a4] ss:$16 sps:$4 sm:$0xff]   ;;  %v16313_v22 = vld [vmem:[#allocation11 + $0x1ac] ss:$16 sps:$4 sm:$0xff]   ;;  %v16308_v24 = vld [vmem:[#allocation11 + $0x1a0] ss:$16 sps:$4 sm:$0xff]  }
0x142a   :  { %v16311_v63 = vld [vmem:[#allocation11 + $0x1a8] ss:$16 sps:$4 sm:$0xff]   ;;  %v16316_v25 = vld [vmem:[#allocation11 + $0x1c4] ss:$16 sps:$4 sm:$0xff]   ;;  %v16319_v26 = vld [vmem:[#allocation11 + $0x1cc] ss:$16 sps:$4 sm:$0xff]  }
0x142b   :  { %v3556_v30 = vsel %vm3524_vm10, %v3516_v43, %v3554_v16  ;;  %v3557_v34 = vsel %vm3525_vm11, %v3518_v45, %v3555_v27  ;;  %v16314_v16 = vld [vmem:[#allocation11 + $0x1c0] ss:$16 sps:$4 sm:$0xff]   ;;  %v16317_v27 = vld [vmem:[#allocation11 + $0x1c8] ss:$16 sps:$4 sm:$0xff]  }
0x14b6   :  { %v3899_v57 = vpop.xlane.xlu0 %3898 }
0x14b7   :  { %v3900_v38 = vmul.f32 %v3899_v57, %v3556_v30  ;;  %v3901_v41 = vmul.f32 %v3899_v57, %v3557_v34  ;;  %v16320_v57 = vld [vmem:[#allocation11 + $0x1e0] ss:$16 sps:$4 sm:$0xff]   ;;  %v16323_v30 = vld [vmem:[#allocation11 + $0x1e8] ss:$16 sps:$4 sm:$0xff]  }
0x14b8   :  { %v16326_v34 = vld [vmem:[#allocation13 + $0x140] sm:$0xff]  }
0x14b9   :  { %v3920_v0 = vadd.f32 %v3915_v28, %v3900_v38  ;;  %v3921_v46 = vadd.f32 %v3919_v29, %v3901_v41  ;;  %v16322_v28 = vld [vmem:[#allocation11 + $0x1e4] ss:$16 sps:$4 sm:$0xff]   ;;  %v16325_v29 = vld [vmem:[#allocation11 + $0x1ec] ss:$16 sps:$4 sm:$0xff]  }
0x14bb   :  { %v3922_v48 = vmul.f32 %v3920_v0, %v18969_v36  ;;  %v3923_v39 = vmul.f32 %v3921_v46, %v18971_v31  ;;  %v16280_v36 = vld [vmem:[#allocation11 + $0x104] ss:$16 sps:$4 sm:$0xff]   ;;  %v16283_v31 = vld [vmem:[#allocation11 + $0x10c] ss:$16 sps:$4 sm:$0xff]  }
0x14bc   :  { %4347 = vmatprep.subr.bf16.mxu0 %v16280_v36  ;;  %4388 = vmatprep.subr.bf16.mxu1 %v16283_v31  ;;  %v16335_v36 = vld [vmem:[#allocation13 + $0x1d0] sm:$0xff]  }
0x14bd   :  { %v3938_v40 = vmul.f32 %v3936_v47, %v3922_v48  ;;  %v3939_v44 = vmul.f32 %v3937_v1, %v3923_v39  ;;  %4348 = vmatpush1.bf16.msra.mxu0 %v16278_v33  ;;  %v4115_v48 = vrot.slane %v18898_v62, %v18293_v15  ;;  %v16336_v31 = vld [vmem:[#allocation13 + $0x110] sm:$0xff]  }
0x14be   :  { %4349 = vmatprep.subr.bf16.mxu0 %v16286_v54  ;;  %v16337_v33 = vld [vmem:[#allocation13 + $0x190] sm:$0xff]   ;;  %v16339_v54 = vld [vmem:[#allocation13 + $0x1d8] sm:$0xff]  }
0x14bf   :  { %v3941_v49 = vpack.c.bf16 %v3939_v44, %v3939_v44  ;;  %v3940_v50 = vpack.c.bf16 %v3938_v40, %v3938_v40 }
0x14c1   :  { %4103 = vmatprep.mubr.bf16.mxu1 %v3941_v49  ;;  %4350 = vmatpush1.bf16.msra.mxu0 %v16284_v56  ;;  %v16328_v49 = vld [vmem:[#allocation13 + $0x100] sm:$0xff]   ;;  %v16341_v56 = vld [vmem:[#allocation13 + $0x198] sm:$0xff]  }
0x14c2   :  { %4104 = vmatmul.mubr.bf16.vlgmr.msra.gmra.mrb[48].mxu1 %v3940_v50  ;;  %v16329_v50 = vld [vmem:[#allocation13 + $0x180] sm:$0xff]  }
0x14c3   :  { %4420 = vmatprep.mubr.bf16.mxu1 %v17967_v35  ;;  %4389 = vmatpush1.bf16.msra.mxu1 %v16281_v53  ;;  %v16338_v53 = vld [vmem:[#allocation13 + $0x158] sm:$0xff]  }
0x14c4   :  { %4390 = vmatprep.subr.bf16.mxu1 %v16289_v55  ;;  %v16340_v55 = vld [vmem:[#allocation13 + $0x118] sm:$0xff]  }
0x14c7   :  { %4391 = vmatpush1.bf16.msra.mxu1 %v16287_v58  ;;  %v16342_v58 = vld [vmem:[#allocation13 + $0x160] sm:$0xff]  }
0x14c8   :  { %4392 = vmatprep.subr.bf16.mxu1 %v16295_v59  ;;  %v16344_v59 = vld [vmem:[#allocation13 + $0x120] sm:$0xff]  }
0x14cb   :  { %4393 = vmatpush1.bf16.msra.mxu1 %v16293_v21  ;;  %v16346_v21 = vld [vmem:[#allocation13 + $0x168] sm:$0xff]  }
0x14cc   :  { %4394 = vmatprep.subr.bf16.mxu1 %v16301_v5  ;;  %v16348_v5 = vld [vmem:[#allocation13 + $0x128] sm:$0xff]  }
0x14cf   :  { %4395 = vmatpush1.bf16.msra.mxu1 %v16299_v9  ;;  %v16350_v9 = vld [vmem:[#allocation13 + $0x170] sm:$0xff]  }
0x14d0   :  { %4396 = vmatprep.subr.bf16.mxu1 %v16307_v4  ;;  %v16354_v4 = vld [vmem:[#allocation13 + $0x178] sm:$0xff]  }
0x14d3   :  { %4397 = vmatpush1.bf16.msra.mxu1 %v16305_v52  ;;  %v16353_v52 = vld [vmem:[#allocation13 + $0x1b0] sm:$0xff]  }
0x14d4   :  { %4398 = vmatprep.subr.bf16.mxu1 %v16313_v22  ;;  %v16356_v22 = vld [vmem:[#allocation13 + $0x138] sm:$0xff]  }
0x14d7   :  { %4399 = vmatpush1.bf16.msra.mxu1 %v16311_v63  ;;  %v13637_v63 = vld [vmem:[%s20533_s16 + $0x1] ss:$8 sm:$0xf] }
0x14d8   :  { %4400 = vmatprep.subr.bf16.mxu1 %v16319_v26  ;;  %v4178_v26 = vrot.slane %v13637_v63, %v18273_v2 }
0x14db   :  { %4401 = vmatpush1.bf16.msra.mxu1 %v16317_v27  ;;  %v4182_v27 = vrot.slane %v13637_v63, %v18282_v8 }
0x14dc   :  { %4402 = vmatprep.subr.bf16.mxu1 %v16325_v29 }
0x14df   :  { %4403 = vmatpush1.bf16.msra.mxu1 %v16323_v30 }
0x14e0   :  { %15243 = vmatprep.subr.bf16.mxu1 %v16327_v37 }
0x1595   :  { %v15215_v43 = vpop.f32.mrb[48].mxu1 }
0x1596   :  { %v15216_v45 = vpop.f32.mrb[49].mxu1 }
0x1597   :  { %v15217_v51 = vadd.f32 %v15216_v45, %v15215_v43  ;;  %v15218_v60 = vpop.f32.mrb[50].mxu1  ;;  %v16330_v45 = vld [vmem:[#allocation13 + $0x148] sm:$0xff]  }
0x1598   :  { %v15219_v32 = vpop.f32.mrb[51].mxu1  ;;  %v16332_v60 = vld [vmem:[#allocation13 + $0x108] sm:$0xff]  }
0x1599   :  { %v19092_v19 = vadd.f32 %v15217_v51, %v18795_v23  ;;  %v16292_v23 = vld [vmem:[#allocation11 + $0x144] ss:$16 sps:$4 sm:$0xff]   ;;  %v16331_v51 = vld [vmem:[#allocation13 + $0x1c8] sm:$0xff]  }
0x159a   :  { %4351 = vmatprep.subr.bf16.mxu0 %v16292_v23  ;;  %v16333_v32 = vld [vmem:[#allocation13 + $0x188] sm:$0xff]   ;;  %v16343_v23 = vld [vmem:[#allocation13 + $0x1e0] sm:$0xff]  }
0x159b   :  { %v4117_v7 = vmul.f32 %v19092_v19, %v19092_v19  ;;  %4352 = vmatpush1.bf16.msra.mxu0 %v16290_v17  ;;  %v4116_v39 = vmul.f32 %v4115_v48, %v19092_v19  ;;  %v16345_v17 = vld [vmem:[#allocation13 + $0x1a0] sm:$0xff]  }
0x159c   :  { %4353 = vmatprep.subr.bf16.mxu0 %v16298_v61  ;;  %v16347_v61 = vld [vmem:[#allocation13 + $0x1e8] sm:$0xff]  }
0x159d   :  { %4118 = vadd.xlane.f32.xlu1 %v4117_v7  ;;  %v16334_v7 = vld [vmem:[#allocation13 + $0x150] sm:$0xff]  }
0x159f   :  { %4354 = vmatpush1.bf16.msra.mxu0 %v16296_v6  ;;  %v16349_v6 = vld [vmem:[#allocation13 + $0x1a8] sm:$0xff]  }
0x15a0   :  { %4355 = vmatprep.subr.bf16.mxu0 %v16304_v13  ;;  %v16352_v13 = vld [vmem:[#allocation13 + $0x130] sm:$0xff]  }
0x15a3   :  { %4356 = vmatpush1.bf16.msra.mxu0 %v16302_v11  ;;  %v16351_v11 = vld [vmem:[#allocation13 + $0x1f0] sm:$0xff]  }
0x15a4   :  { %4357 = vmatprep.subr.bf16.mxu0 %v16310_v20  ;;  %v16355_v20 = vld [vmem:[#allocation13 + $0x1f8] sm:$0xff]  }
0x15a7   :  { %4358 = vmatpush1.bf16.msra.mxu0 %v16308_v24  ;;  %v16357_v24 = vld [vmem:[#allocation13 + $0x1b8] sm:$0xff]  }
0x15a8   :  { %4359 = vmatprep.subr.bf16.mxu0 %v16316_v25  ;;  %v4170_v25 = vrot.slane %v13637_v63, %v18275_v3 }
0x15ab   :  { %4360 = vmatpush1.bf16.msra.mxu0 %v16314_v16  ;;  %v4174_v16 = vrot.slane %v13637_v63, %v18293_v15 }
0x15ac   :  { %4361 = vmatprep.subr.bf16.mxu0 %v16322_v28 }
0x15af   :  { %4362 = vmatpush1.bf16.msra.mxu0 %v16320_v57 }
0x15b0   :  { %15221 = vmatprep.subr.bf16.mxu0 %v16326_v34 }
0x162a   :  { %v4119_v38 = vpop.xlane.xlu1 %4118 }
0x162b   :  { %v4120_v41 = vadd.f32 1e-06, %v4119_v38 }
0x162d   :  { %17482 = vrsqrt.f32 %v4120_v41  ;;  %vm4123_vm12 = vcmp.eq.f32.partialorder %v4120_v41, inf  ;;  %v4126_v46 = vand.u32 2147483648, %v4120_v41  ;;  %vm4125_vm13 = vcmp.eq.f32.partialorder %v4120_v41, 0.0 }
0x1637   :  { %v17483_v42 = vpop.eup %17482 }
0x1638   :  { %v4122_v0 = vmul.f32 %v17483_v42, %v4120_v41 }
0x163a   :  { %v4124_v47 = vsel %vm4123_vm12, %v4120_v41, %v4122_v0 }
0x163b   :  { %v4127_v1 = vsel %vm4125_vm13, %v4126_v46, %v4124_v47 }
0x163c   :  { %17484 = vrcp.f32 %v4127_v1 }
0x1646   :  { %v17485_v40 = vpop.eup %17484 }
0x1647   :  { %v4129_v44 = vmul.f32 %v17485_v40, %v4116_v39 }
0x1649   :  { %v4130_v43 = vpack.c.bf16 %v4129_v44, %v4129_v44 }
0x164b   :  { %4380 = vmatmul.mubr.bf16.vlgmr.msra.gmra.mrb[40].mxu0 %v4130_v43  ;;  %4421 = vmatmul.mubr.bf16.vlgmr.msra.gmra.mrb[52].mxu1 %v4130_v43 }
0x164c   :  { %15222 = vmatpush3.bf16.msra.mxu0 %v16328_v49  ;;  %15244 = vmatpush3.bf16.msra.mxu1 %v16329_v50 }
0x164d   :  { %15223 = vmatprep.subr.bf16.mxu0 %v16330_v45  ;;  %15245 = vmatprep.subr.bf16.mxu1 %v16331_v51 }
0x1650   :  { %15224 = vmatpush3.bf16.msra.mxu0 %v16332_v60  ;;  %15246 = vmatpush3.bf16.msra.mxu1 %v16333_v32 }
0x1651   :  { %15225 = vmatprep.subr.bf16.mxu0 %v16334_v7  ;;  %15247 = vmatprep.subr.bf16.mxu1 %v16335_v36 }
0x1654   :  { %15226 = vmatpush3.bf16.msra.mxu0 %v16336_v31  ;;  %15248 = vmatpush3.bf16.msra.mxu1 %v16337_v33 }
0x1655   :  { %15227 = vmatprep.subr.bf16.mxu0 %v16338_v53  ;;  %15249 = vmatprep.subr.bf16.mxu1 %v16339_v54 }
0x1658   :  { %15228 = vmatpush3.bf16.msra.mxu0 %v16340_v55  ;;  %15250 = vmatpush3.bf16.msra.mxu1 %v16341_v56 }
0x1659   :  { %15229 = vmatprep.subr.bf16.mxu0 %v16342_v58  ;;  %15251 = vmatprep.subr.bf16.mxu1 %v16343_v23 }
0x165c   :  { %15230 = vmatpush3.bf16.msra.mxu0 %v16344_v59  ;;  %15252 = vmatpush3.bf16.msra.mxu1 %v16345_v17 }
0x165d   :  { %15231 = vmatprep.subr.bf16.mxu0 %v16346_v21  ;;  %15253 = vmatprep.subr.bf16.mxu1 %v16347_v61  ;;  %v4521_v61 = vrot.slane %v18898_v62, %v18273_v2  ;;  %v16360_v62 = vld [vmem:[%s20571_s0 + $0x204] ss:$16 sps:$4 sm:$0xff]  }
0x1660   :  { %15232 = vmatpush3.bf16.msra.mxu0 %v16348_v5  ;;  %15254 = vmatpush3.bf16.msra.mxu1 %v16349_v6 }
0x1661   :  { %15233 = vmatprep.subr.bf16.mxu0 %v16350_v9  ;;  %15255 = vmatprep.subr.bf16.mxu1 %v16351_v11 }
0x1664   :  { %15234 = vmatpush3.bf16.msra.mxu0 %v16352_v13  ;;  %15256 = vmatpush3.bf16.msra.mxu1 %v16353_v52 }
0x1665   :  { %15235 = vmatprep.subr.bf16.mxu0 %v16354_v4  ;;  %15257 = vmatprep.subr.bf16.mxu1 %v16355_v20 }
0x1668   :  { %15236 = vmatpush3.bf16.msra.mxu0 %v16356_v22  ;;  %15258 = vmatpush3.bf16.msra.mxu1 %v16357_v24 }
0x1669   :  { %5011 = vmatprep.subr.bf16.mxu0 %v16360_v62  ;;  %v16418_v62 = vld [vmem:[#allocation10 + $0x240] ss:$8 sps:$4 sm:$0xff]  }
0x171e   :  { %v4381_v28 = vpop.f32.mrb[40].mxu0  ;;  %v4422_v29 = vpop.f32.mrb[52].mxu1 }
0x171f   :  { %v4382_v57 = vadd.f32 %v4381_v28, %v4170_v25  ;;  %v4423_v30 = vadd.f32 %v4422_v29, %v4178_v26  ;;  %v4383_v34 = vpop.f32.mrb[41].mxu0  ;;  %v4424_v37 = vpop.f32.mrb[53].mxu1  ;;  %v16366_v28 = vld [vmem:[%s20571_s0 + $0x224] ss:$16 sps:$4 sm:$0xff]   ;;  %v16369_v29 = vld [vmem:[%s20571_s0 + $0x22c] ss:$16 sps:$4 sm:$0xff]  }
0x1720   :  { %v4384_v38 = vadd.f32 %v4383_v34, %v4174_v16  ;;  %v4425_v41 = vadd.f32 %v4424_v37, %v4182_v27  ;;  %v4385_v42 = vpop.f32.mrb[42].mxu0  ;;  %v4426_v0 = vpop.f32.mrb[54].mxu1  ;;  %v16363_v16 = vld [vmem:[%s20571_s0 + $0x20c] ss:$16 sps:$4 sm:$0xff]   ;;  %v16358_v27 = vld [vmem:[%s20571_s0 + $0x200] ss:$16 sps:$4 sm:$0xff]  }
0x1721   :  { %v4433_v46 = vmul.f32 0.70710677, %v4382_v57  ;;  %v4435_v47 = vmul.f32 0.70710677, %v4423_v30  ;;  %v4386_v39 = vpop.f32.mrb[43].mxu0  ;;  %v4427_v40 = vpop.f32.mrb[55].mxu1  ;;  %5052 = vmatprep.subr.bf16.mxu1 %v16363_v16 }
0x1722   :  { %v4434_v1 = vmul.f32 0.70710677, %v4384_v38  ;;  %v4436_v48 = vmul.f32 0.70710677, %v4425_v41  ;;  %v4429_v45 = vmul.f32 0.5, %v4382_v57  ;;  %v4431_v32 = vmul.f32 0.5, %v4423_v30 }
0x1723   :  { %17486 = verf.f32 %v4433_v46  ;;  %v4430_v7 = vmul.f32 0.5, %v4384_v38  ;;  %v4432_v33 = vmul.f32 0.5, %v4425_v41  ;;  %v16364_v57 = vld [vmem:[%s20571_s0 + $0x220] ss:$16 sps:$4 sm:$0xff]   ;;  %v16367_v30 = vld [vmem:[%s20571_s0 + $0x228] ss:$16 sps:$4 sm:$0xff]  }
0x1724   :  { %17488 = verf.f32 %v4435_v47  ;;  %v16372_v34 = vld [vmem:[%s20571_s0 + $0x244] ss:$16 sps:$4 sm:$0xff]   ;;  %v16375_v37 = vld [vmem:[%s20571_s0 + $0x24c] ss:$16 sps:$4 sm:$0xff]   ;;  %v16370_v38 = vld [vmem:[%s20571_s0 + $0x240] ss:$16 sps:$4 sm:$0xff]  }
0x1725   :  { %17490 = verf.f32 %v4434_v1  ;;  %v16373_v41 = vld [vmem:[%s20571_s0 + $0x248] ss:$16 sps:$4 sm:$0xff]   ;;  %v16378_v42 = vld [vmem:[%s20571_s0 + $0x264] ss:$16 sps:$4 sm:$0xff]   ;;  %v16381_v0 = vld [vmem:[%s20571_s0 + $0x26c] ss:$16 sps:$4 sm:$0xff]  }
0x1726   :  { %17492 = verf.f32 %v4436_v48  ;;  %v16376_v46 = vld [vmem:[%s20571_s0 + $0x260] ss:$16 sps:$4 sm:$0xff]   ;;  %v16379_v47 = vld [vmem:[%s20571_s0 + $0x268] ss:$16 sps:$4 sm:$0xff]   ;;  %v16384_v48 = vld [vmem:[%s20571_s0 + $0x284] ss:$16 sps:$4 sm:$0xff]  }
0x1727   :  { %v16382_v1 = vld [vmem:[%s20571_s0 + $0x280] ss:$16 sps:$4 sm:$0xff]   ;;  %v16385_v39 = vld [vmem:[%s20571_s0 + $0x288] ss:$16 sps:$4 sm:$0xff]   ;;  %v16387_v40 = vld [vmem:[%s20571_s0 + $0x28c] ss:$16 sps:$4 sm:$0xff]  }
0x1728   :  { %v16423_v16 = vld [vmem:[#allocation10 + $0x254] ss:$8 sps:$4 sm:$0xff]  }
0x172d   :  { %v17487_v44 = vpop.eup %17486 }
0x172e   :  { %v17489_v49 = vpop.eup %17488  ;;  %v4441_v50 = vadd.f32 1.0, %v17487_v44  ;;  %v16390_v44 = vld [vmem:[%s20571_s0 + $0x2a4] ss:$16 sps:$4 sm:$0xff]  }
0x172f   :  { %v17491_v43 = vpop.eup %17490  ;;  %v4443_v51 = vadd.f32 1.0, %v17489_v49  ;;  %v16393_v49 = vld [vmem:[%s20571_s0 + $0x2ac] ss:$16 sps:$4 sm:$0xff]  }
0x1730   :  { %v17493_v60 = vpop.eup %17492  ;;  %v4442_v36 = vadd.f32 1.0, %v17491_v43  ;;  %v4445_v31 = vmul.f32 %v4441_v50, %v4429_v45  ;;  %v16388_v50 = vld [vmem:[%s20571_s0 + $0x2a0] ss:$16 sps:$4 sm:$0xff]   ;;  %v16391_v43 = vld [vmem:[%s20571_s0 + $0x2a8] ss:$16 sps:$4 sm:$0xff]  }
0x1731   :  { %v4444_v53 = vadd.f32 1.0, %v17493_v60  ;;  %v4447_v54 = vmul.f32 %v4443_v51, %v4431_v32  ;;  %v16396_v45 = vld [vmem:[%s20571_s0 + $0x2c4] ss:$16 sps:$4 sm:$0xff]   ;;  %v16399_v51 = vld [vmem:[%s20571_s0 + $0x2cc] ss:$16 sps:$4 sm:$0xff]  }
0x1732   :  { %v4446_v55 = vmul.f32 %v4442_v36, %v4430_v7  ;;  %v4449_v23 = vpack.c.bf16 %v4445_v31, %v4445_v31  ;;  %v16394_v60 = vld [vmem:[%s20571_s0 + $0x2c0] ss:$16 sps:$4 sm:$0xff]   ;;  %v16397_v32 = vld [vmem:[%s20571_s0 + $0x2c8] ss:$16 sps:$4 sm:$0xff]   ;;  %v16402_v7 = vld [vmem:[%s20571_s0 + $0x2e4] ss:$16 sps:$4 sm:$0xff]  }
0x1733   :  { %v4448_v56 = vmul.f32 %v4444_v53, %v4432_v33  ;;  %v4451_v17 = vpack.c.bf16 %v4447_v54, %v4447_v54  ;;  %v16405_v36 = vld [vmem:[%s20571_s0 + $0x2ec] ss:$16 sps:$4 sm:$0xff]   ;;  %v16400_v31 = vld [vmem:[%s20571_s0 + $0x2e0] ss:$16 sps:$4 sm:$0xff]   ;;  %v16403_v33 = vld [vmem:[%s20571_s0 + $0x2e8] ss:$16 sps:$4 sm:$0xff]  }
0x1734   :  { %v4450_v58 = vpack.c.bf16 %v4446_v55, %v4446_v55  ;;  %v16408_v53 = vld [vmem:[#allocation10 + $0x204] ss:$8 sps:$4 sm:$0xff]  }
0x1735   :  { %v4452_v59 = vpack.c.bf16 %v4448_v56, %v4448_v56 }
0x1736   :  { %4746 = vmatprep.mubr.bf16.mxu0 %v4450_v58 }
0x1737   :  { %4786 = vmatprep.mubr.bf16.mxu1 %v4452_v59  ;;  %4747 = vmatmul.mubr.bf16.vlgmr.msra.gmra.mrb[44].mxu0 %v4449_v23 }
0x1738   :  { %4787 = vmatmul.mubr.bf16.vlgmr.msra.gmra.mrb[56].mxu1 %v4451_v17  ;;  %5043 = vmatprep.mubr.bf16.mxu0 %v17967_v35 }
0x1739   :  { %5084 = vmatprep.mubr.bf16.mxu1 %v17967_v35  ;;  %5012 = vmatpush1.bf16.msra.mxu0 %v16358_v27  ;;  %v16421_v27 = vld [vmem:[#allocation10 + $0x250] ss:$8 sps:$4 sm:$0xff]  }
0x173a   :  { %5013 = vmatprep.subr.bf16.mxu0 %v16366_v28  ;;  %v16424_v28 = vld [vmem:[#allocation10 + $0x260] ss:$8 sps:$4 sm:$0xff]  }
0x173d   :  { %5014 = vmatpush1.bf16.msra.mxu0 %v16364_v57  ;;  %v16427_v57 = vld [vmem:[#allocation10 + $0x270] ss:$8 sps:$4 sm:$0xff]  }
0x173e   :  { %5015 = vmatprep.subr.bf16.mxu0 %v16372_v34  ;;  %v16433_v34 = vld [vmem:[#allocation10 + $0x284] ss:$8 sps:$4 sm:$0xff]  }
0x1741   :  { %5016 = vmatpush1.bf16.msra.mxu0 %v16370_v38  ;;  %v16431_v38 = vld [vmem:[#allocation10 + $0x280] ss:$8 sps:$4 sm:$0xff]  }
0x1742   :  { %5017 = vmatprep.subr.bf16.mxu0 %v16378_v42  ;;  %v16438_v42 = vld [vmem:[#allocation10 + $0x294] ss:$8 sps:$4 sm:$0xff]  }
0x1745   :  { %5018 = vmatpush1.bf16.msra.mxu0 %v16376_v46  ;;  %v16436_v46 = vld [vmem:[#allocation10 + $0x290] ss:$8 sps:$4 sm:$0xff]  }
0x1746   :  { %5019 = vmatprep.subr.bf16.mxu0 %v16384_v48  ;;  %v16444_v48 = vld [vmem:[%s20526_s9 + $0x110] sm:$0xff]  }
0x1749   :  { %5020 = vmatpush1.bf16.msra.mxu0 %v16382_v1  ;;  %v16443_v1 = vld [vmem:[#allocation10 + $0x2a4] ss:$8 sps:$4 sm:$0xff]  }
0x174a   :  { %5021 = vmatprep.subr.bf16.mxu0 %v16390_v44  ;;  %v16448_v44 = vld [vmem:[#allocation10 + $0x2b4] ss:$8 sps:$4 sm:$0xff]  }
0x174d   :  { %5022 = vmatpush1.bf16.msra.mxu0 %v16388_v50  ;;  %v16446_v50 = vld [vmem:[#allocation10 + $0x2b0] ss:$8 sps:$4 sm:$0xff]  }
0x174e   :  { %5023 = vmatprep.subr.bf16.mxu0 %v16396_v45  ;;  %v16453_v45 = vld [vmem:[#allocation10 + $0x2c4] ss:$8 sps:$4 sm:$0xff]  }
0x1751   :  { %5024 = vmatpush1.bf16.msra.mxu0 %v16394_v60  ;;  %v16451_v60 = vld [vmem:[#allocation10 + $0x2c0] ss:$8 sps:$4 sm:$0xff]  }
0x1752   :  { %5025 = vmatprep.subr.bf16.mxu0 %v16402_v7  ;;  %v16458_v7 = vld [vmem:[#allocation10 + $0x2d4] ss:$8 sps:$4 sm:$0xff]  }
0x1755   :  { %5026 = vmatpush1.bf16.msra.mxu0 %v16400_v31  ;;  %v16456_v31 = vld [vmem:[#allocation10 + $0x2d0] ss:$8 sps:$4 sm:$0xff]  }
0x1756   :  { %5341 = vmatprep.subr.bf16.mxu0 %v16408_v53  ;;  %v16463_v53 = vld [vmem:[#allocation10 + $0x2e4] ss:$8 sps:$4 sm:$0xff]  }
0x180a   :  { %v15237_v21 = vpop.f32.mrb[44].mxu0 }
0x180b   :  { %v15259_v5 = vpop.f32.mrb[56].mxu1  ;;  %v15238_v6 = vpop.f32.mrb[45].mxu0 }
0x180c   :  { %v15239_v9 = vadd.f32 %v15238_v6, %v15237_v21  ;;  %v15260_v11 = vpop.f32.mrb[57].mxu1  ;;  %v15240_v13 = vpop.f32.mrb[46].mxu0  ;;  %v19214_v21 = vld [vmem:[%s20532_s15 + $0x8] sm:$0x7] }
0x180d   :  { %v15261_v52 = vadd.f32 %v15260_v11, %v15259_v5  ;;  %v15262_v4 = vpop.f32.mrb[58].mxu1  ;;  %v15241_v20 = vpop.f32.mrb[47].mxu0  ;;  %v16406_v11 = vld [vmem:[#allocation10 + $0x200] ss:$8 sps:$4 sm:$0xff]  }
0x180e   :  { %v4749_v22 = vadd.f32 %v15239_v9, %v4521_v61  ;;  %v15263_v24 = vpop.f32.mrb[59].mxu1  ;;  %v4802_v61 = vrot.slane %v19214_v21, %v18275_v3  ;;  %v16409_v4 = vld [vmem:[#allocation10 + $0x210] ss:$8 sps:$4 sm:$0xff]   ;;  %v16414_v20 = vld [vmem:[#allocation10 + $0x224] ss:$8 sps:$4 sm:$0xff]  }
0x180f   :  { %v16417_v24 = vld [vmem:[#allocation10 + $0x234] ss:$8 sps:$4 sm:$0xff]  }
0x1810   :  { %v4789_v63 = vadd.f32 %v15261_v52, %v4749_v22  ;;  %v16411_v52 = vld [vmem:[#allocation10 + $0x214] ss:$8 sps:$4 sm:$0xff]   ;;  %v16412_v22 = vld [vmem:[#allocation10 + $0x220] ss:$8 sps:$4 sm:$0xff]  }
0x1812   :  { %v19111_v25 = vadd.f32 %v4789_v63, %v19092_v19  ;;  %v16361_v19 = vld [vmem:[%s20571_s0 + $0x208] ss:$16 sps:$4 sm:$0xff]   ;;  %v16415_v63 = vld [vmem:[#allocation10 + $0x230] ss:$8 sps:$4 sm:$0xff]  }
0x1813   :  { %5053 = vmatpush1.bf16.msra.mxu1 %v16361_v19  ;;  %v16426_v19 = vld [vmem:[#allocation10 + $0x264] ss:$8 sps:$4 sm:$0xff]  }
0x1814   :  { %v4804_v26 = vmul.f32 %v19111_v25, %v19111_v25  ;;  %5054 = vmatprep.subr.bf16.mxu1 %v16369_v29  ;;  %v4803_v5 = vmul.f32 %v4802_v61, %v19111_v25  ;;  %v16429_v29 = vld [vmem:[#allocation10 + $0x274] ss:$8 sps:$4 sm:$0xff]   ;;  %v19273_v61 = vld [vmem:[%s20531_s14 + $0x10] sm:$0x77] }
0x1816   :  { %4805 = vadd.xlane.f32.xlu0 %v4804_v26  ;;  %v16420_v26 = vld [vmem:[#allocation10 + $0x244] ss:$8 sps:$4 sm:$0xff]  }
0x1817   :  { %5055 = vmatpush1.bf16.msra.mxu1 %v16367_v30  ;;  %v16430_v30 = vld [vmem:[%s20526_s9 + $0x140] sm:$0xff]  }
0x1818   :  { %5056 = vmatprep.subr.bf16.mxu1 %v16375_v37  ;;  %v16434_v37 = vld [vmem:[%s20526_s9 + $0x100] sm:$0xff]  }
0x181b   :  { %5057 = vmatpush1.bf16.msra.mxu1 %v16373_v41  ;;  %v16435_v41 = vld [vmem:[%s20526_s9 + $0x148] sm:$0xff]  }
0x181c   :  { %5058 = vmatprep.subr.bf16.mxu1 %v16381_v0  ;;  %v16439_v0 = vld [vmem:[%s20526_s9 + $0x108] sm:$0xff]  }
0x181f   :  { %5059 = vmatpush1.bf16.msra.mxu1 %v16379_v47  ;;  %v16440_v47 = vld [vmem:[%s20526_s9 + $0x150] sm:$0xff]  }
0x1820   :  { %5060 = vmatprep.subr.bf16.mxu1 %v16387_v40  ;;  %v16445_v40 = vld [vmem:[%s20526_s9 + $0x158] sm:$0xff]  }
0x1823   :  { %5061 = vmatpush1.bf16.msra.mxu1 %v16385_v39  ;;  %v16441_v39 = vld [vmem:[#allocation10 + $0x2a0] ss:$8 sps:$4 sm:$0xff]  }
0x1824   :  { %5062 = vmatprep.subr.bf16.mxu1 %v16393_v49  ;;  %v16449_v49 = vld [vmem:[%s20526_s9 + $0x118] sm:$0xff]  }
0x1827   :  { %5063 = vmatpush1.bf16.msra.mxu1 %v16391_v43  ;;  %v16450_v43 = vld [vmem:[%s20526_s9 + $0x160] sm:$0xff]  }
0x1828   :  { %5064 = vmatprep.subr.bf16.mxu1 %v16399_v51  ;;  %v16454_v51 = vld [vmem:[%s20526_s9 + $0x120] sm:$0xff]  }
0x182b   :  { %5065 = vmatpush1.bf16.msra.mxu1 %v16397_v32  ;;  %v16455_v32 = vld [vmem:[%s20526_s9 + $0x168] sm:$0xff]  }
0x182c   :  { %5066 = vmatprep.subr.bf16.mxu1 %v16405_v36  ;;  %v16459_v36 = vld [vmem:[%s20526_s9 + $0x128] sm:$0xff]  }
0x182f   :  { %5067 = vmatpush1.bf16.msra.mxu1 %v16403_v33  ;;  %v16460_v33 = vld [vmem:[%s20526_s9 + $0x170] sm:$0xff]  }
0x1830   :  { %15265 = vmatprep.subr.bf16.mxu1 %v16430_v30 }
0x18a3   :  { %v4806_v54 = vpop.xlane.xlu0 %4805 }
0x18a4   :  { %v4807_v55 = vadd.f32 1e-06, %v4806_v54  ;;  %v16464_v54 = vld [vmem:[%s20526_s9 + $0x130] sm:$0xff]  }
0x18a6   :  { %17494 = vrsqrt.f32 %v4807_v55  ;;  %vm4810_vm15 = vcmp.eq.f32.partialorder %v4807_v55, inf  ;;  %v4813_v23 = vand.u32 2147483648, %v4807_v55  ;;  %vm4812_vm0 = vcmp.eq.f32.partialorder %v4807_v55, 0.0 }
0x18b0   :  { %v17495_v56 = vpop.eup %17494 }
0x18b1   :  { %v4809_v58 = vmul.f32 %v17495_v56, %v4807_v55  ;;  %v16465_v56 = vld [vmem:[%s20526_s9 + $0x178] sm:$0xff]  }
0x18b3   :  { %v4811_v59 = vsel %vm4810_vm15, %v4807_v55, %v4809_v58  ;;  %v16461_v55 = vld [vmem:[#allocation10 + $0x2e0] ss:$8 sps:$4 sm:$0xff]   ;;  %v16468_v58 = vld [vmem:[#allocation10 + $0x2f4] ss:$8 sps:$4 sm:$0xff]  }
0x18b4   :  { %v4814_v17 = vsel %vm4812_vm0, %v4813_v23, %v4811_v59  ;;  %v16469_v23 = vld [vmem:[%s20526_s9 + $0x138] sm:$0xff]  }
0x18b5   :  { %17496 = vrcp.f32 %v4814_v17  ;;  %v16466_v59 = vld [vmem:[#allocation10 + $0x2f0] ss:$8 sps:$4 sm:$0xff]   ;;  %v16470_v17 = vld [vmem:[%s20527_s10 + $0x140] sm:$0xff]  }
0x18bf   :  { %v17497_v6 = vpop.eup %17496 }
0x18c0   :  { %v4816_v9 = vmul.f32 %v17497_v6, %v4803_v5  ;;  %v5097_v5 = vrot.slane %v19273_v61, %v18275_v3  ;;  %v5101_v6 = vrot.slane %v19273_v61, %v18285_v10 }
0x18c2   :  { %v4817_v13 = vpack.c.bf16 %v4816_v9, %v4816_v9  ;;  %v5107_v9 = vrot.slane %v5097_v5, %v18275_v3 }
0x18c4   :  { %5044 = vmatmul.mubr.bf16.vlgmr.msra.gmra.mrb[48].mxu0 %v4817_v13  ;;  %5085 = vmatmul.mubr.bf16.vlgmr.msra.gmra.mrb[60].mxu1 %v4817_v13 }
0x18c5   :  { %5342 = vmatpush1.bf16.msra.mxu0 %v16406_v11  ;;  %15266 = vmatpush3.bf16.msra.mxu1 %v16434_v37  ;;  %v5111_v11 = vrot.slane %v5101_v6, %v18275_v3 }
0x18c6   :  { %5343 = vmatprep.subr.bf16.mxu0 %v16411_v52  ;;  %15267 = vmatprep.subr.bf16.mxu1 %v16435_v41 }
0x18c9   :  { %5344 = vmatpush1.bf16.msra.mxu0 %v16409_v4  ;;  %15268 = vmatpush3.bf16.msra.mxu1 %v16439_v0  ;;  %v16471_v0 = vld [vmem:[%s20527_s10 + $0x100] sm:$0xff]  }
0x18ca   :  { %5345 = vmatprep.subr.bf16.mxu0 %v16414_v20  ;;  %15269 = vmatprep.subr.bf16.mxu1 %v16440_v47  ;;  %v16472_v47 = vld [vmem:[%s20527_s10 + $0x148] sm:$0xff]  }
0x18cd   :  { %5346 = vmatpush1.bf16.msra.mxu0 %v16412_v22  ;;  %15270 = vmatpush3.bf16.msra.mxu1 %v16444_v48  ;;  %v16474_v48 = vld [vmem:[%s20527_s10 + $0x150] sm:$0xff]  }
0x18ce   :  { %5347 = vmatprep.subr.bf16.mxu0 %v16417_v24  ;;  %15271 = vmatprep.subr.bf16.mxu1 %v16445_v40  ;;  %v16476_v40 = vld [vmem:[%s20527_s10 + $0x158] sm:$0xff]  }
0x18d1   :  { %5348 = vmatpush1.bf16.msra.mxu0 %v16415_v63  ;;  %15272 = vmatpush3.bf16.msra.mxu1 %v16449_v49  ;;  %v16478_v49 = vld [vmem:[%s20527_s10 + $0x160] sm:$0xff]  }
0x18d2   :  { %5349 = vmatprep.subr.bf16.mxu0 %v16420_v26  ;;  %15273 = vmatprep.subr.bf16.mxu1 %v16450_v43  ;;  %v16480_v43 = vld [vmem:[%s20527_s10 + $0x168] sm:$0xff]  }
0x18d5   :  { %5350 = vmatpush1.bf16.msra.mxu0 %v16418_v62  ;;  %15274 = vmatpush3.bf16.msra.mxu1 %v16454_v51  ;;  %v16482_v51 = vld [vmem:[%s20527_s10 + $0x170] sm:$0xff]  }
0x18d6   :  { %5351 = vmatprep.subr.bf16.mxu0 %v16423_v16  ;;  %15275 = vmatprep.subr.bf16.mxu1 %v16455_v32  ;;  %v16484_v32 = vld [vmem:[%s20527_s10 + $0x178] sm:$0xff]  }
0x18d9   :  { %5352 = vmatpush1.bf16.msra.mxu0 %v16421_v27  ;;  %15276 = vmatpush3.bf16.msra.mxu1 %v16459_v36  ;;  %v16486_v36 = vld [vmem:[%s20528_s11 + $0x140] sm:$0xff]  }
0x18da   :  { %5353 = vmatprep.subr.bf16.mxu0 %v16426_v19  ;;  %15277 = vmatprep.subr.bf16.mxu1 %v16460_v33  ;;  %v16488_v33 = vld [vmem:[%s20528_s11 + $0x148] sm:$0xff]  }
0x18dd   :  { %5354 = vmatpush1.bf16.msra.mxu0 %v16424_v28  ;;  %15278 = vmatpush3.bf16.msra.mxu1 %v16464_v54  ;;  %v16490_v54 = vld [vmem:[%s20528_s11 + $0x150] sm:$0xff]  }
0x18de   :  { %5355 = vmatprep.subr.bf16.mxu0 %v16429_v29  ;;  %15279 = vmatprep.subr.bf16.mxu1 %v16465_v56  ;;  %v16492_v56 = vld [vmem:[%s20528_s11 + $0x158] sm:$0xff]  }
0x18e1   :  { %5356 = vmatpush1.bf16.msra.mxu0 %v16427_v57  ;;  %15280 = vmatpush3.bf16.msra.mxu1 %v16469_v23  ;;  %v16494_v23 = vld [vmem:[%s20528_s11 + $0x160] sm:$0xff]  }
0x18e2   :  { %5357 = vmatprep.subr.bf16.mxu0 %v16433_v34  ;;  %15287 = vmatprep.subr.bf16.mxu1 %v16470_v17 }
0x18e5   :  { %5358 = vmatpush1.bf16.msra.mxu0 %v16431_v38 }
0x18e6   :  { %5359 = vmatprep.subr.bf16.mxu0 %v16438_v42 }
0x18e9   :  { %5360 = vmatpush1.bf16.msra.mxu0 %v16436_v46 }
0x18ea   :  { %5361 = vmatprep.subr.bf16.mxu0 %v16443_v1  ;;  %v16473_v1 = vld [vmem:[%s20527_s10 + $0x108] sm:$0xff]  }
0x18ed   :  { %5362 = vmatpush1.bf16.msra.mxu0 %v16441_v39  ;;  %v16475_v39 = vld [vmem:[%s20527_s10 + $0x110] sm:$0xff]  }
0x18ee   :  { %5363 = vmatprep.subr.bf16.mxu0 %v16448_v44  ;;  %v16477_v44 = vld [vmem:[%s20527_s10 + $0x118] sm:$0xff]  }
0x18f1   :  { %5364 = vmatpush1.bf16.msra.mxu0 %v16446_v50  ;;  %v16479_v50 = vld [vmem:[%s20527_s10 + $0x120] sm:$0xff]  }
0x18f2   :  { %5365 = vmatprep.subr.bf16.mxu0 %v16453_v45  ;;  %v16481_v45 = vld [vmem:[%s20527_s10 + $0x128] sm:$0xff]  }
0x18f5   :  { %5366 = vmatpush1.bf16.msra.mxu0 %v16451_v60  ;;  %v16483_v60 = vld [vmem:[%s20527_s10 + $0x130] sm:$0xff]  }
0x18f6   :  { %5367 = vmatprep.subr.bf16.mxu0 %v16458_v7  ;;  %v16485_v7 = vld [vmem:[%s20527_s10 + $0x138] sm:$0xff]  }
0x18f9   :  { %5368 = vmatpush1.bf16.msra.mxu0 %v16456_v31  ;;  %v16487_v31 = vld [vmem:[%s20528_s11 + $0x100] sm:$0xff]  }
0x18fa   :  { %5369 = vmatprep.subr.bf16.mxu0 %v16463_v53  ;;  %v16489_v53 = vld [vmem:[%s20528_s11 + $0x108] sm:$0xff]  }
0x18fd   :  { %5370 = vmatpush1.bf16.msra.mxu0 %v16461_v55  ;;  %v16491_v55 = vld [vmem:[%s20528_s11 + $0x110] sm:$0xff]  }
0x18fe   :  { %5371 = vmatprep.subr.bf16.mxu0 %v16468_v58  ;;  %v16493_v58 = vld [vmem:[%s20528_s11 + $0x118] sm:$0xff]  }
0x1901   :  { %5372 = vmatpush1.bf16.msra.mxu0 %v16466_v59  ;;  %v16495_v59 = vld [vmem:[%s20528_s11 + $0x120] sm:$0xff]  }
0x1902   :  { %15309 = vmatprep.subr.bf16.mxu0 %v16486_v36 }
0x1997   :  { %v5045_v13 = vpop.f32.mrb[48].mxu0  ;;  %v19281_v52 = vpop.f32.mrb[60].mxu1 }
0x1998   :  { %v5112_v4 = vadd.f32 %v5107_v9, %v5045_v13  ;;  %v5047_v20 = vpop.f32.mrb[49].mxu0  ;;  %v19283_v22 = vpop.f32.mrb[61].mxu1 }
0x1999   :  { %v5113_v24 = vadd.f32 %v5111_v11, %v5047_v20  ;;  %v5049_v63 = vpop.f32.mrb[50].mxu0  ;;  %v5090_v26 = vpop.f32.mrb[62].mxu1 }
0x199a   :  { %v13768_v62 = vmul.f32 -1.442695, %v5112_v4  ;;  %v5050_v16 = vpop.f32.mrb[51].mxu0  ;;  %v5091_v27 = vpop.f32.mrb[63].mxu1 }
0x199b   :  { %v13769_v19 = vmul.f32 -1.442695, %v5113_v24 }
0x199c   :  { %17498 = vpow2.f32 %v13768_v62 }
0x199d   :  { %17500 = vpow2.f32 %v13769_v19 }
0x19a6   :  { %v17499_v28 = vpop.eup %17498 }
0x19a7   :  { %v17501_v29 = vpop.eup %17500  ;;  %v5120_v57 = vadd.f32 1.0, %v17499_v28 }
0x19a8   :  { %v5121_v30 = vadd.f32 1.0, %v17501_v29  ;;  %v16496_v29 = vld [vmem:[%s20528_s11 + $0x168] sm:$0xff]  }
0x19a9   :  { %17502 = vrcp.f32 %v5120_v57  ;;  %v16497_v57 = vld [vmem:[%s20528_s11 + $0x128] sm:$0xff]  }
0x19aa   :  { %17504 = vrcp.f32 %v5121_v30  ;;  %v16498_v30 = vld [vmem:[%s20528_s11 + $0x170] sm:$0xff]  }
0x19b3   :  { %v17503_v34 = vpop.eup %17502 }
0x19b4   :  { %v17505_v37 = vpop.eup %17504  ;;  %v19285_v38 = vmul.f32 %v17503_v34, %v5112_v4  ;;  %v16499_v34 = vld [vmem:[%s20528_s11 + $0x130] sm:$0xff]  }
0x19b5   :  { %v19287_v41 = vmul.f32 %v17505_v37, %v5113_v24  ;;  %v16500_v37 = vld [vmem:[%s20528_s11 + $0x178] sm:$0xff]  }
0x19b6   :  { %v5128_v46 = vpack.c.bf16 %v19285_v38, %v19285_v38 }
0x19b7   :  { %v5129_v42 = vpack.c.bf16 %v19287_v41, %v19287_v41 }
0x19b9   :  { %5373 = vmatprep.mubr.bf16.mxu0 %v5129_v42  ;;  %5579 = vmatprep.mubr.bf16.mxu1 %v5129_v42 }
0x19ba   :  { %5374 = vmatmul.mubr.bf16.vlgmr.msra.gmra.mrb[52].mxu0 %v5128_v46  ;;  %5580 = vmatmul.mubr.bf16.vlgmr.msra.gmra.mrb[64].mxu1 %v5128_v46 }
0x19bb   :  { %15288 = vmatpush3.bf16.msra.mxu1 %v16471_v0  ;;  %5748 = vmatprep.mubr.bf16.mxu1 %v5129_v42  ;;  %v16501_v42 = vld [vmem:[%s20528_s11 + $0x138] sm:$0xff]   ;;  %v5166_v0 = vrot.slane %v19273_v61, %v18293_v15 }
0x19bc   :  { %15289 = vmatprep.subr.bf16.mxu1 %v16472_v47  ;;  %15310 = vmatpush3.bf16.msra.mxu0 %v16487_v31 }
0x19bd   :  { %15311 = vmatprep.subr.bf16.mxu0 %v16488_v33  ;;  %v5176_v47 = vrot.slane %v5166_v0, %v18293_v15 }
0x19bf   :  { %15290 = vmatpush3.bf16.msra.mxu1 %v16473_v1 }
0x19c0   :  { %15291 = vmatprep.subr.bf16.mxu1 %v16474_v48  ;;  %15312 = vmatpush3.bf16.msra.mxu0 %v16489_v53 }
0x19c1   :  { %15313 = vmatprep.subr.bf16.mxu0 %v16490_v54 }
0x19c3   :  { %15292 = vmatpush3.bf16.msra.mxu1 %v16475_v39 }
0x19c4   :  { %15293 = vmatprep.subr.bf16.mxu1 %v16476_v40  ;;  %15314 = vmatpush3.bf16.msra.mxu0 %v16491_v55 }
0x19c5   :  { %15315 = vmatprep.subr.bf16.mxu0 %v16492_v56 }
0x19c7   :  { %15294 = vmatpush3.bf16.msra.mxu1 %v16477_v44 }
0x19c8   :  { %15295 = vmatprep.subr.bf16.mxu1 %v16478_v49  ;;  %15316 = vmatpush3.bf16.msra.mxu0 %v16493_v58 }
0x19c9   :  { %15317 = vmatprep.subr.bf16.mxu0 %v16494_v23 }
0x19cb   :  { %15296 = vmatpush3.bf16.msra.mxu1 %v16479_v50 }
0x19cc   :  { %15297 = vmatprep.subr.bf16.mxu1 %v16480_v43  ;;  %15318 = vmatpush3.bf16.msra.mxu0 %v16495_v59 }
0x19cd   :  { %15319 = vmatprep.subr.bf16.mxu0 %v16496_v29 }
0x19cf   :  { %15298 = vmatpush3.bf16.msra.mxu1 %v16481_v45 }
0x19d0   :  { %15299 = vmatprep.subr.bf16.mxu1 %v16482_v51  ;;  %15320 = vmatpush3.bf16.msra.mxu0 %v16497_v57 }
0x19d1   :  { %15321 = vmatprep.subr.bf16.mxu0 %v16498_v30 }
0x19d3   :  { %15300 = vmatpush3.bf16.msra.mxu1 %v16483_v60 }
0x19d4   :  { %15301 = vmatprep.subr.bf16.mxu1 %v16484_v32  ;;  %15322 = vmatpush3.bf16.msra.mxu0 %v16499_v34  ;;  %v13898_v32 = vmul.f32 -1.442695, %v19281_v52 }
0x19d5   :  { %15323 = vmatprep.subr.bf16.mxu0 %v16500_v37 }
0x19d7   :  { %15302 = vmatpush3.bf16.msra.mxu1 %v16485_v7  ;;  %v13899_v7 = vmul.f32 -1.442695, %v19283_v22 }
0x19d8   :  { %15324 = vmatpush3.bf16.msra.mxu0 %v16501_v42 }
0x19da   :  { %5749 = vmatmul.mubr.bf16.vlgmr.msra.gmra.mrb[68].mxu1 %v5128_v46  ;;  %v5170_v46 = vrot.slane %v19273_v61, %v18288_v12 }
0x19db   :  { %6239 = vmatprep.mubr.bf16.mxu1 %v17967_v35 }
0x19dc   :  { %v5180_v1 = vrot.slane %v5170_v46, %v18293_v15 }
0x1a8d   :  { %v5375_v17 = vpop.f32.mrb[52].mxu0  ;;  %v15281_v5 = vpop.f32.mrb[64].mxu1 }
0x1a8e   :  { %v5377_v6 = vpop.f32.mrb[53].mxu0  ;;  %v15282_v9 = vpop.f32.mrb[65].mxu1  ;;  %v5376_v48 = vadd.f32 %v5375_v17, %v5176_v47 }
0x1a8f   :  { %v15283_v11 = vadd.f32 %v15282_v9, %v15281_v5  ;;  %v5379_v13 = vpop.f32.mrb[54].mxu0  ;;  %v15284_v4 = vpop.f32.mrb[66].mxu1  ;;  %v5378_v39 = vadd.f32 %v5377_v6, %v5180_v1 }
0x1a90   :  { %v5380_v20 = vpop.f32.mrb[55].mxu0  ;;  %v15285_v24 = vpop.f32.mrb[67].mxu1  ;;  %v5388_v40 = vand.u32 2147483647, %v5376_v48  ;;  %vm5384_vm3 = vcmp.ne.f32.partialorder %v5376_v48, %v5376_v48 }
0x1a91   :  { %v5389_v44 = vand.u32 2147483647, %v5378_v39  ;;  %vm5385_vm4 = vcmp.ne.f32.partialorder %v5378_v39, %v5378_v39 }
0x1a92   :  { %v5390_v49 = vsub.f32 0.0, %v5388_v40 }
0x1a93   :  { %v5391_v50 = vsub.f32 0.0, %v5389_v44 }
0x1a94   :  { %v5392_v43 = vmul.f32 1.442695, %v5390_v49 }
0x1a95   :  { %v5394_v45 = vmul.f32 1.442695, %v5391_v50 }
0x1a96   :  { %17506 = vpow2.f32 %v5392_v43 }
0x1a97   :  { %17508 = vpow2.f32 %v5394_v45 }
0x1a98   :  { %17510 = vpow2.f32 %v13898_v32 }
0x1a99   :  { %17512 = vpow2.f32 %v13899_v7 }
0x1aa0   :  { %v17507_v51 = vpop.eup %17506 }
0x1aa1   :  { %v17509_v60 = vpop.eup %17508  ;;  %v5396_v36 = vadd.f32 1.0, %v17507_v51  ;;  %v5399_v53 = vmul.f32 -0.5, %v17507_v51  ;;  %v5402_v6 = vand.u32 2147483647, %v17507_v51 }
0x1aa2   :  { %v5405_v31 = vadd.f32 1.0, %v17509_v60  ;;  %v17511_v33 = vpop.eup %17510  ;;  %v5408_v54 = vmul.f32 -0.5, %v17509_v60  ;;  %v5411_v9 = vand.u32 2147483647, %v17509_v60 }
0x1aa3   :  { %17514 = vlog2.f32 %v5396_v36  ;;  %v17513_v55 = vpop.eup %17512  ;;  %v5790_v23 = vadd.f32 1.0, %v17511_v33  ;;  %v5400_v59 = vadd.f32 1.0, %v5399_v53  ;;  %vm5403_vm1 = vcmp.lt.f32.partialorder %v5402_v6, 0.0004427343  ;;  %v16505_v33 = vld [vmem:[#allocation11 + $0x208] ss:$16 sps:$4 sm:$0xff]  }
0x1aa4   :  { %17516 = vlog2.f32 %v5405_v31  ;;  %v5409_v17 = vadd.f32 1.0, %v5408_v54  ;;  %v5791_v5 = vadd.f32 1.0, %v17513_v55  ;;  %vm5412_vm2 = vcmp.lt.f32.partialorder %v5411_v9, 0.0004427343  ;;  %v16502_v31 = vld [vmem:[#allocation11 + $0x200] ss:$16 sps:$4 sm:$0xff]  }
0x1aa5   :  { %17518 = vrcp.f32 %v5790_v23  ;;  %v5401_v4 = vmul.f32 %v17507_v51, %v5400_v59  ;;  %v16510_v53 = vld [vmem:[#allocation11 + $0x224] ss:$16 sps:$4 sm:$0xff]   ;;  %v16513_v54 = vld [vmem:[#allocation11 + $0x22c] ss:$16 sps:$4 sm:$0xff]   ;;  %v16508_v55 = vld [vmem:[#allocation11 + $0x220] ss:$16 sps:$4 sm:$0xff]  }
0x1aa6   :  { %v5410_v20 = vmul.f32 %v17509_v60, %v5409_v17  ;;  %17520 = vrcp.f32 %v5791_v5  ;;  %v16514_v23 = vld [vmem:[#allocation11 + $0x240] ss:$16 sps:$4 sm:$0xff]   ;;  %v16517_v59 = vld [vmem:[#allocation11 + $0x248] ss:$16 sps:$4 sm:$0xff]   ;;  %v16522_v17 = vld [vmem:[#allocation11 + $0x264] ss:$16 sps:$4 sm:$0xff]  }
0x1aa7   :  { %v16525_v5 = vld [vmem:[#allocation11 + $0x26c] ss:$16 sps:$4 sm:$0xff]   ;;  %v16520_v6 = vld [vmem:[#allocation11 + $0x260] ss:$16 sps:$4 sm:$0xff]   ;;  %v16523_v9 = vld [vmem:[#allocation11 + $0x268] ss:$16 sps:$4 sm:$0xff]  }
0x1aad   :  { %v15303_v63 = vpop.f32.mrb[68].mxu1  ;;  %v17515_v56 = vpop.eup %17514 }
0x1aae   :  { %v15304_v26 = vpop.f32.mrb[69].mxu1  ;;  %v17517_v58 = vpop.eup %17516 }
0x1aaf   :  { %v15305_v62 = vadd.f32 %v15304_v26, %v15303_v63  ;;  %v15306_v16 = vpop.f32.mrb[70].mxu1  ;;  %v5407_v13 = vmul.f32 0.6931472, %v17517_v58  ;;  %v5382_v26 = vmax.f32 %v5376_v48, 0.0  ;;  %v17519_v42 = vpop.eup %17518  ;;  %v16519_v58 = vld [vmem:[#allocation11 + $0x24c] ss:$16 sps:$4 sm:$0xff]  }
0x1ab0   :  { %v15307_v27 = vpop.f32.mrb[71].mxu1  ;;  %v5765_v16 = vrot.slane %v19273_v61, %v18273_v2  ;;  %v17521_v47 = vpop.eup %17520  ;;  %v5796_v44 = vmul.f32 %v17519_v42, %v19281_v52  ;;  %v16551_v42 = vld [vmem:[#allocation13 + $0x2c0] sm:$0xff]  }
0x1ab1   :  { %v5756_v19 = vmul.f32 %v15305_v62, %v15283_v11  ;;  %v5398_v11 = vmul.f32 0.6931472, %v17515_v56  ;;  %v5413_v63 = vsel %vm5412_vm2, %v5410_v20, %v5407_v13  ;;  %v5383_v62 = vmax.f32 %v5378_v39, 0.0  ;;  %v16511_v56 = vld [vmem:[#allocation11 + $0x228] ss:$16 sps:$4 sm:$0xff]  }
0x1ab2   :  { %v5769_v27 = vrot.slane %v19273_v61, %v18291_v14  ;;  %v5775_v29 = vrot.slane %v5765_v16, %v18273_v2  ;;  %v5797_v61 = vmul.f32 %v17521_v47, %v19283_v22  ;;  %v16531_v13 = vld [vmem:[#allocation11 + $0x28c] ss:$16 sps:$4 sm:$0xff]   ;;  %v16529_v20 = vld [vmem:[#allocation11 + $0x288] ss:$16 sps:$4 sm:$0xff]   ;;  %v16540_v16 = vld [vmem:[#allocation11 + $0x2c4] ss:$16 sps:$4 sm:$0xff]  }
0x1ab3   :  { %v5757_v28 = vsel %vm2040_vm14, %v5756_v19, 0.0  ;;  %v5404_v24 = vsel %vm5403_vm1, %v5401_v4, %v5398_v11  ;;  %v16528_v11 = vld [vmem:[#allocation11 + $0x284] ss:$16 sps:$4 sm:$0xff]   ;;  %v16526_v4 = vld [vmem:[#allocation11 + $0x280] ss:$16 sps:$4 sm:$0xff]  }
0x1ab4   :  { %5758 = vadd.xlane.f32.xlu1 %v5757_v28  ;;  %v5414_v19 = vadd.f32 %v5404_v24, %v5382_v26  ;;  %v5415_v28 = vadd.f32 %v5413_v63, %v5383_v62  ;;  %v5779_v57 = vrot.slane %v5769_v27, %v18273_v2  ;;  %v16534_v24 = vld [vmem:[#allocation11 + $0x2a4] ss:$16 sps:$4 sm:$0xff]   ;;  %v16537_v63 = vld [vmem:[#allocation11 + $0x2ac] ss:$16 sps:$4 sm:$0xff]   ;;  %v16532_v26 = vld [vmem:[#allocation11 + $0x2a0] ss:$16 sps:$4 sm:$0xff]  }
0x1ab5   :  { %v16535_v62 = vld [vmem:[#allocation11 + $0x2a8] ss:$16 sps:$4 sm:$0xff]   ;;  %v16543_v27 = vld [vmem:[#allocation11 + $0x2cc] ss:$16 sps:$4 sm:$0xff]  }
0x1ab6   :  { %v5416_v34 = vsel %vm5384_vm3, %v5376_v48, %v5414_v19  ;;  %v5417_v37 = vsel %vm5385_vm4, %v5378_v39, %v5415_v28  ;;  %v16538_v19 = vld [vmem:[#allocation11 + $0x2c0] ss:$16 sps:$4 sm:$0xff]   ;;  %v16541_v28 = vld [vmem:[#allocation11 + $0x2c8] ss:$16 sps:$4 sm:$0xff]  }
0x1b41   :  { %v5759_v30 = vpop.xlane.xlu1 %5758 }
0x1b42   :  { %v5760_v0 = vmul.f32 %v5759_v30, %v5416_v34  ;;  %v5761_v46 = vmul.f32 %v5759_v30, %v5417_v37  ;;  %v16544_v30 = vld [vmem:[#allocation11 + $0x2e0] ss:$16 sps:$4 sm:$0xff]   ;;  %v16547_v34 = vld [vmem:[#allocation11 + $0x2e8] ss:$16 sps:$4 sm:$0xff]  }
0x1b43   :  { %v16550_v37 = vld [vmem:[#allocation13 + $0x240] sm:$0xff]  }
0x1b44   :  { %v5780_v1 = vadd.f32 %v5775_v29, %v5760_v0  ;;  %v5781_v40 = vadd.f32 %v5779_v57, %v5761_v46  ;;  %v16546_v29 = vld [vmem:[#allocation11 + $0x2e4] ss:$16 sps:$4 sm:$0xff]   ;;  %v16549_v57 = vld [vmem:[#allocation11 + $0x2ec] ss:$16 sps:$4 sm:$0xff]  }
0x1b46   :  { %v5782_v49 = vmul.f32 %v5780_v1, %v19285_v38  ;;  %v5783_v50 = vmul.f32 %v5781_v40, %v19287_v41  ;;  %v16504_v38 = vld [vmem:[#allocation11 + $0x204] ss:$16 sps:$4 sm:$0xff]   ;;  %v16507_v41 = vld [vmem:[#allocation11 + $0x20c] ss:$16 sps:$4 sm:$0xff]  }
0x1b47   :  { %6207 = vmatprep.subr.bf16.mxu1 %v16504_v38  ;;  %6248 = vmatprep.subr.bf16.mxu0 %v16507_v41  ;;  %v16559_v38 = vld [vmem:[#allocation13 + $0x2d0] sm:$0xff]  }
0x1b48   :  { %v5798_v43 = vmul.f32 %v5796_v44, %v5782_v49  ;;  %v5799_v45 = vmul.f32 %v5797_v61, %v5783_v50  ;;  %6208 = vmatpush1.bf16.msra.mxu1 %v16502_v31  ;;  %v5975_v49 = vrot.slane %v19214_v21, %v18293_v15  ;;  %v16560_v41 = vld [vmem:[#allocation13 + $0x210] sm:$0xff]  }
0x1b49   :  { %6209 = vmatprep.subr.bf16.mxu1 %v16510_v53  ;;  %v16561_v31 = vld [vmem:[#allocation13 + $0x290] sm:$0xff]   ;;  %v16563_v53 = vld [vmem:[#allocation13 + $0x2d8] sm:$0xff]  }
0x1b4a   :  { %v5801_v51 = vpack.c.bf16 %v5799_v45, %v5799_v45  ;;  %v5800_v60 = vpack.c.bf16 %v5798_v43, %v5798_v43 }
0x1b4c   :  { %5963 = vmatprep.mubr.bf16.mxu0 %v5801_v51  ;;  %6210 = vmatpush1.bf16.msra.mxu1 %v16508_v55  ;;  %v16552_v51 = vld [vmem:[#allocation13 + $0x200] sm:$0xff]   ;;  %v16565_v55 = vld [vmem:[#allocation13 + $0x298] sm:$0xff]  }
0x1b4d   :  { %5964 = vmatmul.mubr.bf16.vlgmr.msra.gmra.mrb[56].mxu0 %v5800_v60  ;;  %v16553_v60 = vld [vmem:[#allocation13 + $0x280] sm:$0xff]  }
0x1b4e   :  { %6280 = vmatprep.mubr.bf16.mxu0 %v17967_v35  ;;  %6249 = vmatpush1.bf16.msra.mxu0 %v16505_v33  ;;  %v16562_v33 = vld [vmem:[#allocation13 + $0x258] sm:$0xff]  }
0x1b4f   :  { %6250 = vmatprep.subr.bf16.mxu0 %v16513_v54  ;;  %v16564_v54 = vld [vmem:[#allocation13 + $0x218] sm:$0xff]  }
0x1b52   :  { %6251 = vmatpush1.bf16.msra.mxu0 %v16511_v56  ;;  %v16566_v56 = vld [vmem:[#allocation13 + $0x260] sm:$0xff]  }
0x1b53   :  { %6252 = vmatprep.subr.bf16.mxu0 %v16519_v58  ;;  %v16568_v58 = vld [vmem:[#allocation13 + $0x220] sm:$0xff]  }
0x1b56   :  { %6253 = vmatpush1.bf16.msra.mxu0 %v16517_v59  ;;  %v16570_v59 = vld [vmem:[#allocation13 + $0x268] sm:$0xff]  }
0x1b57   :  { %6254 = vmatprep.subr.bf16.mxu0 %v16525_v5  ;;  %v16572_v5 = vld [vmem:[#allocation13 + $0x228] sm:$0xff]  }
0x1b5a   :  { %6255 = vmatpush1.bf16.msra.mxu0 %v16523_v9  ;;  %v16574_v9 = vld [vmem:[#allocation13 + $0x270] sm:$0xff]  }
0x1b5b   :  { %6256 = vmatprep.subr.bf16.mxu0 %v16531_v13  ;;  %v16576_v13 = vld [vmem:[#allocation13 + $0x230] sm:$0xff]  }
0x1b5e   :  { %6257 = vmatpush1.bf16.msra.mxu0 %v16529_v20  ;;  %v16578_v20 = vld [vmem:[#allocation13 + $0x278] sm:$0xff]  }
0x1b5f   :  { %6258 = vmatprep.subr.bf16.mxu0 %v16537_v63  ;;  %v16580_v63 = vld [vmem:[#allocation13 + $0x238] sm:$0xff]  }
0x1b62   :  { %6259 = vmatpush1.bf16.msra.mxu0 %v16535_v62  ;;  %v13948_v62 = vld [vmem:[%s20533_s16 + $0x2] ss:$8 sm:$0xf] }
0x1b63   :  { %6260 = vmatprep.subr.bf16.mxu0 %v16543_v27  ;;  %v6038_v27 = vrot.slane %v13948_v62, %v18273_v2 }
0x1b66   :  { %6261 = vmatpush1.bf16.msra.mxu0 %v16541_v28  ;;  %v6042_v28 = vrot.slane %v13948_v62, %v18282_v8 }
0x1b67   :  { %6262 = vmatprep.subr.bf16.mxu0 %v16549_v57 }
0x1b6a   :  { %6263 = vmatpush1.bf16.msra.mxu0 %v16547_v34 }
0x1b6b   :  { %15353 = vmatprep.subr.bf16.mxu0 %v16551_v42 }
0x1c20   :  { %v15325_v48 = vpop.f32.mrb[56].mxu0 }
0x1c21   :  { %v15326_v39 = vpop.f32.mrb[57].mxu0 }
0x1c22   :  { %v15327_v32 = vadd.f32 %v15326_v39, %v15325_v48  ;;  %v15328_v7 = vpop.f32.mrb[58].mxu0  ;;  %v16554_v39 = vld [vmem:[#allocation13 + $0x248] sm:$0xff]  }
0x1c23   :  { %v15329_v36 = vpop.f32.mrb[59].mxu0  ;;  %v16556_v7 = vld [vmem:[#allocation13 + $0x208] sm:$0xff]  }
0x1c24   :  { %v19408_v52 = vadd.f32 %v15327_v32, %v19111_v25  ;;  %v16516_v25 = vld [vmem:[#allocation11 + $0x244] ss:$16 sps:$4 sm:$0xff]   ;;  %v16555_v32 = vld [vmem:[#allocation13 + $0x2c8] sm:$0xff]  }
0x1c25   :  { %6211 = vmatprep.subr.bf16.mxu1 %v16516_v25  ;;  %v16557_v36 = vld [vmem:[#allocation13 + $0x288] sm:$0xff]   ;;  %v16567_v25 = vld [vmem:[#allocation13 + $0x2e0] sm:$0xff]  }
0x1c26   :  { %v5977_v22 = vmul.f32 %v19408_v52, %v19408_v52  ;;  %6212 = vmatpush1.bf16.msra.mxu1 %v16514_v23  ;;  %v5976_v50 = vmul.f32 %v5975_v49, %v19408_v52  ;;  %v16569_v23 = vld [vmem:[#allocation13 + $0x2a0] sm:$0xff]  }
0x1c27   :  { %6213 = vmatprep.subr.bf16.mxu1 %v16522_v17  ;;  %v16571_v17 = vld [vmem:[#allocation13 + $0x2e8] sm:$0xff]  }
0x1c28   :  { %5978 = vadd.xlane.f32.xlu0 %v5977_v22  ;;  %v16558_v22 = vld [vmem:[#allocation13 + $0x250] sm:$0xff]  }
0x1c2a   :  { %6214 = vmatpush1.bf16.msra.mxu1 %v16520_v6  ;;  %v16573_v6 = vld [vmem:[#allocation13 + $0x2a8] sm:$0xff]  }
0x1c2b   :  { %6215 = vmatprep.subr.bf16.mxu1 %v16528_v11  ;;  %v16575_v11 = vld [vmem:[#allocation13 + $0x2f0] sm:$0xff]  }
0x1c2e   :  { %6216 = vmatpush1.bf16.msra.mxu1 %v16526_v4  ;;  %v16577_v4 = vld [vmem:[#allocation13 + $0x2b0] sm:$0xff]  }
0x1c2f   :  { %6217 = vmatprep.subr.bf16.mxu1 %v16534_v24  ;;  %v16579_v24 = vld [vmem:[#allocation13 + $0x2f8] sm:$0xff]  }
0x1c32   :  { %6218 = vmatpush1.bf16.msra.mxu1 %v16532_v26  ;;  %v16581_v26 = vld [vmem:[#allocation13 + $0x2b8] sm:$0xff]  }
0x1c33   :  { %6219 = vmatprep.subr.bf16.mxu1 %v16540_v16  ;;  %v6030_v16 = vrot.slane %v13948_v62, %v18275_v3 }
0x1c36   :  { %6220 = vmatpush1.bf16.msra.mxu1 %v16538_v19  ;;  %v6034_v19 = vrot.slane %v13948_v62, %v18293_v15 }
0x1c37   :  { %6221 = vmatprep.subr.bf16.mxu1 %v16546_v29 }
0x1c3a   :  { %6222 = vmatpush1.bf16.msra.mxu1 %v16544_v30 }
0x1c3b   :  { %15331 = vmatprep.subr.bf16.mxu1 %v16550_v37 }
0x1cb5   :  { %v5979_v0 = vpop.xlane.xlu0 %5978 }
0x1cb6   :  { %v5980_v46 = vadd.f32 1e-06, %v5979_v0 }
0x1cb8   :  { %17522 = vrsqrt.f32 %v5980_v46  ;;  %vm5983_vm5 = vcmp.eq.f32.partialorder %v5980_v46, inf  ;;  %v5986_v40 = vand.u32 2147483648, %v5980_v46  ;;  %vm5985_vm6 = vcmp.eq.f32.partialorder %v5980_v46, 0.0 }
0x1cc2   :  { %v17523_v47 = vpop.eup %17522 }
0x1cc3   :  { %v5982_v1 = vmul.f32 %v17523_v47, %v5980_v46 }
0x1cc5   :  { %v5984_v44 = vsel %vm5983_vm5, %v5980_v46, %v5982_v1 }
0x1cc6   :  { %v5987_v61 = vsel %vm5985_vm6, %v5986_v40, %v5984_v44 }
0x1cc7   :  { %17524 = vrcp.f32 %v5987_v61 }
0x1cd1   :  { %v17525_v43 = vpop.eup %17524 }
0x1cd2   :  { %v5989_v45 = vmul.f32 %v17525_v43, %v5976_v50 }
0x1cd4   :  { %v5990_v48 = vpack.c.bf16 %v5989_v45, %v5989_v45 }
0x1cd6   :  { %6240 = vmatmul.mubr.bf16.vlgmr.msra.gmra.mrb[72].mxu1 %v5990_v48  ;;  %6281 = vmatmul.mubr.bf16.vlgmr.msra.gmra.mrb[60].mxu0 %v5990_v48 }
0x1cd7   :  { %15332 = vmatpush3.bf16.msra.mxu1 %v16552_v51  ;;  %15354 = vmatpush3.bf16.msra.mxu0 %v16553_v60 }
0x1cd8   :  { %15333 = vmatprep.subr.bf16.mxu1 %v16554_v39  ;;  %15355 = vmatprep.subr.bf16.mxu0 %v16555_v32 }
0x1cdb   :  { %15334 = vmatpush3.bf16.msra.mxu1 %v16556_v7  ;;  %15356 = vmatpush3.bf16.msra.mxu0 %v16557_v36 }
0x1cdc   :  { %15335 = vmatprep.subr.bf16.mxu1 %v16558_v22  ;;  %15357 = vmatprep.subr.bf16.mxu0 %v16559_v38 }
0x1cdf   :  { %15336 = vmatpush3.bf16.msra.mxu1 %v16560_v41  ;;  %15358 = vmatpush3.bf16.msra.mxu0 %v16561_v31 }
0x1ce0   :  { %15337 = vmatprep.subr.bf16.mxu1 %v16562_v33  ;;  %15359 = vmatprep.subr.bf16.mxu0 %v16563_v53 }
0x1ce3   :  { %15338 = vmatpush3.bf16.msra.mxu1 %v16564_v54  ;;  %15360 = vmatpush3.bf16.msra.mxu0 %v16565_v55 }
0x1ce4   :  { %15339 = vmatprep.subr.bf16.mxu1 %v16566_v56  ;;  %15361 = vmatprep.subr.bf16.mxu0 %v16567_v25 }
0x1ce7   :  { %15340 = vmatpush3.bf16.msra.mxu1 %v16568_v58  ;;  %15362 = vmatpush3.bf16.msra.mxu0 %v16569_v23 }
0x1ce8   :  { %15341 = vmatprep.subr.bf16.mxu1 %v16570_v59  ;;  %15363 = vmatprep.subr.bf16.mxu0 %v16571_v17  ;;  %v6381_v17 = vrot.slane %v19214_v21, %v18273_v2  ;;  %v16584_v21 = vld [vmem:[%s20571_s0 + $0x304] ss:$16 sps:$4 sm:$0xff]  }
0x1ceb   :  { %15342 = vmatpush3.bf16.msra.mxu1 %v16572_v5  ;;  %15364 = vmatpush3.bf16.msra.mxu0 %v16573_v6 }
0x1cec   :  { %15343 = vmatprep.subr.bf16.mxu1 %v16574_v9  ;;  %15365 = vmatprep.subr.bf16.mxu0 %v16575_v11 }
0x1cef   :  { %15344 = vmatpush3.bf16.msra.mxu1 %v16576_v13  ;;  %15366 = vmatpush3.bf16.msra.mxu0 %v16577_v4 }
0x1cf0   :  { %15345 = vmatprep.subr.bf16.mxu1 %v16578_v20  ;;  %15367 = vmatprep.subr.bf16.mxu0 %v16579_v24 }
0x1cf3   :  { %15346 = vmatpush3.bf16.msra.mxu1 %v16580_v63  ;;  %15368 = vmatpush3.bf16.msra.mxu0 %v16581_v26 }
0x1cf4   :  { %6871 = vmatprep.subr.bf16.mxu1 %v16584_v21  ;;  %v16642_v21 = vld [vmem:[#allocation10 + $0x340] ss:$8 sps:$4 sm:$0xff]  }
0x1da9   :  { %v6241_v29 = vpop.f32.mrb[72].mxu1  ;;  %v6282_v57 = vpop.f32.mrb[60].mxu0 }
0x1daa   :  { %v6242_v30 = vadd.f32 %v6241_v29, %v6030_v16  ;;  %v6283_v34 = vadd.f32 %v6282_v57, %v6038_v27  ;;  %v6243_v37 = vpop.f32.mrb[73].mxu1  ;;  %v6284_v42 = vpop.f32.mrb[61].mxu0  ;;  %v16590_v29 = vld [vmem:[%s20571_s0 + $0x324] ss:$16 sps:$4 sm:$0xff]   ;;  %v16593_v57 = vld [vmem:[%s20571_s0 + $0x32c] ss:$16 sps:$4 sm:$0xff]  }
0x1dab   :  { %v6244_v0 = vadd.f32 %v6243_v37, %v6034_v19  ;;  %v6285_v46 = vadd.f32 %v6284_v42, %v6042_v28  ;;  %v6245_v47 = vpop.f32.mrb[74].mxu1  ;;  %v6286_v1 = vpop.f32.mrb[62].mxu0  ;;  %v16587_v19 = vld [vmem:[%s20571_s0 + $0x30c] ss:$16 sps:$4 sm:$0xff]   ;;  %v16582_v28 = vld [vmem:[%s20571_s0 + $0x300] ss:$16 sps:$4 sm:$0xff]  }
0x1dac   :  { %v6293_v40 = vmul.f32 0.70710677, %v6242_v30  ;;  %v6295_v44 = vmul.f32 0.70710677, %v6283_v34  ;;  %v6246_v50 = vpop.f32.mrb[75].mxu1  ;;  %v6287_v43 = vpop.f32.mrb[63].mxu0  ;;  %6912 = vmatprep.subr.bf16.mxu0 %v16587_v19 }
0x1dad   :  { %v6294_v61 = vmul.f32 0.70710677, %v6244_v0  ;;  %v6296_v49 = vmul.f32 0.70710677, %v6285_v46  ;;  %v6289_v39 = vmul.f32 0.5, %v6242_v30  ;;  %v6291_v36 = vmul.f32 0.5, %v6283_v34 }
0x1dae   :  { %17526 = verf.f32 %v6293_v40  ;;  %v6290_v22 = vmul.f32 0.5, %v6244_v0  ;;  %v6292_v31 = vmul.f32 0.5, %v6285_v46  ;;  %v16588_v30 = vld [vmem:[%s20571_s0 + $0x320] ss:$16 sps:$4 sm:$0xff]   ;;  %v16591_v34 = vld [vmem:[%s20571_s0 + $0x328] ss:$16 sps:$4 sm:$0xff]  }
0x1daf   :  { %17528 = verf.f32 %v6295_v44  ;;  %v16596_v37 = vld [vmem:[%s20571_s0 + $0x344] ss:$16 sps:$4 sm:$0xff]   ;;  %v16599_v42 = vld [vmem:[%s20571_s0 + $0x34c] ss:$16 sps:$4 sm:$0xff]   ;;  %v16594_v0 = vld [vmem:[%s20571_s0 + $0x340] ss:$16 sps:$4 sm:$0xff]  }
0x1db0   :  { %17530 = verf.f32 %v6294_v61  ;;  %v16597_v46 = vld [vmem:[%s20571_s0 + $0x348] ss:$16 sps:$4 sm:$0xff]   ;;  %v16602_v47 = vld [vmem:[%s20571_s0 + $0x364] ss:$16 sps:$4 sm:$0xff]   ;;  %v16605_v1 = vld [vmem:[%s20571_s0 + $0x36c] ss:$16 sps:$4 sm:$0xff]  }
0x1db1   :  { %17532 = verf.f32 %v6296_v49  ;;  %v16600_v40 = vld [vmem:[%s20571_s0 + $0x360] ss:$16 sps:$4 sm:$0xff]   ;;  %v16603_v44 = vld [vmem:[%s20571_s0 + $0x368] ss:$16 sps:$4 sm:$0xff]   ;;  %v16608_v49 = vld [vmem:[%s20571_s0 + $0x384] ss:$16 sps:$4 sm:$0xff]  }
0x1db2   :  { %v16606_v61 = vld [vmem:[%s20571_s0 + $0x380] ss:$16 sps:$4 sm:$0xff]   ;;  %v16609_v50 = vld [vmem:[%s20571_s0 + $0x388] ss:$16 sps:$4 sm:$0xff]   ;;  %v16611_v43 = vld [vmem:[%s20571_s0 + $0x38c] ss:$16 sps:$4 sm:$0xff]  }
0x1db3   :  { %v16647_v19 = vld [vmem:[#allocation10 + $0x354] ss:$8 sps:$4 sm:$0xff]  }
0x1db8   :  { %v17527_v45 = vpop.eup %17526 }
0x1db9   :  { %v17529_v51 = vpop.eup %17528  ;;  %v6301_v60 = vadd.f32 1.0, %v17527_v45  ;;  %v16614_v45 = vld [vmem:[%s20571_s0 + $0x3a4] ss:$16 sps:$4 sm:$0xff]  }
0x1dba   :  { %v17531_v48 = vpop.eup %17530  ;;  %v6303_v32 = vadd.f32 1.0, %v17529_v51  ;;  %v16617_v51 = vld [vmem:[%s20571_s0 + $0x3ac] ss:$16 sps:$4 sm:$0xff]  }
0x1dbb   :  { %v17533_v7 = vpop.eup %17532  ;;  %v6302_v38 = vadd.f32 1.0, %v17531_v48  ;;  %v6305_v41 = vmul.f32 %v6301_v60, %v6289_v39  ;;  %v16612_v60 = vld [vmem:[%s20571_s0 + $0x3a0] ss:$16 sps:$4 sm:$0xff]   ;;  %v16615_v48 = vld [vmem:[%s20571_s0 + $0x3a8] ss:$16 sps:$4 sm:$0xff]  }
0x1dbc   :  { %v6304_v33 = vadd.f32 1.0, %v17533_v7  ;;  %v6307_v53 = vmul.f32 %v6303_v32, %v6291_v36  ;;  %v16620_v39 = vld [vmem:[%s20571_s0 + $0x3c4] ss:$16 sps:$4 sm:$0xff]   ;;  %v16623_v32 = vld [vmem:[%s20571_s0 + $0x3cc] ss:$16 sps:$4 sm:$0xff]  }
0x1dbd   :  { %v6306_v54 = vmul.f32 %v6302_v38, %v6290_v22  ;;  %v6309_v25 = vpack.c.bf16 %v6305_v41, %v6305_v41  ;;  %v16618_v7 = vld [vmem:[%s20571_s0 + $0x3c0] ss:$16 sps:$4 sm:$0xff]   ;;  %v16621_v36 = vld [vmem:[%s20571_s0 + $0x3c8] ss:$16 sps:$4 sm:$0xff]   ;;  %v16626_v22 = vld [vmem:[%s20571_s0 + $0x3e4] ss:$16 sps:$4 sm:$0xff]  }
0x1dbe   :  { %v6308_v55 = vmul.f32 %v6304_v33, %v6292_v31  ;;  %v6311_v23 = vpack.c.bf16 %v6307_v53, %v6307_v53  ;;  %v16629_v38 = vld [vmem:[%s20571_s0 + $0x3ec] ss:$16 sps:$4 sm:$0xff]   ;;  %v16624_v41 = vld [vmem:[%s20571_s0 + $0x3e0] ss:$16 sps:$4 sm:$0xff]   ;;  %v16627_v31 = vld [vmem:[%s20571_s0 + $0x3e8] ss:$16 sps:$4 sm:$0xff]  }
0x1dbf   :  { %v6310_v56 = vpack.c.bf16 %v6306_v54, %v6306_v54  ;;  %v16632_v33 = vld [vmem:[#allocation10 + $0x304] ss:$8 sps:$4 sm:$0xff]  }
0x1dc0   :  { %v6312_v58 = vpack.c.bf16 %v6308_v55, %v6308_v55 }
0x1dc1   :  { %6606 = vmatprep.mubr.bf16.mxu1 %v6310_v56 }
0x1dc2   :  { %6646 = vmatprep.mubr.bf16.mxu0 %v6312_v58  ;;  %6607 = vmatmul.mubr.bf16.vlgmr.msra.gmra.mrb[76].mxu1 %v6309_v25 }
0x1dc3   :  { %6647 = vmatmul.mubr.bf16.vlgmr.msra.gmra.mrb[64].mxu0 %v6311_v23  ;;  %6903 = vmatprep.mubr.bf16.mxu1 %v17967_v35 }
0x1dc4   :  { %6944 = vmatprep.mubr.bf16.mxu0 %v17967_v35  ;;  %6872 = vmatpush1.bf16.msra.mxu1 %v16582_v28  ;;  %v16645_v28 = vld [vmem:[#allocation10 + $0x350] ss:$8 sps:$4 sm:$0xff]  }
0x1dc5   :  { %6873 = vmatprep.subr.bf16.mxu1 %v16590_v29  ;;  %v16648_v29 = vld [vmem:[#allocation10 + $0x360] ss:$8 sps:$4 sm:$0xff]  }
0x1dc8   :  { %6874 = vmatpush1.bf16.msra.mxu1 %v16588_v30  ;;  %v16651_v30 = vld [vmem:[#allocation10 + $0x370] ss:$8 sps:$4 sm:$0xff]  }
0x1dc9   :  { %6875 = vmatprep.subr.bf16.mxu1 %v16596_v37  ;;  %v16657_v37 = vld [vmem:[#allocation10 + $0x384] ss:$8 sps:$4 sm:$0xff]  }
0x1dcc   :  { %6876 = vmatpush1.bf16.msra.mxu1 %v16594_v0  ;;  %v16655_v0 = vld [vmem:[#allocation10 + $0x380] ss:$8 sps:$4 sm:$0xff]  }
0x1dcd   :  { %6877 = vmatprep.subr.bf16.mxu1 %v16602_v47  ;;  %v16662_v47 = vld [vmem:[#allocation10 + $0x394] ss:$8 sps:$4 sm:$0xff]  }
0x1dd0   :  { %6878 = vmatpush1.bf16.msra.mxu1 %v16600_v40  ;;  %v16660_v40 = vld [vmem:[#allocation10 + $0x390] ss:$8 sps:$4 sm:$0xff]  }
0x1dd1   :  { %6879 = vmatprep.subr.bf16.mxu1 %v16608_v49  ;;  %v16668_v49 = vld [vmem:[%s20526_s9 + $0x190] sm:$0xff]  }
0x1dd4   :  { %6880 = vmatpush1.bf16.msra.mxu1 %v16606_v61  ;;  %v16667_v61 = vld [vmem:[#allocation10 + $0x3a4] ss:$8 sps:$4 sm:$0xff]  }
0x1dd5   :  { %6881 = vmatprep.subr.bf16.mxu1 %v16614_v45  ;;  %v16672_v45 = vld [vmem:[#allocation10 + $0x3b4] ss:$8 sps:$4 sm:$0xff]  }
0x1dd8   :  { %6882 = vmatpush1.bf16.msra.mxu1 %v16612_v60  ;;  %v16670_v60 = vld [vmem:[#allocation10 + $0x3b0] ss:$8 sps:$4 sm:$0xff]  }
0x1dd9   :  { %6883 = vmatprep.subr.bf16.mxu1 %v16620_v39  ;;  %v16677_v39 = vld [vmem:[#allocation10 + $0x3c4] ss:$8 sps:$4 sm:$0xff]  }
0x1ddc   :  { %6884 = vmatpush1.bf16.msra.mxu1 %v16618_v7  ;;  %v16675_v7 = vld [vmem:[#allocation10 + $0x3c0] ss:$8 sps:$4 sm:$0xff]  }
0x1ddd   :  { %6885 = vmatprep.subr.bf16.mxu1 %v16626_v22  ;;  %v16682_v22 = vld [vmem:[#allocation10 + $0x3d4] ss:$8 sps:$4 sm:$0xff]  }
0x1de0   :  { %6886 = vmatpush1.bf16.msra.mxu1 %v16624_v41  ;;  %v16680_v41 = vld [vmem:[#allocation10 + $0x3d0] ss:$8 sps:$4 sm:$0xff]  }
0x1de1   :  { %7201 = vmatprep.subr.bf16.mxu1 %v16632_v33  ;;  %v16687_v33 = vld [vmem:[#allocation10 + $0x3e4] ss:$8 sps:$4 sm:$0xff]  }
0x1e95   :  { %v15347_v59 = vpop.f32.mrb[76].mxu1 }
0x1e96   :  { %v15369_v5 = vpop.f32.mrb[64].mxu0  ;;  %v15348_v6 = vpop.f32.mrb[77].mxu1 }
0x1e97   :  { %v15349_v9 = vadd.f32 %v15348_v6, %v15347_v59  ;;  %v15370_v11 = vpop.f32.mrb[65].mxu0  ;;  %v15350_v13 = vpop.f32.mrb[78].mxu1  ;;  %v19530_v59 = vld [vmem:[%s20532_s15 + $0xc] sm:$0x7] }
0x1e98   :  { %v15371_v4 = vadd.f32 %v15370_v11, %v15369_v5  ;;  %v15372_v20 = vpop.f32.mrb[66].mxu0  ;;  %v15351_v24 = vpop.f32.mrb[79].mxu1  ;;  %v16630_v11 = vld [vmem:[#allocation10 + $0x300] ss:$8 sps:$4 sm:$0xff]  }
0x1e99   :  { %v6609_v63 = vadd.f32 %v15349_v9, %v6381_v17  ;;  %v15373_v26 = vpop.f32.mrb[67].mxu0  ;;  %v6662_v17 = vrot.slane %v19530_v59, %v18275_v3  ;;  %v16633_v20 = vld [vmem:[#allocation10 + $0x310] ss:$8 sps:$4 sm:$0xff]   ;;  %v16638_v24 = vld [vmem:[#allocation10 + $0x324] ss:$8 sps:$4 sm:$0xff]  }
0x1e9a   :  { %v16641_v26 = vld [vmem:[#allocation10 + $0x334] ss:$8 sps:$4 sm:$0xff]  }
0x1e9b   :  { %v6649_v62 = vadd.f32 %v15371_v4, %v6609_v63  ;;  %v16635_v4 = vld [vmem:[#allocation10 + $0x314] ss:$8 sps:$4 sm:$0xff]   ;;  %v16636_v63 = vld [vmem:[#allocation10 + $0x320] ss:$8 sps:$4 sm:$0xff]  }
0x1e9d   :  { %v19427_v16 = vadd.f32 %v6649_v62, %v19408_v52  ;;  %v16585_v52 = vld [vmem:[%s20571_s0 + $0x308] ss:$16 sps:$4 sm:$0xff]   ;;  %v16639_v62 = vld [vmem:[#allocation10 + $0x330] ss:$8 sps:$4 sm:$0xff]  }
0x1e9e   :  { %6913 = vmatpush1.bf16.msra.mxu0 %v16585_v52  ;;  %v16650_v52 = vld [vmem:[#allocation10 + $0x364] ss:$8 sps:$4 sm:$0xff]  }
0x1e9f   :  { %v6664_v27 = vmul.f32 %v19427_v16, %v19427_v16  ;;  %6914 = vmatprep.subr.bf16.mxu0 %v16593_v57  ;;  %v6663_v5 = vmul.f32 %v6662_v17, %v19427_v16  ;;  %v16653_v57 = vld [vmem:[#allocation10 + $0x374] ss:$8 sps:$4 sm:$0xff]  }
0x1ea0   :  { %v19589_v17 = vld [vmem:[%s20531_s14 + $0x18] sm:$0x77] }
0x1ea1   :  { %6665 = vadd.xlane.f32.xlu1 %v6664_v27  ;;  %v16644_v27 = vld [vmem:[#allocation10 + $0x344] ss:$8 sps:$4 sm:$0xff]  }
0x1ea2   :  { %6915 = vmatpush1.bf16.msra.mxu0 %v16591_v34  ;;  %v16654_v34 = vld [vmem:[%s20526_s9 + $0x1c0] sm:$0xff]  }
0x1ea3   :  { %6916 = vmatprep.subr.bf16.mxu0 %v16599_v42  ;;  %v16658_v42 = vld [vmem:[%s20526_s9 + $0x180] sm:$0xff]  }
0x1ea6   :  { %6917 = vmatpush1.bf16.msra.mxu0 %v16597_v46  ;;  %v16659_v46 = vld [vmem:[%s20526_s9 + $0x1c8] sm:$0xff]  }
0x1ea7   :  { %6918 = vmatprep.subr.bf16.mxu0 %v16605_v1  ;;  %v16663_v1 = vld [vmem:[%s20526_s9 + $0x188] sm:$0xff]  }
0x1eaa   :  { %6919 = vmatpush1.bf16.msra.mxu0 %v16603_v44  ;;  %v16664_v44 = vld [vmem:[%s20526_s9 + $0x1d0] sm:$0xff]  }
0x1eab   :  { %6920 = vmatprep.subr.bf16.mxu0 %v16611_v43  ;;  %v16669_v43 = vld [vmem:[%s20526_s9 + $0x1d8] sm:$0xff]  }
0x1eae   :  { %6921 = vmatpush1.bf16.msra.mxu0 %v16609_v50  ;;  %v16665_v50 = vld [vmem:[#allocation10 + $0x3a0] ss:$8 sps:$4 sm:$0xff]  }
0x1eaf   :  { %6922 = vmatprep.subr.bf16.mxu0 %v16617_v51  ;;  %v16673_v51 = vld [vmem:[%s20526_s9 + $0x198] sm:$0xff]  }
0x1eb2   :  { %6923 = vmatpush1.bf16.msra.mxu0 %v16615_v48  ;;  %v16674_v48 = vld [vmem:[%s20526_s9 + $0x1e0] sm:$0xff]  }
0x1eb3   :  { %6924 = vmatprep.subr.bf16.mxu0 %v16623_v32  ;;  %v16678_v32 = vld [vmem:[%s20526_s9 + $0x1a0] sm:$0xff]  }
0x1eb6   :  { %6925 = vmatpush1.bf16.msra.mxu0 %v16621_v36  ;;  %v16679_v36 = vld [vmem:[%s20526_s9 + $0x1e8] sm:$0xff]  }
0x1eb7   :  { %6926 = vmatprep.subr.bf16.mxu0 %v16629_v38  ;;  %v16683_v38 = vld [vmem:[%s20526_s9 + $0x1a8] sm:$0xff]  }
0x1eba   :  { %6927 = vmatpush1.bf16.msra.mxu0 %v16627_v31  ;;  %v16684_v31 = vld [vmem:[%s20526_s9 + $0x1f0] sm:$0xff]  }
0x1ebb   :  { %15375 = vmatprep.subr.bf16.mxu0 %v16654_v34 }
0x1f2e   :  { %v6666_v53 = vpop.xlane.xlu1 %6665 }
0x1f2f   :  { %v6667_v54 = vadd.f32 1e-06, %v6666_v53  ;;  %v16688_v53 = vld [vmem:[%s20526_s9 + $0x1b0] sm:$0xff]  }
0x1f31   :  { %17534 = vrsqrt.f32 %v6667_v54  ;;  %vm6670_vm7 = vcmp.eq.f32.partialorder %v6667_v54, inf  ;;  %v6673_v25 = vand.u32 2147483648, %v6667_v54  ;;  %vm6672_vm9 = vcmp.eq.f32.partialorder %v6667_v54, 0.0 }
0x1f3b   :  { %v17535_v55 = vpop.eup %17534 }
0x1f3c   :  { %v6669_v56 = vmul.f32 %v17535_v55, %v6667_v54  ;;  %v16689_v55 = vld [vmem:[%s20526_s9 + $0x1f8] sm:$0xff]  }
0x1f3e   :  { %v6671_v58 = vsel %vm6670_vm7, %v6667_v54, %v6669_v56  ;;  %v16685_v54 = vld [vmem:[#allocation10 + $0x3e0] ss:$8 sps:$4 sm:$0xff]   ;;  %v16692_v56 = vld [vmem:[#allocation10 + $0x3f4] ss:$8 sps:$4 sm:$0xff]  }
0x1f3f   :  { %v6674_v23 = vsel %vm6672_vm9, %v6673_v25, %v6671_v58  ;;  %v16693_v25 = vld [vmem:[%s20526_s9 + $0x1b8] sm:$0xff]  }
0x1f40   :  { %17536 = vrcp.f32 %v6674_v23  ;;  %v16690_v58 = vld [vmem:[#allocation10 + $0x3f0] ss:$8 sps:$4 sm:$0xff]   ;;  %v16694_v23 = vld [vmem:[%s20527_s10 + $0x1c0] sm:$0xff]  }
0x1f4a   :  { %v17537_v6 = vpop.eup %17536 }
0x1f4b   :  { %v6676_v9 = vmul.f32 %v17537_v6, %v6663_v5  ;;  %v6957_v5 = vrot.slane %v19589_v17, %v18275_v3  ;;  %v6961_v6 = vrot.slane %v19589_v17, %v18285_v10 }
0x1f4d   :  { %v6677_v13 = vpack.c.bf16 %v6676_v9, %v6676_v9  ;;  %v6967_v9 = vrot.slane %v6957_v5, %v18275_v3 }
0x1f4f   :  { %6904 = vmatmul.mubr.bf16.vlgmr.msra.gmra.mrb[80].mxu1 %v6677_v13  ;;  %6945 = vmatmul.mubr.bf16.vlgmr.msra.gmra.mrb[68].mxu0 %v6677_v13 }
0x1f50   :  { %7202 = vmatpush1.bf16.msra.mxu1 %v16630_v11  ;;  %15376 = vmatpush3.bf16.msra.mxu0 %v16658_v42  ;;  %v6971_v11 = vrot.slane %v6961_v6, %v18275_v3 }
0x1f51   :  { %7203 = vmatprep.subr.bf16.mxu1 %v16635_v4  ;;  %15377 = vmatprep.subr.bf16.mxu0 %v16659_v46 }
0x1f54   :  { %7204 = vmatpush1.bf16.msra.mxu1 %v16633_v20  ;;  %15378 = vmatpush3.bf16.msra.mxu0 %v16663_v1  ;;  %v16695_v1 = vld [vmem:[%s20527_s10 + $0x180] sm:$0xff]  }
0x1f55   :  { %7205 = vmatprep.subr.bf16.mxu1 %v16638_v24  ;;  %15379 = vmatprep.subr.bf16.mxu0 %v16664_v44  ;;  %v16696_v44 = vld [vmem:[%s20527_s10 + $0x1c8] sm:$0xff]  }
0x1f58   :  { %7206 = vmatpush1.bf16.msra.mxu1 %v16636_v63  ;;  %15380 = vmatpush3.bf16.msra.mxu0 %v16668_v49  ;;  %v16698_v49 = vld [vmem:[%s20527_s10 + $0x1d0] sm:$0xff]  }
0x1f59   :  { %7207 = vmatprep.subr.bf16.mxu1 %v16641_v26  ;;  %15381 = vmatprep.subr.bf16.mxu0 %v16669_v43  ;;  %v16700_v43 = vld [vmem:[%s20527_s10 + $0x1d8] sm:$0xff]  }
0x1f5c   :  { %7208 = vmatpush1.bf16.msra.mxu1 %v16639_v62  ;;  %15382 = vmatpush3.bf16.msra.mxu0 %v16673_v51  ;;  %v16702_v51 = vld [vmem:[%s20527_s10 + $0x1e0] sm:$0xff]  }
0x1f5d   :  { %7209 = vmatprep.subr.bf16.mxu1 %v16644_v27  ;;  %15383 = vmatprep.subr.bf16.mxu0 %v16674_v48  ;;  %v16704_v48 = vld [vmem:[%s20527_s10 + $0x1e8] sm:$0xff]  }
0x1f60   :  { %7210 = vmatpush1.bf16.msra.mxu1 %v16642_v21  ;;  %15384 = vmatpush3.bf16.msra.mxu0 %v16678_v32  ;;  %v16706_v32 = vld [vmem:[%s20527_s10 + $0x1f0] sm:$0xff]  }
0x1f61   :  { %7211 = vmatprep.subr.bf16.mxu1 %v16647_v19  ;;  %15385 = vmatprep.subr.bf16.mxu0 %v16679_v36  ;;  %v16708_v36 = vld [vmem:[%s20527_s10 + $0x1f8] sm:$0xff]  }
0x1f64   :  { %7212 = vmatpush1.bf16.msra.mxu1 %v16645_v28  ;;  %15386 = vmatpush3.bf16.msra.mxu0 %v16683_v38  ;;  %v16710_v38 = vld [vmem:[%s20528_s11 + $0x1c0] sm:$0xff]  }
0x1f65   :  { %7213 = vmatprep.subr.bf16.mxu1 %v16650_v52  ;;  %15387 = vmatprep.subr.bf16.mxu0 %v16684_v31  ;;  %v16712_v31 = vld [vmem:[%s20528_s11 + $0x1c8] sm:$0xff]  }
0x1f68   :  { %7214 = vmatpush1.bf16.msra.mxu1 %v16648_v29  ;;  %15388 = vmatpush3.bf16.msra.mxu0 %v16688_v53  ;;  %v16714_v53 = vld [vmem:[%s20528_s11 + $0x1d0] sm:$0xff]  }
0x1f69   :  { %7215 = vmatprep.subr.bf16.mxu1 %v16653_v57  ;;  %15389 = vmatprep.subr.bf16.mxu0 %v16689_v55  ;;  %v16716_v55 = vld [vmem:[%s20528_s11 + $0x1d8] sm:$0xff]  }
0x1f6c   :  { %7216 = vmatpush1.bf16.msra.mxu1 %v16651_v30  ;;  %15390 = vmatpush3.bf16.msra.mxu0 %v16693_v25  ;;  %v16718_v25 = vld [vmem:[%s20528_s11 + $0x1e0] sm:$0xff]  }
0x1f6d   :  { %7217 = vmatprep.subr.bf16.mxu1 %v16657_v37  ;;  %15397 = vmatprep.subr.bf16.mxu0 %v16694_v23 }
0x1f70   :  { %7218 = vmatpush1.bf16.msra.mxu1 %v16655_v0 }
0x1f71   :  { %7219 = vmatprep.subr.bf16.mxu1 %v16662_v47 }
0x1f74   :  { %7220 = vmatpush1.bf16.msra.mxu1 %v16660_v40 }
0x1f75   :  { %7221 = vmatprep.subr.bf16.mxu1 %v16667_v61  ;;  %v16697_v61 = vld [vmem:[%s20527_s10 + $0x188] sm:$0xff]  }
0x1f78   :  { %7222 = vmatpush1.bf16.msra.mxu1 %v16665_v50  ;;  %v16699_v50 = vld [vmem:[%s20527_s10 + $0x190] sm:$0xff]  }
0x1f79   :  { %7223 = vmatprep.subr.bf16.mxu1 %v16672_v45  ;;  %v16701_v45 = vld [vmem:[%s20527_s10 + $0x198] sm:$0xff]  }
0x1f7c   :  { %7224 = vmatpush1.bf16.msra.mxu1 %v16670_v60  ;;  %v16703_v60 = vld [vmem:[%s20527_s10 + $0x1a0] sm:$0xff]  }
0x1f7d   :  { %7225 = vmatprep.subr.bf16.mxu1 %v16677_v39  ;;  %v16705_v39 = vld [vmem:[%s20527_s10 + $0x1a8] sm:$0xff]  }
0x1f80   :  { %7226 = vmatpush1.bf16.msra.mxu1 %v16675_v7  ;;  %v16707_v7 = vld [vmem:[%s20527_s10 + $0x1b0] sm:$0xff]  }
0x1f81   :  { %7227 = vmatprep.subr.bf16.mxu1 %v16682_v22  ;;  %v16709_v22 = vld [vmem:[%s20527_s10 + $0x1b8] sm:$0xff]  }
0x1f84   :  { %7228 = vmatpush1.bf16.msra.mxu1 %v16680_v41  ;;  %v16711_v41 = vld [vmem:[%s20528_s11 + $0x180] sm:$0xff]  }
0x1f85   :  { %7229 = vmatprep.subr.bf16.mxu1 %v16687_v33  ;;  %v16713_v33 = vld [vmem:[%s20528_s11 + $0x188] sm:$0xff]  }
0x1f88   :  { %7230 = vmatpush1.bf16.msra.mxu1 %v16685_v54  ;;  %v16715_v54 = vld [vmem:[%s20528_s11 + $0x190] sm:$0xff]  }
0x1f89   :  { %7231 = vmatprep.subr.bf16.mxu1 %v16692_v56  ;;  %v16717_v56 = vld [vmem:[%s20528_s11 + $0x198] sm:$0xff]  }
0x1f8c   :  { %7232 = vmatpush1.bf16.msra.mxu1 %v16690_v58  ;;  %v16719_v58 = vld [vmem:[%s20528_s11 + $0x1a0] sm:$0xff]  }
0x1f8d   :  { %15419 = vmatprep.subr.bf16.mxu1 %v16710_v38 }
0x2022   :  { %v6905_v13 = vpop.f32.mrb[80].mxu1  ;;  %v19597_v4 = vpop.f32.mrb[68].mxu0 }
0x2023   :  { %v6972_v20 = vadd.f32 %v6967_v9, %v6905_v13  ;;  %v6907_v24 = vpop.f32.mrb[81].mxu1  ;;  %v19599_v63 = vpop.f32.mrb[69].mxu0 }
0x2024   :  { %v6973_v26 = vadd.f32 %v6971_v11, %v6907_v24  ;;  %v6909_v62 = vpop.f32.mrb[82].mxu1  ;;  %v6950_v27 = vpop.f32.mrb[70].mxu0 }
0x2025   :  { %v14079_v21 = vmul.f32 -1.442695, %v6972_v20  ;;  %v6910_v19 = vpop.f32.mrb[83].mxu1  ;;  %v6951_v28 = vpop.f32.mrb[71].mxu0 }
0x2026   :  { %v14080_v52 = vmul.f32 -1.442695, %v6973_v26 }
0x2027   :  { %17538 = vpow2.f32 %v14079_v21 }
0x2028   :  { %17540 = vpow2.f32 %v14080_v52 }
0x2031   :  { %v17539_v29 = vpop.eup %17538 }
0x2032   :  { %v17541_v57 = vpop.eup %17540  ;;  %v6980_v30 = vadd.f32 1.0, %v17539_v29 }
0x2033   :  { %v6981_v34 = vadd.f32 1.0, %v17541_v57  ;;  %v16720_v57 = vld [vmem:[%s20528_s11 + $0x1e8] sm:$0xff]  }
0x2034   :  { %17542 = vrcp.f32 %v6980_v30  ;;  %v16721_v30 = vld [vmem:[%s20528_s11 + $0x1a8] sm:$0xff]  }
0x2035   :  { %17544 = vrcp.f32 %v6981_v34  ;;  %v16722_v34 = vld [vmem:[%s20528_s11 + $0x1f0] sm:$0xff]  }
0x203e   :  { %v17543_v37 = vpop.eup %17542 }
0x203f   :  { %v17545_v42 = vpop.eup %17544  ;;  %v19601_v0 = vmul.f32 %v17543_v37, %v6972_v20  ;;  %v16723_v37 = vld [vmem:[%s20528_s11 + $0x1b0] sm:$0xff]  }
0x2040   :  { %v19603_v46 = vmul.f32 %v17545_v42, %v6973_v26  ;;  %v16724_v42 = vld [vmem:[%s20528_s11 + $0x1f8] sm:$0xff]  }
0x2041   :  { %v6988_v40 = vpack.c.bf16 %v19601_v0, %v19601_v0 }
0x2042   :  { %v6989_v47 = vpack.c.bf16 %v19603_v46, %v19603_v46 }
0x2044   :  { %7233 = vmatprep.mubr.bf16.mxu1 %v6989_v47  ;;  %7439 = vmatprep.mubr.bf16.mxu0 %v6989_v47 }
0x2045   :  { %7234 = vmatmul.mubr.bf16.vlgmr.msra.gmra.mrb[84].mxu1 %v6988_v40  ;;  %7440 = vmatmul.mubr.bf16.vlgmr.msra.gmra.mrb[72].mxu0 %v6988_v40 }
0x2046   :  { %15398 = vmatpush3.bf16.msra.mxu0 %v16695_v1  ;;  %7608 = vmatprep.mubr.bf16.mxu0 %v6989_v47  ;;  %v16725_v47 = vld [vmem:[%s20528_s11 + $0x1b8] sm:$0xff]   ;;  %v7026_v1 = vrot.slane %v19589_v17, %v18293_v15 }
0x2047   :  { %15399 = vmatprep.subr.bf16.mxu0 %v16696_v44  ;;  %15420 = vmatpush3.bf16.msra.mxu1 %v16711_v41 }
0x2048   :  { %15421 = vmatprep.subr.bf16.mxu1 %v16712_v31  ;;  %v7036_v44 = vrot.slane %v7026_v1, %v18293_v15 }
0x204a   :  { %15400 = vmatpush3.bf16.msra.mxu0 %v16697_v61 }
0x204b   :  { %15401 = vmatprep.subr.bf16.mxu0 %v16698_v49  ;;  %15422 = vmatpush3.bf16.msra.mxu1 %v16713_v33 }
0x204c   :  { %15423 = vmatprep.subr.bf16.mxu1 %v16714_v53 }
0x204e   :  { %15402 = vmatpush3.bf16.msra.mxu0 %v16699_v50 }
0x204f   :  { %15403 = vmatprep.subr.bf16.mxu0 %v16700_v43  ;;  %15424 = vmatpush3.bf16.msra.mxu1 %v16715_v54 }
0x2050   :  { %15425 = vmatprep.subr.bf16.mxu1 %v16716_v55 }
0x2052   :  { %15404 = vmatpush3.bf16.msra.mxu0 %v16701_v45 }
0x2053   :  { %15405 = vmatprep.subr.bf16.mxu0 %v16702_v51  ;;  %15426 = vmatpush3.bf16.msra.mxu1 %v16717_v56 }
0x2054   :  { %15427 = vmatprep.subr.bf16.mxu1 %v16718_v25 }
0x2056   :  { %15406 = vmatpush3.bf16.msra.mxu0 %v16703_v60 }
0x2057   :  { %15407 = vmatprep.subr.bf16.mxu0 %v16704_v48  ;;  %15428 = vmatpush3.bf16.msra.mxu1 %v16719_v58 }
0x2058   :  { %15429 = vmatprep.subr.bf16.mxu1 %v16720_v57 }
0x205a   :  { %15408 = vmatpush3.bf16.msra.mxu0 %v16705_v39 }
0x205b   :  { %15409 = vmatprep.subr.bf16.mxu0 %v16706_v32  ;;  %15430 = vmatpush3.bf16.msra.mxu1 %v16721_v30 }
0x205c   :  { %15431 = vmatprep.subr.bf16.mxu1 %v16722_v34 }
0x205e   :  { %15410 = vmatpush3.bf16.msra.mxu0 %v16707_v7 }
0x205f   :  { %15411 = vmatprep.subr.bf16.mxu0 %v16708_v36  ;;  %15432 = vmatpush3.bf16.msra.mxu1 %v16723_v37  ;;  %v14209_v36 = vmul.f32 -1.442695, %v19597_v4 }
0x2060   :  { %15433 = vmatprep.subr.bf16.mxu1 %v16724_v42 }
0x2062   :  { %15412 = vmatpush3.bf16.msra.mxu0 %v16709_v22  ;;  %v14210_v22 = vmul.f32 -1.442695, %v19599_v63 }
0x2063   :  { %15434 = vmatpush3.bf16.msra.mxu1 %v16725_v47 }
0x2065   :  { %7609 = vmatmul.mubr.bf16.vlgmr.msra.gmra.mrb[76].mxu0 %v6988_v40  ;;  %v7030_v40 = vrot.slane %v19589_v17, %v18288_v12 }
0x2066   :  { %8099 = vmatprep.mubr.bf16.mxu0 %v17967_v35 }
0x2067   :  { %v7040_v61 = vrot.slane %v7030_v40, %v18293_v15 }
0x2118   :  { %v7235_v23 = vpop.f32.mrb[84].mxu1  ;;  %v15391_v5 = vpop.f32.mrb[72].mxu0 }
0x2119   :  { %v7237_v6 = vpop.f32.mrb[85].mxu1  ;;  %v15392_v9 = vpop.f32.mrb[73].mxu0  ;;  %v7236_v49 = vadd.f32 %v7235_v23, %v7036_v44 }
0x211a   :  { %v15393_v11 = vadd.f32 %v15392_v9, %v15391_v5  ;;  %v7239_v13 = vpop.f32.mrb[86].mxu1  ;;  %v15394_v20 = vpop.f32.mrb[74].mxu0  ;;  %v7238_v50 = vadd.f32 %v7237_v6, %v7040_v61 }
0x211b   :  { %v7240_v24 = vpop.f32.mrb[87].mxu1  ;;  %v15395_v26 = vpop.f32.mrb[75].mxu0  ;;  %v7248_v43 = vand.u32 2147483647, %v7236_v49  ;;  %vm7244_vm12 = vcmp.ne.f32.partialorder %v7236_v49, %v7236_v49 }
0x211c   :  { %v7249_v45 = vand.u32 2147483647, %v7238_v50  ;;  %vm7245_vm13 = vcmp.ne.f32.partialorder %v7238_v50, %v7238_v50 }
0x211d   :  { %v7250_v51 = vsub.f32 0.0, %v7248_v43 }
0x211e   :  { %v7251_v60 = vsub.f32 0.0, %v7249_v45 }
0x211f   :  { %v7252_v48 = vmul.f32 1.442695, %v7250_v51 }
0x2120   :  { %v7254_v39 = vmul.f32 1.442695, %v7251_v60 }
0x2121   :  { %17546 = vpow2.f32 %v7252_v48 }
0x2122   :  { %17548 = vpow2.f32 %v7254_v39 }
0x2123   :  { %17550 = vpow2.f32 %v14209_v36 }
0x2124   :  { %17552 = vpow2.f32 %v14210_v22 }
0x212b   :  { %v17547_v32 = vpop.eup %17546 }
0x212c   :  { %v17549_v7 = vpop.eup %17548  ;;  %v7256_v38 = vadd.f32 1.0, %v17547_v32  ;;  %v7259_v33 = vmul.f32 -0.5, %v17547_v32  ;;  %v7262_v6 = vand.u32 2147483647, %v17547_v32 }
0x212d   :  { %v7265_v41 = vadd.f32 1.0, %v17549_v7  ;;  %v17551_v31 = vpop.eup %17550  ;;  %v7268_v53 = vmul.f32 -0.5, %v17549_v7  ;;  %v7271_v9 = vand.u32 2147483647, %v17549_v7 }
0x212e   :  { %17554 = vlog2.f32 %v7256_v38  ;;  %v17553_v54 = vpop.eup %17552  ;;  %v7650_v25 = vadd.f32 1.0, %v17551_v31  ;;  %v7260_v58 = vadd.f32 1.0, %v7259_v33  ;;  %vm7263_vm10 = vcmp.lt.f32.partialorder %v7262_v6, 0.0004427343  ;;  %v16729_v31 = vld [vmem:[#allocation11 + $0x308] ss:$16 sps:$4 sm:$0xff]  }
0x212f   :  { %17556 = vlog2.f32 %v7265_v41  ;;  %v7269_v23 = vadd.f32 1.0, %v7268_v53  ;;  %v7651_v5 = vadd.f32 1.0, %v17553_v54  ;;  %vm7272_vm11 = vcmp.lt.f32.partialorder %v7271_v9, 0.0004427343  ;;  %v16726_v41 = vld [vmem:[#allocation11 + $0x300] ss:$16 sps:$4 sm:$0xff]  }
0x2130   :  { %17558 = vrcp.f32 %v7650_v25  ;;  %v7261_v20 = vmul.f32 %v17547_v32, %v7260_v58  ;;  %v16734_v33 = vld [vmem:[#allocation11 + $0x324] ss:$16 sps:$4 sm:$0xff]   ;;  %v16737_v53 = vld [vmem:[#allocation11 + $0x32c] ss:$16 sps:$4 sm:$0xff]   ;;  %v16732_v54 = vld [vmem:[#allocation11 + $0x320] ss:$16 sps:$4 sm:$0xff]  }
0x2131   :  { %v7270_v24 = vmul.f32 %v17549_v7, %v7269_v23  ;;  %17560 = vrcp.f32 %v7651_v5  ;;  %v16738_v25 = vld [vmem:[#allocation11 + $0x340] ss:$16 sps:$4 sm:$0xff]   ;;  %v16741_v58 = vld [vmem:[#allocation11 + $0x348] ss:$16 sps:$4 sm:$0xff]   ;;  %v16746_v23 = vld [vmem:[#allocation11 + $0x364] ss:$16 sps:$4 sm:$0xff]  }
0x2132   :  { %v16749_v5 = vld [vmem:[#allocation11 + $0x36c] ss:$16 sps:$4 sm:$0xff]   ;;  %v16744_v6 = vld [vmem:[#allocation11 + $0x360] ss:$16 sps:$4 sm:$0xff]   ;;  %v16747_v9 = vld [vmem:[#allocation11 + $0x368] ss:$16 sps:$4 sm:$0xff]  }
0x2138   :  { %v15413_v62 = vpop.f32.mrb[76].mxu0  ;;  %v17555_v55 = vpop.eup %17554 }
0x2139   :  { %v15414_v27 = vpop.f32.mrb[77].mxu0  ;;  %v17557_v56 = vpop.eup %17556 }
0x213a   :  { %v15415_v21 = vadd.f32 %v15414_v27, %v15413_v62  ;;  %v15416_v19 = vpop.f32.mrb[78].mxu0  ;;  %v7267_v13 = vmul.f32 0.6931472, %v17557_v56  ;;  %v7242_v27 = vmax.f32 %v7236_v49, 0.0  ;;  %v17559_v47 = vpop.eup %17558  ;;  %v16743_v56 = vld [vmem:[#allocation11 + $0x34c] ss:$16 sps:$4 sm:$0xff]  }
0x213b   :  { %v15417_v28 = vpop.f32.mrb[79].mxu0  ;;  %v7625_v19 = vrot.slane %v19589_v17, %v18273_v2  ;;  %v17561_v44 = vpop.eup %17560  ;;  %v7656_v45 = vmul.f32 %v17559_v47, %v19597_v4  ;;  %v16775_v47 = vld [vmem:[#allocation13 + $0x3c0] sm:$0xff]  }
0x213c   :  { %v7616_v52 = vmul.f32 %v15415_v21, %v15393_v11  ;;  %v7258_v11 = vmul.f32 0.6931472, %v17555_v55  ;;  %v7273_v62 = vsel %vm7272_vm11, %v7270_v24, %v7267_v13  ;;  %v7243_v21 = vmax.f32 %v7238_v50, 0.0  ;;  %v16735_v55 = vld [vmem:[#allocation11 + $0x328] ss:$16 sps:$4 sm:$0xff]  }
0x213d   :  { %v7629_v28 = vrot.slane %v19589_v17, %v18291_v14  ;;  %v7635_v57 = vrot.slane %v7625_v19, %v18273_v2  ;;  %v7657_v17 = vmul.f32 %v17561_v44, %v19599_v63  ;;  %v16755_v13 = vld [vmem:[#allocation11 + $0x38c] ss:$16 sps:$4 sm:$0xff]   ;;  %v16753_v24 = vld [vmem:[#allocation11 + $0x388] ss:$16 sps:$4 sm:$0xff]   ;;  %v16764_v19 = vld [vmem:[#allocation11 + $0x3c4] ss:$16 sps:$4 sm:$0xff]  }
0x213e   :  { %v7617_v29 = vsel %vm2040_vm14, %v7616_v52, 0.0  ;;  %v7264_v26 = vsel %vm7263_vm10, %v7261_v20, %v7258_v11  ;;  %v16752_v11 = vld [vmem:[#allocation11 + $0x384] ss:$16 sps:$4 sm:$0xff]   ;;  %v16750_v20 = vld [vmem:[#allocation11 + $0x380] ss:$16 sps:$4 sm:$0xff]  }
0x213f   :  { %7618 = vadd.xlane.f32.xlu0 %v7617_v29  ;;  %v7274_v52 = vadd.f32 %v7264_v26, %v7242_v27  ;;  %v7275_v29 = vadd.f32 %v7273_v62, %v7243_v21  ;;  %v7639_v30 = vrot.slane %v7629_v28, %v18273_v2  ;;  %v16758_v26 = vld [vmem:[#allocation11 + $0x3a4] ss:$16 sps:$4 sm:$0xff]   ;;  %v16761_v62 = vld [vmem:[#allocation11 + $0x3ac] ss:$16 sps:$4 sm:$0xff]   ;;  %v16756_v27 = vld [vmem:[#allocation11 + $0x3a0] ss:$16 sps:$4 sm:$0xff]  }
0x2140   :  { %v16759_v21 = vld [vmem:[#allocation11 + $0x3a8] ss:$16 sps:$4 sm:$0xff]   ;;  %v16767_v28 = vld [vmem:[#allocation11 + $0x3cc] ss:$16 sps:$4 sm:$0xff]  }
0x2141   :  { %v7276_v37 = vsel %vm7244_vm12, %v7236_v49, %v7274_v52  ;;  %v7277_v42 = vsel %vm7245_vm13, %v7238_v50, %v7275_v29  ;;  %v16762_v52 = vld [vmem:[#allocation11 + $0x3c0] ss:$16 sps:$4 sm:$0xff]   ;;  %v16765_v29 = vld [vmem:[#allocation11 + $0x3c8] ss:$16 sps:$4 sm:$0xff]  }
0x21cc   :  { %v7619_v34 = vpop.xlane.xlu0 %7618 }
0x21cd   :  { %v7620_v1 = vmul.f32 %v7619_v34, %v7276_v37  ;;  %v7621_v40 = vmul.f32 %v7619_v34, %v7277_v42  ;;  %v16768_v34 = vld [vmem:[#allocation11 + $0x3e0] ss:$16 sps:$4 sm:$0xff]   ;;  %v16771_v37 = vld [vmem:[#allocation11 + $0x3e8] ss:$16 sps:$4 sm:$0xff]  }
0x21ce   :  { %v16774_v42 = vld [vmem:[#allocation13 + $0x340] sm:$0xff]  }
0x21cf   :  { %v7640_v61 = vadd.f32 %v7635_v57, %v7620_v1  ;;  %v7641_v43 = vadd.f32 %v7639_v30, %v7621_v40  ;;  %v16770_v57 = vld [vmem:[#allocation11 + $0x3e4] ss:$16 sps:$4 sm:$0xff]   ;;  %v16773_v30 = vld [vmem:[#allocation11 + $0x3ec] ss:$16 sps:$4 sm:$0xff]  }
0x21d1   :  { %v7642_v51 = vmul.f32 %v7640_v61, %v19601_v0  ;;  %v7643_v60 = vmul.f32 %v7641_v43, %v19603_v46  ;;  %v16728_v0 = vld [vmem:[#allocation11 + $0x304] ss:$16 sps:$4 sm:$0xff]   ;;  %v16731_v46 = vld [vmem:[#allocation11 + $0x30c] ss:$16 sps:$4 sm:$0xff]  }
0x21d2   :  { %8067 = vmatprep.subr.bf16.mxu0 %v16728_v0  ;;  %8108 = vmatprep.subr.bf16.mxu1 %v16731_v46  ;;  %v16783_v0 = vld [vmem:[#allocation13 + $0x3d0] sm:$0xff]  }
0x21d3   :  { %v7658_v48 = vmul.f32 %v7656_v45, %v7642_v51  ;;  %v7659_v39 = vmul.f32 %v7657_v17, %v7643_v60  ;;  %8068 = vmatpush1.bf16.msra.mxu0 %v16726_v41  ;;  %v7835_v51 = vrot.slane %v19530_v59, %v18293_v15  ;;  %v16784_v46 = vld [vmem:[#allocation13 + $0x310] sm:$0xff]  }
0x21d4   :  { %8069 = vmatprep.subr.bf16.mxu0 %v16734_v33  ;;  %v16785_v41 = vld [vmem:[#allocation13 + $0x390] sm:$0xff]   ;;  %v16787_v33 = vld [vmem:[#allocation13 + $0x3d8] sm:$0xff]  }
0x21d5   :  { %v7661_v32 = vpack.c.bf16 %v7659_v39, %v7659_v39  ;;  %v7660_v7 = vpack.c.bf16 %v7658_v48, %v7658_v48 }
0x21d7   :  { %7823 = vmatprep.mubr.bf16.mxu1 %v7661_v32  ;;  %8070 = vmatpush1.bf16.msra.mxu0 %v16732_v54  ;;  %v16776_v32 = vld [vmem:[#allocation13 + $0x300] sm:$0xff]   ;;  %v16789_v54 = vld [vmem:[#allocation13 + $0x398] sm:$0xff]  }
0x21d8   :  { %7824 = vmatmul.mubr.bf16.vlgmr.msra.gmra.mrb[88].mxu1 %v7660_v7  ;;  %v16777_v7 = vld [vmem:[#allocation13 + $0x380] sm:$0xff]  }
0x21d9   :  { %8140 = vmatprep.mubr.bf16.mxu1 %v17967_v35  ;;  %8109 = vmatpush1.bf16.msra.mxu1 %v16729_v31  ;;  %v16786_v31 = vld [vmem:[#allocation13 + $0x358] sm:$0xff]  }
0x21da   :  { %8110 = vmatprep.subr.bf16.mxu1 %v16737_v53  ;;  %v16788_v53 = vld [vmem:[#allocation13 + $0x318] sm:$0xff]  }
0x21dd   :  { %8111 = vmatpush1.bf16.msra.mxu1 %v16735_v55  ;;  %v16790_v55 = vld [vmem:[#allocation13 + $0x360] sm:$0xff]  }
0x21de   :  { %8112 = vmatprep.subr.bf16.mxu1 %v16743_v56  ;;  %v16792_v56 = vld [vmem:[#allocation13 + $0x320] sm:$0xff]  }
0x21e1   :  { %8113 = vmatpush1.bf16.msra.mxu1 %v16741_v58  ;;  %v16794_v58 = vld [vmem:[#allocation13 + $0x368] sm:$0xff]  }
0x21e2   :  { %8114 = vmatprep.subr.bf16.mxu1 %v16749_v5  ;;  %v16796_v5 = vld [vmem:[#allocation13 + $0x328] sm:$0xff]  }
0x21e5   :  { %8115 = vmatpush1.bf16.msra.mxu1 %v16747_v9  ;;  %v16798_v9 = vld [vmem:[#allocation13 + $0x370] sm:$0xff]  }
0x21e6   :  { %8116 = vmatprep.subr.bf16.mxu1 %v16755_v13  ;;  %v16800_v13 = vld [vmem:[#allocation13 + $0x330] sm:$0xff]  }
0x21e9   :  { %8117 = vmatpush1.bf16.msra.mxu1 %v16753_v24  ;;  %v16802_v24 = vld [vmem:[#allocation13 + $0x378] sm:$0xff]  }
0x21ea   :  { %8118 = vmatprep.subr.bf16.mxu1 %v16761_v62  ;;  %v16804_v62 = vld [vmem:[#allocation13 + $0x338] sm:$0xff]  }
0x21ed   :  { %8119 = vmatpush1.bf16.msra.mxu1 %v16759_v21  ;;  %v14259_v21 = vld [vmem:[%s20533_s16 + $0x3] ss:$8 sm:$0xf] }
0x21ee   :  { %8120 = vmatprep.subr.bf16.mxu1 %v16767_v28  ;;  %v7898_v28 = vrot.slane %v14259_v21, %v18273_v2 }
0x21f1   :  { %8121 = vmatpush1.bf16.msra.mxu1 %v16765_v29  ;;  %v7902_v29 = vrot.slane %v14259_v21, %v18282_v8 }
0x21f2   :  { %8122 = vmatprep.subr.bf16.mxu1 %v16773_v30 }
0x21f5   :  { %8123 = vmatpush1.bf16.msra.mxu1 %v16771_v37 }
0x21f6   :  { %15463 = vmatprep.subr.bf16.mxu1 %v16775_v47 }
0x22ab   :  { %v15435_v49 = vpop.f32.mrb[88].mxu1 }
0x22ac   :  { %v15436_v50 = vpop.f32.mrb[89].mxu1 }
0x22ad   :  { %v15437_v36 = vadd.f32 %v15436_v50, %v15435_v49  ;;  %v15438_v22 = vpop.f32.mrb[90].mxu1  ;;  %v16778_v50 = vld [vmem:[#allocation13 + $0x348] sm:$0xff]  }
0x22ae   :  { %v15439_v38 = vpop.f32.mrb[91].mxu1  ;;  %v16780_v22 = vld [vmem:[#allocation13 + $0x308] sm:$0xff]  }
0x22af   :  { %v19724_v4 = vadd.f32 %v15437_v36, %v19427_v16  ;;  %v16740_v16 = vld [vmem:[#allocation11 + $0x344] ss:$16 sps:$4 sm:$0xff]   ;;  %v16779_v36 = vld [vmem:[#allocation13 + $0x3c8] sm:$0xff]  }
0x22b0   :  { %8071 = vmatprep.subr.bf16.mxu0 %v16740_v16  ;;  %v16781_v38 = vld [vmem:[#allocation13 + $0x388] sm:$0xff]   ;;  %v16791_v16 = vld [vmem:[#allocation13 + $0x3e0] sm:$0xff]  }
0x22b1   :  { %v7837_v63 = vmul.f32 %v19724_v4, %v19724_v4  ;;  %8072 = vmatpush1.bf16.msra.mxu0 %v16738_v25  ;;  %v7836_v60 = vmul.f32 %v7835_v51, %v19724_v4  ;;  %v16793_v25 = vld [vmem:[#allocation13 + $0x3a0] sm:$0xff]  }
0x22b2   :  { %8073 = vmatprep.subr.bf16.mxu0 %v16746_v23  ;;  %v16795_v23 = vld [vmem:[#allocation13 + $0x3e8] sm:$0xff]  }
0x22b3   :  { %7838 = vadd.xlane.f32.xlu1 %v7837_v63  ;;  %v16782_v63 = vld [vmem:[#allocation13 + $0x350] sm:$0xff]  }
0x22b5   :  { %8074 = vmatpush1.bf16.msra.mxu0 %v16744_v6  ;;  %v16797_v6 = vld [vmem:[#allocation13 + $0x3a8] sm:$0xff]  }
0x22b6   :  { %8075 = vmatprep.subr.bf16.mxu0 %v16752_v11  ;;  %v16799_v11 = vld [vmem:[#allocation13 + $0x3f0] sm:$0xff]  }
0x22b9   :  { %8076 = vmatpush1.bf16.msra.mxu0 %v16750_v20  ;;  %v16801_v20 = vld [vmem:[#allocation13 + $0x3b0] sm:$0xff]  }
0x22ba   :  { %8077 = vmatprep.subr.bf16.mxu0 %v16758_v26  ;;  %v16803_v26 = vld [vmem:[#allocation13 + $0x3f8] sm:$0xff]  }
0x22bd   :  { %8078 = vmatpush1.bf16.msra.mxu0 %v16756_v27  ;;  %v16805_v27 = vld [vmem:[#allocation13 + $0x3b8] sm:$0xff]  }
0x22be   :  { %8079 = vmatprep.subr.bf16.mxu0 %v16764_v19  ;;  %v7890_v19 = vrot.slane %v14259_v21, %v18275_v3 }
0x22c1   :  { %8080 = vmatpush1.bf16.msra.mxu0 %v16762_v52  ;;  %v7894_v52 = vrot.slane %v14259_v21, %v18293_v15 }
0x22c2   :  { %8081 = vmatprep.subr.bf16.mxu0 %v16770_v57 }
0x22c5   :  { %8082 = vmatpush1.bf16.msra.mxu0 %v16768_v34 }
0x22c6   :  { %15441 = vmatprep.subr.bf16.mxu0 %v16774_v42 }
0x2340   :  { %v7839_v1 = vpop.xlane.xlu1 %7838 }
0x2341   :  { %v7840_v40 = vadd.f32 1e-06, %v7839_v1 }
0x2343   :  { %17562 = vrsqrt.f32 %v7840_v40  ;;  %vm7843_vm15 = vcmp.eq.f32.partialorder %v7840_v40, inf  ;;  %v7846_v43 = vand.u32 2147483648, %v7840_v40  ;;  %vm7845_vm0 = vcmp.eq.f32.partialorder %v7840_v40, 0.0 }
0x234d   :  { %v17563_v44 = vpop.eup %17562 }
0x234e   :  { %v7842_v61 = vmul.f32 %v17563_v44, %v7840_v40 }
0x2350   :  { %v7844_v45 = vsel %vm7843_vm15, %v7840_v40, %v7842_v61 }
0x2351   :  { %v7847_v17 = vsel %vm7845_vm0, %v7846_v43, %v7844_v45 }
0x2352   :  { %17564 = vrcp.f32 %v7847_v17 }
0x235c   :  { %v17565_v48 = vpop.eup %17564 }
0x235d   :  { %v7849_v39 = vmul.f32 %v17565_v48, %v7836_v60 }
0x235f   :  { %v7850_v49 = vpack.c.bf16 %v7849_v39, %v7849_v39 }
0x2361   :  { %8100 = vmatmul.mubr.bf16.vlgmr.msra.gmra.mrb[80].mxu0 %v7850_v49  ;;  %8141 = vmatmul.mubr.bf16.vlgmr.msra.gmra.mrb[92].mxu1 %v7850_v49 }
0x2362   :  { %15442 = vmatpush3.bf16.msra.mxu0 %v16776_v32  ;;  %15464 = vmatpush3.bf16.msra.mxu1 %v16777_v7 }
0x2363   :  { %15443 = vmatprep.subr.bf16.mxu0 %v16778_v50  ;;  %15465 = vmatprep.subr.bf16.mxu1 %v16779_v36 }
0x2366   :  { %15444 = vmatpush3.bf16.msra.mxu0 %v16780_v22  ;;  %15466 = vmatpush3.bf16.msra.mxu1 %v16781_v38 }
0x2367   :  { %15445 = vmatprep.subr.bf16.mxu0 %v16782_v63  ;;  %15467 = vmatprep.subr.bf16.mxu1 %v16783_v0 }
0x236a   :  { %15446 = vmatpush3.bf16.msra.mxu0 %v16784_v46  ;;  %15468 = vmatpush3.bf16.msra.mxu1 %v16785_v41 }
0x236b   :  { %15447 = vmatprep.subr.bf16.mxu0 %v16786_v31  ;;  %15469 = vmatprep.subr.bf16.mxu1 %v16787_v33 }
0x236e   :  { %15448 = vmatpush3.bf16.msra.mxu0 %v16788_v53  ;;  %15470 = vmatpush3.bf16.msra.mxu1 %v16789_v54 }
0x236f   :  { %15449 = vmatprep.subr.bf16.mxu0 %v16790_v55  ;;  %15471 = vmatprep.subr.bf16.mxu1 %v16791_v16 }
0x2372   :  { %15450 = vmatpush3.bf16.msra.mxu0 %v16792_v56  ;;  %15472 = vmatpush3.bf16.msra.mxu1 %v16793_v25 }
0x2373   :  { %15451 = vmatprep.subr.bf16.mxu0 %v16794_v58  ;;  %15473 = vmatprep.subr.bf16.mxu1 %v16795_v23  ;;  %v8241_v23 = vrot.slane %v19530_v59, %v18273_v2  ;;  %v16808_v59 = vld [vmem:[%s20571_s0 + $0x404] ss:$16 sps:$4 sm:$0xff]  }
0x2376   :  { %15452 = vmatpush3.bf16.msra.mxu0 %v16796_v5  ;;  %15474 = vmatpush3.bf16.msra.mxu1 %v16797_v6 }
0x2377   :  { %15453 = vmatprep.subr.bf16.mxu0 %v16798_v9  ;;  %15475 = vmatprep.subr.bf16.mxu1 %v16799_v11 }
0x237a   :  { %15454 = vmatpush3.bf16.msra.mxu0 %v16800_v13  ;;  %15476 = vmatpush3.bf16.msra.mxu1 %v16801_v20 }
0x237b   :  { %15455 = vmatprep.subr.bf16.mxu0 %v16802_v24  ;;  %15477 = vmatprep.subr.bf16.mxu1 %v16803_v26 }
0x237e   :  { %15456 = vmatpush3.bf16.msra.mxu0 %v16804_v62  ;;  %15478 = vmatpush3.bf16.msra.mxu1 %v16805_v27 }
0x237f   :  { %8731 = vmatprep.subr.bf16.mxu0 %v16808_v59  ;;  %v16866_v59 = vld [vmem:[#allocation10 + $0x440] ss:$8 sps:$4 sm:$0xff]  }
0x2434   :  { %v8101_v57 = vpop.f32.mrb[80].mxu0  ;;  %v8142_v30 = vpop.f32.mrb[92].mxu1 }
0x2435   :  { %v8102_v34 = vadd.f32 %v8101_v57, %v7890_v19  ;;  %v8143_v37 = vadd.f32 %v8142_v30, %v7898_v28  ;;  %v8103_v42 = vpop.f32.mrb[81].mxu0  ;;  %v8144_v47 = vpop.f32.mrb[93].mxu1  ;;  %v16814_v57 = vld [vmem:[%s20571_s0 + $0x424] ss:$16 sps:$4 sm:$0xff]   ;;  %v16817_v30 = vld [vmem:[%s20571_s0 + $0x42c] ss:$16 sps:$4 sm:$0xff]  }
0x2436   :  { %v8104_v1 = vadd.f32 %v8103_v42, %v7894_v52  ;;  %v8145_v40 = vadd.f32 %v8144_v47, %v7902_v29  ;;  %v8105_v44 = vpop.f32.mrb[82].mxu0  ;;  %v8146_v61 = vpop.f32.mrb[94].mxu1  ;;  %v16811_v52 = vld [vmem:[%s20571_s0 + $0x40c] ss:$16 sps:$4 sm:$0xff]   ;;  %v16806_v29 = vld [vmem:[%s20571_s0 + $0x400] ss:$16 sps:$4 sm:$0xff]  }
0x2437   :  { %v8153_v43 = vmul.f32 0.70710677, %v8102_v34  ;;  %v8155_v45 = vmul.f32 0.70710677, %v8143_v37  ;;  %v8106_v60 = vpop.f32.mrb[83].mxu0  ;;  %v8147_v48 = vpop.f32.mrb[95].mxu1  ;;  %8772 = vmatprep.subr.bf16.mxu1 %v16811_v52 }
0x2438   :  { %v8154_v17 = vmul.f32 0.70710677, %v8104_v1  ;;  %v8156_v51 = vmul.f32 0.70710677, %v8145_v40  ;;  %v8149_v50 = vmul.f32 0.5, %v8102_v34  ;;  %v8151_v38 = vmul.f32 0.5, %v8143_v37 }
0x2439   :  { %17566 = verf.f32 %v8153_v43  ;;  %v8150_v63 = vmul.f32 0.5, %v8104_v1  ;;  %v8152_v41 = vmul.f32 0.5, %v8145_v40  ;;  %v16812_v34 = vld [vmem:[%s20571_s0 + $0x420] ss:$16 sps:$4 sm:$0xff]   ;;  %v16815_v37 = vld [vmem:[%s20571_s0 + $0x428] ss:$16 sps:$4 sm:$0xff]  }
0x243a   :  { %17568 = verf.f32 %v8155_v45  ;;  %v16820_v42 = vld [vmem:[%s20571_s0 + $0x444] ss:$16 sps:$4 sm:$0xff]   ;;  %v16823_v47 = vld [vmem:[%s20571_s0 + $0x44c] ss:$16 sps:$4 sm:$0xff]   ;;  %v16818_v1 = vld [vmem:[%s20571_s0 + $0x440] ss:$16 sps:$4 sm:$0xff]  }
0x243b   :  { %17570 = verf.f32 %v8154_v17  ;;  %v16821_v40 = vld [vmem:[%s20571_s0 + $0x448] ss:$16 sps:$4 sm:$0xff]   ;;  %v16826_v44 = vld [vmem:[%s20571_s0 + $0x464] ss:$16 sps:$4 sm:$0xff]   ;;  %v16829_v61 = vld [vmem:[%s20571_s0 + $0x46c] ss:$16 sps:$4 sm:$0xff]  }
0x243c   :  { %17572 = verf.f32 %v8156_v51  ;;  %v16824_v43 = vld [vmem:[%s20571_s0 + $0x460] ss:$16 sps:$4 sm:$0xff]   ;;  %v16827_v45 = vld [vmem:[%s20571_s0 + $0x468] ss:$16 sps:$4 sm:$0xff]   ;;  %v16832_v51 = vld [vmem:[%s20571_s0 + $0x484] ss:$16 sps:$4 sm:$0xff]  }
0x243d   :  { %v16830_v17 = vld [vmem:[%s20571_s0 + $0x480] ss:$16 sps:$4 sm:$0xff]   ;;  %v16833_v60 = vld [vmem:[%s20571_s0 + $0x488] ss:$16 sps:$4 sm:$0xff]   ;;  %v16835_v48 = vld [vmem:[%s20571_s0 + $0x48c] ss:$16 sps:$4 sm:$0xff]  }
0x243e   :  { %v16871_v52 = vld [vmem:[#allocation10 + $0x454] ss:$8 sps:$4 sm:$0xff]  }
0x2443   :  { %v17567_v39 = vpop.eup %17566 }
0x2444   :  { %v17569_v32 = vpop.eup %17568  ;;  %v8161_v7 = vadd.f32 1.0, %v17567_v39  ;;  %v16838_v39 = vld [vmem:[%s20571_s0 + $0x4a4] ss:$16 sps:$4 sm:$0xff]  }
0x2445   :  { %v17571_v49 = vpop.eup %17570  ;;  %v8163_v36 = vadd.f32 1.0, %v17569_v32  ;;  %v16841_v32 = vld [vmem:[%s20571_s0 + $0x4ac] ss:$16 sps:$4 sm:$0xff]  }
0x2446   :  { %v17573_v22 = vpop.eup %17572  ;;  %v8162_v0 = vadd.f32 1.0, %v17571_v49  ;;  %v8165_v46 = vmul.f32 %v8161_v7, %v8149_v50  ;;  %v16836_v7 = vld [vmem:[%s20571_s0 + $0x4a0] ss:$16 sps:$4 sm:$0xff]   ;;  %v16839_v49 = vld [vmem:[%s20571_s0 + $0x4a8] ss:$16 sps:$4 sm:$0xff]  }
0x2447   :  { %v8164_v31 = vadd.f32 1.0, %v17573_v22  ;;  %v8167_v33 = vmul.f32 %v8163_v36, %v8151_v38  ;;  %v16844_v50 = vld [vmem:[%s20571_s0 + $0x4c4] ss:$16 sps:$4 sm:$0xff]   ;;  %v16847_v36 = vld [vmem:[%s20571_s0 + $0x4cc] ss:$16 sps:$4 sm:$0xff]  }
0x2448   :  { %v8166_v53 = vmul.f32 %v8162_v0, %v8150_v63  ;;  %v8169_v16 = vpack.c.bf16 %v8165_v46, %v8165_v46  ;;  %v16842_v22 = vld [vmem:[%s20571_s0 + $0x4c0] ss:$16 sps:$4 sm:$0xff]   ;;  %v16845_v38 = vld [vmem:[%s20571_s0 + $0x4c8] ss:$16 sps:$4 sm:$0xff]   ;;  %v16850_v63 = vld [vmem:[%s20571_s0 + $0x4e4] ss:$16 sps:$4 sm:$0xff]  }
0x2449   :  { %v8168_v54 = vmul.f32 %v8164_v31, %v8152_v41  ;;  %v8171_v25 = vpack.c.bf16 %v8167_v33, %v8167_v33  ;;  %v16853_v0 = vld [vmem:[%s20571_s0 + $0x4ec] ss:$16 sps:$4 sm:$0xff]   ;;  %v16848_v46 = vld [vmem:[%s20571_s0 + $0x4e0] ss:$16 sps:$4 sm:$0xff]   ;;  %v16851_v41 = vld [vmem:[%s20571_s0 + $0x4e8] ss:$16 sps:$4 sm:$0xff]  }
0x244a   :  { %v8170_v55 = vpack.c.bf16 %v8166_v53, %v8166_v53  ;;  %v16856_v31 = vld [vmem:[#allocation10 + $0x404] ss:$8 sps:$4 sm:$0xff]  }
0x244b   :  { %v8172_v56 = vpack.c.bf16 %v8168_v54, %v8168_v54 }
0x244c   :  { %8466 = vmatprep.mubr.bf16.mxu0 %v8170_v55 }
0x244d   :  { %8506 = vmatprep.mubr.bf16.mxu1 %v8172_v56  ;;  %8467 = vmatmul.mubr.bf16.vlgmr.msra.gmra.mrb[84].mxu0 %v8169_v16 }
0x244e   :  { %8507 = vmatmul.mubr.bf16.vlgmr.msra.gmra.mrb[96].mxu1 %v8171_v25  ;;  %8763 = vmatprep.mubr.bf16.mxu0 %v17967_v35 }
0x244f   :  { %8804 = vmatprep.mubr.bf16.mxu1 %v17967_v35  ;;  %8732 = vmatpush1.bf16.msra.mxu0 %v16806_v29  ;;  %v16869_v29 = vld [vmem:[#allocation10 + $0x450] ss:$8 sps:$4 sm:$0xff]  }
0x2450   :  { %8733 = vmatprep.subr.bf16.mxu0 %v16814_v57  ;;  %v16872_v57 = vld [vmem:[#allocation10 + $0x460] ss:$8 sps:$4 sm:$0xff]  }
0x2453   :  { %8734 = vmatpush1.bf16.msra.mxu0 %v16812_v34  ;;  %v16875_v34 = vld [vmem:[#allocation10 + $0x470] ss:$8 sps:$4 sm:$0xff]  }
0x2454   :  { %8735 = vmatprep.subr.bf16.mxu0 %v16820_v42  ;;  %v16881_v42 = vld [vmem:[#allocation10 + $0x484] ss:$8 sps:$4 sm:$0xff]  }
0x2457   :  { %8736 = vmatpush1.bf16.msra.mxu0 %v16818_v1  ;;  %v16879_v1 = vld [vmem:[#allocation10 + $0x480] ss:$8 sps:$4 sm:$0xff]  }
0x2458   :  { %8737 = vmatprep.subr.bf16.mxu0 %v16826_v44  ;;  %v16886_v44 = vld [vmem:[#allocation10 + $0x494] ss:$8 sps:$4 sm:$0xff]  }
0x245b   :  { %8738 = vmatpush1.bf16.msra.mxu0 %v16824_v43  ;;  %v16884_v43 = vld [vmem:[#allocation10 + $0x490] ss:$8 sps:$4 sm:$0xff]  }
0x245c   :  { %8739 = vmatprep.subr.bf16.mxu0 %v16832_v51  ;;  %v16892_v51 = vld [vmem:[%s20526_s9 + $0x210] sm:$0xff]  }
0x245f   :  { %8740 = vmatpush1.bf16.msra.mxu0 %v16830_v17  ;;  %v16891_v17 = vld [vmem:[#allocation10 + $0x4a4] ss:$8 sps:$4 sm:$0xff]  }
0x2460   :  { %8741 = vmatprep.subr.bf16.mxu0 %v16838_v39  ;;  %v16896_v39 = vld [vmem:[#allocation10 + $0x4b4] ss:$8 sps:$4 sm:$0xff]  }
0x2463   :  { %8742 = vmatpush1.bf16.msra.mxu0 %v16836_v7  ;;  %v16894_v7 = vld [vmem:[#allocation10 + $0x4b0] ss:$8 sps:$4 sm:$0xff]  }
0x2464   :  { %8743 = vmatprep.subr.bf16.mxu0 %v16844_v50  ;;  %v16901_v50 = vld [vmem:[#allocation10 + $0x4c4] ss:$8 sps:$4 sm:$0xff]  }
0x2467   :  { %8744 = vmatpush1.bf16.msra.mxu0 %v16842_v22  ;;  %v16899_v22 = vld [vmem:[#allocation10 + $0x4c0] ss:$8 sps:$4 sm:$0xff]  }
0x2468   :  { %8745 = vmatprep.subr.bf16.mxu0 %v16850_v63  ;;  %v16906_v63 = vld [vmem:[#allocation10 + $0x4d4] ss:$8 sps:$4 sm:$0xff]  }
0x246b   :  { %8746 = vmatpush1.bf16.msra.mxu0 %v16848_v46  ;;  %v16904_v46 = vld [vmem:[#allocation10 + $0x4d0] ss:$8 sps:$4 sm:$0xff]  }
0x246c   :  { %9061 = vmatprep.subr.bf16.mxu0 %v16856_v31  ;;  %v16911_v31 = vld [vmem:[#allocation10 + $0x4e4] ss:$8 sps:$4 sm:$0xff]  }
0x2520   :  { %v15457_v58 = vpop.f32.mrb[84].mxu0 }
0x2521   :  { %v15479_v5 = vpop.f32.mrb[96].mxu1  ;;  %v15458_v6 = vpop.f32.mrb[85].mxu0 }
0x2522   :  { %v15459_v9 = vadd.f32 %v15458_v6, %v15457_v58  ;;  %v15480_v11 = vpop.f32.mrb[97].mxu1  ;;  %v15460_v13 = vpop.f32.mrb[86].mxu0  ;;  %v19846_v58 = vld [vmem:[%s20532_s15 + $0x10] sm:$0x7] }
0x2523   :  { %v15481_v20 = vadd.f32 %v15480_v11, %v15479_v5  ;;  %v15482_v24 = vpop.f32.mrb[98].mxu1  ;;  %v15461_v26 = vpop.f32.mrb[87].mxu0  ;;  %v16854_v11 = vld [vmem:[#allocation10 + $0x400] ss:$8 sps:$4 sm:$0xff]  }
0x2524   :  { %v8469_v62 = vadd.f32 %v15459_v9, %v8241_v23  ;;  %v15483_v27 = vpop.f32.mrb[99].mxu1  ;;  %v8522_v23 = vrot.slane %v19846_v58, %v18275_v3  ;;  %v16857_v24 = vld [vmem:[#allocation10 + $0x410] ss:$8 sps:$4 sm:$0xff]   ;;  %v16862_v26 = vld [vmem:[#allocation10 + $0x424] ss:$8 sps:$4 sm:$0xff]  }
0x2525   :  { %v16865_v27 = vld [vmem:[#allocation10 + $0x434] ss:$8 sps:$4 sm:$0xff]  }
0x2526   :  { %v8509_v21 = vadd.f32 %v15481_v20, %v8469_v62  ;;  %v16859_v20 = vld [vmem:[#allocation10 + $0x414] ss:$8 sps:$4 sm:$0xff]   ;;  %v16860_v62 = vld [vmem:[#allocation10 + $0x420] ss:$8 sps:$4 sm:$0xff]  }
0x2528   :  { %v19743_v19 = vadd.f32 %v8509_v21, %v19724_v4  ;;  %v16809_v4 = vld [vmem:[%s20571_s0 + $0x408] ss:$16 sps:$4 sm:$0xff]   ;;  %v16863_v21 = vld [vmem:[#allocation10 + $0x430] ss:$8 sps:$4 sm:$0xff]  }
0x2529   :  { %8773 = vmatpush1.bf16.msra.mxu1 %v16809_v4  ;;  %v16874_v4 = vld [vmem:[#allocation10 + $0x464] ss:$8 sps:$4 sm:$0xff]  }
0x252a   :  { %v8524_v28 = vmul.f32 %v19743_v19, %v19743_v19  ;;  %8774 = vmatprep.subr.bf16.mxu1 %v16817_v30  ;;  %v8523_v5 = vmul.f32 %v8522_v23, %v19743_v19  ;;  %v16877_v30 = vld [vmem:[#allocation10 + $0x474] ss:$8 sps:$4 sm:$0xff]  }
0x252b   :  { %v19905_v23 = vld [vmem:[%s20531_s14 + $0x20] sm:$0x77] }
0x252c   :  { %8525 = vadd.xlane.f32.xlu0 %v8524_v28  ;;  %v16868_v28 = vld [vmem:[#allocation10 + $0x444] ss:$8 sps:$4 sm:$0xff]  }
0x252d   :  { %8775 = vmatpush1.bf16.msra.mxu1 %v16815_v37  ;;  %v16878_v37 = vld [vmem:[%s20526_s9 + $0x240] sm:$0xff]  }
0x252e   :  { %8776 = vmatprep.subr.bf16.mxu1 %v16823_v47  ;;  %v16882_v47 = vld [vmem:[%s20526_s9 + $0x200] sm:$0xff]  }
0x2531   :  { %8777 = vmatpush1.bf16.msra.mxu1 %v16821_v40  ;;  %v16883_v40 = vld [vmem:[%s20526_s9 + $0x248] sm:$0xff]  }
0x2532   :  { %8778 = vmatprep.subr.bf16.mxu1 %v16829_v61  ;;  %v16887_v61 = vld [vmem:[%s20526_s9 + $0x208] sm:$0xff]  }
0x2535   :  { %8779 = vmatpush1.bf16.msra.mxu1 %v16827_v45  ;;  %v16888_v45 = vld [vmem:[%s20526_s9 + $0x250] sm:$0xff]  }
0x2536   :  { %8780 = vmatprep.subr.bf16.mxu1 %v16835_v48  ;;  %v16893_v48 = vld [vmem:[%s20526_s9 + $0x258] sm:$0xff]  }
0x2539   :  { %8781 = vmatpush1.bf16.msra.mxu1 %v16833_v60  ;;  %v16889_v60 = vld [vmem:[#allocation10 + $0x4a0] ss:$8 sps:$4 sm:$0xff]  }
0x253a   :  { %8782 = vmatprep.subr.bf16.mxu1 %v16841_v32  ;;  %v16897_v32 = vld [vmem:[%s20526_s9 + $0x218] sm:$0xff]  }
0x253d   :  { %8783 = vmatpush1.bf16.msra.mxu1 %v16839_v49  ;;  %v16898_v49 = vld [vmem:[%s20526_s9 + $0x260] sm:$0xff]  }
0x253e   :  { %8784 = vmatprep.subr.bf16.mxu1 %v16847_v36  ;;  %v16902_v36 = vld [vmem:[%s20526_s9 + $0x220] sm:$0xff]  }
0x2541   :  { %8785 = vmatpush1.bf16.msra.mxu1 %v16845_v38  ;;  %v16903_v38 = vld [vmem:[%s20526_s9 + $0x268] sm:$0xff]  }
0x2542   :  { %8786 = vmatprep.subr.bf16.mxu1 %v16853_v0  ;;  %v16907_v0 = vld [vmem:[%s20526_s9 + $0x228] sm:$0xff]  }
0x2545   :  { %8787 = vmatpush1.bf16.msra.mxu1 %v16851_v41  ;;  %v16908_v41 = vld [vmem:[%s20526_s9 + $0x270] sm:$0xff]  }
0x2546   :  { %15485 = vmatprep.subr.bf16.mxu1 %v16878_v37 }
0x25b9   :  { %v8526_v33 = vpop.xlane.xlu0 %8525 }
0x25ba   :  { %v8527_v53 = vadd.f32 1e-06, %v8526_v33  ;;  %v16912_v33 = vld [vmem:[%s20526_s9 + $0x230] sm:$0xff]  }
0x25bc   :  { %17574 = vrsqrt.f32 %v8527_v53  ;;  %vm8530_vm1 = vcmp.eq.f32.partialorder %v8527_v53, inf  ;;  %v8533_v16 = vand.u32 2147483648, %v8527_v53  ;;  %vm8532_vm2 = vcmp.eq.f32.partialorder %v8527_v53, 0.0 }
0x25c6   :  { %v17575_v54 = vpop.eup %17574 }
0x25c7   :  { %v8529_v55 = vmul.f32 %v17575_v54, %v8527_v53  ;;  %v16913_v54 = vld [vmem:[%s20526_s9 + $0x278] sm:$0xff]  }
0x25c9   :  { %v8531_v56 = vsel %vm8530_vm1, %v8527_v53, %v8529_v55  ;;  %v16909_v53 = vld [vmem:[#allocation10 + $0x4e0] ss:$8 sps:$4 sm:$0xff]   ;;  %v16916_v55 = vld [vmem:[#allocation10 + $0x4f4] ss:$8 sps:$4 sm:$0xff]  }
0x25ca   :  { %v8534_v25 = vsel %vm8532_vm2, %v8533_v16, %v8531_v56  ;;  %v16917_v16 = vld [vmem:[%s20526_s9 + $0x238] sm:$0xff]  }
0x25cb   :  { %17576 = vrcp.f32 %v8534_v25  ;;  %v16914_v56 = vld [vmem:[#allocation10 + $0x4f0] ss:$8 sps:$4 sm:$0xff]   ;;  %v16918_v25 = vld [vmem:[%s20527_s10 + $0x240] sm:$0xff]  }
0x25d5   :  { %v17577_v6 = vpop.eup %17576 }
0x25d6   :  { %v8536_v9 = vmul.f32 %v17577_v6, %v8523_v5  ;;  %v8817_v5 = vrot.slane %v19905_v23, %v18275_v3  ;;  %v8821_v6 = vrot.slane %v19905_v23, %v18285_v10 }
0x25d8   :  { %v8537_v13 = vpack.c.bf16 %v8536_v9, %v8536_v9  ;;  %v8827_v9 = vrot.slane %v8817_v5, %v18275_v3 }
0x25da   :  { %8764 = vmatmul.mubr.bf16.vlgmr.msra.gmra.mrb[88].mxu0 %v8537_v13  ;;  %8805 = vmatmul.mubr.bf16.vlgmr.msra.gmra.mrb[100].mxu1 %v8537_v13 }
0x25db   :  { %9062 = vmatpush1.bf16.msra.mxu0 %v16854_v11  ;;  %15486 = vmatpush3.bf16.msra.mxu1 %v16882_v47  ;;  %v8831_v11 = vrot.slane %v8821_v6, %v18275_v3 }
0x25dc   :  { %9063 = vmatprep.subr.bf16.mxu0 %v16859_v20  ;;  %15487 = vmatprep.subr.bf16.mxu1 %v16883_v40 }
0x25df   :  { %9064 = vmatpush1.bf16.msra.mxu0 %v16857_v24  ;;  %15488 = vmatpush3.bf16.msra.mxu1 %v16887_v61  ;;  %v16919_v61 = vld [vmem:[%s20527_s10 + $0x200] sm:$0xff]  }
0x25e0   :  { %9065 = vmatprep.subr.bf16.mxu0 %v16862_v26  ;;  %15489 = vmatprep.subr.bf16.mxu1 %v16888_v45  ;;  %v16920_v45 = vld [vmem:[%s20527_s10 + $0x248] sm:$0xff]  }
0x25e3   :  { %9066 = vmatpush1.bf16.msra.mxu0 %v16860_v62  ;;  %15490 = vmatpush3.bf16.msra.mxu1 %v16892_v51  ;;  %v16922_v51 = vld [vmem:[%s20527_s10 + $0x250] sm:$0xff]  }
0x25e4   :  { %9067 = vmatprep.subr.bf16.mxu0 %v16865_v27  ;;  %15491 = vmatprep.subr.bf16.mxu1 %v16893_v48  ;;  %v16924_v48 = vld [vmem:[%s20527_s10 + $0x258] sm:$0xff]  }
0x25e7   :  { %9068 = vmatpush1.bf16.msra.mxu0 %v16863_v21  ;;  %15492 = vmatpush3.bf16.msra.mxu1 %v16897_v32  ;;  %v16926_v32 = vld [vmem:[%s20527_s10 + $0x260] sm:$0xff]  }
0x25e8   :  { %9069 = vmatprep.subr.bf16.mxu0 %v16868_v28  ;;  %15493 = vmatprep.subr.bf16.mxu1 %v16898_v49  ;;  %v16928_v49 = vld [vmem:[%s20527_s10 + $0x268] sm:$0xff]  }
0x25eb   :  { %9070 = vmatpush1.bf16.msra.mxu0 %v16866_v59  ;;  %15494 = vmatpush3.bf16.msra.mxu1 %v16902_v36  ;;  %v16930_v36 = vld [vmem:[%s20527_s10 + $0x270] sm:$0xff]  }
0x25ec   :  { %9071 = vmatprep.subr.bf16.mxu0 %v16871_v52  ;;  %15495 = vmatprep.subr.bf16.mxu1 %v16903_v38  ;;  %v16932_v38 = vld [vmem:[%s20527_s10 + $0x278] sm:$0xff]  }
0x25ef   :  { %9072 = vmatpush1.bf16.msra.mxu0 %v16869_v29  ;;  %15496 = vmatpush3.bf16.msra.mxu1 %v16907_v0  ;;  %v16934_v0 = vld [vmem:[%s20528_s11 + $0x240] sm:$0xff]  }
0x25f0   :  { %9073 = vmatprep.subr.bf16.mxu0 %v16874_v4  ;;  %15497 = vmatprep.subr.bf16.mxu1 %v16908_v41  ;;  %v16936_v41 = vld [vmem:[%s20528_s11 + $0x248] sm:$0xff]  }
0x25f3   :  { %9074 = vmatpush1.bf16.msra.mxu0 %v16872_v57  ;;  %15498 = vmatpush3.bf16.msra.mxu1 %v16912_v33  ;;  %v16938_v33 = vld [vmem:[%s20528_s11 + $0x250] sm:$0xff]  }
0x25f4   :  { %9075 = vmatprep.subr.bf16.mxu0 %v16877_v30  ;;  %15499 = vmatprep.subr.bf16.mxu1 %v16913_v54  ;;  %v16940_v54 = vld [vmem:[%s20528_s11 + $0x258] sm:$0xff]  }
0x25f7   :  { %9076 = vmatpush1.bf16.msra.mxu0 %v16875_v34  ;;  %15500 = vmatpush3.bf16.msra.mxu1 %v16917_v16  ;;  %v16942_v16 = vld [vmem:[%s20528_s11 + $0x260] sm:$0xff]  }
0x25f8   :  { %9077 = vmatprep.subr.bf16.mxu0 %v16881_v42  ;;  %15507 = vmatprep.subr.bf16.mxu1 %v16918_v25 }
0x25fb   :  { %9078 = vmatpush1.bf16.msra.mxu0 %v16879_v1 }
0x25fc   :  { %9079 = vmatprep.subr.bf16.mxu0 %v16886_v44 }
0x25ff   :  { %9080 = vmatpush1.bf16.msra.mxu0 %v16884_v43 }
0x2600   :  { %9081 = vmatprep.subr.bf16.mxu0 %v16891_v17  ;;  %v16921_v17 = vld [vmem:[%s20527_s10 + $0x208] sm:$0xff]  }
0x2603   :  { %9082 = vmatpush1.bf16.msra.mxu0 %v16889_v60  ;;  %v16923_v60 = vld [vmem:[%s20527_s10 + $0x210] sm:$0xff]  }
0x2604   :  { %9083 = vmatprep.subr.bf16.mxu0 %v16896_v39  ;;  %v16925_v39 = vld [vmem:[%s20527_s10 + $0x218] sm:$0xff]  }
0x2607   :  { %9084 = vmatpush1.bf16.msra.mxu0 %v16894_v7  ;;  %v16927_v7 = vld [vmem:[%s20527_s10 + $0x220] sm:$0xff]  }
0x2608   :  { %9085 = vmatprep.subr.bf16.mxu0 %v16901_v50  ;;  %v16929_v50 = vld [vmem:[%s20527_s10 + $0x228] sm:$0xff]  }
0x260b   :  { %9086 = vmatpush1.bf16.msra.mxu0 %v16899_v22  ;;  %v16931_v22 = vld [vmem:[%s20527_s10 + $0x230] sm:$0xff]  }
0x260c   :  { %9087 = vmatprep.subr.bf16.mxu0 %v16906_v63  ;;  %v16933_v63 = vld [vmem:[%s20527_s10 + $0x238] sm:$0xff]  }
0x260f   :  { %9088 = vmatpush1.bf16.msra.mxu0 %v16904_v46  ;;  %v16935_v46 = vld [vmem:[%s20528_s11 + $0x200] sm:$0xff]  }
0x2610   :  { %9089 = vmatprep.subr.bf16.mxu0 %v16911_v31  ;;  %v16937_v31 = vld [vmem:[%s20528_s11 + $0x208] sm:$0xff]  }
0x2613   :  { %9090 = vmatpush1.bf16.msra.mxu0 %v16909_v53  ;;  %v16939_v53 = vld [vmem:[%s20528_s11 + $0x210] sm:$0xff]  }
0x2614   :  { %9091 = vmatprep.subr.bf16.mxu0 %v16916_v55  ;;  %v16941_v55 = vld [vmem:[%s20528_s11 + $0x218] sm:$0xff]  }
0x2617   :  { %9092 = vmatpush1.bf16.msra.mxu0 %v16914_v56  ;;  %v16943_v56 = vld [vmem:[%s20528_s11 + $0x220] sm:$0xff]  }
0x2618   :  { %15529 = vmatprep.subr.bf16.mxu0 %v16934_v0 }
0x26ad   :  { %v8765_v13 = vpop.f32.mrb[88].mxu0  ;;  %v19913_v20 = vpop.f32.mrb[100].mxu1 }
0x26ae   :  { %v8832_v24 = vadd.f32 %v8827_v9, %v8765_v13  ;;  %v8767_v26 = vpop.f32.mrb[89].mxu0  ;;  %v19915_v62 = vpop.f32.mrb[101].mxu1 }
0x26af   :  { %v8833_v27 = vadd.f32 %v8831_v11, %v8767_v26  ;;  %v8769_v21 = vpop.f32.mrb[90].mxu0  ;;  %v8810_v28 = vpop.f32.mrb[102].mxu1 }
0x26b0   :  { %v14390_v59 = vmul.f32 -1.442695, %v8832_v24  ;;  %v8770_v52 = vpop.f32.mrb[91].mxu0  ;;  %v8811_v29 = vpop.f32.mrb[103].mxu1 }
0x26b1   :  { %v14391_v4 = vmul.f32 -1.442695, %v8833_v27 }
0x26b2   :  { %17578 = vpow2.f32 %v14390_v59 }
0x26b3   :  { %17580 = vpow2.f32 %v14391_v4 }
0x26bc   :  { %v17579_v57 = vpop.eup %17578 }
0x26bd   :  { %v17581_v30 = vpop.eup %17580  ;;  %v8840_v34 = vadd.f32 1.0, %v17579_v57 }
0x26be   :  { %v8841_v37 = vadd.f32 1.0, %v17581_v30  ;;  %v16944_v30 = vld [vmem:[%s20528_s11 + $0x268] sm:$0xff]  }
0x26bf   :  { %17582 = vrcp.f32 %v8840_v34  ;;  %v16945_v34 = vld [vmem:[%s20528_s11 + $0x228] sm:$0xff]  }
0x26c0   :  { %17584 = vrcp.f32 %v8841_v37  ;;  %v16946_v37 = vld [vmem:[%s20528_s11 + $0x270] sm:$0xff]  }
0x26c9   :  { %v17583_v42 = vpop.eup %17582 }
0x26ca   :  { %v17585_v47 = vpop.eup %17584  ;;  %v19917_v1 = vmul.f32 %v17583_v42, %v8832_v24  ;;  %v16947_v42 = vld [vmem:[%s20528_s11 + $0x230] sm:$0xff]  }
0x26cb   :  { %v19919_v40 = vmul.f32 %v17585_v47, %v8833_v27  ;;  %v16948_v47 = vld [vmem:[%s20528_s11 + $0x278] sm:$0xff]  }
0x26cc   :  { %v8848_v43 = vpack.c.bf16 %v19917_v1, %v19917_v1 }
0x26cd   :  { %v8849_v44 = vpack.c.bf16 %v19919_v40, %v19919_v40 }
0x26cf   :  { %9093 = vmatprep.mubr.bf16.mxu0 %v8849_v44  ;;  %9299 = vmatprep.mubr.bf16.mxu1 %v8849_v44 }
0x26d0   :  { %9094 = vmatmul.mubr.bf16.vlgmr.msra.gmra.mrb[92].mxu0 %v8848_v43  ;;  %9300 = vmatmul.mubr.bf16.vlgmr.msra.gmra.mrb[104].mxu1 %v8848_v43 }
0x26d1   :  { %15508 = vmatpush3.bf16.msra.mxu1 %v16919_v61  ;;  %9468 = vmatprep.mubr.bf16.mxu1 %v8849_v44  ;;  %v16949_v44 = vld [vmem:[%s20528_s11 + $0x238] sm:$0xff]   ;;  %v8886_v61 = vrot.slane %v19905_v23, %v18293_v15 }
0x26d2   :  { %15509 = vmatprep.subr.bf16.mxu1 %v16920_v45  ;;  %15530 = vmatpush3.bf16.msra.mxu0 %v16935_v46 }
0x26d3   :  { %15531 = vmatprep.subr.bf16.mxu0 %v16936_v41  ;;  %v8896_v45 = vrot.slane %v8886_v61, %v18293_v15 }
0x26d5   :  { %15510 = vmatpush3.bf16.msra.mxu1 %v16921_v17 }
0x26d6   :  { %15511 = vmatprep.subr.bf16.mxu1 %v16922_v51  ;;  %15532 = vmatpush3.bf16.msra.mxu0 %v16937_v31 }
0x26d7   :  { %15533 = vmatprep.subr.bf16.mxu0 %v16938_v33 }
0x26d9   :  { %15512 = vmatpush3.bf16.msra.mxu1 %v16923_v60 }
0x26da   :  { %15513 = vmatprep.subr.bf16.mxu1 %v16924_v48  ;;  %15534 = vmatpush3.bf16.msra.mxu0 %v16939_v53 }
0x26db   :  { %15535 = vmatprep.subr.bf16.mxu0 %v16940_v54 }
0x26dd   :  { %15514 = vmatpush3.bf16.msra.mxu1 %v16925_v39 }
0x26de   :  { %15515 = vmatprep.subr.bf16.mxu1 %v16926_v32  ;;  %15536 = vmatpush3.bf16.msra.mxu0 %v16941_v55 }
0x26df   :  { %15537 = vmatprep.subr.bf16.mxu0 %v16942_v16 }
0x26e1   :  { %15516 = vmatpush3.bf16.msra.mxu1 %v16927_v7 }
0x26e2   :  { %15517 = vmatprep.subr.bf16.mxu1 %v16928_v49  ;;  %15538 = vmatpush3.bf16.msra.mxu0 %v16943_v56 }
0x26e3   :  { %15539 = vmatprep.subr.bf16.mxu0 %v16944_v30 }
0x26e5   :  { %15518 = vmatpush3.bf16.msra.mxu1 %v16929_v50 }
0x26e6   :  { %15519 = vmatprep.subr.bf16.mxu1 %v16930_v36  ;;  %15540 = vmatpush3.bf16.msra.mxu0 %v16945_v34 }
0x26e7   :  { %15541 = vmatprep.subr.bf16.mxu0 %v16946_v37 }
0x26e9   :  { %15520 = vmatpush3.bf16.msra.mxu1 %v16931_v22 }
0x26ea   :  { %15521 = vmatprep.subr.bf16.mxu1 %v16932_v38  ;;  %15542 = vmatpush3.bf16.msra.mxu0 %v16947_v42  ;;  %v14520_v38 = vmul.f32 -1.442695, %v19913_v20 }
0x26eb   :  { %15543 = vmatprep.subr.bf16.mxu0 %v16948_v47 }
0x26ed   :  { %15522 = vmatpush3.bf16.msra.mxu1 %v16933_v63  ;;  %v14521_v63 = vmul.f32 -1.442695, %v19915_v62 }
0x26ee   :  { %15544 = vmatpush3.bf16.msra.mxu0 %v16949_v44 }
0x26f0   :  { %9469 = vmatmul.mubr.bf16.vlgmr.msra.gmra.mrb[108].mxu1 %v8848_v43  ;;  %v8890_v43 = vrot.slane %v19905_v23, %v18288_v12 }
0x26f1   :  { %9959 = vmatprep.mubr.bf16.mxu1 %v17967_v35 }
0x26f2   :  { %v8900_v17 = vrot.slane %v8890_v43, %v18293_v15 }
0x27a3   :  { %v9095_v25 = vpop.f32.mrb[92].mxu0  ;;  %v15501_v5 = vpop.f32.mrb[104].mxu1 }
0x27a4   :  { %v9097_v6 = vpop.f32.mrb[93].mxu0  ;;  %v15502_v9 = vpop.f32.mrb[105].mxu1  ;;  %v9096_v51 = vadd.f32 %v9095_v25, %v8896_v45 }
0x27a5   :  { %v15503_v11 = vadd.f32 %v15502_v9, %v15501_v5  ;;  %v9099_v13 = vpop.f32.mrb[94].mxu0  ;;  %v15504_v24 = vpop.f32.mrb[106].mxu1  ;;  %v9098_v60 = vadd.f32 %v9097_v6, %v8900_v17 }
0x27a6   :  { %v9100_v26 = vpop.f32.mrb[95].mxu0  ;;  %v15505_v27 = vpop.f32.mrb[107].mxu1  ;;  %v9108_v48 = vand.u32 2147483647, %v9096_v51  ;;  %vm9104_vm5 = vcmp.ne.f32.partialorder %v9096_v51, %v9096_v51 }
0x27a7   :  { %v9109_v39 = vand.u32 2147483647, %v9098_v60  ;;  %vm9105_vm6 = vcmp.ne.f32.partialorder %v9098_v60, %v9098_v60 }
0x27a8   :  { %v9110_v32 = vsub.f32 0.0, %v9108_v48 }
0x27a9   :  { %v9111_v7 = vsub.f32 0.0, %v9109_v39 }
0x27aa   :  { %v9112_v49 = vmul.f32 1.442695, %v9110_v32 }
0x27ab   :  { %v9114_v50 = vmul.f32 1.442695, %v9111_v7 }
0x27ac   :  { %17586 = vpow2.f32 %v9112_v49 }
0x27ad   :  { %17588 = vpow2.f32 %v9114_v50 }
0x27ae   :  { %17590 = vpow2.f32 %v14520_v38 }
0x27af   :  { %17592 = vpow2.f32 %v14521_v63 }
0x27b6   :  { %v17587_v36 = vpop.eup %17586 }
0x27b7   :  { %v17589_v22 = vpop.eup %17588  ;;  %v9116_v0 = vadd.f32 1.0, %v17587_v36  ;;  %v9119_v31 = vmul.f32 -0.5, %v17587_v36  ;;  %v9122_v6 = vand.u32 2147483647, %v17587_v36 }
0x27b8   :  { %v9125_v46 = vadd.f32 1.0, %v17589_v22  ;;  %v17591_v41 = vpop.eup %17590  ;;  %v9128_v33 = vmul.f32 -0.5, %v17589_v22  ;;  %v9131_v9 = vand.u32 2147483647, %v17589_v22 }
0x27b9   :  { %17594 = vlog2.f32 %v9116_v0  ;;  %v17593_v53 = vpop.eup %17592  ;;  %v9510_v16 = vadd.f32 1.0, %v17591_v41  ;;  %v9120_v56 = vadd.f32 1.0, %v9119_v31  ;;  %vm9123_vm3 = vcmp.lt.f32.partialorder %v9122_v6, 0.0004427343  ;;  %v16953_v41 = vld [vmem:[#allocation11 + $0x408] ss:$16 sps:$4 sm:$0xff]  }
0x27ba   :  { %17596 = vlog2.f32 %v9125_v46  ;;  %v9129_v25 = vadd.f32 1.0, %v9128_v33  ;;  %v9511_v5 = vadd.f32 1.0, %v17593_v53  ;;  %vm9132_vm4 = vcmp.lt.f32.partialorder %v9131_v9, 0.0004427343  ;;  %v16950_v46 = vld [vmem:[#allocation11 + $0x400] ss:$16 sps:$4 sm:$0xff]  }
0x27bb   :  { %17598 = vrcp.f32 %v9510_v16  ;;  %v9121_v24 = vmul.f32 %v17587_v36, %v9120_v56  ;;  %v16958_v31 = vld [vmem:[#allocation11 + $0x424] ss:$16 sps:$4 sm:$0xff]   ;;  %v16961_v33 = vld [vmem:[#allocation11 + $0x42c] ss:$16 sps:$4 sm:$0xff]   ;;  %v16956_v53 = vld [vmem:[#allocation11 + $0x420] ss:$16 sps:$4 sm:$0xff]  }
0x27bc   :  { %v9130_v26 = vmul.f32 %v17589_v22, %v9129_v25  ;;  %17600 = vrcp.f32 %v9511_v5  ;;  %v16962_v16 = vld [vmem:[#allocation11 + $0x440] ss:$16 sps:$4 sm:$0xff]   ;;  %v16965_v56 = vld [vmem:[#allocation11 + $0x448] ss:$16 sps:$4 sm:$0xff]   ;;  %v16970_v25 = vld [vmem:[#allocation11 + $0x464] ss:$16 sps:$4 sm:$0xff]  }
0x27bd   :  { %v16973_v5 = vld [vmem:[#allocation11 + $0x46c] ss:$16 sps:$4 sm:$0xff]   ;;  %v16968_v6 = vld [vmem:[#allocation11 + $0x460] ss:$16 sps:$4 sm:$0xff]   ;;  %v16971_v9 = vld [vmem:[#allocation11 + $0x468] ss:$16 sps:$4 sm:$0xff]  }
0x27c3   :  { %v15523_v21 = vpop.f32.mrb[108].mxu1  ;;  %v17595_v54 = vpop.eup %17594 }
0x27c4   :  { %v15524_v28 = vpop.f32.mrb[109].mxu1  ;;  %v17597_v55 = vpop.eup %17596 }
0x27c5   :  { %v15525_v59 = vadd.f32 %v15524_v28, %v15523_v21  ;;  %v15526_v52 = vpop.f32.mrb[110].mxu1  ;;  %v9127_v13 = vmul.f32 0.6931472, %v17597_v55  ;;  %v9102_v28 = vmax.f32 %v9096_v51, 0.0  ;;  %v17599_v44 = vpop.eup %17598  ;;  %v16967_v55 = vld [vmem:[#allocation11 + $0x44c] ss:$16 sps:$4 sm:$0xff]  }
0x27c6   :  { %v15527_v29 = vpop.f32.mrb[111].mxu1  ;;  %v9485_v52 = vrot.slane %v19905_v23, %v18273_v2  ;;  %v17601_v45 = vpop.eup %17600  ;;  %v9516_v39 = vmul.f32 %v17599_v44, %v19913_v20  ;;  %v16999_v44 = vld [vmem:[#allocation13 + $0x4c0] sm:$0xff]  }
0x27c7   :  { %v9476_v4 = vmul.f32 %v15525_v59, %v15503_v11  ;;  %v9118_v11 = vmul.f32 0.6931472, %v17595_v54  ;;  %v9133_v21 = vsel %vm9132_vm4, %v9130_v26, %v9127_v13  ;;  %v9103_v59 = vmax.f32 %v9098_v60, 0.0  ;;  %v16959_v54 = vld [vmem:[#allocation11 + $0x428] ss:$16 sps:$4 sm:$0xff]  }
0x27c8   :  { %v9489_v29 = vrot.slane %v19905_v23, %v18291_v14  ;;  %v9495_v30 = vrot.slane %v9485_v52, %v18273_v2  ;;  %v9517_v23 = vmul.f32 %v17601_v45, %v19915_v62  ;;  %v16979_v13 = vld [vmem:[#allocation11 + $0x48c] ss:$16 sps:$4 sm:$0xff]   ;;  %v16977_v26 = vld [vmem:[#allocation11 + $0x488] ss:$16 sps:$4 sm:$0xff]   ;;  %v16988_v52 = vld [vmem:[#allocation11 + $0x4c4] ss:$16 sps:$4 sm:$0xff]  }
0x27c9   :  { %v9477_v57 = vsel %vm2040_vm14, %v9476_v4, 0.0  ;;  %v9124_v27 = vsel %vm9123_vm3, %v9121_v24, %v9118_v11  ;;  %v16976_v11 = vld [vmem:[#allocation11 + $0x484] ss:$16 sps:$4 sm:$0xff]   ;;  %v16974_v24 = vld [vmem:[#allocation11 + $0x480] ss:$16 sps:$4 sm:$0xff]  }
0x27ca   :  { %9478 = vadd.xlane.f32.xlu1 %v9477_v57  ;;  %v9134_v4 = vadd.f32 %v9124_v27, %v9102_v28  ;;  %v9135_v57 = vadd.f32 %v9133_v21, %v9103_v59  ;;  %v9499_v34 = vrot.slane %v9489_v29, %v18273_v2  ;;  %v16982_v27 = vld [vmem:[#allocation11 + $0x4a4] ss:$16 sps:$4 sm:$0xff]   ;;  %v16985_v21 = vld [vmem:[#allocation11 + $0x4ac] ss:$16 sps:$4 sm:$0xff]   ;;  %v16980_v28 = vld [vmem:[#allocation11 + $0x4a0] ss:$16 sps:$4 sm:$0xff]  }
0x27cb   :  { %v16983_v59 = vld [vmem:[#allocation11 + $0x4a8] ss:$16 sps:$4 sm:$0xff]   ;;  %v16991_v29 = vld [vmem:[#allocation11 + $0x4cc] ss:$16 sps:$4 sm:$0xff]  }
0x27cc   :  { %v9136_v42 = vsel %vm9104_vm5, %v9096_v51, %v9134_v4  ;;  %v9137_v47 = vsel %vm9105_vm6, %v9098_v60, %v9135_v57  ;;  %v16986_v4 = vld [vmem:[#allocation11 + $0x4c0] ss:$16 sps:$4 sm:$0xff]   ;;  %v16989_v57 = vld [vmem:[#allocation11 + $0x4c8] ss:$16 sps:$4 sm:$0xff]  }
0x2857   :  { %v9479_v37 = vpop.xlane.xlu1 %9478 }
0x2858   :  { %v9480_v61 = vmul.f32 %v9479_v37, %v9136_v42  ;;  %v9481_v43 = vmul.f32 %v9479_v37, %v9137_v47  ;;  %v16992_v37 = vld [vmem:[#allocation11 + $0x4e0] ss:$16 sps:$4 sm:$0xff]   ;;  %v16995_v42 = vld [vmem:[#allocation11 + $0x4e8] ss:$16 sps:$4 sm:$0xff]  }
0x2859   :  { %v16998_v47 = vld [vmem:[#allocation13 + $0x440] sm:$0xff]  }
0x285a   :  { %v9500_v17 = vadd.f32 %v9495_v30, %v9480_v61  ;;  %v9501_v48 = vadd.f32 %v9499_v34, %v9481_v43  ;;  %v16994_v30 = vld [vmem:[#allocation11 + $0x4e4] ss:$16 sps:$4 sm:$0xff]   ;;  %v16997_v34 = vld [vmem:[#allocation11 + $0x4ec] ss:$16 sps:$4 sm:$0xff]  }
0x285c   :  { %v9502_v32 = vmul.f32 %v9500_v17, %v19917_v1  ;;  %v9503_v7 = vmul.f32 %v9501_v48, %v19919_v40  ;;  %v16952_v1 = vld [vmem:[#allocation11 + $0x404] ss:$16 sps:$4 sm:$0xff]   ;;  %v16955_v40 = vld [vmem:[#allocation11 + $0x40c] ss:$16 sps:$4 sm:$0xff]  }
0x285d   :  { %9927 = vmatprep.subr.bf16.mxu1 %v16952_v1  ;;  %9968 = vmatprep.subr.bf16.mxu0 %v16955_v40  ;;  %v17007_v1 = vld [vmem:[#allocation13 + $0x4d0] sm:$0xff]  }
0x285e   :  { %v9518_v49 = vmul.f32 %v9516_v39, %v9502_v32  ;;  %v9519_v50 = vmul.f32 %v9517_v23, %v9503_v7  ;;  %9928 = vmatpush1.bf16.msra.mxu1 %v16950_v46  ;;  %v9695_v32 = vrot.slane %v19846_v58, %v18293_v15  ;;  %v17008_v40 = vld [vmem:[#allocation13 + $0x410] sm:$0xff]  }
0x285f   :  { %9929 = vmatprep.subr.bf16.mxu1 %v16958_v31  ;;  %v17009_v46 = vld [vmem:[#allocation13 + $0x490] sm:$0xff]   ;;  %v17011_v31 = vld [vmem:[#allocation13 + $0x4d8] sm:$0xff]  }
0x2860   :  { %v9521_v36 = vpack.c.bf16 %v9519_v50, %v9519_v50  ;;  %v9520_v22 = vpack.c.bf16 %v9518_v49, %v9518_v49 }
0x2862   :  { %9683 = vmatprep.mubr.bf16.mxu0 %v9521_v36  ;;  %9930 = vmatpush1.bf16.msra.mxu1 %v16956_v53  ;;  %v17000_v36 = vld [vmem:[#allocation13 + $0x400] sm:$0xff]   ;;  %v17013_v53 = vld [vmem:[#allocation13 + $0x498] sm:$0xff]  }
0x2863   :  { %9684 = vmatmul.mubr.bf16.vlgmr.msra.gmra.mrb[96].mxu0 %v9520_v22  ;;  %v17001_v22 = vld [vmem:[#allocation13 + $0x480] sm:$0xff]  }
0x2864   :  { %10000 = vmatprep.mubr.bf16.mxu0 %v17967_v35  ;;  %9969 = vmatpush1.bf16.msra.mxu0 %v16953_v41  ;;  %v17010_v41 = vld [vmem:[#allocation13 + $0x458] sm:$0xff]  }
0x2865   :  { %9970 = vmatprep.subr.bf16.mxu0 %v16961_v33  ;;  %v17012_v33 = vld [vmem:[#allocation13 + $0x418] sm:$0xff]  }
0x2868   :  { %9971 = vmatpush1.bf16.msra.mxu0 %v16959_v54  ;;  %v17014_v54 = vld [vmem:[#allocation13 + $0x460] sm:$0xff]  }
0x2869   :  { %9972 = vmatprep.subr.bf16.mxu0 %v16967_v55  ;;  %v17016_v55 = vld [vmem:[#allocation13 + $0x420] sm:$0xff]  }
0x286c   :  { %9973 = vmatpush1.bf16.msra.mxu0 %v16965_v56  ;;  %v17018_v56 = vld [vmem:[#allocation13 + $0x468] sm:$0xff]  }
0x286d   :  { %9974 = vmatprep.subr.bf16.mxu0 %v16973_v5  ;;  %v17020_v5 = vld [vmem:[#allocation13 + $0x428] sm:$0xff]  }
0x2870   :  { %9975 = vmatpush1.bf16.msra.mxu0 %v16971_v9  ;;  %v17022_v9 = vld [vmem:[#allocation13 + $0x470] sm:$0xff]  }
0x2871   :  { %9976 = vmatprep.subr.bf16.mxu0 %v16979_v13  ;;  %v17024_v13 = vld [vmem:[#allocation13 + $0x430] sm:$0xff]  }
0x2874   :  { %9977 = vmatpush1.bf16.msra.mxu0 %v16977_v26  ;;  %v17026_v26 = vld [vmem:[#allocation13 + $0x478] sm:$0xff]  }
0x2875   :  { %9978 = vmatprep.subr.bf16.mxu0 %v16985_v21  ;;  %v17028_v21 = vld [vmem:[#allocation13 + $0x438] sm:$0xff]  }
0x2878   :  { %9979 = vmatpush1.bf16.msra.mxu0 %v16983_v59  ;;  %v14570_v59 = vld [vmem:[%s20533_s16 + $0x4] ss:$8 sm:$0xf] }
0x2879   :  { %9980 = vmatprep.subr.bf16.mxu0 %v16991_v29  ;;  %v9758_v29 = vrot.slane %v14570_v59, %v18273_v2 }
0x287c   :  { %9981 = vmatpush1.bf16.msra.mxu0 %v16989_v57  ;;  %v9762_v57 = vrot.slane %v14570_v59, %v18282_v8 }
0x287d   :  { %9982 = vmatprep.subr.bf16.mxu0 %v16997_v34 }
0x2880   :  { %9983 = vmatpush1.bf16.msra.mxu0 %v16995_v42 }
0x2881   :  { %15573 = vmatprep.subr.bf16.mxu0 %v16999_v44 }
0x2936   :  { %v15545_v51 = vpop.f32.mrb[96].mxu0 }
0x2937   :  { %v15546_v60 = vpop.f32.mrb[97].mxu0 }
0x2938   :  { %v15547_v38 = vadd.f32 %v15546_v60, %v15545_v51  ;;  %v15548_v63 = vpop.f32.mrb[98].mxu0  ;;  %v17002_v60 = vld [vmem:[#allocation13 + $0x448] sm:$0xff]  }
0x2939   :  { %v15549_v0 = vpop.f32.mrb[99].mxu0  ;;  %v17004_v63 = vld [vmem:[#allocation13 + $0x408] sm:$0xff]  }
0x293a   :  { %v20040_v20 = vadd.f32 %v15547_v38, %v19743_v19  ;;  %v16964_v19 = vld [vmem:[#allocation11 + $0x444] ss:$16 sps:$4 sm:$0xff]   ;;  %v17003_v38 = vld [vmem:[#allocation13 + $0x4c8] sm:$0xff]  }
0x293b   :  { %9931 = vmatprep.subr.bf16.mxu1 %v16964_v19  ;;  %v17005_v0 = vld [vmem:[#allocation13 + $0x488] sm:$0xff]   ;;  %v17015_v19 = vld [vmem:[#allocation13 + $0x4e0] sm:$0xff]  }
0x293c   :  { %v9697_v62 = vmul.f32 %v20040_v20, %v20040_v20  ;;  %9932 = vmatpush1.bf16.msra.mxu1 %v16962_v16  ;;  %v9696_v7 = vmul.f32 %v9695_v32, %v20040_v20  ;;  %v17017_v16 = vld [vmem:[#allocation13 + $0x4a0] sm:$0xff]  }
0x293d   :  { %9933 = vmatprep.subr.bf16.mxu1 %v16970_v25  ;;  %v17019_v25 = vld [vmem:[#allocation13 + $0x4e8] sm:$0xff]  }
0x293e   :  { %9698 = vadd.xlane.f32.xlu0 %v9697_v62  ;;  %v17006_v62 = vld [vmem:[#allocation13 + $0x450] sm:$0xff]  }
0x2940   :  { %9934 = vmatpush1.bf16.msra.mxu1 %v16968_v6  ;;  %v17021_v6 = vld [vmem:[#allocation13 + $0x4a8] sm:$0xff]  }
0x2941   :  { %9935 = vmatprep.subr.bf16.mxu1 %v16976_v11  ;;  %v17023_v11 = vld [vmem:[#allocation13 + $0x4f0] sm:$0xff]  }
0x2944   :  { %9936 = vmatpush1.bf16.msra.mxu1 %v16974_v24  ;;  %v17025_v24 = vld [vmem:[#allocation13 + $0x4b0] sm:$0xff]  }
0x2945   :  { %9937 = vmatprep.subr.bf16.mxu1 %v16982_v27  ;;  %v17027_v27 = vld [vmem:[#allocation13 + $0x4f8] sm:$0xff]  }
0x2948   :  { %9938 = vmatpush1.bf16.msra.mxu1 %v16980_v28  ;;  %v17029_v28 = vld [vmem:[#allocation13 + $0x4b8] sm:$0xff]  }
0x2949   :  { %9939 = vmatprep.subr.bf16.mxu1 %v16988_v52  ;;  %v9750_v52 = vrot.slane %v14570_v59, %v18275_v3 }
0x294c   :  { %9940 = vmatpush1.bf16.msra.mxu1 %v16986_v4  ;;  %v9754_v4 = vrot.slane %v14570_v59, %v18293_v15 }
0x294d   :  { %9941 = vmatprep.subr.bf16.mxu1 %v16994_v30 }
0x2950   :  { %9942 = vmatpush1.bf16.msra.mxu1 %v16992_v37 }
0x2951   :  { %15551 = vmatprep.subr.bf16.mxu1 %v16998_v47 }
0x29cb   :  { %v9699_v61 = vpop.xlane.xlu0 %9698 }
0x29cc   :  { %v9700_v43 = vadd.f32 1e-06, %v9699_v61 }
0x29ce   :  { %17602 = vrsqrt.f32 %v9700_v43  ;;  %vm9703_vm7 = vcmp.eq.f32.partialorder %v9700_v43, inf  ;;  %v9706_v48 = vand.u32 2147483648, %v9700_v43  ;;  %vm9705_vm9 = vcmp.eq.f32.partialorder %v9700_v43, 0.0 }
0x29d8   :  { %v17603_v45 = vpop.eup %17602 }
0x29d9   :  { %v9702_v17 = vmul.f32 %v17603_v45, %v9700_v43 }
0x29db   :  { %v9704_v39 = vsel %vm9703_vm7, %v9700_v43, %v9702_v17 }
0x29dc   :  { %v9707_v23 = vsel %vm9705_vm9, %v9706_v48, %v9704_v39 }
0x29dd   :  { %17604 = vrcp.f32 %v9707_v23 }
0x29e7   :  { %v17605_v49 = vpop.eup %17604 }
0x29e8   :  { %v9709_v50 = vmul.f32 %v17605_v49, %v9696_v7 }
0x29ea   :  { %v9710_v51 = vpack.c.bf16 %v9709_v50, %v9709_v50 }
0x29ec   :  { %9960 = vmatmul.mubr.bf16.vlgmr.msra.gmra.mrb[112].mxu1 %v9710_v51  ;;  %10001 = vmatmul.mubr.bf16.vlgmr.msra.gmra.mrb[100].mxu0 %v9710_v51 }
0x29ed   :  { %15552 = vmatpush3.bf16.msra.mxu1 %v17000_v36  ;;  %15574 = vmatpush3.bf16.msra.mxu0 %v17001_v22 }
0x29ee   :  { %15553 = vmatprep.subr.bf16.mxu1 %v17002_v60  ;;  %15575 = vmatprep.subr.bf16.mxu0 %v17003_v38 }
0x29f1   :  { %15554 = vmatpush3.bf16.msra.mxu1 %v17004_v63  ;;  %15576 = vmatpush3.bf16.msra.mxu0 %v17005_v0 }
0x29f2   :  { %15555 = vmatprep.subr.bf16.mxu1 %v17006_v62  ;;  %15577 = vmatprep.subr.bf16.mxu0 %v17007_v1 }
0x29f5   :  { %15556 = vmatpush3.bf16.msra.mxu1 %v17008_v40  ;;  %15578 = vmatpush3.bf16.msra.mxu0 %v17009_v46 }
0x29f6   :  { %15557 = vmatprep.subr.bf16.mxu1 %v17010_v41  ;;  %15579 = vmatprep.subr.bf16.mxu0 %v17011_v31 }
0x29f9   :  { %15558 = vmatpush3.bf16.msra.mxu1 %v17012_v33  ;;  %15580 = vmatpush3.bf16.msra.mxu0 %v17013_v53 }
0x29fa   :  { %15559 = vmatprep.subr.bf16.mxu1 %v17014_v54  ;;  %15581 = vmatprep.subr.bf16.mxu0 %v17015_v19 }
0x29fd   :  { %15560 = vmatpush3.bf16.msra.mxu1 %v17016_v55  ;;  %15582 = vmatpush3.bf16.msra.mxu0 %v17017_v16 }
0x29fe   :  { %15561 = vmatprep.subr.bf16.mxu1 %v17018_v56  ;;  %15583 = vmatprep.subr.bf16.mxu0 %v17019_v25  ;;  %v10101_v25 = vrot.slane %v19846_v58, %v18273_v2  ;;  %v17032_v58 = vld [vmem:[%s20571_s0 + $0x504] ss:$16 sps:$4 sm:$0xff]  }
0x2a01   :  { %15562 = vmatpush3.bf16.msra.mxu1 %v17020_v5  ;;  %15584 = vmatpush3.bf16.msra.mxu0 %v17021_v6 }
0x2a02   :  { %15563 = vmatprep.subr.bf16.mxu1 %v17022_v9  ;;  %15585 = vmatprep.subr.bf16.mxu0 %v17023_v11 }
0x2a05   :  { %15564 = vmatpush3.bf16.msra.mxu1 %v17024_v13  ;;  %15586 = vmatpush3.bf16.msra.mxu0 %v17025_v24 }
0x2a06   :  { %15565 = vmatprep.subr.bf16.mxu1 %v17026_v26  ;;  %15587 = vmatprep.subr.bf16.mxu0 %v17027_v27 }
0x2a09   :  { %15566 = vmatpush3.bf16.msra.mxu1 %v17028_v21  ;;  %15588 = vmatpush3.bf16.msra.mxu0 %v17029_v28 }
0x2a0a   :  { %10591 = vmatprep.subr.bf16.mxu1 %v17032_v58  ;;  %v17090_v58 = vld [vmem:[#allocation10 + $0x540] ss:$8 sps:$4 sm:$0xff]  }
0x2abf   :  { %v9961_v30 = vpop.f32.mrb[112].mxu1  ;;  %v10002_v34 = vpop.f32.mrb[100].mxu0 }
0x2ac0   :  { %v9962_v37 = vadd.f32 %v9961_v30, %v9750_v52  ;;  %v10003_v42 = vadd.f32 %v10002_v34, %v9758_v29  ;;  %v9963_v47 = vpop.f32.mrb[113].mxu1  ;;  %v10004_v44 = vpop.f32.mrb[101].mxu0  ;;  %v17038_v30 = vld [vmem:[%s20571_s0 + $0x524] ss:$16 sps:$4 sm:$0xff]   ;;  %v17041_v34 = vld [vmem:[%s20571_s0 + $0x52c] ss:$16 sps:$4 sm:$0xff]  }
0x2ac1   :  { %v9964_v61 = vadd.f32 %v9963_v47, %v9754_v4  ;;  %v10005_v43 = vadd.f32 %v10004_v44, %v9762_v57  ;;  %v9965_v45 = vpop.f32.mrb[114].mxu1  ;;  %v10006_v17 = vpop.f32.mrb[102].mxu0  ;;  %v17035_v4 = vld [vmem:[%s20571_s0 + $0x50c] ss:$16 sps:$4 sm:$0xff]   ;;  %v17030_v57 = vld [vmem:[%s20571_s0 + $0x500] ss:$16 sps:$4 sm:$0xff]  }
0x2ac2   :  { %v10013_v48 = vmul.f32 0.70710677, %v9962_v37  ;;  %v10015_v39 = vmul.f32 0.70710677, %v10003_v42  ;;  %v9966_v7 = vpop.f32.mrb[115].mxu1  ;;  %v10007_v49 = vpop.f32.mrb[103].mxu0  ;;  %10632 = vmatprep.subr.bf16.mxu0 %v17035_v4 }
0x2ac3   :  { %v10014_v23 = vmul.f32 0.70710677, %v9964_v61  ;;  %v10016_v32 = vmul.f32 0.70710677, %v10005_v43  ;;  %v10009_v60 = vmul.f32 0.5, %v9962_v37  ;;  %v10011_v0 = vmul.f32 0.5, %v10003_v42 }
0x2ac4   :  { %17606 = verf.f32 %v10013_v48  ;;  %v10010_v62 = vmul.f32 0.5, %v9964_v61  ;;  %v10012_v46 = vmul.f32 0.5, %v10005_v43  ;;  %v17036_v37 = vld [vmem:[%s20571_s0 + $0x520] ss:$16 sps:$4 sm:$0xff]   ;;  %v17039_v42 = vld [vmem:[%s20571_s0 + $0x528] ss:$16 sps:$4 sm:$0xff]  }
0x2ac5   :  { %17608 = verf.f32 %v10015_v39  ;;  %v17044_v47 = vld [vmem:[%s20571_s0 + $0x544] ss:$16 sps:$4 sm:$0xff]   ;;  %v17047_v44 = vld [vmem:[%s20571_s0 + $0x54c] ss:$16 sps:$4 sm:$0xff]   ;;  %v17042_v61 = vld [vmem:[%s20571_s0 + $0x540] ss:$16 sps:$4 sm:$0xff]  }
0x2ac6   :  { %17610 = verf.f32 %v10014_v23  ;;  %v17045_v43 = vld [vmem:[%s20571_s0 + $0x548] ss:$16 sps:$4 sm:$0xff]   ;;  %v17050_v45 = vld [vmem:[%s20571_s0 + $0x564] ss:$16 sps:$4 sm:$0xff]   ;;  %v17053_v17 = vld [vmem:[%s20571_s0 + $0x56c] ss:$16 sps:$4 sm:$0xff]  }
0x2ac7   :  { %17612 = verf.f32 %v10016_v32  ;;  %v17048_v48 = vld [vmem:[%s20571_s0 + $0x560] ss:$16 sps:$4 sm:$0xff]   ;;  %v17051_v39 = vld [vmem:[%s20571_s0 + $0x568] ss:$16 sps:$4 sm:$0xff]   ;;  %v17056_v32 = vld [vmem:[%s20571_s0 + $0x584] ss:$16 sps:$4 sm:$0xff]  }
0x2ac8   :  { %v17054_v23 = vld [vmem:[%s20571_s0 + $0x580] ss:$16 sps:$4 sm:$0xff]   ;;  %v17057_v7 = vld [vmem:[%s20571_s0 + $0x588] ss:$16 sps:$4 sm:$0xff]   ;;  %v17059_v49 = vld [vmem:[%s20571_s0 + $0x58c] ss:$16 sps:$4 sm:$0xff]  }
0x2ac9   :  { %v17095_v4 = vld [vmem:[#allocation10 + $0x554] ss:$8 sps:$4 sm:$0xff]  }
0x2ace   :  { %v17607_v50 = vpop.eup %17606 }
0x2acf   :  { %v17609_v36 = vpop.eup %17608  ;;  %v10021_v22 = vadd.f32 1.0, %v17607_v50  ;;  %v17062_v50 = vld [vmem:[%s20571_s0 + $0x5a4] ss:$16 sps:$4 sm:$0xff]  }
0x2ad0   :  { %v17611_v51 = vpop.eup %17610  ;;  %v10023_v38 = vadd.f32 1.0, %v17609_v36  ;;  %v17065_v36 = vld [vmem:[%s20571_s0 + $0x5ac] ss:$16 sps:$4 sm:$0xff]  }
0x2ad1   :  { %v17613_v63 = vpop.eup %17612  ;;  %v10022_v1 = vadd.f32 1.0, %v17611_v51  ;;  %v10025_v40 = vmul.f32 %v10021_v22, %v10009_v60  ;;  %v17060_v22 = vld [vmem:[%s20571_s0 + $0x5a0] ss:$16 sps:$4 sm:$0xff]   ;;  %v17063_v51 = vld [vmem:[%s20571_s0 + $0x5a8] ss:$16 sps:$4 sm:$0xff]  }
0x2ad2   :  { %v10024_v41 = vadd.f32 1.0, %v17613_v63  ;;  %v10027_v31 = vmul.f32 %v10023_v38, %v10011_v0  ;;  %v17068_v60 = vld [vmem:[%s20571_s0 + $0x5c4] ss:$16 sps:$4 sm:$0xff]   ;;  %v17071_v38 = vld [vmem:[%s20571_s0 + $0x5cc] ss:$16 sps:$4 sm:$0xff]  }
0x2ad3   :  { %v10026_v33 = vmul.f32 %v10022_v1, %v10010_v62  ;;  %v10029_v19 = vpack.c.bf16 %v10025_v40, %v10025_v40  ;;  %v17066_v63 = vld [vmem:[%s20571_s0 + $0x5c0] ss:$16 sps:$4 sm:$0xff]   ;;  %v17069_v0 = vld [vmem:[%s20571_s0 + $0x5c8] ss:$16 sps:$4 sm:$0xff]   ;;  %v17074_v62 = vld [vmem:[%s20571_s0 + $0x5e4] ss:$16 sps:$4 sm:$0xff]  }
0x2ad4   :  { %v10028_v53 = vmul.f32 %v10024_v41, %v10012_v46  ;;  %v10031_v16 = vpack.c.bf16 %v10027_v31, %v10027_v31  ;;  %v17077_v1 = vld [vmem:[%s20571_s0 + $0x5ec] ss:$16 sps:$4 sm:$0xff]   ;;  %v17072_v40 = vld [vmem:[%s20571_s0 + $0x5e0] ss:$16 sps:$4 sm:$0xff]   ;;  %v17075_v46 = vld [vmem:[%s20571_s0 + $0x5e8] ss:$16 sps:$4 sm:$0xff]  }
0x2ad5   :  { %v10030_v54 = vpack.c.bf16 %v10026_v33, %v10026_v33  ;;  %v17080_v41 = vld [vmem:[#allocation10 + $0x504] ss:$8 sps:$4 sm:$0xff]  }
0x2ad6   :  { %v10032_v55 = vpack.c.bf16 %v10028_v53, %v10028_v53 }
0x2ad7   :  { %10326 = vmatprep.mubr.bf16.mxu1 %v10030_v54 }
0x2ad8   :  { %10366 = vmatprep.mubr.bf16.mxu0 %v10032_v55  ;;  %10327 = vmatmul.mubr.bf16.vlgmr.msra.gmra.mrb[116].mxu1 %v10029_v19 }
0x2ad9   :  { %10367 = vmatmul.mubr.bf16.vlgmr.msra.gmra.mrb[104].mxu0 %v10031_v16  ;;  %10623 = vmatprep.mubr.bf16.mxu1 %v17967_v35 }
0x2ada   :  { %10664 = vmatprep.mubr.bf16.mxu0 %v17967_v35  ;;  %10592 = vmatpush1.bf16.msra.mxu1 %v17030_v57  ;;  %v17093_v57 = vld [vmem:[#allocation10 + $0x550] ss:$8 sps:$4 sm:$0xff]  }
0x2adb   :  { %10593 = vmatprep.subr.bf16.mxu1 %v17038_v30  ;;  %v17096_v30 = vld [vmem:[#allocation10 + $0x560] ss:$8 sps:$4 sm:$0xff]  }
0x2ade   :  { %10594 = vmatpush1.bf16.msra.mxu1 %v17036_v37  ;;  %v17099_v37 = vld [vmem:[#allocation10 + $0x570] ss:$8 sps:$4 sm:$0xff]  }
0x2adf   :  { %10595 = vmatprep.subr.bf16.mxu1 %v17044_v47  ;;  %v17105_v47 = vld [vmem:[#allocation10 + $0x584] ss:$8 sps:$4 sm:$0xff]  }
0x2ae2   :  { %10596 = vmatpush1.bf16.msra.mxu1 %v17042_v61  ;;  %v17103_v61 = vld [vmem:[#allocation10 + $0x580] ss:$8 sps:$4 sm:$0xff]  }
0x2ae3   :  { %10597 = vmatprep.subr.bf16.mxu1 %v17050_v45  ;;  %v17110_v45 = vld [vmem:[#allocation10 + $0x594] ss:$8 sps:$4 sm:$0xff]  }
0x2ae6   :  { %10598 = vmatpush1.bf16.msra.mxu1 %v17048_v48  ;;  %v17108_v48 = vld [vmem:[#allocation10 + $0x590] ss:$8 sps:$4 sm:$0xff]  }
0x2ae7   :  { %10599 = vmatprep.subr.bf16.mxu1 %v17056_v32  ;;  %v17116_v32 = vld [vmem:[%s20526_s9 + $0x290] sm:$0xff]  }
0x2aea   :  { %10600 = vmatpush1.bf16.msra.mxu1 %v17054_v23  ;;  %v17115_v23 = vld [vmem:[#allocation10 + $0x5a4] ss:$8 sps:$4 sm:$0xff]  }
0x2aeb   :  { %10601 = vmatprep.subr.bf16.mxu1 %v17062_v50  ;;  %v17120_v50 = vld [vmem:[#allocation10 + $0x5b4] ss:$8 sps:$4 sm:$0xff]  }
0x2aee   :  { %10602 = vmatpush1.bf16.msra.mxu1 %v17060_v22  ;;  %v17118_v22 = vld [vmem:[#allocation10 + $0x5b0] ss:$8 sps:$4 sm:$0xff]  }
0x2aef   :  { %10603 = vmatprep.subr.bf16.mxu1 %v17068_v60  ;;  %v17125_v60 = vld [vmem:[#allocation10 + $0x5c4] ss:$8 sps:$4 sm:$0xff]  }
0x2af2   :  { %10604 = vmatpush1.bf16.msra.mxu1 %v17066_v63  ;;  %v17123_v63 = vld [vmem:[#allocation10 + $0x5c0] ss:$8 sps:$4 sm:$0xff]  }
0x2af3   :  { %10605 = vmatprep.subr.bf16.mxu1 %v17074_v62  ;;  %v17130_v62 = vld [vmem:[#allocation10 + $0x5d4] ss:$8 sps:$4 sm:$0xff]  }
0x2af6   :  { %10606 = vmatpush1.bf16.msra.mxu1 %v17072_v40  ;;  %v17128_v40 = vld [vmem:[#allocation10 + $0x5d0] ss:$8 sps:$4 sm:$0xff]  }
0x2af7   :  { %10921 = vmatprep.subr.bf16.mxu1 %v17080_v41  ;;  %v17135_v41 = vld [vmem:[#allocation10 + $0x5e4] ss:$8 sps:$4 sm:$0xff]  }
0x2bab   :  { %v15567_v56 = vpop.f32.mrb[116].mxu1 }
0x2bac   :  { %v15589_v5 = vpop.f32.mrb[104].mxu0  ;;  %v15568_v6 = vpop.f32.mrb[117].mxu1 }
0x2bad   :  { %v15569_v9 = vadd.f32 %v15568_v6, %v15567_v56  ;;  %v15590_v11 = vpop.f32.mrb[105].mxu0  ;;  %v15570_v13 = vpop.f32.mrb[118].mxu1  ;;  %v20162_v56 = vld [vmem:[%s20532_s15 + $0x14] sm:$0x7] }
0x2bae   :  { %v15591_v24 = vadd.f32 %v15590_v11, %v15589_v5  ;;  %v15592_v26 = vpop.f32.mrb[106].mxu0  ;;  %v15571_v27 = vpop.f32.mrb[119].mxu1  ;;  %v17078_v11 = vld [vmem:[#allocation10 + $0x500] ss:$8 sps:$4 sm:$0xff]  }
0x2baf   :  { %v10329_v21 = vadd.f32 %v15569_v9, %v10101_v25  ;;  %v15593_v28 = vpop.f32.mrb[107].mxu0  ;;  %v10382_v25 = vrot.slane %v20162_v56, %v18275_v3  ;;  %v17081_v26 = vld [vmem:[#allocation10 + $0x510] ss:$8 sps:$4 sm:$0xff]   ;;  %v17086_v27 = vld [vmem:[#allocation10 + $0x524] ss:$8 sps:$4 sm:$0xff]  }
0x2bb0   :  { %v17089_v28 = vld [vmem:[#allocation10 + $0x534] ss:$8 sps:$4 sm:$0xff]  }
0x2bb1   :  { %v10369_v59 = vadd.f32 %v15591_v24, %v10329_v21  ;;  %v17083_v24 = vld [vmem:[#allocation10 + $0x514] ss:$8 sps:$4 sm:$0xff]   ;;  %v17084_v21 = vld [vmem:[#allocation10 + $0x520] ss:$8 sps:$4 sm:$0xff]  }
0x2bb3   :  { %v20059_v52 = vadd.f32 %v10369_v59, %v20040_v20  ;;  %v17033_v20 = vld [vmem:[%s20571_s0 + $0x508] ss:$16 sps:$4 sm:$0xff]   ;;  %v17087_v59 = vld [vmem:[#allocation10 + $0x530] ss:$8 sps:$4 sm:$0xff]  }
0x2bb4   :  { %10633 = vmatpush1.bf16.msra.mxu0 %v17033_v20  ;;  %v17098_v20 = vld [vmem:[#allocation10 + $0x564] ss:$8 sps:$4 sm:$0xff]  }
0x2bb5   :  { %v10384_v29 = vmul.f32 %v20059_v52, %v20059_v52  ;;  %10634 = vmatprep.subr.bf16.mxu0 %v17041_v34  ;;  %v10383_v5 = vmul.f32 %v10382_v25, %v20059_v52  ;;  %v17101_v34 = vld [vmem:[#allocation10 + $0x574] ss:$8 sps:$4 sm:$0xff]   ;;  %v20221_v25 = vld [vmem:[%s20531_s14 + $0x28] sm:$0x77] }
0x2bb7   :  { %10385 = vadd.xlane.f32.xlu1 %v10384_v29  ;;  %v17092_v29 = vld [vmem:[#allocation10 + $0x544] ss:$8 sps:$4 sm:$0xff]  }
0x2bb8   :  { %10635 = vmatpush1.bf16.msra.mxu0 %v17039_v42  ;;  %v17102_v42 = vld [vmem:[%s20526_s9 + $0x2c0] sm:$0xff]  }
0x2bb9   :  { %10636 = vmatprep.subr.bf16.mxu0 %v17047_v44  ;;  %v17106_v44 = vld [vmem:[%s20526_s9 + $0x280] sm:$0xff]  }
0x2bbc   :  { %10637 = vmatpush1.bf16.msra.mxu0 %v17045_v43  ;;  %v17107_v43 = vld [vmem:[%s20526_s9 + $0x2c8] sm:$0xff]  }
0x2bbd   :  { %10638 = vmatprep.subr.bf16.mxu0 %v17053_v17  ;;  %v17111_v17 = vld [vmem:[%s20526_s9 + $0x288] sm:$0xff]  }
0x2bc0   :  { %10639 = vmatpush1.bf16.msra.mxu0 %v17051_v39  ;;  %v17112_v39 = vld [vmem:[%s20526_s9 + $0x2d0] sm:$0xff]  }
0x2bc1   :  { %10640 = vmatprep.subr.bf16.mxu0 %v17059_v49  ;;  %v17117_v49 = vld [vmem:[%s20526_s9 + $0x2d8] sm:$0xff]  }
0x2bc4   :  { %10641 = vmatpush1.bf16.msra.mxu0 %v17057_v7  ;;  %v17113_v7 = vld [vmem:[#allocation10 + $0x5a0] ss:$8 sps:$4 sm:$0xff]  }
0x2bc5   :  { %10642 = vmatprep.subr.bf16.mxu0 %v17065_v36  ;;  %v17121_v36 = vld [vmem:[%s20526_s9 + $0x298] sm:$0xff]  }
0x2bc8   :  { %10643 = vmatpush1.bf16.msra.mxu0 %v17063_v51  ;;  %v17122_v51 = vld [vmem:[%s20526_s9 + $0x2e0] sm:$0xff]  }
0x2bc9   :  { %10644 = vmatprep.subr.bf16.mxu0 %v17071_v38  ;;  %v17126_v38 = vld [vmem:[%s20526_s9 + $0x2a0] sm:$0xff]  }
0x2bcc   :  { %10645 = vmatpush1.bf16.msra.mxu0 %v17069_v0  ;;  %v17127_v0 = vld [vmem:[%s20526_s9 + $0x2e8] sm:$0xff]  }
0x2bcd   :  { %10646 = vmatprep.subr.bf16.mxu0 %v17077_v1  ;;  %v17131_v1 = vld [vmem:[%s20526_s9 + $0x2a8] sm:$0xff]  }
0x2bd0   :  { %10647 = vmatpush1.bf16.msra.mxu0 %v17075_v46  ;;  %v17132_v46 = vld [vmem:[%s20526_s9 + $0x2f0] sm:$0xff]  }
0x2bd1   :  { %15595 = vmatprep.subr.bf16.mxu0 %v17102_v42 }
0x2c44   :  { %v10386_v31 = vpop.xlane.xlu1 %10385 }
0x2c45   :  { %v10387_v33 = vadd.f32 1e-06, %v10386_v31  ;;  %v17136_v31 = vld [vmem:[%s20526_s9 + $0x2b0] sm:$0xff]  }
0x2c47   :  { %17614 = vrsqrt.f32 %v10387_v33  ;;  %vm10390_vm10 = vcmp.eq.f32.partialorder %v10387_v33, inf  ;;  %v10393_v19 = vand.u32 2147483648, %v10387_v33  ;;  %vm10392_vm11 = vcmp.eq.f32.partialorder %v10387_v33, 0.0 }
0x2c51   :  { %v17615_v53 = vpop.eup %17614 }
0x2c52   :  { %v10389_v54 = vmul.f32 %v17615_v53, %v10387_v33  ;;  %v17137_v53 = vld [vmem:[%s20526_s9 + $0x2f8] sm:$0xff]  }
0x2c54   :  { %v10391_v55 = vsel %vm10390_vm10, %v10387_v33, %v10389_v54  ;;  %v17133_v33 = vld [vmem:[#allocation10 + $0x5e0] ss:$8 sps:$4 sm:$0xff]   ;;  %v17140_v54 = vld [vmem:[#allocation10 + $0x5f4] ss:$8 sps:$4 sm:$0xff]  }
0x2c55   :  { %v10394_v16 = vsel %vm10392_vm11, %v10393_v19, %v10391_v55  ;;  %v17141_v19 = vld [vmem:[%s20526_s9 + $0x2b8] sm:$0xff]  }
0x2c56   :  { %17616 = vrcp.f32 %v10394_v16  ;;  %v17138_v55 = vld [vmem:[#allocation10 + $0x5f0] ss:$8 sps:$4 sm:$0xff]   ;;  %v17142_v16 = vld [vmem:[%s20527_s10 + $0x2c0] sm:$0xff]  }
0x2c60   :  { %v17617_v6 = vpop.eup %17616 }
0x2c61   :  { %v10396_v9 = vmul.f32 %v17617_v6, %v10383_v5  ;;  %v10677_v5 = vrot.slane %v20221_v25, %v18275_v3  ;;  %v10681_v6 = vrot.slane %v20221_v25, %v18285_v10 }
0x2c63   :  { %v10397_v13 = vpack.c.bf16 %v10396_v9, %v10396_v9  ;;  %v10687_v9 = vrot.slane %v10677_v5, %v18275_v3 }
0x2c65   :  { %10624 = vmatmul.mubr.bf16.vlgmr.msra.gmra.mrb[120].mxu1 %v10397_v13  ;;  %10665 = vmatmul.mubr.bf16.vlgmr.msra.gmra.mrb[108].mxu0 %v10397_v13 }
0x2c66   :  { %10922 = vmatpush1.bf16.msra.mxu1 %v17078_v11  ;;  %15596 = vmatpush3.bf16.msra.mxu0 %v17106_v44  ;;  %v10691_v11 = vrot.slane %v10681_v6, %v18275_v3 }
0x2c67   :  { %10923 = vmatprep.subr.bf16.mxu1 %v17083_v24  ;;  %15597 = vmatprep.subr.bf16.mxu0 %v17107_v43 }
0x2c6a   :  { %10924 = vmatpush1.bf16.msra.mxu1 %v17081_v26  ;;  %15598 = vmatpush3.bf16.msra.mxu0 %v17111_v17 }
0x2c6b   :  { %10925 = vmatprep.subr.bf16.mxu1 %v17086_v27  ;;  %15599 = vmatprep.subr.bf16.mxu0 %v17112_v39  ;;  %v17145_v39 = vld [vmem:[%s20527_s10 + $0x288] sm:$0xff]  }
0x2c6e   :  { %10926 = vmatpush1.bf16.msra.mxu1 %v17084_v21  ;;  %15600 = vmatpush3.bf16.msra.mxu0 %v17116_v32  ;;  %v17147_v32 = vld [vmem:[%s20527_s10 + $0x290] sm:$0xff]  }
0x2c6f   :  { %10927 = vmatprep.subr.bf16.mxu1 %v17089_v28  ;;  %15601 = vmatprep.subr.bf16.mxu0 %v17117_v49  ;;  %v17149_v49 = vld [vmem:[%s20527_s10 + $0x298] sm:$0xff]  }
0x2c72   :  { %10928 = vmatpush1.bf16.msra.mxu1 %v17087_v59  ;;  %15602 = vmatpush3.bf16.msra.mxu0 %v17121_v36  ;;  %v17151_v36 = vld [vmem:[%s20527_s10 + $0x2a0] sm:$0xff]  }
0x2c73   :  { %10929 = vmatprep.subr.bf16.mxu1 %v17092_v29  ;;  %15603 = vmatprep.subr.bf16.mxu0 %v17122_v51  ;;  %v17153_v51 = vld [vmem:[%s20527_s10 + $0x2a8] sm:$0xff]  }
0x2c76   :  { %10930 = vmatpush1.bf16.msra.mxu1 %v17090_v58  ;;  %15604 = vmatpush3.bf16.msra.mxu0 %v17126_v38  ;;  %v17155_v38 = vld [vmem:[%s20527_s10 + $0x2b0] sm:$0xff]  }
0x2c77   :  { %10931 = vmatprep.subr.bf16.mxu1 %v17095_v4  ;;  %15605 = vmatprep.subr.bf16.mxu0 %v17127_v0  ;;  %v17157_v0 = vld [vmem:[%s20527_s10 + $0x2b8] sm:$0xff]  }
0x2c7a   :  { %10932 = vmatpush1.bf16.msra.mxu1 %v17093_v57  ;;  %15606 = vmatpush3.bf16.msra.mxu0 %v17131_v1  ;;  %v17159_v1 = vld [vmem:[%s20528_s11 + $0x280] sm:$0xff]  }
0x2c7b   :  { %10933 = vmatprep.subr.bf16.mxu1 %v17098_v20  ;;  %15607 = vmatprep.subr.bf16.mxu0 %v17132_v46  ;;  %v17161_v46 = vld [vmem:[%s20528_s11 + $0x288] sm:$0xff]  }
0x2c7e   :  { %10934 = vmatpush1.bf16.msra.mxu1 %v17096_v30  ;;  %15608 = vmatpush3.bf16.msra.mxu0 %v17136_v31  ;;  %v17163_v31 = vld [vmem:[%s20528_s11 + $0x290] sm:$0xff]  }
0x2c7f   :  { %10935 = vmatprep.subr.bf16.mxu1 %v17101_v34  ;;  %15609 = vmatprep.subr.bf16.mxu0 %v17137_v53  ;;  %v17165_v53 = vld [vmem:[%s20528_s11 + $0x298] sm:$0xff]  }
0x2c82   :  { %10936 = vmatpush1.bf16.msra.mxu1 %v17099_v37  ;;  %15610 = vmatpush3.bf16.msra.mxu0 %v17141_v19  ;;  %v17167_v19 = vld [vmem:[%s20528_s11 + $0x2a0] sm:$0xff]  }
0x2c83   :  { %10937 = vmatprep.subr.bf16.mxu1 %v17105_v47  ;;  %15617 = vmatprep.subr.bf16.mxu0 %v17142_v16 }
0x2c86   :  { %10938 = vmatpush1.bf16.msra.mxu1 %v17103_v61 }
0x2c87   :  { %10939 = vmatprep.subr.bf16.mxu1 %v17110_v45  ;;  %v17143_v45 = vld [vmem:[%s20527_s10 + $0x280] sm:$0xff]  }
0x2c8a   :  { %10940 = vmatpush1.bf16.msra.mxu1 %v17108_v48  ;;  %v17144_v48 = vld [vmem:[%s20527_s10 + $0x2c8] sm:$0xff]  }
0x2c8b   :  { %10941 = vmatprep.subr.bf16.mxu1 %v17115_v23  ;;  %v17146_v23 = vld [vmem:[%s20527_s10 + $0x2d0] sm:$0xff]  }
0x2c8e   :  { %10942 = vmatpush1.bf16.msra.mxu1 %v17113_v7  ;;  %v17148_v7 = vld [vmem:[%s20527_s10 + $0x2d8] sm:$0xff]  }
0x2c8f   :  { %10943 = vmatprep.subr.bf16.mxu1 %v17120_v50  ;;  %v17150_v50 = vld [vmem:[%s20527_s10 + $0x2e0] sm:$0xff]  }
0x2c92   :  { %10944 = vmatpush1.bf16.msra.mxu1 %v17118_v22  ;;  %v17152_v22 = vld [vmem:[%s20527_s10 + $0x2e8] sm:$0xff]  }
0x2c93   :  { %10945 = vmatprep.subr.bf16.mxu1 %v17125_v60  ;;  %v17154_v60 = vld [vmem:[%s20527_s10 + $0x2f0] sm:$0xff]  }
0x2c96   :  { %10946 = vmatpush1.bf16.msra.mxu1 %v17123_v63  ;;  %v17156_v63 = vld [vmem:[%s20527_s10 + $0x2f8] sm:$0xff]  }
0x2c97   :  { %10947 = vmatprep.subr.bf16.mxu1 %v17130_v62  ;;  %v17158_v62 = vld [vmem:[%s20528_s11 + $0x2c0] sm:$0xff]  }
0x2c9a   :  { %10948 = vmatpush1.bf16.msra.mxu1 %v17128_v40  ;;  %v17160_v40 = vld [vmem:[%s20528_s11 + $0x2c8] sm:$0xff]  }
0x2c9b   :  { %10949 = vmatprep.subr.bf16.mxu1 %v17135_v41  ;;  %v17162_v41 = vld [vmem:[%s20528_s11 + $0x2d0] sm:$0xff]  }
0x2c9e   :  { %10950 = vmatpush1.bf16.msra.mxu1 %v17133_v33  ;;  %v17164_v33 = vld [vmem:[%s20528_s11 + $0x2d8] sm:$0xff]  }
0x2c9f   :  { %10951 = vmatprep.subr.bf16.mxu1 %v17140_v54  ;;  %v17166_v54 = vld [vmem:[%s20528_s11 + $0x2e0] sm:$0xff]  }
0x2ca2   :  { %10952 = vmatpush1.bf16.msra.mxu1 %v17138_v55 }
0x2ca3   :  { %15639 = vmatprep.subr.bf16.mxu1 %v17158_v62 }
0x2d38   :  { %v10625_v13 = vpop.f32.mrb[120].mxu1  ;;  %v20229_v24 = vpop.f32.mrb[108].mxu0 }
0x2d39   :  { %v10692_v26 = vadd.f32 %v10687_v9, %v10625_v13  ;;  %v10627_v27 = vpop.f32.mrb[121].mxu1  ;;  %v20231_v21 = vpop.f32.mrb[109].mxu0 }
0x2d3a   :  { %v10693_v28 = vadd.f32 %v10691_v11, %v10627_v27  ;;  %v10629_v59 = vpop.f32.mrb[122].mxu1  ;;  %v10670_v29 = vpop.f32.mrb[110].mxu0 }
0x2d3b   :  { %v14701_v58 = vmul.f32 -1.442695, %v10692_v26  ;;  %v10630_v4 = vpop.f32.mrb[123].mxu1  ;;  %v10671_v57 = vpop.f32.mrb[111].mxu0 }
0x2d3c   :  { %v14702_v20 = vmul.f32 -1.442695, %v10693_v28 }
0x2d3d   :  { %17618 = vpow2.f32 %v14701_v58 }
0x2d3e   :  { %17620 = vpow2.f32 %v14702_v20 }
0x2d47   :  { %v17619_v10 = vpop.eup %17618 }
0x2d48   :  { %v17621_v30 = vpop.eup %17620  ;;  %v10700_v34 = vadd.f32 1.0, %v17619_v10  ;;  %v17168_v10 = vld [vmem:[%s20528_s11 + $0x2e8] sm:$0xff]  }
0x2d49   :  { %v10701_v37 = vadd.f32 1.0, %v17621_v30  ;;  %v17169_v30 = vld [vmem:[%s20528_s11 + $0x2a8] sm:$0xff]  }
0x2d4a   :  { %17622 = vrcp.f32 %v10700_v34  ;;  %v17170_v34 = vld [vmem:[%s20528_s11 + $0x2f0] sm:$0xff]  }
0x2d4b   :  { %17624 = vrcp.f32 %v10701_v37  ;;  %v17171_v37 = vld [vmem:[%s20528_s11 + $0x2b0] sm:$0xff]  }
0x2d54   :  { %v17623_v42 = vpop.eup %17622 }
0x2d55   :  { %v17625_v47 = vpop.eup %17624  ;;  %v20233_v44 = vmul.f32 %v17623_v42, %v10692_v26  ;;  %v17172_v42 = vld [vmem:[%s20528_s11 + $0x2f8] sm:$0xff]  }
0x2d56   :  { %v20235_v61 = vmul.f32 %v17625_v47, %v10693_v28  ;;  %v17173_v47 = vld [vmem:[%s20528_s11 + $0x2b8] sm:$0xff]  }
0x2d57   :  { %v10708_v17 = vpack.c.bf16 %v20233_v44, %v20233_v44 }
0x2d58   :  { %v10709_v43 = vpack.c.bf16 %v20235_v61, %v20235_v61 }
0x2d5a   :  { %10953 = vmatprep.mubr.bf16.mxu1 %v10709_v43  ;;  %11159 = vmatprep.mubr.bf16.mxu0 %v10709_v43 }
0x2d5b   :  { %10954 = vmatmul.mubr.bf16.vlgmr.msra.gmra.mrb[124].mxu1 %v10708_v17  ;;  %11160 = vmatmul.mubr.bf16.vlgmr.msra.gmra.mrb[112].mxu0 %v10708_v17 }
0x2d5c   :  { %15618 = vmatpush3.bf16.msra.mxu0 %v17143_v45  ;;  %11328 = vmatprep.mubr.bf16.mxu0 %v10709_v43  ;;  %v10746_v43 = vrot.slane %v20221_v25, %v18293_v15  ;;  %v10750_v45 = vrot.slane %v20221_v25, %v18288_v12  ;;  %v14832_v12 = vmul.f32 -1.442695, %v20231_v21 }
0x2d5d   :  { %15619 = vmatprep.subr.bf16.mxu0 %v17144_v48  ;;  %15640 = vmatpush3.bf16.msra.mxu1 %v17159_v1 }
0x2d5e   :  { %15641 = vmatprep.subr.bf16.mxu1 %v17160_v40  ;;  %v10760_v48 = vrot.slane %v10750_v45, %v18293_v15 }
0x2d60   :  { %15620 = vmatpush3.bf16.msra.mxu0 %v17145_v39 }
0x2d61   :  { %15621 = vmatprep.subr.bf16.mxu0 %v17146_v23  ;;  %15642 = vmatpush3.bf16.msra.mxu1 %v17161_v46 }
0x2d62   :  { %15643 = vmatprep.subr.bf16.mxu1 %v17162_v41 }
0x2d64   :  { %15622 = vmatpush3.bf16.msra.mxu0 %v17147_v32 }
0x2d65   :  { %15623 = vmatprep.subr.bf16.mxu0 %v17148_v7  ;;  %15644 = vmatpush3.bf16.msra.mxu1 %v17163_v31 }
0x2d66   :  { %15645 = vmatprep.subr.bf16.mxu1 %v17164_v33 }
0x2d68   :  { %15624 = vmatpush3.bf16.msra.mxu0 %v17149_v49 }
0x2d69   :  { %15625 = vmatprep.subr.bf16.mxu0 %v17150_v50  ;;  %15646 = vmatpush3.bf16.msra.mxu1 %v17165_v53 }
0x2d6a   :  { %15647 = vmatprep.subr.bf16.mxu1 %v17166_v54 }
0x2d6c   :  { %15626 = vmatpush3.bf16.msra.mxu0 %v17151_v36 }
0x2d6d   :  { %15627 = vmatprep.subr.bf16.mxu0 %v17152_v22  ;;  %15648 = vmatpush3.bf16.msra.mxu1 %v17167_v19 }
0x2d6e   :  { %15649 = vmatprep.subr.bf16.mxu1 %v17168_v10 }
0x2d70   :  { %15628 = vmatpush3.bf16.msra.mxu0 %v17153_v51 }
0x2d71   :  { %15629 = vmatprep.subr.bf16.mxu0 %v17154_v60  ;;  %15650 = vmatpush3.bf16.msra.mxu1 %v17169_v30 }
0x2d72   :  { %15651 = vmatprep.subr.bf16.mxu1 %v17170_v34 }
0x2d74   :  { %15630 = vmatpush3.bf16.msra.mxu0 %v17155_v38  ;;  %v14831_v38 = vmul.f32 -1.442695, %v20229_v24 }
0x2d75   :  { %15631 = vmatprep.subr.bf16.mxu0 %v17156_v63  ;;  %15652 = vmatpush3.bf16.msra.mxu1 %v17171_v37 }
0x2d76   :  { %15653 = vmatprep.subr.bf16.mxu1 %v17172_v42 }
0x2d78   :  { %15632 = vmatpush3.bf16.msra.mxu0 %v17157_v0 }
0x2d79   :  { %15654 = vmatpush3.bf16.msra.mxu1 %v17173_v47 }
0x2d7b   :  { %11329 = vmatmul.mubr.bf16.vlgmr.msra.gmra.mrb[116].mxu0 %v10708_v17  ;;  %v10756_v17 = vrot.slane %v10746_v43, %v18293_v15 }
0x2d7c   :  { %11819 = vmatprep.mubr.bf16.mxu0 %v17967_v35 }
0x2e2e   :  { %v10955_v55 = vpop.f32.mrb[124].mxu1  ;;  %v15611_v16 = vpop.f32.mrb[112].mxu0 }
0x2e2f   :  { %v10957_v5 = vpop.f32.mrb[125].mxu1  ;;  %v15612_v6 = vpop.f32.mrb[113].mxu0  ;;  %v10956_v39 = vadd.f32 %v10955_v55, %v10756_v17 }
0x2e30   :  { %v15613_v9 = vadd.f32 %v15612_v6, %v15611_v16  ;;  %v10959_v11 = vpop.f32.mrb[126].mxu1  ;;  %v15614_v13 = vpop.f32.mrb[114].mxu0  ;;  %v10958_v23 = vadd.f32 %v10957_v5, %v10760_v48 }
0x2e31   :  { %v10960_v26 = vpop.f32.mrb[127].mxu1  ;;  %v15615_v27 = vpop.f32.mrb[115].mxu0  ;;  %v10968_v32 = vand.u32 2147483647, %v10956_v39  ;;  %vm10964_vm13 = vcmp.ne.f32.partialorder %v10956_v39, %v10956_v39 }
0x2e32   :  { %v10969_v7 = vand.u32 2147483647, %v10958_v23  ;;  %v10962_v27 = vmax.f32 %v10956_v39, 0.0  ;;  %vm10965_vm15 = vcmp.ne.f32.partialorder %v10958_v23, %v10958_v23 }
0x2e33   :  { %v10970_v49 = vsub.f32 0.0, %v10968_v32 }
0x2e34   :  { %v10971_v50 = vsub.f32 0.0, %v10969_v7 }
0x2e35   :  { %v10972_v36 = vmul.f32 1.442695, %v10970_v49 }
0x2e36   :  { %v10974_v22 = vmul.f32 1.442695, %v10971_v50 }
0x2e37   :  { %17626 = vpow2.f32 %v10972_v36 }
0x2e38   :  { %17628 = vpow2.f32 %v10974_v22 }
0x2e39   :  { %17630 = vpow2.f32 %v14831_v38  ;;  %v17174_v38 = vld [vmem:[#allocation11 + $0x500] ss:$16 sps:$4 sm:$0xff]  }
0x2e3a   :  { %17632 = vpow2.f32 %v14832_v12  ;;  %v17177_v12 = vld [vmem:[#allocation11 + $0x508] ss:$16 sps:$4 sm:$0xff]  }
0x2e41   :  { %v17627_v51 = vpop.eup %17626 }
0x2e42   :  { %v17629_v60 = vpop.eup %17628  ;;  %v10976_v63 = vadd.f32 1.0, %v17627_v51  ;;  %v10979_v1 = vmul.f32 -0.5, %v17627_v51  ;;  %v10982_v55 = vand.u32 2147483647, %v17627_v51 }
0x2e43   :  { %v10985_v0 = vadd.f32 1.0, %v17629_v60  ;;  %v17631_v62 = vpop.eup %17630  ;;  %v10988_v40 = vmul.f32 -0.5, %v17629_v60  ;;  %v10991_v16 = vand.u32 2147483647, %v17629_v60 }
0x2e44   :  { %17634 = vlog2.f32 %v10976_v63  ;;  %v17633_v46 = vpop.eup %17632  ;;  %v11370_v33 = vadd.f32 1.0, %v17631_v62  ;;  %v10980_v53 = vadd.f32 1.0, %v10979_v1  ;;  %v17182_v63 = vld [vmem:[#allocation11 + $0x524] ss:$16 sps:$4 sm:$0xff]   ;;  %v17180_v62 = vld [vmem:[#allocation11 + $0x520] ss:$16 sps:$4 sm:$0xff]  }
0x2e45   :  { %17636 = vlog2.f32 %v10985_v0  ;;  %v10989_v54 = vadd.f32 1.0, %v10988_v40  ;;  %v11371_v19 = vadd.f32 1.0, %v17633_v46  ;;  %vm10992_vm12 = vcmp.lt.f32.partialorder %v10991_v16, 0.0004427343  ;;  %v17185_v0 = vld [vmem:[#allocation11 + $0x52c] ss:$16 sps:$4 sm:$0xff]  }
0x2e46   :  { %17638 = vrcp.f32 %v11370_v33  ;;  %v17183_v1 = vld [vmem:[#allocation11 + $0x528] ss:$16 sps:$4 sm:$0xff]   ;;  %v17191_v40 = vld [vmem:[#allocation11 + $0x54c] ss:$16 sps:$4 sm:$0xff]   ;;  %v17186_v46 = vld [vmem:[#allocation11 + $0x540] ss:$16 sps:$4 sm:$0xff]  }
0x2e47   :  { %v10990_v11 = vmul.f32 %v17629_v60, %v10989_v54  ;;  %17640 = vrcp.f32 %v11371_v19  ;;  %v17197_v33 = vld [vmem:[#allocation11 + $0x56c] ss:$16 sps:$4 sm:$0xff]   ;;  %v17195_v54 = vld [vmem:[#allocation11 + $0x568] ss:$16 sps:$4 sm:$0xff]   ;;  %v17200_v19 = vld [vmem:[#allocation11 + $0x584] ss:$16 sps:$4 sm:$0xff]  }
0x2e48   :  { %v17198_v16 = vld [vmem:[#allocation11 + $0x580] ss:$16 sps:$4 sm:$0xff]  }
0x2e4e   :  { %v15633_v28 = vpop.f32.mrb[116].mxu0  ;;  %v17635_v41 = vpop.eup %17634 }
0x2e4f   :  { %v15634_v59 = vpop.f32.mrb[117].mxu0  ;;  %v17637_v31 = vpop.eup %17636  ;;  %v10978_v5 = vmul.f32 0.6931472, %v17635_v41  ;;  %v17189_v41 = vld [vmem:[#allocation11 + $0x548] ss:$16 sps:$4 sm:$0xff]  }
0x2e50   :  { %v15635_v29 = vadd.f32 %v15634_v59, %v15633_v28  ;;  %v15636_v58 = vpop.f32.mrb[118].mxu0  ;;  %v10987_v6 = vmul.f32 0.6931472, %v17637_v31  ;;  %v10963_v28 = vmax.f32 %v10958_v23, 0.0  ;;  %v11345_v59 = vrot.slane %v20221_v25, %v18273_v2  ;;  %v17639_v37 = vpop.eup %17638  ;;  %v17194_v31 = vld [vmem:[#allocation11 + $0x564] ss:$16 sps:$4 sm:$0xff]  }
0x2e51   :  { %v15637_v4 = vpop.f32.mrb[119].mxu0  ;;  %v17641_v43 = vpop.eup %17640  ;;  %v11376_v48 = vmul.f32 %v17639_v37, %v20229_v24 }
0x2e52   :  { %v11336_v57 = vmul.f32 %v15635_v29, %v15613_v9  ;;  %v10981_v9 = vmul.f32 %v17627_v51, %v10980_v53  ;;  %v10993_v26 = vsel %vm10992_vm12, %v10990_v11, %v10987_v6  ;;  %v11349_v29 = vrot.slane %v20221_v25, %v18291_v14  ;;  %v17192_v53 = vld [vmem:[#allocation11 + $0x560] ss:$16 sps:$4 sm:$0xff]   ;;  %v17206_v6 = vld [vmem:[#allocation11 + $0x5a4] ss:$16 sps:$4 sm:$0xff]  }
0x2e53   :  { %v10995_v4 = vadd.f32 %v10993_v26, %v10963_v28  ;;  %v11377_v14 = vmul.f32 %v17641_v43, %v20231_v21  ;;  %v17204_v11 = vld [vmem:[#allocation11 + $0x5a0] ss:$16 sps:$4 sm:$0xff]   ;;  %v17212_v26 = vld [vmem:[#allocation11 + $0x5c4] ss:$16 sps:$4 sm:$0xff]  }
0x2e54   :  { %v11337_v20 = vsel %vm2040_vm14, %v11336_v57, 0.0  ;;  %vm10983_vm14 = vcmp.lt.f32.partialorder %v10982_v55, 0.0004427343  ;;  %v11355_v57 = vrot.slane %v11345_v59, %v18273_v2  ;;  %v17203_v55 = vld [vmem:[#allocation11 + $0x58c] ss:$16 sps:$4 sm:$0xff]  }
0x2e55   :  { %11338 = vadd.xlane.f32.xlu0 %v11337_v20  ;;  %v10984_v13 = vsel %vm10983_vm14, %v10981_v9, %v10978_v5  ;;  %v11359_v20 = vrot.slane %v11349_v29, %v18273_v2  ;;  %v10997_v34 = vsel %vm10965_vm15, %v10958_v23, %v10995_v4  ;;  %v17201_v5 = vld [vmem:[#allocation11 + $0x588] ss:$16 sps:$4 sm:$0xff]   ;;  %v17209_v9 = vld [vmem:[#allocation11 + $0x5ac] ss:$16 sps:$4 sm:$0xff]   ;;  %v17210_v28 = vld [vmem:[#allocation11 + $0x5c0] ss:$16 sps:$4 sm:$0xff]  }
0x2e56   :  { %v10994_v58 = vadd.f32 %v10984_v13, %v10962_v27  ;;  %v17207_v13 = vld [vmem:[#allocation11 + $0x5a8] ss:$16 sps:$4 sm:$0xff]   ;;  %v17215_v27 = vld [vmem:[#allocation11 + $0x5cc] ss:$16 sps:$4 sm:$0xff]   ;;  %v17218_v29 = vld [vmem:[#allocation11 + $0x5e4] ss:$16 sps:$4 sm:$0xff]  }
0x2e57   :  { %v17213_v59 = vld [vmem:[#allocation11 + $0x5c8] ss:$16 sps:$4 sm:$0xff]   ;;  %v17216_v4 = vld [vmem:[#allocation11 + $0x5e0] ss:$16 sps:$4 sm:$0xff]  }
0x2e58   :  { %v10996_v30 = vsel %vm10964_vm13, %v10956_v39, %v10994_v58  ;;  %v17221_v58 = vld [vmem:[#allocation11 + $0x5ec] ss:$16 sps:$4 sm:$0xff]  }
0x2ee2   :  { %v11339_v10 = vpop.xlane.xlu0 %11338 }
0x2ee3   :  { %v11340_v42 = vmul.f32 %v11339_v10, %v10996_v30  ;;  %v11341_v47 = vmul.f32 %v11339_v10, %v10997_v34  ;;  %v17223_v10 = vld [vmem:[#allocation13 + $0x5c0] sm:$0xff]  }
0x2ee5   :  { %v11360_v45 = vadd.f32 %v11355_v57, %v11340_v42  ;;  %v11361_v17 = vadd.f32 %v11359_v20, %v11341_v47  ;;  %v17219_v57 = vld [vmem:[#allocation11 + $0x5e8] ss:$16 sps:$4 sm:$0xff]   ;;  %v17222_v20 = vld [vmem:[#allocation13 + $0x540] sm:$0xff]  }
0x2ee7   :  { %v11362_v25 = vmul.f32 %v11360_v45, %v20233_v44  ;;  %v11363_v32 = vmul.f32 %v11361_v17, %v20235_v61  ;;  %v17176_v44 = vld [vmem:[#allocation11 + $0x504] ss:$16 sps:$4 sm:$0xff]   ;;  %v17179_v61 = vld [vmem:[#allocation11 + $0x50c] ss:$16 sps:$4 sm:$0xff]   ;;  %v11555_v17 = vrot.slane %v20162_v56, %v18293_v15 }
0x2ee8   :  { %11787 = vmatprep.subr.bf16.mxu0 %v17176_v44  ;;  %11828 = vmatprep.subr.bf16.mxu1 %v17179_v61  ;;  %v17234_v44 = vld [vmem:[#allocation13 + $0x558] sm:$0xff]  }
0x2ee9   :  { %v11378_v7 = vmul.f32 %v11376_v48, %v11362_v25  ;;  %v11379_v49 = vmul.f32 %v11377_v14, %v11363_v32  ;;  %11788 = vmatpush1.bf16.msra.mxu0 %v17174_v38  ;;  %v17224_v32 = vld [vmem:[#allocation13 + $0x500] sm:$0xff]   ;;  %v17235_v61 = vld [vmem:[#allocation13 + $0x5d8] sm:$0xff]  }
0x2eea   :  { %11789 = vmatprep.subr.bf16.mxu0 %v17182_v63  ;;  %v17236_v38 = vld [vmem:[#allocation13 + $0x518] sm:$0xff]   ;;  %v17238_v63 = vld [vmem:[#allocation13 + $0x560] sm:$0xff]  }
0x2eeb   :  { %v11381_v50 = vpack.c.bf16 %v11379_v49, %v11379_v49  ;;  %v11380_v36 = vpack.c.bf16 %v11378_v7, %v11378_v7  ;;  %v17225_v7 = vld [vmem:[#allocation13 + $0x580] sm:$0xff]  }
0x2eed   :  { %11543 = vmatprep.mubr.bf16.mxu1 %v11381_v50  ;;  %11790 = vmatpush1.bf16.msra.mxu0 %v17180_v62  ;;  %v17226_v50 = vld [vmem:[#allocation13 + $0x548] sm:$0xff]   ;;  %v17240_v62 = vld [vmem:[#allocation13 + $0x520] sm:$0xff]  }
0x2eee   :  { %11544 = vmatmul.mubr.bf16.vlgmr.msra.gmra.mrb[128].mxu1 %v11380_v36  ;;  %v17227_v36 = vld [vmem:[#allocation13 + $0x5c8] sm:$0xff]  }
0x2eef   :  { %11860 = vmatprep.mubr.bf16.mxu1 %v17967_v35  ;;  %11829 = vmatpush1.bf16.msra.mxu1 %v17177_v12  ;;  %v17237_v12 = vld [vmem:[#allocation13 + $0x598] sm:$0xff]  }
0x2ef0   :  { %11830 = vmatprep.subr.bf16.mxu1 %v17185_v0  ;;  %v17239_v0 = vld [vmem:[#allocation13 + $0x5e0] sm:$0xff]  }
0x2ef3   :  { %11831 = vmatpush1.bf16.msra.mxu1 %v17183_v1  ;;  %v17241_v1 = vld [vmem:[#allocation13 + $0x5a0] sm:$0xff]  }
0x2ef4   :  { %11832 = vmatprep.subr.bf16.mxu1 %v17191_v40  ;;  %v17243_v40 = vld [vmem:[#allocation13 + $0x5e8] sm:$0xff]  }
0x2ef7   :  { %11833 = vmatpush1.bf16.msra.mxu1 %v17189_v41  ;;  %v17245_v41 = vld [vmem:[#allocation13 + $0x5a8] sm:$0xff]  }
0x2ef8   :  { %11834 = vmatprep.subr.bf16.mxu1 %v17197_v33  ;;  %v17247_v33 = vld [vmem:[#allocation13 + $0x5f0] sm:$0xff]  }
0x2efb   :  { %11835 = vmatpush1.bf16.msra.mxu1 %v17195_v54  ;;  %v17249_v54 = vld [vmem:[#allocation13 + $0x5b0] sm:$0xff]  }
0x2efc   :  { %11836 = vmatprep.subr.bf16.mxu1 %v17203_v55  ;;  %v17251_v55 = vld [vmem:[#allocation13 + $0x5f8] sm:$0xff]  }
0x2eff   :  { %11837 = vmatpush1.bf16.msra.mxu1 %v17201_v5  ;;  %v17253_v5 = vld [vmem:[#allocation13 + $0x5b8] sm:$0xff]  }
0x2f00   :  { %11838 = vmatprep.subr.bf16.mxu1 %v17209_v9 }
0x2f03   :  { %11839 = vmatpush1.bf16.msra.mxu1 %v17207_v13 }
0x2f04   :  { %11840 = vmatprep.subr.bf16.mxu1 %v17215_v27 }
0x2f07   :  { %11841 = vmatpush1.bf16.msra.mxu1 %v17213_v59 }
0x2f08   :  { %11842 = vmatprep.subr.bf16.mxu1 %v17221_v58 }
0x2f0b   :  { %11843 = vmatpush1.bf16.msra.mxu1 %v17219_v57 }
0x2f0c   :  { %15683 = vmatprep.subr.bf16.mxu1 %v17223_v10 }
0x2fc1   :  { %v15655_v39 = vpop.f32.mrb[128].mxu1 }
0x2fc2   :  { %v15656_v23 = vpop.f32.mrb[129].mxu1 }
0x2fc3   :  { %v15657_v22 = vadd.f32 %v15656_v23, %v15655_v39  ;;  %v15658_v51 = vpop.f32.mrb[130].mxu1  ;;  %v17228_v39 = vld [vmem:[#allocation13 + $0x508] sm:$0xff]  }
0x2fc4   :  { %v15659_v60 = vpop.f32.mrb[131].mxu1  ;;  %v17229_v23 = vld [vmem:[#allocation13 + $0x588] sm:$0xff]   ;;  %v17231_v51 = vld [vmem:[#allocation13 + $0x5d0] sm:$0xff]  }
0x2fc5   :  { %v20356_v24 = vadd.f32 %v15657_v22, %v20059_v52  ;;  %v17188_v52 = vld [vmem:[#allocation11 + $0x544] ss:$16 sps:$4 sm:$0xff]  }
0x2fc6   :  { %11791 = vmatprep.subr.bf16.mxu0 %v17188_v52  ;;  %v17230_v22 = vld [vmem:[#allocation13 + $0x550] sm:$0xff]   ;;  %v17242_v52 = vld [vmem:[#allocation13 + $0x568] sm:$0xff]  }
0x2fc7   :  { %v11557_v21 = vmul.f32 %v20356_v24, %v20356_v24  ;;  %11792 = vmatpush1.bf16.msra.mxu0 %v17186_v46  ;;  %v11556_v48 = vmul.f32 %v11555_v17, %v20356_v24  ;;  %v17232_v60 = vld [vmem:[#allocation13 + $0x510] sm:$0xff]   ;;  %v17244_v46 = vld [vmem:[#allocation13 + $0x528] sm:$0xff]  }
0x2fc8   :  { %11793 = vmatprep.subr.bf16.mxu0 %v17194_v31  ;;  %v17246_v31 = vld [vmem:[#allocation13 + $0x570] sm:$0xff]  }
0x2fc9   :  { %11558 = vadd.xlane.f32.xlu1 %v11557_v21  ;;  %v17233_v21 = vld [vmem:[#allocation13 + $0x590] sm:$0xff]  }
0x2fcb   :  { %11794 = vmatpush1.bf16.msra.mxu0 %v17192_v53  ;;  %v17248_v53 = vld [vmem:[#allocation13 + $0x530] sm:$0xff]  }
0x2fcc   :  { %11795 = vmatprep.subr.bf16.mxu0 %v17200_v19  ;;  %v17250_v19 = vld [vmem:[#allocation13 + $0x578] sm:$0xff]  }
0x2fcf   :  { %11796 = vmatpush1.bf16.msra.mxu0 %v17198_v16  ;;  %v17252_v16 = vld [vmem:[#allocation13 + $0x538] sm:$0xff]  }
0x2fd0   :  { %11797 = vmatprep.subr.bf16.mxu0 %v17206_v6  ;;  %v14881_v6 = vld [vmem:[%s20533_s16 + $0x5] ss:$8 sm:$0xf] }
0x2fd1   :  { %v11610_v9 = vrot.slane %v14881_v6, %v18275_v3  ;;  %v11614_v13 = vrot.slane %v14881_v6, %v18293_v15 }
0x2fd3   :  { %11798 = vmatpush1.bf16.msra.mxu0 %v17204_v11  ;;  %v11618_v11 = vrot.slane %v14881_v6, %v18273_v2 }
0x2fd4   :  { %11799 = vmatprep.subr.bf16.mxu0 %v17212_v26  ;;  %v11622_v26 = vrot.slane %v14881_v6, %v18282_v8  ;;  %v17254_v6 = vld [vmem:[#allocation14] sm:$0xff]  }
0x2fd7   :  { %11800 = vmatpush1.bf16.msra.mxu0 %v17210_v28 }
0x2fd8   :  { %11801 = vmatprep.subr.bf16.mxu0 %v17218_v29 }
0x2fdb   :  { %11802 = vmatpush1.bf16.msra.mxu0 %v17216_v4 }
0x2fdc   :  { %15661 = vmatprep.subr.bf16.mxu0 %v17222_v20 }
0x3056   :  { %v11559_v30 = vpop.xlane.xlu1 %11558 }
0x3057   :  { %v11560_v34 = vadd.f32 1e-06, %v11559_v30 }
0x3059   :  { %17642 = vrsqrt.f32 %v11560_v34  ;;  %vm11563_vm0 = vcmp.eq.f32.partialorder %v11560_v34, inf  ;;  %v11566_v47 = vand.u32 2147483648, %v11560_v34  ;;  %vm11565_vm1 = vcmp.eq.f32.partialorder %v11560_v34, 0.0 }
0x3063   :  { %v17643_v37 = vpop.eup %17642 }
0x3064   :  { %v11562_v42 = vmul.f32 %v17643_v37, %v11560_v34 }
0x3066   :  { %v11564_v43 = vsel %vm11563_vm0, %v11560_v34, %v11562_v42 }
0x3067   :  { %v11567_v45 = vsel %vm11565_vm1, %v11566_v47, %v11564_v43 }
0x3068   :  { %17644 = vrcp.f32 %v11567_v45 }
0x3072   :  { %v17645_v14 = vpop.eup %17644 }
0x3073   :  { %v11569_v25 = vmul.f32 %v17645_v14, %v11556_v48 }
0x3075   :  { %v11570_v49 = vpack.c.bf16 %v11569_v25, %v11569_v25 }
0x3077   :  { %11820 = vmatmul.mubr.bf16.vlgmr.msra.gmra.mrb[120].mxu0 %v11570_v49  ;;  %11861 = vmatmul.mubr.bf16.vlgmr.msra.gmra.mrb[132].mxu1 %v11570_v49 }
0x3078   :  { %15662 = vmatpush3.bf16.msra.mxu0 %v17224_v32  ;;  %15684 = vmatpush3.bf16.msra.mxu1 %v17225_v7 }
0x3079   :  { %15663 = vmatprep.subr.bf16.mxu0 %v17226_v50  ;;  %15685 = vmatprep.subr.bf16.mxu1 %v17227_v36 }
0x307c   :  { %15664 = vmatpush3.bf16.msra.mxu0 %v17228_v39  ;;  %15686 = vmatpush3.bf16.msra.mxu1 %v17229_v23 }
0x307d   :  { %15665 = vmatprep.subr.bf16.mxu0 %v17230_v22  ;;  %15687 = vmatprep.subr.bf16.mxu1 %v17231_v51 }
0x3080   :  { %15666 = vmatpush3.bf16.msra.mxu0 %v17232_v60  ;;  %15688 = vmatpush3.bf16.msra.mxu1 %v17233_v21 }
0x3081   :  { %15667 = vmatprep.subr.bf16.mxu0 %v17234_v44  ;;  %15689 = vmatprep.subr.bf16.mxu1 %v17235_v61 }
0x3084   :  { %15668 = vmatpush3.bf16.msra.mxu0 %v17236_v38  ;;  %15690 = vmatpush3.bf16.msra.mxu1 %v17237_v12 }
0x3085   :  { %15669 = vmatprep.subr.bf16.mxu0 %v17238_v63  ;;  %15691 = vmatprep.subr.bf16.mxu1 %v17239_v0 }
0x3088   :  { %15670 = vmatpush3.bf16.msra.mxu0 %v17240_v62  ;;  %15692 = vmatpush3.bf16.msra.mxu1 %v17241_v1  ;;  %v11961_v62 = vrot.slane %v20162_v56, %v18273_v2  ;;  %v17255_v56 = vld [vmem:[#allocation14 + $0x8] sm:$0xff]  }
0x3089   :  { %15671 = vmatprep.subr.bf16.mxu0 %v17242_v52  ;;  %15693 = vmatprep.subr.bf16.mxu1 %v17243_v40 }
0x308c   :  { %15672 = vmatpush3.bf16.msra.mxu0 %v17244_v46  ;;  %15694 = vmatpush3.bf16.msra.mxu1 %v17245_v41 }
0x308d   :  { %15673 = vmatprep.subr.bf16.mxu0 %v17246_v31  ;;  %15695 = vmatprep.subr.bf16.mxu1 %v17247_v33 }
0x3090   :  { %15674 = vmatpush3.bf16.msra.mxu0 %v17248_v53  ;;  %15696 = vmatpush3.bf16.msra.mxu1 %v17249_v54 }
0x3091   :  { %15675 = vmatprep.subr.bf16.mxu0 %v17250_v19  ;;  %15697 = vmatprep.subr.bf16.mxu1 %v17251_v55 }
0x3094   :  { %15676 = vmatpush3.bf16.msra.mxu0 %v17252_v16  ;;  %15698 = vmatpush3.bf16.msra.mxu1 %v17253_v5 }
0x3095   :  { %15815 = vmatprep.subr.bf16.mxu0 %v17968_v18 }
0x314a   :  { %v11821_v27 = vpop.f32.mrb[120].mxu0  ;;  %v11862_v28 = vpop.f32.mrb[132].mxu1 }
0x314b   :  { %v11822_v59 = vadd.f32 %v11821_v27, %v11610_v9  ;;  %v11863_v29 = vadd.f32 %v11862_v28, %v11618_v11  ;;  %v11823_v58 = vpop.f32.mrb[121].mxu0  ;;  %v11864_v4 = vpop.f32.mrb[133].mxu1  ;;  %v17256_v9 = vld [vmem:[#allocation14 + $0x10] sm:$0xff]   ;;  %v17257_v11 = vld [vmem:[#allocation14 + $0x18] sm:$0xff]  }
0x314c   :  { %v11824_v57 = vadd.f32 %v11823_v58, %v11614_v13  ;;  %v11865_v20 = vadd.f32 %v11864_v4, %v11622_v26  ;;  %v11825_v10 = vpop.f32.mrb[122].mxu0  ;;  %v11866_v30 = vpop.f32.mrb[134].mxu1  ;;  %v17258_v13 = vld [vmem:[#allocation14 + $0x20] sm:$0xff]   ;;  %v17260_v26 = vld [vmem:[#allocation14 + $0x30] sm:$0xff]   ;;  %v17261_v27 = vld [vmem:[#allocation14 + $0x38] sm:$0xff]  }
0x314d   :  { %v11873_v34 = vmul.f32 0.70710677, %v11822_v59  ;;  %v11875_v37 = vmul.f32 0.70710677, %v11863_v29  ;;  %v11826_v43 = vpop.f32.mrb[123].mxu0  ;;  %v11867_v45 = vpop.f32.mrb[135].mxu1 }
0x314e   :  { %v11874_v42 = vmul.f32 0.70710677, %v11824_v57  ;;  %v11876_v47 = vmul.f32 0.70710677, %v11865_v20  ;;  %v11869_v32 = vmul.f32 0.5, %v11822_v59  ;;  %v11871_v50 = vmul.f32 0.5, %v11863_v29 }
0x314f   :  { %17646 = verf.f32 %v11873_v34  ;;  %v11870_v36 = vmul.f32 0.5, %v11824_v57  ;;  %v11872_v22 = vmul.f32 0.5, %v11865_v20  ;;  %v20384_v10 = vld [vmem:[#allocation17] sm:$0xf] }
0x3150   :  { %17648 = verf.f32 %v11875_v37  ;;  %v12239_v30 = vrot.slane %v20384_v10, %v18275_v3  ;;  %v12363_v43 = vrot.slane %v20384_v10, %v18293_v15 }
0x3151   :  { %17650 = verf.f32 %v11874_v42 }
0x3152   :  { %17652 = verf.f32 %v11876_v47 }
0x3159   :  { %v17647_v17 = vpop.eup %17646 }
0x315a   :  { %v17649_v48 = vpop.eup %17648  ;;  %v11881_v14 = vadd.f32 1.0, %v17647_v17 }
0x315b   :  { %v17651_v25 = vpop.eup %17650  ;;  %v11883_v7 = vadd.f32 1.0, %v17649_v48 }
0x315c   :  { %v17653_v49 = vpop.eup %17652  ;;  %v11882_v39 = vadd.f32 1.0, %v17651_v25  ;;  %v11885_v23 = vmul.f32 %v11881_v14, %v11869_v32 }
0x315d   :  { %v11884_v51 = vadd.f32 1.0, %v17653_v49  ;;  %v11887_v60 = vmul.f32 %v11883_v7, %v11871_v50  ;;  %v17264_v49 = vld [vmem:[%s20572_s5 + $0x4] ss:$16 sps:$4 sm:$0xff]   ;;  %v17262_v50 = vld [vmem:[%s20572_s5] ss:$16 sps:$4 sm:$0xff]  }
0x315e   :  { %v11886_v21 = vmul.f32 %v11882_v39, %v11870_v36  ;;  %v11889_v38 = vpack.c.bf16 %v11885_v23, %v11885_v23  ;;  %v17265_v36 = vld [vmem:[%s20572_s5 + $0x8] ss:$16 sps:$4 sm:$0xff]   ;;  %12598 = vmatprep.subr.bf16.mxu1 %v17264_v49  ;;  %v17270_v39 = vld [vmem:[%s20572_s5 + $0x24] ss:$16 sps:$4 sm:$0xff]   ;;  %v17273_v23 = vld [vmem:[%s20572_s5 + $0x2c] ss:$16 sps:$4 sm:$0xff]  }
0x315f   :  { %v11888_v44 = vmul.f32 %v11884_v51, %v11872_v22  ;;  %v11891_v63 = vpack.c.bf16 %v11887_v60, %v11887_v60  ;;  %v17268_v22 = vld [vmem:[%s20572_s5 + $0x20] ss:$16 sps:$4 sm:$0xff]   ;;  %v17271_v51 = vld [vmem:[%s20572_s5 + $0x28] ss:$16 sps:$4 sm:$0xff]   ;;  %v17276_v60 = vld [vmem:[%s20572_s5 + $0x44] ss:$16 sps:$4 sm:$0xff]  }
0x3160   :  { %v11890_v61 = vpack.c.bf16 %v11886_v21, %v11886_v21  ;;  %v17279_v21 = vld [vmem:[%s20572_s5 + $0x4c] ss:$16 sps:$4 sm:$0xff]  }
0x3161   :  { %v11892_v12 = vpack.c.bf16 %v11888_v44, %v11888_v44  ;;  %v17274_v44 = vld [vmem:[%s20572_s5 + $0x40] ss:$16 sps:$4 sm:$0xff]  }
0x3162   :  { %12186 = vmatprep.mubr.bf16.mxu0 %v11890_v61  ;;  %v17277_v61 = vld [vmem:[%s20572_s5 + $0x48] ss:$16 sps:$4 sm:$0xff]   ;;  %v17323_v49 = vld [vmem:[#allocation16 + $0xd8] sm:$0xff]  }
0x3163   :  { %12226 = vmatprep.mubr.bf16.mxu1 %v11892_v12  ;;  %12187 = vmatmul.mubr.bf16.vlgmr.msra.gmra.mrb[124].mxu0 %v11889_v38  ;;  %v17282_v38 = vld [vmem:[%s20572_s5 + $0x64] ss:$16 sps:$4 sm:$0xff]   ;;  %v17285_v12 = vld [vmem:[%s20572_s5 + $0x6c] ss:$16 sps:$4 sm:$0xff]  }
0x3164   :  { %12227 = vmatmul.mubr.bf16.vlgmr.msra.gmra.mrb[136].mxu1 %v11891_v63  ;;  %15831 = vmatprep.mubr.msk.bf16.mxu0 %vm17969_vm8, %v17968_v18  ;;  %v17280_v63 = vld [vmem:[%s20572_s5 + $0x60] ss:$16 sps:$4 sm:$0xff]  }
0x3165   :  { %12630 = vmatprep.mubr.bf16.mxu1 %v17967_v35  ;;  %15816 = vmatpush3.bf16.msra.mxu0 %v17254_v6  ;;  %v17304_v6 = vld [vmem:[%s20572_s5 + $0xe0] ss:$16 sps:$4 sm:$0xff]  }
0x3166   :  { %15817 = vmatprep.subr.bf16.mxu0 %v17968_v18  ;;  %12599 = vmatpush1.bf16.msra.mxu1 %v17262_v50  ;;  %v17325_v50 = vld [vmem:[#allocation16 + $0x98] sm:$0xff]  }
0x3167   :  { %12600 = vmatprep.subr.bf16.mxu1 %v17270_v39  ;;  %v17327_v39 = vld [vmem:[#allocation16 + $0xe0] sm:$0xff]  }
0x3169   :  { %15818 = vmatpush3.bf16.msra.mxu0 %v17255_v56  ;;  %v17307_v56 = vld [vmem:[%s20572_s5 + $0xe8] ss:$16 sps:$4 sm:$0xff]  }
0x316a   :  { %15819 = vmatprep.subr.bf16.mxu0 %v17968_v18  ;;  %12601 = vmatpush1.bf16.msra.mxu1 %v17268_v22  ;;  %v17329_v22 = vld [vmem:[#allocation16 + $0xa0] sm:$0xff]  }
0x316b   :  { %12602 = vmatprep.subr.bf16.mxu1 %v17276_v60  ;;  %v17331_v60 = vld [vmem:[#allocation16 + $0xe8] sm:$0xff]  }
0x316d   :  { %15820 = vmatpush3.bf16.msra.mxu0 %v17256_v9  ;;  %v17310_v9 = vld [vmem:[#allocation16 + $0x40] sm:$0xff]  }
0x316e   :  { %15821 = vmatprep.subr.bf16.mxu0 %v17968_v18  ;;  %12603 = vmatpush1.bf16.msra.mxu1 %v17274_v44  ;;  %v17333_v44 = vld [vmem:[#allocation16 + $0xa8] sm:$0xff]  }
0x316f   :  { %12604 = vmatprep.subr.bf16.mxu1 %v17282_v38  ;;  %v17335_v38 = vld [vmem:[#allocation16 + $0xf0] sm:$0xff]  }
0x3171   :  { %15822 = vmatpush3.bf16.msra.mxu0 %v17257_v11  ;;  %v17311_v11 = vld [vmem:[#allocation16 + $0xc0] sm:$0xff]  }
0x3172   :  { %15823 = vmatprep.subr.bf16.mxu0 %v17968_v18  ;;  %12605 = vmatpush1.bf16.msra.mxu1 %v17280_v63  ;;  %v17337_v63 = vld [vmem:[#allocation16 + $0xb0] sm:$0xff]  }
0x3175   :  { %15824 = vmatpush3.bf16.msra.mxu0 %v17258_v13 }
0x3176   :  { %15825 = vmatprep.subr.bf16.mxu0 %v17968_v18 }
0x3236   :  { %v15677_v0 = vpop.f32.mrb[124].mxu0 }
0x3237   :  { %v15699_v1 = vpop.f32.mrb[136].mxu1  ;;  %v15678_v52 = vpop.f32.mrb[125].mxu0 }
0x3238   :  { %v15679_v40 = vadd.f32 %v15678_v52, %v15677_v0  ;;  %v15700_v46 = vpop.f32.mrb[137].mxu1  ;;  %v15680_v41 = vpop.f32.mrb[126].mxu0  ;;  %v17283_v0 = vld [vmem:[%s20572_s5 + $0x68] ss:$16 sps:$4 sm:$0xff]  }
0x3239   :  { %v15701_v31 = vadd.f32 %v15700_v46, %v15699_v1  ;;  %v15702_v33 = vpop.f32.mrb[138].mxu1  ;;  %v15681_v53 = vpop.f32.mrb[127].mxu0  ;;  %v17288_v1 = vld [vmem:[%s20572_s5 + $0x84] ss:$16 sps:$4 sm:$0xff]   ;;  %v17289_v52 = vld [vmem:[%s20572_s5 + $0x88] ss:$16 sps:$4 sm:$0xff]  }
0x323a   :  { %v12189_v54 = vadd.f32 %v15679_v40, %v11961_v62  ;;  %v15703_v19 = vpop.f32.mrb[139].mxu1  ;;  %v17286_v62 = vld [vmem:[%s20572_s5 + $0x80] ss:$16 sps:$4 sm:$0xff]   ;;  %v17291_v40 = vld [vmem:[%s20572_s5 + $0x8c] ss:$16 sps:$4 sm:$0xff]   ;;  %12606 = vmatprep.subr.bf16.mxu1 %v17288_v1 }
0x323b   :  { %v17294_v46 = vld [vmem:[%s20572_s5 + $0xa4] ss:$16 sps:$4 sm:$0xff]   ;;  %v17297_v41 = vld [vmem:[%s20572_s5 + $0xac] ss:$16 sps:$4 sm:$0xff]   ;;  %12607 = vmatpush1.bf16.msra.mxu1 %v17286_v62  ;;  %v17295_v33 = vld [vmem:[%s20572_s5 + $0xa8] ss:$16 sps:$4 sm:$0xff]  }
0x323c   :  { %v12229_v55 = vadd.f32 %v15701_v31, %v12189_v54  ;;  %v17292_v31 = vld [vmem:[%s20572_s5 + $0xa0] ss:$16 sps:$4 sm:$0xff]   ;;  %12608 = vmatprep.subr.bf16.mxu1 %v17294_v46  ;;  %v17300_v53 = vld [vmem:[%s20572_s5 + $0xc4] ss:$16 sps:$4 sm:$0xff]   ;;  %v17303_v54 = vld [vmem:[%s20572_s5 + $0xcc] ss:$16 sps:$4 sm:$0xff]  }
0x323d   :  { %v17298_v19 = vld [vmem:[%s20572_s5 + $0xc0] ss:$16 sps:$4 sm:$0xff]  }
0x323e   :  { %v12234_v16 = vadd.f32 %v12229_v55, %v20356_v24  ;;  %v17259_v24 = vld [vmem:[#allocation14 + $0x28] sm:$0xff]   ;;  %v17301_v55 = vld [vmem:[%s20572_s5 + $0xc8] ss:$16 sps:$4 sm:$0xff]   ;;  %v17339_v62 = vld [vmem:[#allocation16 + $0xf8] sm:$0xff]  }
0x323f   :  { %15826 = vmatpush3.bf16.msra.mxu0 %v17259_v24  ;;  %12609 = vmatpush1.bf16.msra.mxu1 %v17292_v31  ;;  %v17340_v1 = vld [vmem:[#allocation16 + $0x38] sm:$0xff]  }
0x3240   :  { %v12241_v5 = vmul.f32 %v12234_v16, %v12234_v16  ;;  %15827 = vmatprep.subr.bf16.mxu0 %v17968_v18  ;;  %v12240_v34 = vmul.f32 %v12239_v30, %v12234_v16  ;;  %12610 = vmatprep.subr.bf16.mxu1 %v17300_v53  ;;  %v17312_v30 = vld [vmem:[#allocation16] sm:$0xff]  }
0x3242   :  { %12242 = vadd.xlane.f32.xlu0 %v12241_v5  ;;  %v17309_v5 = vld [vmem:[%s20572_s5 + $0xec] ss:$16 sps:$4 sm:$0xff]  }
0x3243   :  { %15828 = vmatpush3.bf16.msra.mxu0 %v17260_v26  ;;  %12611 = vmatpush1.bf16.msra.mxu1 %v17298_v19 }
0x3244   :  { %15829 = vmatprep.subr.bf16.mxu0 %v17968_v18 }
0x3247   :  { %15830 = vmatpush3.bf16.msra.mxu0 %v17261_v27 }
0x32cf   :  { %v12243_v28 = vpop.xlane.xlu0 %12242 }
0x32d0   :  { %v12244_v59 = vadd.f32 1e-06, %v12243_v28 }
0x32d2   :  { %17654 = vrsqrt.f32 %v12244_v59  ;;  %vm12247_vm2 = vcmp.eq.f32.partialorder %v12244_v59, inf  ;;  %v12250_v4 = vand.u32 2147483648, %v12244_v59  ;;  %vm12249_vm3 = vcmp.eq.f32.partialorder %v12244_v59, 0.0 }
0x32dc   :  { %v17655_v29 = vpop.eup %17654 }
0x32dd   :  { %v12246_v58 = vmul.f32 %v17655_v29, %v12244_v59 }
0x32df   :  { %v12248_v57 = vsel %vm12247_vm2, %v12244_v59, %v12246_v58  ;;  %v12368_v58 = vrot.slane %v20384_v10, %v18273_v2 }
0x32e0   :  { %v12251_v20 = vsel %vm12249_vm3, %v12250_v4, %v12248_v57 }
0x32e1   :  { %17656 = vrcp.f32 %v12251_v20 }
0x32eb   :  { %v17657_v37 = vpop.eup %17656 }
0x32ec   :  { %v12253_v42 = vmul.f32 %v17657_v37, %v12240_v34  ;;  %v17313_v34 = vld [vmem:[#allocation16 + $0x80] sm:$0xff]  }
0x32ee   :  { %v12254_v47 = vpack.c.bf16 %v12253_v42, %v12253_v42  ;;  %v17314_v42 = vld [vmem:[#allocation16 + $0x48] sm:$0xff]  }
0x32f0   :  { %15832 = vmatmul.mubr.bf16.vlgmr.msra.gmra.mrb[128].mxu0 %v12254_v47  ;;  %v17315_v47 = vld [vmem:[#allocation16 + $0xc8] sm:$0xff]  }
0x32f1   :  { %12671 = vmatprep.mubr.bf16.mxu0 %v17967_v35  ;;  %v17267_v35 = vld [vmem:[%s20572_s5 + $0xc] ss:$16 sps:$4 sm:$0xff]  }
0x32f2   :  { %12639 = vmatprep.subr.bf16.mxu0 %v17267_v35  ;;  %v17324_v35 = vld [vmem:[#allocation16 + $0x18] sm:$0xff]  }
0x32f3   :  { %12640 = vmatpush1.bf16.msra.mxu0 %v17265_v36  ;;  %v17326_v36 = vld [vmem:[#allocation16 + $0x60] sm:$0xff]  }
0x32f4   :  { %12641 = vmatprep.subr.bf16.mxu0 %v17273_v23  ;;  %v17328_v23 = vld [vmem:[#allocation16 + $0x20] sm:$0xff]  }
0x32f7   :  { %12642 = vmatpush1.bf16.msra.mxu0 %v17271_v51  ;;  %v17330_v51 = vld [vmem:[#allocation16 + $0x68] sm:$0xff]  }
0x32f8   :  { %12643 = vmatprep.subr.bf16.mxu0 %v17279_v21  ;;  %v17332_v21 = vld [vmem:[#allocation16 + $0x28] sm:$0xff]  }
0x32fb   :  { %12644 = vmatpush1.bf16.msra.mxu0 %v17277_v61  ;;  %v17334_v61 = vld [vmem:[#allocation16 + $0x70] sm:$0xff]  }
0x32fc   :  { %12645 = vmatprep.subr.bf16.mxu0 %v17285_v12  ;;  %v17336_v12 = vld [vmem:[#allocation16 + $0x30] sm:$0xff]  }
0x32ff   :  { %12646 = vmatpush1.bf16.msra.mxu0 %v17283_v0  ;;  %v17338_v0 = vld [vmem:[#allocation16 + $0x78] sm:$0xff]  }
0x3300   :  { %12647 = vmatprep.subr.bf16.mxu0 %v17291_v40  ;;  %v12416_v40 = vld [vmem:[#allocation19] sm:$0xf] }
0x3301   :  { %v12421_v46 = vrot.slane %v12416_v40, %v18275_v3  ;;  %v12425_v31 = vrot.slane %v12416_v40, %v18293_v15 }
0x3303   :  { %12648 = vmatpush1.bf16.msra.mxu0 %v17289_v52  ;;  %v17341_v52 = vld [vmem:[#allocation16 + $0xb8] sm:$0xff]  }
0x3304   :  { %12649 = vmatprep.subr.bf16.mxu0 %v17297_v41  ;;  %v12429_v41 = vrot.slane %v12416_v40, %v18273_v2 }
0x3307   :  { %12650 = vmatpush1.bf16.msra.mxu0 %v17295_v33  ;;  %v12433_v33 = vrot.slane %v12416_v40, %v18282_v8 }
0x3308   :  { %12651 = vmatprep.subr.bf16.mxu0 %v17303_v54 }
0x330b   :  { %12652 = vmatpush1.bf16.msra.mxu0 %v17301_v55 }
0x330c   :  { %12653 = vmatprep.subr.bf16.mxu0 %v17309_v5 }
0x330f   :  { %12654 = vmatpush1.bf16.msra.mxu0 %v17307_v56 }
0x3310   :  { %15736 = vmatprep.subr.bf16.mxu0 %v17311_v11 }
0x33c3   :  { %v12353_v45 = vpop.f32.mrb[128].mxu0 }
0x33c4   :  { %v12359_v17 = vadd.f32 %v12353_v45, %v12234_v16  ;;  %v15833_v48 = vpop.f32.mrb[129].mxu0  ;;  %v17306_v16 = vld [vmem:[%s20572_s5 + $0xe4] ss:$16 sps:$4 sm:$0xff]   ;;  %v17317_v45 = vld [vmem:[#allocation16 + $0x88] sm:$0xff]  }
0x33c5   :  { %v12356_v14 = vpop.f32.mrb[130].mxu0  ;;  %12612 = vmatprep.subr.bf16.mxu1 %v17306_v16  ;;  %v17319_v48 = vld [vmem:[#allocation16 + $0xd0] sm:$0xff]  }
0x33c6   :  { %v20391_v25 = vadd.f32 %v12363_v43, %v12359_v17  ;;  %v15834_v32 = vpop.f32.mrb[131].mxu0  ;;  %12613 = vmatpush1.bf16.msra.mxu1 %v17304_v6  ;;  %v17316_v43 = vld [vmem:[#allocation16 + $0x8] sm:$0xff]   ;;  %v17318_v17 = vld [vmem:[#allocation16 + $0x50] sm:$0xff]  }
0x33c7   :  { %15714 = vmatprep.subr.bf16.mxu1 %v17310_v9  ;;  %v17320_v14 = vld [vmem:[#allocation16 + $0x10] sm:$0xff]  }
0x33c8   :  { %v12370_v7 = vmul.f32 %v20391_v25, %v20391_v25  ;;  %v12369_v4 = vmul.f32 %v12368_v58, %v20391_v25  ;;  %v17321_v32 = vld [vmem:[#allocation16 + $0x90] sm:$0xff]  }
0x33ca   :  { %12371 = vadd.xlane.f32.xlu1 %v12370_v7  ;;  %v17322_v7 = vld [vmem:[#allocation16 + $0x58] sm:$0xff]  }
0x3457   :  { %v12372_v13 = vpop.xlane.xlu1 %12371 }
0x3458   :  { %v12373_v24 = vadd.f32 1e-06, %v12372_v13 }
0x345a   :  { %17658 = vrsqrt.f32 %v12373_v24  ;;  %vm12376_vm4 = vcmp.eq.f32.partialorder %v12373_v24, inf  ;;  %v12379_v28 = vand.u32 2147483648, %v12373_v24  ;;  %vm12378_vm5 = vcmp.eq.f32.partialorder %v12373_v24, 0.0 }
0x3464   :  { %v17659_v26 = vpop.eup %17658 }
0x3465   :  { %v12375_v27 = vmul.f32 %v17659_v26, %v12373_v24 }
0x3467   :  { %v12377_v59 = vsel %vm12376_vm4, %v12373_v24, %v12375_v27 }
0x3468   :  { %v12380_v29 = vsel %vm12378_vm5, %v12379_v28, %v12377_v59 }
0x3469   :  { %17660 = vrcp.f32 %v12380_v29 }
0x3473   :  { %v17661_v57 = vpop.eup %17660 }
0x3474   :  { %v12382_v20 = vmul.f32 %v17661_v57, %v12369_v4 }
0x3476   :  { %v12383_v37 = vpack.c.bf16 %v12382_v20, %v12382_v20 }
0x3478   :  { %12631 = vmatmul.mubr.bf16.vlgmr.msra.gmra.mrb[140].mxu1 %v12383_v37  ;;  %12672 = vmatmul.mubr.bf16.vlgmr.msra.gmra.mrb[132].mxu0 %v12383_v37 }
0x3479   :  { %15715 = vmatpush3.bf16.msra.mxu1 %v17312_v30  ;;  %15737 = vmatpush3.bf16.msra.mxu0 %v17313_v34 }
0x347a   :  { %15716 = vmatprep.subr.bf16.mxu1 %v17314_v42  ;;  %15738 = vmatprep.subr.bf16.mxu0 %v17315_v47 }
0x347d   :  { %15717 = vmatpush3.bf16.msra.mxu1 %v17316_v43  ;;  %15739 = vmatpush3.bf16.msra.mxu0 %v17317_v45 }
0x347e   :  { %15718 = vmatprep.subr.bf16.mxu1 %v17318_v17  ;;  %15740 = vmatprep.subr.bf16.mxu0 %v17319_v48 }
0x3481   :  { %15719 = vmatpush3.bf16.msra.mxu1 %v17320_v14  ;;  %15741 = vmatpush3.bf16.msra.mxu0 %v17321_v32  ;;  %v17342_v14 = vld [vmem:[#allocation20] sm:$0xff]  }
0x3482   :  { %15720 = vmatprep.subr.bf16.mxu1 %v17322_v7  ;;  %15742 = vmatprep.subr.bf16.mxu0 %v17323_v49 }
0x3485   :  { %15721 = vmatpush3.bf16.msra.mxu1 %v17324_v35  ;;  %15743 = vmatpush3.bf16.msra.mxu0 %v17325_v50  ;;  %v17343_v35 = vld [vmem:[#allocation20 + $0x8] sm:$0xff]   ;;  %v17344_v50 = vld [vmem:[#allocation20 + $0x10] sm:$0xff]  }
0x3486   :  { %15722 = vmatprep.subr.bf16.mxu1 %v17326_v36  ;;  %15744 = vmatprep.subr.bf16.mxu0 %v17327_v39  ;;  %v17345_v36 = vld [vmem:[#allocation20 + $0x18] sm:$0xff]   ;;  %v17346_v39 = vld [vmem:[#allocation20 + $0x20] sm:$0xff]  }
0x3489   :  { %15723 = vmatpush3.bf16.msra.mxu1 %v17328_v23  ;;  %15745 = vmatpush3.bf16.msra.mxu0 %v17329_v22  ;;  %v17347_v23 = vld [vmem:[#allocation20 + $0x28] sm:$0xff]   ;;  %v17348_v22 = vld [vmem:[#allocation20 + $0x30] sm:$0xff]  }
0x348a   :  { %15724 = vmatprep.subr.bf16.mxu1 %v17330_v51  ;;  %15746 = vmatprep.subr.bf16.mxu0 %v17331_v60  ;;  %v17349_v51 = vld [vmem:[#allocation20 + $0x38] sm:$0xff]  }
0x348d   :  { %15725 = vmatpush3.bf16.msra.mxu1 %v17332_v21  ;;  %15747 = vmatpush3.bf16.msra.mxu0 %v17333_v44  ;;  %v12771_v21 = vrot.slane %v20384_v10, %v18282_v8 }
0x348e   :  { %15726 = vmatprep.subr.bf16.mxu1 %v17334_v61  ;;  %15748 = vmatprep.subr.bf16.mxu0 %v17335_v38 }
0x3491   :  { %15727 = vmatpush3.bf16.msra.mxu1 %v17336_v12  ;;  %15749 = vmatpush3.bf16.msra.mxu0 %v17337_v63 }
0x3492   :  { %15728 = vmatprep.subr.bf16.mxu1 %v17338_v0  ;;  %15750 = vmatprep.subr.bf16.mxu0 %v17339_v62 }
0x3495   :  { %15729 = vmatpush3.bf16.msra.mxu1 %v17340_v1  ;;  %15751 = vmatpush3.bf16.msra.mxu0 %v17341_v52 }
0x3496   :  { %15835 = vmatprep.subr.bf16.mxu1 %v17968_v18 }
0x354b   :  { %v12632_v53 = vpop.f32.mrb[140].mxu1  ;;  %v12673_v54 = vpop.f32.mrb[132].mxu0 }
0x354c   :  { %v12633_v19 = vadd.f32 %v12632_v53, %v12421_v46  ;;  %v12674_v55 = vadd.f32 %v12673_v54, %v12429_v41  ;;  %v12634_v16 = vpop.f32.mrb[141].mxu1  ;;  %v12675_v5 = vpop.f32.mrb[133].mxu0 }
0x354d   :  { %v12635_v6 = vadd.f32 %v12634_v16, %v12425_v31  ;;  %v12676_v56 = vadd.f32 %v12675_v5, %v12433_v33  ;;  %v12636_v9 = vpop.f32.mrb[142].mxu1  ;;  %v12677_v11 = vpop.f32.mrb[134].mxu0  ;;  %v15018_v31 = vld [vmem:[%s20573_s6] ss:$0 sm:$0xff] }
0x354e   :  { %v12684_v13 = vmul.f32 0.70710677, %v12633_v19  ;;  %v12686_v24 = vmul.f32 0.70710677, %v12674_v55  ;;  %v12637_v2 = vpop.f32.mrb[143].mxu1  ;;  %v12678_v27 = vpop.f32.mrb[135].mxu0 }
0x354f   :  { %v12685_v26 = vmul.f32 0.70710677, %v12635_v6  ;;  %v12687_v3 = vmul.f32 0.70710677, %v12676_v56  ;;  %v12680_v58 = vmul.f32 0.5, %v12633_v19  ;;  %v12682_v20 = vmul.f32 0.5, %v12674_v55 }
0x3550   :  { %17662 = verf.f32 %v12684_v13  ;;  %v12681_v30 = vmul.f32 0.5, %v12635_v6  ;;  %v12683_v42 = vmul.f32 0.5, %v12676_v56 }
0x3551   :  { %17664 = verf.f32 %v12686_v24 }
0x3552   :  { %17666 = verf.f32 %v12685_v26 }
0x3553   :  { %17668 = verf.f32 %v12687_v3 }
0x355a   :  { %v17663_v15 = vpop.eup %17662 }
0x355b   :  { %v17665_v28 = vpop.eup %17664  ;;  %v12692_v59 = vadd.f32 1.0, %v17663_v15 }
0x355c   :  { %v17667_v29 = vpop.eup %17666  ;;  %v12694_v4 = vadd.f32 1.0, %v17665_v28 }
0x355d   :  { %v17669_v57 = vpop.eup %17668  ;;  %v12693_v34 = vadd.f32 1.0, %v17667_v29  ;;  %v12696_v37 = vmul.f32 %v12692_v59, %v12680_v58 }
0x355e   :  { %v12695_v47 = vadd.f32 1.0, %v17669_v57  ;;  %v12698_v43 = vmul.f32 %v12694_v4, %v12682_v20 }
0x355f   :  { %v12697_v45 = vmul.f32 %v12693_v34, %v12681_v30  ;;  %v12700_v32 = vpack.c.bf16 %v12696_v37, %v12696_v37 }
0x3560   :  { %v12699_v17 = vmul.f32 %v12695_v47, %v12683_v42  ;;  %v12702_v49 = vpack.c.bf16 %v12698_v43, %v12698_v43 }
0x3561   :  { %v12701_v48 = vpack.c.bf16 %v12697_v45, %v12697_v45 }
0x3562   :  { %v12703_v7 = vpack.c.bf16 %v12699_v17, %v12699_v17 }
0x3563   :  { %12996 = vmatprep.mubr.bf16.mxu1 %v12701_v48 }
0x3564   :  { %13036 = vmatprep.mubr.bf16.mxu0 %v12703_v7  ;;  %12997 = vmatmul.mubr.bf16.vlgmr.msra.gmra.mrb[144].mxu1 %v12700_v32 }
0x3565   :  { %13037 = vmatmul.mubr.bf16.vlgmr.msra.gmra.mrb[136].mxu0 %v12702_v49  ;;  %15836 = vmatpush3.bf16.msra.mxu1 %v17342_v14 }
0x3566   :  { %15837 = vmatprep.subr.bf16.mxu1 %v17968_v18  ;;  %15851 = vmatprep.mubr.msk.bf16.mxu1 %vm17969_vm8, %v17968_v18 }
0x3569   :  { %15838 = vmatpush3.bf16.msra.mxu1 %v17343_v35 }
0x356a   :  { %15839 = vmatprep.subr.bf16.mxu1 %v17968_v18 }
0x356d   :  { %15840 = vmatpush3.bf16.msra.mxu1 %v17344_v50 }
0x356e   :  { %15841 = vmatprep.subr.bf16.mxu1 %v17968_v18 }
0x3571   :  { %15842 = vmatpush3.bf16.msra.mxu1 %v17345_v36 }
0x3572   :  { %15843 = vmatprep.subr.bf16.mxu1 %v17968_v18 }
0x3575   :  { %15844 = vmatpush3.bf16.msra.mxu1 %v17346_v39 }
0x3576   :  { %15845 = vmatprep.subr.bf16.mxu1 %v17968_v18 }
0x3579   :  { %15846 = vmatpush3.bf16.msra.mxu1 %v17347_v23 }
0x357a   :  { %15847 = vmatprep.subr.bf16.mxu1 %v17968_v18 }
0x357d   :  { %15848 = vmatpush3.bf16.msra.mxu1 %v17348_v22 }
0x357e   :  { %15849 = vmatprep.subr.bf16.mxu1 %v17968_v18 }
0x3581   :  { %15850 = vmatpush3.bf16.msra.mxu1 %v17349_v51 }
0x3637   :  { %v15730_v60 = vpop.f32.mrb[144].mxu1 }
0x3638   :  { %v15752_v44 = vpop.f32.mrb[136].mxu0  ;;  %v15731_v61 = vpop.f32.mrb[145].mxu1 }
0x3639   :  { %v15732_v38 = vadd.f32 %v15731_v61, %v15730_v60  ;;  %v15753_v12 = vpop.f32.mrb[137].mxu0  ;;  %v15733_v63 = vpop.f32.mrb[146].mxu1 }
0x363a   :  { %v15754_v0 = vadd.f32 %v15753_v12, %v15752_v44  ;;  %v15755_v62 = vpop.f32.mrb[138].mxu0  ;;  %v15734_v1 = vpop.f32.mrb[147].mxu1 }
0x363b   :  { %v12999_v52 = vadd.f32 %v15732_v38, %v12771_v21  ;;  %v15756_v40 = vpop.f32.mrb[139].mxu0 }
0x363d   :  { %v13039_v46 = vadd.f32 %v15754_v0, %v12999_v52 }
0x363f   :  { %v13044_v41 = vadd.f32 %v13039_v46, %v20391_v25 }
0x3641   :  { %v13049_v18 = vpack.c.bf16 %v13044_v41, %v13044_v41 }
0x3643   :  { %15852 = vmatmul.mubr.bf16.vlgmr.msra.gmra.mrb[148].mxu1 %v13049_v18 }
0x3716   :  { %v13155_v8 = vpop.f32.mrb[148].mxu1 }
0x3717   :  { %v13156_v10 = vadd.f32 %v15018_v31, %v13155_v8  ;;  %v15853_v33 = vpop.f32.mrb[149].mxu1 }
0x3718   :  { %v13158_v53 = vpop.f32.mrb[150].mxu1 }
0x3719   :  { %13161 = vst [vmem:[%s20574_s19] sm:$0xff] %v13156_v10  ;;  %v15854_v54 = vpop.f32.mrb[151].mxu1 }
0x371a   :  { %13166 = vsyncpa [#allocation4], 1 }
0x371b   :  { %13167 = vsyncpa [#allocation6], 1 }
0x371c   :  { %13168 = vsyncpa [#allocation9], 1 }
0x371d   :  { %13169 = vsyncpa [#allocation12], 1 }
0x371e   :  { %13170 = vsyncpa [#allocation15], 1 }
0x371f   :  { %13171 = vsyncpa [#allocation18], 1 }
0x3720   :  { %13172 = vsyncpa [#allocation21], 1 }

</bundles_post_ra>
